<compile_context>
chip_gen: v7x
topology: tpu7x:2x2x1
jax: 0.10.0
libtpu: 0.0.40
codegen_flags: <defaults>
</compile_context>

<pallas_src>
import jax
import jax.numpy as jnp
from jax import lax
from jax.experimental import pallas as pl
from jax.experimental.pallas import tpu as pltpu

BN_EPS = 1e-5
LANES = 128  # TPU lane width: Cout / matmul-N dimension is padded to this


def _split_hi_lo(a_f32):
    """Split an f32 array into bf16 (hi, lo) such that a ~= hi + lo."""
    hi = a_f32.astype(jnp.bfloat16)
    lo = (a_f32 - hi.astype(jnp.float32)).astype(jnp.bfloat16)
    return hi, lo


def _residual_block_kernel(x_ref, w1h_ref, w1l_ref, w2h_ref, w2l_ref,
                           g1_ref, b1_ref, g2_ref, b2_ref,
                           o_ref, xpad_ref):
    """Fully fused ResidualBlock forward.

    x_ref                : (N, H, W, Cp)   input, channels zero-padded to Cp
    w*h_ref / w*l_ref    : (9*C, Cp) bf16  conv weights, dense-K im2col matrix,
                                           split into bf16 hi/lo parts
    g*/b*_ref            : (1, Cp)         BN gamma / beta (zero-padded)
    o_ref                : (N, H, W, Cp)   output
    xpad_ref             : (N, H+2, W+2, C) spatially padded activation scratch
                                           (reused for both conv stages)
    """
    N, H, W, Cp = x_ref.shape
    C = xpad_ref.shape[-1]          # true channel count (un-padded)
    NHW = N * H * W
    inv_n = 1.0 / float(NHW)

    # ---- halo-only zeroing: 4 thin slabs, written once, reused by both stages.
    zrow = jnp.zeros((N, 1, W + 2, C), jnp.float32)
    zcol = jnp.zeros((N, H + 2, 1, C), jnp.float32)
    xpad_ref[:, 0:1, :, :] = zrow
    xpad_ref[:, H + 1:H + 2, :, :] = zrow
    xpad_ref[:, :, 0:1, :] = zcol
    xpad_ref[:, :, W + 1:W + 2, :] = zcol

    def conv3x3(wh_ref, wl_ref):
        # Dense im2col (K = 9*C): taps packed contiguously in channels.
        # Only 3 sublane-shifted loads (one per dx); dy offsets are free
        # major-dim slices of those values.  Column order (dx, dy, ci) matches
        # the weight-row order produced by prep_w() in the wrapper.
        cols = []
        for dx in range(3):
            sh = xpad_ref[:, :, dx:dx + W, :]            # (N, H+2, W, C)
            for dy in range(3):
                cols.append(sh[:, dy:dy + H].reshape(NHW, C))
        col = jnp.concatenate(cols, axis=-1)             # (NHW, 9*C) f32
        # bf16x3: bf16 MXU inputs, f32 accumulation, lo@lo dropped (~2^-18 rel).
        ch, cl = _split_hi_lo(col)
        y = jnp.dot(ch, wh_ref[...], preferred_element_type=jnp.float32)
        y = y + jnp.dot(ch, wl_ref[...], preferred_element_type=jnp.float32)
        y = y + jnp.dot(cl, wh_ref[...], preferred_element_type=jnp.float32)
        return y                                         # (NHW, Cp) f32

    def bn_scale_shift(y, gamma, beta):
        # Two-pass (mean, then centered sum-of-squares) batch statistics:
        # avoids the E[y^2]-E[y]^2 cancellation risk.  BN (+ cancelled conv
        # bias) folds into a single per-channel FMA.
        mean = jnp.sum(y, axis=0, keepdims=True) * inv_n           # (1, Cp)
        d = y - mean
        var = jnp.sum(d * d, axis=0, keepdims=True) * inv_n        # (1, Cp)
        scale = gamma * lax.rsqrt(var + BN_EPS)
        shift = beta - mean * scale
        return scale, shift

    # ---- stage 1: conv1 + bn1 + relu (conv bias cancelled by BN mean subtraction)
    xpad_ref[:, 1:H + 1, 1:W + 1, :] = x_ref[:, :, :, :C]
    y1 = conv3x3(w1h_ref, w1l_ref)
    s1, t1 = bn_scale_shift(y1, g1_ref[...], b1_ref[...])
    h = jnp.maximum(y1 * s1 + t1, 0.0)                   # (NHW, Cp)

    # ---- stage 2: conv2 + bn2 + residual + relu.  xpad_ref is reused (halo and
    #      padded channels are still zero); the residual comes from the already-
    #      resident input block (no second HBM read of x).
    xpad_ref[:, 1:H + 1, 1:W + 1, :] = h.reshape(N, H, W, Cp)[:, :, :, :C]
    y2 = conv3x3(w2h_ref, w2l_ref)
    s2, t2 = bn_scale_shift(y2, g2_ref[...], b2_ref[...])
    res = x_ref[...].reshape(NHW, Cp)
    out = jnp.maximum(y2 * s2 + t2 + res, 0.0)
    o_ref[...] = out.reshape(N, H, W, Cp).astype(o_ref.dtype)


def _full_spec(shape):
    nd = len(shape)
    return pl.BlockSpec(shape, lambda *_, nd=nd: (0,) * nd)


def residual_block(x_nchw, params):
    """Pallas implementation of ResidualBlock.forward. Input/output are NCHW."""
    N, C, H, W = x_nchw.shape
    Cp = ((C + LANES - 1) // LANES) * LANES

    # Layout glue: NCHW -> NHWC, channels padded to lane width so the residual
    # add / BN / output stores are lane-dense.
    # TODO(synk): if the surrounding model is NHWC-native, drop this
    # transpose/pad (each is a separate XLA HBM pass at real shapes).
    x = jnp.transpose(x_nchw, (0, 2, 3, 1)).astype(jnp.float32)
    x = jnp.pad(x, ((0, 0), (0, 0), (0, 0), (0, Cp - C)))

    def prep_w(w_oihw):
        # OIHW -> (kx, ky, ci, co) -> dense-K (9*C, Cp) im2col matrix, matching
        # the kernel's (dx outer, dy middle, ci inner) column order; Cout is
        # padded to the lane width; split into bf16 hi/lo for bf16x3 matmuls.
        # NOTE(item 9): for real Cout>=256, widen the output tile to 256 to
        # fill the v6e/v7x 256-wide MXU; irrelevant at Cout<=128.
        w = jnp.transpose(w_oihw, (3, 2, 1, 0))          # (kx, ky, Cin, Cout)
        w = w.reshape(9 * C, C).astype(jnp.float32)
        w = jnp.pad(w, ((0, 0), (0, Cp - C)))
        return _split_hi_lo(w)

    def prep_v(v):                                       # (C,) -> (1, Cp)
        return jnp.pad(v, (0, Cp - C)).reshape(1, Cp).astype(jnp.float32)

    w1h, w1l = prep_w(params["w1"])
    w2h, w2l = prep_w(params["w2"])
    g1, be1 = prep_v(params["g1"]), prep_v(params["beta1"])
    g2, be2 = prep_v(params["g2"]), prep_v(params["beta2"])
    # NOTE: conv biases b1/b2 are mathematically cancelled by the BatchNorm
    # mean subtraction, so they are not passed to (or computed in) the kernel.

    inputs = [x, w1h, w1l, w2h, w2l, g1, be1, g2, be2]

    out = pl.pallas_call(
        _residual_block_kernel,
        grid=(1,),  # fully fused, global batch-stat BN; see TODO(synk) above
        in_specs=[_full_spec(a.shape) for a in inputs],
        out_specs=_full_spec((N, H, W, Cp)),
        out_shape=jax.ShapeDtypeStruct((N, H, W, Cp), jnp.float32),
        scratch_shapes=[
            pltpu.VMEM((N, H + 2, W + 2, C), jnp.float32),  # padded activation (reused)
        ],
        compiler_params=pltpu.CompilerParams(
            dimension_semantics=("arbitrary",),
            # Safe on all generations at these shapes; tune per-chip (larger on
            # v5e/v6e's 128 MiB, ~48 MiB cap on v7x) once the grid is tiled.
            vmem_limit_bytes=32 * 1024 * 1024,
        ),
    )(*inputs)

    out = out[..., :C]                                   # drop padded channels
    return jnp.transpose(out, (0, 3, 1, 2)).astype(x_nchw.dtype)  # NHWC -> NCHW


def _ref_residual_block(x_nchw, params):
    """Pure-JAX reference mirroring the PyTorch training-mode forward exactly
    (including the conv biases, which the kernel provably omits)."""
    def conv(x, w, b):
        y = lax.conv_general_dilated(
            x, w, window_strides=(1, 1), padding=((1, 1), (1, 1)),
            dimension_numbers=("NCHW", "OIHW", "NCHW"))
        return y + b[None, :, None, None]

    def bn(x, g, be):
        mean = x.mean(axis=(0, 2, 3), keepdims=True)
        var = ((x - mean) ** 2).mean(axis=(0, 2, 3), keepdims=True)
        return ((x - mean) / jnp.sqrt(var + BN_EPS)) * g[None, :, None, None] \
            + be[None, :, None, None]

    out = jax.nn.relu(bn(conv(x_nchw, params["w1"], params["b1"]),
                         params["g1"], params["beta1"]))
    out = bn(conv(out, params["w2"], params["b2"]),
             params["g2"], params["beta2"])
    return jax.nn.relu(out + x_nchw)


if __name__ == "__main__":
    N, C, HW = 2, 4, 16
    key = jax.random.PRNGKey(0)
    ks = jax.random.split(key, 7)
    # Deterministic synthetic parameters (shapes match nn.Conv2d / nn.BatchNorm2d).
    params = {
        "w1": 0.1 * jax.random.normal(ks[0], (C, C, 3, 3), jnp.float32),  # OIHW
        "b1": 0.1 * jax.random.normal(ks[1], (C,), jnp.float32),
        "w2": 0.1 * jax.random.normal(ks[2], (C, C, 3, 3), jnp.float32),
        "b2": 0.1 * jax.random.normal(ks[3], (C,), jnp.float32),
        "g1": jnp.ones((C,), jnp.float32),         # BN default weight = 1
        "beta1": jnp.zeros((C,), jnp.float32),     # BN default bias   = 0
        "g2": 1.0 + 0.1 * jax.random.normal(ks[4], (C,), jnp.float32),
        "beta2": 0.1 * jax.random.normal(ks[5], (C,), jnp.float32),
    }
    x = jax.random.normal(ks[6], (N, C, HW, HW), jnp.float32)

    out = jax.jit(residual_block)(x, params)
    out = jax.block_until_ready(out)

    ref = _ref_residual_block(x, params)
    assert out.shape == ref.shape == (N, C, HW, HW)
    max_err = float(jnp.max(jnp.abs(out - ref)))
    assert jnp.allclose(out, ref, rtol=1e-3, atol=1e-3), max_err
    print("KERNEL_OK")
</pallas_src>

<mosaic_0001>
module attributes {stable_mosaic.version = 11 : i64} {
  func.func @_residual_block_kernel(%arg0: i32, %arg1: memref<2x16x16x128xf32, #tpu.memory_space<vmem>>, %arg2: memref<36x128xbf16, #tpu.memory_space<vmem>>, %arg3: memref<36x128xbf16, #tpu.memory_space<vmem>>, %arg4: memref<36x128xbf16, #tpu.memory_space<vmem>>, %arg5: memref<36x128xbf16, #tpu.memory_space<vmem>>, %arg6: memref<1x128xf32, #tpu.memory_space<vmem>>, %arg7: memref<1x128xf32, #tpu.memory_space<vmem>>, %arg8: memref<1x128xf32, #tpu.memory_space<vmem>>, %arg9: memref<1x128xf32, #tpu.memory_space<vmem>>, %arg10: memref<2x16x16x128xf32, #tpu.memory_space<vmem>>, %arg11: memref<2x18x18x4xf32, #tpu.memory_space<vmem>>) attributes {dimension_semantics = [#tpu.dimension_semantics<arbitrary>], iteration_bounds = array<i64: 1>, scalar_prefetch = 0 : i64, scratch_operands = 1 : i64, tpu.core_type = #tpu.core_type<tc>, window_params = [{pipeline_mode = #tpu.pipeline_mode<synchronous>, transform_indices = @transform_0, window_bounds = array<i64: 2, 16, 16, 128>}, {pipeline_mode = #tpu.pipeline_mode<synchronous>, transform_indices = @transform_1, window_bounds = array<i64: 36, 128>}, {pipeline_mode = #tpu.pipeline_mode<synchronous>, transform_indices = @transform_2, window_bounds = array<i64: 36, 128>}, {pipeline_mode = #tpu.pipeline_mode<synchronous>, transform_indices = @transform_3, window_bounds = array<i64: 36, 128>}, {pipeline_mode = #tpu.pipeline_mode<synchronous>, transform_indices = @transform_4, window_bounds = array<i64: 36, 128>}, {pipeline_mode = #tpu.pipeline_mode<synchronous>, transform_indices = @transform_5, window_bounds = array<i64: 1, 128>}, {pipeline_mode = #tpu.pipeline_mode<synchronous>, transform_indices = @transform_6, window_bounds = array<i64: 1, 128>}, {pipeline_mode = #tpu.pipeline_mode<synchronous>, transform_indices = @transform_7, window_bounds = array<i64: 1, 128>}, {pipeline_mode = #tpu.pipeline_mode<synchronous>, transform_indices = @transform_8, window_bounds = array<i64: 1, 128>}, {pipeline_mode = #tpu.pipeline_mode<synchronous>, transform_indices = @transform_9, window_bounds = array<i64: 2, 16, 16, 128>}]} {
    %cst = arith.constant 0.000000e+00 : f32
    %0 = vector.broadcast %cst : f32 to vector<2x1x18x4xf32>
    %cst_0 = arith.constant 0.000000e+00 : f32
    %1 = vector.broadcast %cst_0 : f32 to vector<2x18x1x4xf32>
    %c0 = arith.constant 0 : index
    %c0_1 = arith.constant 0 : index
    %c0_2 = arith.constant 0 : index
    %c0_3 = arith.constant 0 : index
    %2 = vector.load %arg11[%c0, %c0_1, %c0_2, %c0_3] : memref<2x18x18x4xf32, #tpu.memory_space<vmem>>, vector<2x1x18x4xf32>
    tpu.vector_store %arg11[%c0, %c0_1, %c0_2, %c0_3], %0 {strides = array<i32>} : memref<2x18x18x4xf32, #tpu.memory_space<vmem>>, vector<2x1x18x4xf32>,
    %c0_4 = arith.constant 0 : index
    %c17 = arith.constant 17 : index
    %c0_5 = arith.constant 0 : index
    %c0_6 = arith.constant 0 : index
    %3 = vector.load %arg11[%c0_4, %c17, %c0_5, %c0_6] : memref<2x18x18x4xf32, #tpu.memory_space<vmem>>, vector<2x1x18x4xf32>
    tpu.vector_store %arg11[%c0_4, %c17, %c0_5, %c0_6], %0 {strides = array<i32>} : memref<2x18x18x4xf32, #tpu.memory_space<vmem>>, vector<2x1x18x4xf32>,
    %c0_7 = arith.constant 0 : index
    %c0_8 = arith.constant 0 : index
    %c0_9 = arith.constant 0 : index
    %c0_10 = arith.constant 0 : index
    %4 = vector.load %arg11[%c0_7, %c0_8, %c0_9, %c0_10] : memref<2x18x18x4xf32, #tpu.memory_space<vmem>>, vector<2x18x1x4xf32>
    tpu.vector_store %arg11[%c0_7, %c0_8, %c0_9, %c0_10], %1 {strides = array<i32>} : memref<2x18x18x4xf32, #tpu.memory_space<vmem>>, vector<2x18x1x4xf32>,
    %c0_11 = arith.constant 0 : index
    %c0_12 = arith.constant 0 : index
    %c17_13 = arith.constant 17 : index
    %c0_14 = arith.constant 0 : index
    %5 = vector.load %arg11[%c0_11, %c0_12, %c17_13, %c0_14] : memref<2x18x18x4xf32, #tpu.memory_space<vmem>>, vector<2x18x1x4xf32>
    tpu.vector_store %arg11[%c0_11, %c0_12, %c17_13, %c0_14], %1 {strides = array<i32>} : memref<2x18x18x4xf32, #tpu.memory_space<vmem>>, vector<2x18x1x4xf32>,
    %c0_15 = arith.constant 0 : index
    %c0_16 = arith.constant 0 : index
    %c0_17 = arith.constant 0 : index
    %c0_18 = arith.constant 0 : index
    %6 = vector.load %arg1[%c0_15, %c0_16, %c0_17, %c0_18] : memref<2x16x16x128xf32, #tpu.memory_space<vmem>>, vector<2x16x16x4xf32>
    %c0_19 = arith.constant 0 : index
    %c1 = arith.constant 1 : index
    %c1_20 = arith.constant 1 : index
    %c0_21 = arith.constant 0 : index
    %7 = vector.load %arg11[%c0_19, %c1, %c1_20, %c0_21] : memref<2x18x18x4xf32, #tpu.memory_space<vmem>>, vector<2x16x16x4xf32>
    tpu.vector_store %arg11[%c0_19, %c1, %c1_20, %c0_21], %6 {strides = array<i32>} : memref<2x18x18x4xf32, #tpu.memory_space<vmem>>, vector<2x16x16x4xf32>,
    %c0_22 = arith.constant 0 : index
    %c0_23 = arith.constant 0 : index
    %c0_24 = arith.constant 0 : index
    %c0_25 = arith.constant 0 : index
    %8 = vector.load %arg11[%c0_22, %c0_23, %c0_24, %c0_25] : memref<2x18x18x4xf32, #tpu.memory_space<vmem>>, vector<2x18x16x4xf32>
    %9 = vector.extract_strided_slice %8 {offsets = [0, 0, 0, 0], sizes = [2, 16, 16, 4], strides = [1, 1, 1, 1]} : vector<2x18x16x4xf32> to vector<2x16x16x4xf32>
    %10 = vector.shape_cast %9 : vector<2x16x16x4xf32> to vector<512x4xf32>
    %11 = vector.extract_strided_slice %8 {offsets = [0, 1, 0, 0], sizes = [2, 16, 16, 4], strides = [1, 1, 1, 1]} : vector<2x18x16x4xf32> to vector<2x16x16x4xf32>
    %12 = vector.shape_cast %11 : vector<2x16x16x4xf32> to vector<512x4xf32>
    %13 = vector.extract_strided_slice %8 {offsets = [0, 2, 0, 0], sizes = [2, 16, 16, 4], strides = [1, 1, 1, 1]} : vector<2x18x16x4xf32> to vector<2x16x16x4xf32>
    %14 = vector.shape_cast %13 : vector<2x16x16x4xf32> to vector<512x4xf32>
    %c0_26 = arith.constant 0 : index
    %c0_27 = arith.constant 0 : index
    %c1_28 = arith.constant 1 : index
    %c0_29 = arith.constant 0 : index
    %15 = vector.load %arg11[%c0_26, %c0_27, %c1_28, %c0_29] : memref<2x18x18x4xf32, #tpu.memory_space<vmem>>, vector<2x18x16x4xf32>
    %16 = vector.extract_strided_slice %15 {offsets = [0, 0, 0, 0], sizes = [2, 16, 16, 4], strides = [1, 1, 1, 1]} : vector<2x18x16x4xf32> to vector<2x16x16x4xf32>
    %17 = vector.shape_cast %16 : vector<2x16x16x4xf32> to vector<512x4xf32>
    %18 = vector.extract_strided_slice %15 {offsets = [0, 1, 0, 0], sizes = [2, 16, 16, 4], strides = [1, 1, 1, 1]} : vector<2x18x16x4xf32> to vector<2x16x16x4xf32>
    %19 = vector.shape_cast %18 : vector<2x16x16x4xf32> to vector<512x4xf32>
    %20 = vector.extract_strided_slice %15 {offsets = [0, 2, 0, 0], sizes = [2, 16, 16, 4], strides = [1, 1, 1, 1]} : vector<2x18x16x4xf32> to vector<2x16x16x4xf32>
    %21 = vector.shape_cast %20 : vector<2x16x16x4xf32> to vector<512x4xf32>
    %c0_30 = arith.constant 0 : index
    %c0_31 = arith.constant 0 : index
    %c2 = arith.constant 2 : index
    %c0_32 = arith.constant 0 : index
    %22 = vector.load %arg11[%c0_30, %c0_31, %c2, %c0_32] : memref<2x18x18x4xf32, #tpu.memory_space<vmem>>, vector<2x18x16x4xf32>
    %23 = vector.extract_strided_slice %22 {offsets = [0, 0, 0, 0], sizes = [2, 16, 16, 4], strides = [1, 1, 1, 1]} : vector<2x18x16x4xf32> to vector<2x16x16x4xf32>
    %24 = vector.shape_cast %23 : vector<2x16x16x4xf32> to vector<512x4xf32>
    %25 = vector.extract_strided_slice %22 {offsets = [0, 1, 0, 0], sizes = [2, 16, 16, 4], strides = [1, 1, 1, 1]} : vector<2x18x16x4xf32> to vector<2x16x16x4xf32>
    %26 = vector.shape_cast %25 : vector<2x16x16x4xf32> to vector<512x4xf32>
    %27 = vector.extract_strided_slice %22 {offsets = [0, 2, 0, 0], sizes = [2, 16, 16, 4], strides = [1, 1, 1, 1]} : vector<2x18x16x4xf32> to vector<2x16x16x4xf32>
    %28 = vector.shape_cast %27 : vector<2x16x16x4xf32> to vector<512x4xf32>
    %29 = tpu.concatenate %10, %12, %14, %17, %19, %21, %24, %26, %28 in 1 : vector<512x4xf32>, vector<512x4xf32>, vector<512x4xf32>, vector<512x4xf32>, vector<512x4xf32>, vector<512x4xf32>, vector<512x4xf32>, vector<512x4xf32>, vector<512x4xf32> -> vector<512x36xf32>
    %30 = arith.truncf %29 : vector<512x36xf32> to vector<512x36xbf16>
    %31 = arith.extf %30 : vector<512x36xbf16> to vector<512x36xf32>
    %32 = arith.subf %29, %31 : vector<512x36xf32>
    %33 = arith.truncf %32 : vector<512x36xf32> to vector<512x36xbf16>
    %c0_33 = arith.constant 0 : index
    %c0_34 = arith.constant 0 : index
    %34 = vector.load %arg2[%c0_33, %c0_34] : memref<36x128xbf16, #tpu.memory_space<vmem>>, vector<36x128xbf16>
    %cst_35 = arith.constant dense<0.000000e+00> : vector<512x128xf32>
    %35 = tpu.matmul %30, %34, %cst_35 {dimension_numbers = #tpu.dot_dimension_numbers<[1], [0], [0], [1], [0, 0, 1, 1], [], []>} : vector<512x36xbf16>, vector<36x128xbf16>, vector<512x128xf32> -> vector<512x128xf32>
    %c0_36 = arith.constant 0 : index
    %c0_37 = arith.constant 0 : index
    %36 = vector.load %arg3[%c0_36, %c0_37] : memref<36x128xbf16, #tpu.memory_space<vmem>>, vector<36x128xbf16>
    %cst_38 = arith.constant dense<0.000000e+00> : vector<512x128xf32>
    %37 = tpu.matmul %30, %36, %cst_38 {dimension_numbers = #tpu.dot_dimension_numbers<[1], [0], [0], [1], [0, 0, 1, 1], [], []>} : vector<512x36xbf16>, vector<36x128xbf16>, vector<512x128xf32> -> vector<512x128xf32>
    %38 = arith.addf %35, %37 : vector<512x128xf32>
    %c0_39 = arith.constant 0 : index
    %c0_40 = arith.constant 0 : index
    %39 = vector.load %arg2[%c0_39, %c0_40] : memref<36x128xbf16, #tpu.memory_space<vmem>>, vector<36x128xbf16>
    %cst_41 = arith.constant dense<0.000000e+00> : vector<512x128xf32>
    %40 = tpu.matmul %33, %39, %cst_41 {dimension_numbers = #tpu.dot_dimension_numbers<[1], [0], [0], [1], [0, 0, 1, 1], [], []>} : vector<512x36xbf16>, vector<36x128xbf16>, vector<512x128xf32> -> vector<512x128xf32>
    %41 = arith.addf %38, %40 : vector<512x128xf32>
    %c0_42 = arith.constant 0 : index
    %c0_43 = arith.constant 0 : index
    %42 = vector.load %arg6[%c0_42, %c0_43] : memref<1x128xf32, #tpu.memory_space<vmem>>, vector<1x128xf32>
    %c0_44 = arith.constant 0 : index
    %c0_45 = arith.constant 0 : index
    %43 = vector.load %arg7[%c0_44, %c0_45] : memref<1x128xf32, #tpu.memory_space<vmem>>, vector<1x128xf32>
    %cst_46 = arith.constant dense<0.000000e+00> : vector<128xf32>
    %44 = vector.multi_reduction <add>, %41, %cst_46 [0] : vector<512x128xf32> to vector<128xf32>
    %45 = vector.shape_cast %44 : vector<128xf32> to vector<1x128xf32>
    %cst_47 = arith.constant 0.001953125 : f32
    %46 = vector.broadcast %cst_47 : f32 to vector<1x128xf32>
    %47 = arith.mulf %45, %46 : vector<1x128xf32>
    %48 = vector.broadcast %47 : vector<1x128xf32> to vector<512x128xf32>
    %49 = arith.subf %41, %48 : vector<512x128xf32>
    %50 = arith.mulf %49, %49 : vector<512x128xf32>
    %cst_48 = arith.constant dense<0.000000e+00> : vector<128xf32>
    %51 = vector.multi_reduction <add>, %50, %cst_48 [0] : vector<512x128xf32> to vector<128xf32>
    %52 = vector.shape_cast %51 : vector<128xf32> to vector<1x128xf32>
    %cst_49 = arith.constant 0.001953125 : f32
    %53 = vector.broadcast %cst_49 : f32 to vector<1x128xf32>
    %54 = arith.mulf %52, %53 : vector<1x128xf32>
    %cst_50 = arith.constant 9.99999974E-6 : f32
    %55 = vector.broadcast %cst_50 : f32 to vector<1x128xf32>
    %56 = arith.addf %54, %55 : vector<1x128xf32>
    %57 = math.rsqrt %56 : vector<1x128xf32>
    %58 = arith.mulf %42, %57 : vector<1x128xf32>
    %59 = arith.mulf %47, %58 : vector<1x128xf32>
    %60 = arith.subf %43, %59 : vector<1x128xf32>
    %61 = vector.broadcast %58 : vector<1x128xf32> to vector<512x128xf32>
    %62 = arith.mulf %41, %61 : vector<512x128xf32>
    %63 = vector.broadcast %60 : vector<1x128xf32> to vector<512x128xf32>
    %64 = arith.addf %62, %63 : vector<512x128xf32>
    %cst_51 = arith.constant 0.000000e+00 : f32
    %65 = vector.broadcast %cst_51 : f32 to vector<512x128xf32>
    %66 = arith.maximumf %64, %65 : vector<512x128xf32>
    %67 = vector.shape_cast %66 : vector<512x128xf32> to vector<2x16x16x128xf32>
    %68 = vector.extract_strided_slice %67 {offsets = [0, 0, 0, 0], sizes = [2, 16, 16, 4], strides = [1, 1, 1, 1]} : vector<2x16x16x128xf32> to vector<2x16x16x4xf32>
    %c0_52 = arith.constant 0 : index
    %c1_53 = arith.constant 1 : index
    %c1_54 = arith.constant 1 : index
    %c0_55 = arith.constant 0 : index
    %69 = vector.load %arg11[%c0_52, %c1_53, %c1_54, %c0_55] : memref<2x18x18x4xf32, #tpu.memory_space<vmem>>, vector<2x16x16x4xf32>
    tpu.vector_store %arg11[%c0_52, %c1_53, %c1_54, %c0_55], %68 {strides = array<i32>} : memref<2x18x18x4xf32, #tpu.memory_space<vmem>>, vector<2x16x16x4xf32>,
    %c0_56 = arith.constant 0 : index
    %c0_57 = arith.constant 0 : index
    %c0_58 = arith.constant 0 : index
    %c0_59 = arith.constant 0 : index
    %70 = vector.load %arg11[%c0_56, %c0_57, %c0_58, %c0_59] : memref<2x18x18x4xf32, #tpu.memory_space<vmem>>, vector<2x18x16x4xf32>
    %71 = vector.extract_strided_slice %70 {offsets = [0, 0, 0, 0], sizes = [2, 16, 16, 4], strides = [1, 1, 1, 1]} : vector<2x18x16x4xf32> to vector<2x16x16x4xf32>
    %72 = vector.shape_cast %71 : vector<2x16x16x4xf32> to vector<512x4xf32>
    %73 = vector.extract_strided_slice %70 {offsets = [0, 1, 0, 0], sizes = [2, 16, 16, 4], strides = [1, 1, 1, 1]} : vector<2x18x16x4xf32> to vector<2x16x16x4xf32>
    %74 = vector.shape_cast %73 : vector<2x16x16x4xf32> to vector<512x4xf32>
    %75 = vector.extract_strided_slice %70 {offsets = [0, 2, 0, 0], sizes = [2, 16, 16, 4], strides = [1, 1, 1, 1]} : vector<2x18x16x4xf32> to vector<2x16x16x4xf32>
    %76 = vector.shape_cast %75 : vector<2x16x16x4xf32> to vector<512x4xf32>
    %c0_60 = arith.constant 0 : index
    %c0_61 = arith.constant 0 : index
    %c1_62 = arith.constant 1 : index
    %c0_63 = arith.constant 0 : index
    %77 = vector.load %arg11[%c0_60, %c0_61, %c1_62, %c0_63] : memref<2x18x18x4xf32, #tpu.memory_space<vmem>>, vector<2x18x16x4xf32>
    %78 = vector.extract_strided_slice %77 {offsets = [0, 0, 0, 0], sizes = [2, 16, 16, 4], strides = [1, 1, 1, 1]} : vector<2x18x16x4xf32> to vector<2x16x16x4xf32>
    %79 = vector.shape_cast %78 : vector<2x16x16x4xf32> to vector<512x4xf32>
    %80 = vector.extract_strided_slice %77 {offsets = [0, 1, 0, 0], sizes = [2, 16, 16, 4], strides = [1, 1, 1, 1]} : vector<2x18x16x4xf32> to vector<2x16x16x4xf32>
    %81 = vector.shape_cast %80 : vector<2x16x16x4xf32> to vector<512x4xf32>
    %82 = vector.extract_strided_slice %77 {offsets = [0, 2, 0, 0], sizes = [2, 16, 16, 4], strides = [1, 1, 1, 1]} : vector<2x18x16x4xf32> to vector<2x16x16x4xf32>
    %83 = vector.shape_cast %82 : vector<2x16x16x4xf32> to vector<512x4xf32>
    %c0_64 = arith.constant 0 : index
    %c0_65 = arith.constant 0 : index
    %c2_66 = arith.constant 2 : index
    %c0_67 = arith.constant 0 : index
    %84 = vector.load %arg11[%c0_64, %c0_65, %c2_66, %c0_67] : memref<2x18x18x4xf32, #tpu.memory_space<vmem>>, vector<2x18x16x4xf32>
    %85 = vector.extract_strided_slice %84 {offsets = [0, 0, 0, 0], sizes = [2, 16, 16, 4], strides = [1, 1, 1, 1]} : vector<2x18x16x4xf32> to vector<2x16x16x4xf32>
    %86 = vector.shape_cast %85 : vector<2x16x16x4xf32> to vector<512x4xf32>
    %87 = vector.extract_strided_slice %84 {offsets = [0, 1, 0, 0], sizes = [2, 16, 16, 4], strides = [1, 1, 1, 1]} : vector<2x18x16x4xf32> to vector<2x16x16x4xf32>
    %88 = vector.shape_cast %87 : vector<2x16x16x4xf32> to vector<512x4xf32>
    %89 = vector.extract_strided_slice %84 {offsets = [0, 2, 0, 0], sizes = [2, 16, 16, 4], strides = [1, 1, 1, 1]} : vector<2x18x16x4xf32> to vector<2x16x16x4xf32>
    %90 = vector.shape_cast %89 : vector<2x16x16x4xf32> to vector<512x4xf32>
    %91 = tpu.concatenate %72, %74, %76, %79, %81, %83, %86, %88, %90 in 1 : vector<512x4xf32>, vector<512x4xf32>, vector<512x4xf32>, vector<512x4xf32>, vector<512x4xf32>, vector<512x4xf32>, vector<512x4xf32>, vector<512x4xf32>, vector<512x4xf32> -> vector<512x36xf32>
    %92 = arith.truncf %91 : vector<512x36xf32> to vector<512x36xbf16>
    %93 = arith.extf %92 : vector<512x36xbf16> to vector<512x36xf32>
    %94 = arith.subf %91, %93 : vector<512x36xf32>
    %95 = arith.truncf %94 : vector<512x36xf32> to vector<512x36xbf16>
    %c0_68 = arith.constant 0 : index
    %c0_69 = arith.constant 0 : index
    %96 = vector.load %arg4[%c0_68, %c0_69] : memref<36x128xbf16, #tpu.memory_space<vmem>>, vector<36x128xbf16>
    %cst_70 = arith.constant dense<0.000000e+00> : vector<512x128xf32>
    %97 = tpu.matmul %92, %96, %cst_70 {dimension_numbers = #tpu.dot_dimension_numbers<[1], [0], [0], [1], [0, 0, 1, 1], [], []>} : vector<512x36xbf16>, vector<36x128xbf16>, vector<512x128xf32> -> vector<512x128xf32>
    %c0_71 = arith.constant 0 : index
    %c0_72 = arith.constant 0 : index
    %98 = vector.load %arg5[%c0_71, %c0_72] : memref<36x128xbf16, #tpu.memory_space<vmem>>, vector<36x128xbf16>
    %cst_73 = arith.constant dense<0.000000e+00> : vector<512x128xf32>
    %99 = tpu.matmul %92, %98, %cst_73 {dimension_numbers = #tpu.dot_dimension_numbers<[1], [0], [0], [1], [0, 0, 1, 1], [], []>} : vector<512x36xbf16>, vector<36x128xbf16>, vector<512x128xf32> -> vector<512x128xf32>
    %100 = arith.addf %97, %99 : vector<512x128xf32>
    %c0_74 = arith.constant 0 : index
    %c0_75 = arith.constant 0 : index
    %101 = vector.load %arg4[%c0_74, %c0_75] : memref<36x128xbf16, #tpu.memory_space<vmem>>, vector<36x128xbf16>
    %cst_76 = arith.constant dense<0.000000e+00> : vector<512x128xf32>
    %102 = tpu.matmul %95, %101, %cst_76 {dimension_numbers = #tpu.dot_dimension_numbers<[1], [0], [0], [1], [0, 0, 1, 1], [], []>} : vector<512x36xbf16>, vector<36x128xbf16>, vector<512x128xf32> -> vector<512x128xf32>
    %103 = arith.addf %100, %102 : vector<512x128xf32>
    %c0_77 = arith.constant 0 : index
    %c0_78 = arith.constant 0 : index
    %104 = vector.load %arg8[%c0_77, %c0_78] : memref<1x128xf32, #tpu.memory_space<vmem>>, vector<1x128xf32>
    %c0_79 = arith.constant 0 : index
    %c0_80 = arith.constant 0 : index
    %105 = vector.load %arg9[%c0_79, %c0_80] : memref<1x128xf32, #tpu.memory_space<vmem>>, vector<1x128xf32>
    %cst_81 = arith.constant dense<0.000000e+00> : vector<128xf32>
    %106 = vector.multi_reduction <add>, %103, %cst_81 [0] : vector<512x128xf32> to vector<128xf32>
    %107 = vector.shape_cast %106 : vector<128xf32> to vector<1x128xf32>
    %cst_82 = arith.constant 0.001953125 : f32
    %108 = vector.broadcast %cst_82 : f32 to vector<1x128xf32>
    %109 = arith.mulf %107, %108 : vector<1x128xf32>
    %110 = vector.broadcast %109 : vector<1x128xf32> to vector<512x128xf32>
    %111 = arith.subf %103, %110 : vector<512x128xf32>
    %112 = arith.mulf %111, %111 : vector<512x128xf32>
    %cst_83 = arith.constant dense<0.000000e+00> : vector<128xf32>
    %113 = vector.multi_reduction <add>, %112, %cst_83 [0] : vector<512x128xf32> to vector<128xf32>
    %114 = vector.shape_cast %113 : vector<128xf32> to vector<1x128xf32>
    %cst_84 = arith.constant 0.001953125 : f32
    %115 = vector.broadcast %cst_84 : f32 to vector<1x128xf32>
    %116 = arith.mulf %114, %115 : vector<1x128xf32>
    %cst_85 = arith.constant 9.99999974E-6 : f32
    %117 = vector.broadcast %cst_85 : f32 to vector<1x128xf32>
    %118 = arith.addf %116, %117 : vector<1x128xf32>
    %119 = math.rsqrt %118 : vector<1x128xf32>
    %120 = arith.mulf %104, %119 : vector<1x128xf32>
    %121 = arith.mulf %109, %120 : vector<1x128xf32>
    %122 = arith.subf %105, %121 : vector<1x128xf32>
    %c0_86 = arith.constant 0 : index
    %c0_87 = arith.constant 0 : index
    %c0_88 = arith.constant 0 : index
    %c0_89 = arith.constant 0 : index
    %123 = vector.load %arg1[%c0_86, %c0_87, %c0_88, %c0_89] : memref<2x16x16x128xf32, #tpu.memory_space<vmem>>, vector<2x16x16x128xf32>
    %124 = vector.shape_cast %123 : vector<2x16x16x128xf32> to vector<512x128xf32>
    %125 = vector.broadcast %120 : vector<1x128xf32> to vector<512x128xf32>
    %126 = arith.mulf %103, %125 : vector<512x128xf32>
    %127 = vector.broadcast %122 : vector<1x128xf32> to vector<512x128xf32>
    %128 = arith.addf %126, %127 : vector<512x128xf32>
    %129 = arith.addf %128, %124 : vector<512x128xf32>
    %cst_90 = arith.constant 0.000000e+00 : f32
    %130 = vector.broadcast %cst_90 : f32 to vector<512x128xf32>
    %131 = arith.maximumf %129, %130 : vector<512x128xf32>
    %132 = vector.shape_cast %131 : vector<512x128xf32> to vector<2x16x16x128xf32>
    %c0_91 = arith.constant 0 : index
    %c0_92 = arith.constant 0 : index
    %c0_93 = arith.constant 0 : index
    %c0_94 = arith.constant 0 : index
    %133 = vector.load %arg10[%c0_91, %c0_92, %c0_93, %c0_94] : memref<2x16x16x128xf32, #tpu.memory_space<vmem>>, vector<2x16x16x128xf32>
    tpu.vector_store %arg10[%c0_91, %c0_92, %c0_93, %c0_94], %132 {strides = array<i32>} : memref<2x16x16x128xf32, #tpu.memory_space<vmem>>, vector<2x16x16x128xf32>,
    return
  }
  func.func @transform_0(%arg0: i32) -> (i32, i32, i32, i32) {
    %c0_i32 = arith.constant 0 : i32
    %c0_i32_0 = arith.constant 0 : i32
    %c0_i32_1 = arith.constant 0 : i32
    %c0_i32_2 = arith.constant 0 : i32
    %c0_i32_3 = arith.constant 0 : i32
    return %c0_i32, %c0_i32_0, %c0_i32_1, %c0_i32_2 : i32, i32, i32, i32
  }
  func.func @transform_1(%arg0: i32) -> (i32, i32) {
    %c0_i32 = arith.constant 0 : i32
    %c0_i32_0 = arith.constant 0 : i32
    %c0_i32_1 = arith.constant 0 : i32
    return %c0_i32, %c0_i32_0 : i32, i32
  }
  func.func @transform_2(%arg0: i32) -> (i32, i32) {
    %c0_i32 = arith.constant 0 : i32
    %c0_i32_0 = arith.constant 0 : i32
    %c0_i32_1 = arith.constant 0 : i32
    return %c0_i32, %c0_i32_0 : i32, i32
  }
  func.func @transform_3(%arg0: i32) -> (i32, i32) {
    %c0_i32 = arith.constant 0 : i32
    %c0_i32_0 = arith.constant 0 : i32
    %c0_i32_1 = arith.constant 0 : i32
    return %c0_i32, %c0_i32_0 : i32, i32
  }
  func.func @transform_4(%arg0: i32) -> (i32, i32) {
    %c0_i32 = arith.constant 0 : i32
    %c0_i32_0 = arith.constant 0 : i32
    %c0_i32_1 = arith.constant 0 : i32
    return %c0_i32, %c0_i32_0 : i32, i32
  }
  func.func @transform_5(%arg0: i32) -> (i32, i32) {
    %c0_i32 = arith.constant 0 : i32
    %c0_i32_0 = arith.constant 0 : i32
    %c0_i32_1 = arith.constant 0 : i32
    return %c0_i32, %c0_i32_0 : i32, i32
  }
  func.func @transform_6(%arg0: i32) -> (i32, i32) {
    %c0_i32 = arith.constant 0 : i32
    %c0_i32_0 = arith.constant 0 : i32
    %c0_i32_1 = arith.constant 0 : i32
    return %c0_i32, %c0_i32_0 : i32, i32
  }
  func.func @transform_7(%arg0: i32) -> (i32, i32) {
    %c0_i32 = arith.constant 0 : i32
    %c0_i32_0 = arith.constant 0 : i32
    %c0_i32_1 = arith.constant 0 : i32
    return %c0_i32, %c0_i32_0 : i32, i32
  }
  func.func @transform_8(%arg0: i32) -> (i32, i32) {
    %c0_i32 = arith.constant 0 : i32
    %c0_i32_0 = arith.constant 0 : i32
    %c0_i32_1 = arith.constant 0 : i32
    return %c0_i32, %c0_i32_0 : i32, i32
  }
  func.func @transform_9(%arg0: i32) -> (i32, i32, i32, i32) {
    %c0_i32 = arith.constant 0 : i32
    %c0_i32_0 = arith.constant 0 : i32
    %c0_i32_1 = arith.constant 0 : i32
    %c0_i32_2 = arith.constant 0 : i32
    %c0_i32_3 = arith.constant 0 : i32
    return %c0_i32, %c0_i32_0, %c0_i32_1, %c0_i32_2 : i32, i32, i32, i32
  }
}

</mosaic_0001>

<bundles_post_ra>
// kernel: residual_block.1
= control target key start
LH: loop header
LB: loop body
LE: loop exit
PB: predicated region body
PF: predicated region fallthrough
CT: control target
= control target key end

     0   :  { %vm33_vm0 = vcmask 31744   ;;  %vm48_vm1 = vcmask 24576   ;;  %v10406_v0 = vmov 0.0   ;;  %s10407_s15 = smov 4   ;;  %vm36_vm2 = vcmask 25600   ;;  %s10408_s16 = smov 8   ;;  %s18880_s0 = inlined_call_operand.vmem [shape: f32[2,16,16,128], index: 0, kind: input, shape index: {}]   ;;  %s18881_s2 = inlined_call_operand.vmem [shape: bf16[36,128], index: 2, kind: input, shape index: {}]   ;;  %s18882_s1 = inlined_call_operand.vmem [shape: bf16[36,128], index: 1, kind: input, shape index: {}]   ;;  %s18883_s5 = inlined_call_operand.vmem [shape: f32[1,128], index: 5, kind: input, shape index: {}]   ;;  %s18884_s6 = inlined_call_operand.vmem [shape: f32[1,128], index: 6, kind: input, shape index: {}]   ;;  %s18885_s4 = inlined_call_operand.vmem [shape: bf16[36,128], index: 4, kind: input, shape index: {}]   ;;  %s18886_s3 = inlined_call_operand.vmem [shape: bf16[36,128], index: 3, kind: input, shape index: {}]   ;;  %s18887_s7 = inlined_call_operand.vmem [shape: f32[1,128], index: 7, kind: input, shape index: {}]   ;;  %s18888_s8 = inlined_call_operand.vmem [shape: f32[1,128], index: 8, kind: input, shape index: {}]   ;;  %s18889_s9 = inlined_call_operand.vmem [shape: f32[2,16,16,128], index: 9, kind: output, shape index: {}]  }
   0x1   :  { %51 = vst.msk [vmem:[#allocation2 + $0x30] sm:$0x1] %vm48_vm1, %v10406_v0  ;;  %v10470_v1 = vld [vmem:[%s18880_s0 + $0x10] sm:$0xff]  ;;  %50 = vst.msk [vmem:[#allocation2 + $0x18] sm:$0x1] %vm48_vm1, %v10406_v0  ;;  %v121_v2 = vld [vmem:[%s18880_s0] sm:$0xff] }
   0x2   :  { %34 = vst.msk [vmem:[#allocation2] sm:$0xff] %vm33_vm0, %v10406_v0  ;;  %35 = vst.msk [vmem:[#allocation2 + $0x8] sm:$0xff] %vm33_vm0, %v10406_v0  ;;  %v124_v3 = vld [vmem:[%s18880_s0 + $0x18] sm:$0xff]  ;;  %v122_v4 = vld [vmem:[%s18880_s0 + $0x8] sm:$0xff]  ;;  %s10409_s17 = smov 12   ;;  %s10410_s18 = smov 16  }
   0x3   :  { %38 = vst.msk [vmem:[#allocation2 + $0x1b0] sm:$0xff] %vm33_vm0, %v10406_v0  ;;  %39 = vst.msk [vmem:[#allocation2 + $0x1b8] sm:$0xff] %vm33_vm0, %v10406_v0  ;;  %v125_v5 = vld [vmem:[%s18880_s0 + $0x20] sm:$0xff]  ;;  %v126_v6 = vld [vmem:[%s18880_s0 + $0x28] sm:$0xff]  ;;  %s10411_s19 = smov 20   ;;  %s10412_s22 = smov 24  }
   0x4   :  { %42 = vst.msk [vmem:[#allocation2 + $0x198] sm:$0xff] %vm33_vm0, %v10406_v0  ;;  %43 = vst.msk [vmem:[#allocation2 + $0x1a0] sm:$0xff] %vm33_vm0, %v10406_v0  ;;  %v127_v7 = vld [vmem:[%s18880_s0 + $0x30] sm:$0xff]  ;;  %v128_v8 = vld [vmem:[%s18880_s0 + $0x38] sm:$0xff]  ;;  %vm3047_vm3 = vcmask 1041408   ;;  %s10413_s27 = smov 28  }
   0x5   :  { %45 = vst.msk [vmem:[#allocation2 + $0x348] sm:$0xff] %vm33_vm0, %v10406_v0  ;;  %46 = vst.msk [vmem:[#allocation2 + $0x350] sm:$0xff] %vm33_vm0, %v10406_v0  ;;  %v129_v9 = vld [vmem:[%s18880_s0 + $0x40] sm:$0xff]  ;;  %v130_v10 = vld [vmem:[%s18880_s0 + $0x48] sm:$0xff]  ;;  %vm2278_vm4 = vcmask 64512   ;;  %vm2343_vm5 = vcmask 97280  }
   0x6   :  { %52 = vst.msk [vmem:[#allocation2 + $0x48] sm:$0x1] %vm48_vm1, %v10406_v0  ;;  %53 = vst.msk [vmem:[#allocation2 + $0x60] sm:$0x1] %vm48_vm1, %v10406_v0  ;;  %v131_v11 = vld [vmem:[%s18880_s0 + $0x50] sm:$0xff]  ;;  %v132_v12 = vld [vmem:[%s18880_s0 + $0x58] sm:$0xff] }
   0x7   :  { %54 = vst.msk [vmem:[#allocation2 + $0x78] sm:$0x1] %vm48_vm1, %v10406_v0  ;;  %55 = vst.msk [vmem:[#allocation2 + $0x90] sm:$0x1] %vm48_vm1, %v10406_v0  ;;  %v133_v13 = vld [vmem:[%s18880_s0 + $0x60] sm:$0xff]  ;;  %v134_v14 = vld [vmem:[%s18880_s0 + $0x68] sm:$0xff] }
   0x8   :  { %56 = vst.msk [vmem:[#allocation2 + $0xa8] sm:$0x1] %vm48_vm1, %v10406_v0  ;;  %57 = vst.msk [vmem:[#allocation2 + $0xc0] sm:$0x1] %vm48_vm1, %v10406_v0  ;;  %v135_v15 = vld [vmem:[%s18880_s0 + $0x70] sm:$0xff]  ;;  %v136_v16 = vld [vmem:[%s18880_s0 + $0x78] sm:$0xff] }
   0x9   :  { %58 = vst.msk [vmem:[#allocation2 + $0xd8] sm:$0x1] %vm48_vm1, %v10406_v0  ;;  %59 = vst.msk [vmem:[#allocation2 + $0xf0] sm:$0x1] %vm48_vm1, %v10406_v0  ;;  %v137_v17 = vld [vmem:[%s18880_s0 + $0x80] sm:$0xff]  ;;  %v138_v18 = vld [vmem:[%s18880_s0 + $0x88] sm:$0xff] }
   0xa   :  { %60 = vst.msk [vmem:[#allocation2 + $0x108] sm:$0x1] %vm48_vm1, %v10406_v0  ;;  %61 = vst.msk [vmem:[#allocation2 + $0x120] sm:$0x1] %vm48_vm1, %v10406_v0  ;;  %v139_v19 = vld [vmem:[%s18880_s0 + $0x90] sm:$0xff]  ;;  %v140_v20 = vld [vmem:[%s18880_s0 + $0x98] sm:$0xff] }
   0xb   :  { %62 = vst.msk [vmem:[#allocation2 + $0x138] sm:$0x1] %vm48_vm1, %v10406_v0  ;;  %63 = vst.msk [vmem:[#allocation2 + $0x150] sm:$0x1] %vm48_vm1, %v10406_v0  ;;  %v141_v21 = vld [vmem:[%s18880_s0 + $0xa0] sm:$0xff]  ;;  %v142_v22 = vld [vmem:[%s18880_s0 + $0xa8] sm:$0xff] }
   0xc   :  { %64 = vst.msk [vmem:[#allocation2 + $0x168] sm:$0x1] %vm48_vm1, %v10406_v0  ;;  %65 = vst.msk [vmem:[#allocation2 + $0x180] sm:$0x1] %vm48_vm1, %v10406_v0  ;;  %v143_v23 = vld [vmem:[%s18880_s0 + $0xb0] sm:$0xff]  ;;  %v144_v24 = vld [vmem:[%s18880_s0 + $0xb8] sm:$0xff] }
   0xd   :  { %68 = vst.msk [vmem:[#allocation2 + $0x1c8] sm:$0x1] %vm48_vm1, %v10406_v0  ;;  %69 = vst.msk [vmem:[#allocation2 + $0x1e0] sm:$0x1] %vm48_vm1, %v10406_v0  ;;  %v145_v32 = vld [vmem:[%s18880_s0 + $0xc0] sm:$0xff]  ;;  %v146_v33 = vld [vmem:[%s18880_s0 + $0xc8] sm:$0xff] }
   0xe   :  { %70 = vst.msk [vmem:[#allocation2 + $0x1f8] sm:$0x1] %vm48_vm1, %v10406_v0  ;;  %71 = vst.msk [vmem:[#allocation2 + $0x210] sm:$0x1] %vm48_vm1, %v10406_v0  ;;  %v147_v34 = vld [vmem:[%s18880_s0 + $0xd0] sm:$0xff]  ;;  %v148_v36 = vld [vmem:[%s18880_s0 + $0xd8] sm:$0xff] }
   0xf   :  { %72 = vst.msk [vmem:[#allocation2 + $0x228] sm:$0x1] %vm48_vm1, %v10406_v0  ;;  %73 = vst.msk [vmem:[#allocation2 + $0x240] sm:$0x1] %vm48_vm1, %v10406_v0  ;;  %v149_v37 = vld [vmem:[%s18880_s0 + $0xe0] sm:$0xff]  ;;  %v150_v38 = vld [vmem:[%s18880_s0 + $0xe8] sm:$0xff] }
  0x10   :  { %74 = vst.msk [vmem:[#allocation2 + $0x258] sm:$0x1] %vm48_vm1, %v10406_v0  ;;  %75 = vst.msk [vmem:[#allocation2 + $0x270] sm:$0x1] %vm48_vm1, %v10406_v0  ;;  %v151_v39 = vld [vmem:[%s18880_s0 + $0xf0] sm:$0xff]  ;;  %v152_v40 = vld [vmem:[%s18880_s0 + $0xf8] sm:$0xff] }
  0x11   :  { %76 = vst.msk [vmem:[#allocation2 + $0x288] sm:$0x1] %vm48_vm1, %v10406_v0  ;;  %77 = vst.msk [vmem:[#allocation2 + $0x2a0] sm:$0x1] %vm48_vm1, %v10406_v0  ;;  %v153_v41 = vld [vmem:[%s18880_s0 + $0x100] sm:$0xff]  ;;  %v154_v42 = vld [vmem:[%s18880_s0 + $0x108] sm:$0xff] }
  0x12   :  { %78 = vst.msk [vmem:[#allocation2 + $0x2b8] sm:$0x1] %vm48_vm1, %v10406_v0  ;;  %79 = vst.msk [vmem:[#allocation2 + $0x2d0] sm:$0x1] %vm48_vm1, %v10406_v0  ;;  %v155_v43 = vld [vmem:[%s18880_s0 + $0x110] sm:$0xff]  ;;  %v156_v45 = vld [vmem:[%s18880_s0 + $0x118] sm:$0xff] }
  0x13   :  { %80 = vst.msk [vmem:[#allocation2 + $0x2e8] sm:$0x1] %vm48_vm1, %v10406_v0  ;;  %81 = vst.msk [vmem:[#allocation2 + $0x300] sm:$0x1] %vm48_vm1, %v10406_v0  ;;  %v157_v46 = vld [vmem:[%s18880_s0 + $0x120] sm:$0xff]  ;;  %v158_v47 = vld [vmem:[%s18880_s0 + $0x128] sm:$0xff] }
  0x14   :  { %82 = vst.msk [vmem:[#allocation2 + $0x318] sm:$0x1] %vm48_vm1, %v10406_v0  ;;  %83 = vst.msk [vmem:[#allocation2 + $0x330] sm:$0x1] %vm48_vm1, %v10406_v0  ;;  %v159_v49 = vld [vmem:[%s18880_s0 + $0x130] sm:$0xff]  ;;  %v160_v50 = vld [vmem:[%s18880_s0 + $0x138] sm:$0xff] }
  0x15   :  { %86 = vst.msk [vmem:[#allocation2 + $0x29] sm:$0x1] %vm48_vm1, %v10406_v0  ;;  %87 = vst.msk [vmem:[#allocation2 + $0x41] sm:$0x1] %vm48_vm1, %v10406_v0  ;;  %v161_v51 = vld [vmem:[%s18880_s0 + $0x140] sm:$0xff]  ;;  %v162_v52 = vld [vmem:[%s18880_s0 + $0x148] sm:$0xff] }
  0x16   :  { %88 = vst.msk [vmem:[#allocation2 + $0x59] sm:$0x1] %vm48_vm1, %v10406_v0  ;;  %89 = vst.msk [vmem:[#allocation2 + $0x71] sm:$0x1] %vm48_vm1, %v10406_v0  ;;  %v163_v53 = vld [vmem:[%s18880_s0 + $0x150] sm:$0xff]  ;;  %v164_v54 = vld [vmem:[%s18880_s0 + $0x158] sm:$0xff] }
  0x17   :  { %90 = vst.msk [vmem:[#allocation2 + $0x89] sm:$0x1] %vm48_vm1, %v10406_v0  ;;  %91 = vst.msk [vmem:[#allocation2 + $0xa1] sm:$0x1] %vm48_vm1, %v10406_v0  ;;  %v165_v55 = vld [vmem:[%s18880_s0 + $0x160] sm:$0xff]  ;;  %v166_v56 = vld [vmem:[%s18880_s0 + $0x168] sm:$0xff] }
  0x18   :  { %92 = vst.msk [vmem:[#allocation2 + $0xb9] sm:$0x1] %vm48_vm1, %v10406_v0  ;;  %93 = vst.msk [vmem:[#allocation2 + $0xd1] sm:$0x1] %vm48_vm1, %v10406_v0  ;;  %v167_v57 = vld [vmem:[%s18880_s0 + $0x170] sm:$0xff]  ;;  %v168_v60 = vld [vmem:[%s18880_s0 + $0x178] sm:$0xff] }
  0x19   :  { %94 = vst.msk [vmem:[#allocation2 + $0xe9] sm:$0x1] %vm48_vm1, %v10406_v0  ;;  %95 = vst.msk [vmem:[#allocation2 + $0x101] sm:$0x1] %vm48_vm1, %v10406_v0  ;;  %vm2408_vm6 = vcmask 130048   ;;  %vm2473_vm7 = vcmask 162816  }
  0x1a   :  { %96 = vst.msk [vmem:[#allocation2 + $0x119] sm:$0x1] %vm48_vm1, %v10406_v0  ;;  %97 = vst.msk [vmem:[#allocation2 + $0x131] sm:$0x1] %vm48_vm1, %v10406_v0  ;;  %vm2538_vm8 = vcmask 195584   ;;  %vm2603_vm9 = vcmask 228352  }
  0x1b   :  { %98 = vst.msk [vmem:[#allocation2 + $0x149] sm:$0x1] %vm48_vm1, %v10406_v0  ;;  %99 = vst.msk [vmem:[#allocation2 + $0x161] sm:$0x1] %vm48_vm1, %v10406_v0  ;;  %vm2668_vm10 = vcmask 261120   ;;  %vm2950_vm11 = vcmask 293888  }
  0x1c   :  { %100 = vst.msk [vmem:[#allocation2 + $0x179] sm:$0x1] %vm48_vm1, %v10406_v0  ;;  %101 = vst.msk [vmem:[#allocation2 + $0x191] sm:$0x1] %vm48_vm1, %v10406_v0 }
  0x1d   :  { %104 = vst.msk [vmem:[#allocation2 + $0x1d9] sm:$0x1] %vm48_vm1, %v10406_v0  ;;  %105 = vst.msk [vmem:[#allocation2 + $0x1f1] sm:$0x1] %vm48_vm1, %v10406_v0 }
  0x1e   :  { %106 = vst.msk [vmem:[#allocation2 + $0x209] sm:$0x1] %vm48_vm1, %v10406_v0  ;;  %107 = vst.msk [vmem:[#allocation2 + $0x221] sm:$0x1] %vm48_vm1, %v10406_v0 }
  0x1f   :  { %108 = vst.msk [vmem:[#allocation2 + $0x239] sm:$0x1] %vm48_vm1, %v10406_v0  ;;  %109 = vst.msk [vmem:[#allocation2 + $0x251] sm:$0x1] %vm48_vm1, %v10406_v0 }
  0x20   :  { %110 = vst.msk [vmem:[#allocation2 + $0x269] sm:$0x1] %vm48_vm1, %v10406_v0  ;;  %111 = vst.msk [vmem:[#allocation2 + $0x281] sm:$0x1] %vm48_vm1, %v10406_v0 }
  0x21   :  { %112 = vst.msk [vmem:[#allocation2 + $0x299] sm:$0x1] %vm48_vm1, %v10406_v0  ;;  %113 = vst.msk [vmem:[#allocation2 + $0x2b1] sm:$0x1] %vm48_vm1, %v10406_v0 }
  0x22   :  { %114 = vst.msk [vmem:[#allocation2 + $0x2c9] sm:$0x1] %vm48_vm1, %v10406_v0  ;;  %115 = vst.msk [vmem:[#allocation2 + $0x2e1] sm:$0x1] %vm48_vm1, %v10406_v0 }
  0x23   :  { %116 = vst.msk [vmem:[#allocation2 + $0x2f9] sm:$0x1] %vm48_vm1, %v10406_v0  ;;  %117 = vst.msk [vmem:[#allocation2 + $0x311] sm:$0x1] %vm48_vm1, %v10406_v0 }
  0x24   :  { %118 = vst.msk [vmem:[#allocation2 + $0x329] sm:$0x1] %vm48_vm1, %v10406_v0  ;;  %119 = vst.msk [vmem:[#allocation2 + $0x341] sm:$0x1] %vm48_vm1, %v10406_v0 }
  0x25   :  { %188 = vst.msk [vmem:[#allocation2 + $0x31] sm:$0xff] %vm33_vm0, %v10470_v1  ;;  %186 = vst.msk [vmem:[#allocation2 + $0x19] sm:$0xff] %vm33_vm0, %v121_v2  ;;  %v169_v1 = vld [vmem:[%s18880_s0 + $0x180] sm:$0xff]  ;;  %v170_v2 = vld [vmem:[%s18880_s0 + $0x188] sm:$0xff] }
  0x26   :  { %49 = vst.msk [vmem:[#allocation2] sm:$0x1] %vm48_vm1, %v10406_v0  ;;  %66 = vst.msk [vmem:[#allocation2 + $0x198] sm:$0x1] %vm48_vm1, %v10406_v0 }
  0x27   :  { %67 = vst.msk [vmem:[#allocation2 + $0x1b0] sm:$0x1] %vm48_vm1, %v10406_v0  ;;  %84 = vst.msk [vmem:[#allocation2 + $0x348] sm:$0x1] %vm48_vm1, %v10406_v0 }
  0x28   :  { %189 = vst.msk [vmem:[#allocation2 + $0x39] sm:$0xff] %vm33_vm0, %v124_v3  ;;  %187 = vst.msk [vmem:[#allocation2 + $0x21] sm:$0xff] %vm33_vm0, %v122_v4  ;;  %v171_v3 = vld [vmem:[%s18880_s0 + $0x190] sm:$0xff] }
  0x29   :  { %190 = vst.msk [vmem:[#allocation2 + $0x49] sm:$0xff] %vm33_vm0, %v125_v5  ;;  %191 = vst.msk [vmem:[#allocation2 + $0x51] sm:$0xff] %vm33_vm0, %v126_v6  ;;  %v172_v5 = vld [vmem:[%s18880_s0 + $0x198] sm:$0xff]  ;;  %v173_v6 = vld [vmem:[%s18880_s0 + $0x1a0] sm:$0xff] }
  0x2a   :  { %192 = vst.msk [vmem:[#allocation2 + $0x61] sm:$0xff] %vm33_vm0, %v127_v7  ;;  %193 = vst.msk [vmem:[#allocation2 + $0x69] sm:$0xff] %vm33_vm0, %v128_v8  ;;  %v174_v7 = vld [vmem:[%s18880_s0 + $0x1a8] sm:$0xff]  ;;  %v175_v8 = vld [vmem:[%s18880_s0 + $0x1b0] sm:$0xff] }
  0x2b   :  { %194 = vst.msk [vmem:[#allocation2 + $0x79] sm:$0xff] %vm33_vm0, %v129_v9  ;;  %195 = vst.msk [vmem:[#allocation2 + $0x81] sm:$0xff] %vm33_vm0, %v130_v10  ;;  %v176_v9 = vld [vmem:[%s18880_s0 + $0x1b8] sm:$0xff]  ;;  %v177_v10 = vld [vmem:[%s18880_s0 + $0x1c0] sm:$0xff] }
  0x2c   :  { %196 = vst.msk [vmem:[#allocation2 + $0x91] sm:$0xff] %vm33_vm0, %v131_v11  ;;  %197 = vst.msk [vmem:[#allocation2 + $0x99] sm:$0xff] %vm33_vm0, %v132_v12  ;;  %v10713_v25 = vld [vmem:[#allocation2 + $0x30] sm:$0xff]  ;;  %v252_v26 = vld [vmem:[#allocation2 + $0x18] sm:$0xff] }
  0x2d   :  { %198 = vst.msk [vmem:[#allocation2 + $0xa9] sm:$0xff] %vm33_vm0, %v133_v13  ;;  %199 = vst.msk [vmem:[#allocation2 + $0xb1] sm:$0xff] %vm33_vm0, %v134_v14  ;;  %534 = vrot.lane.b32.xlu1 %v10713_v25, %s10407_s15  ;;  %530 = vrot.lane.b32.xlu0 %v252_v26, %s10407_s15  ;;  %v178_v11 = vld [vmem:[%s18880_s0 + $0x1c8] sm:$0xff]  ;;  %v179_v12 = vld [vmem:[%s18880_s0 + $0x1d0] sm:$0xff] }
  0x2e   :  { %200 = vst.msk [vmem:[#allocation2 + $0xc1] sm:$0xff] %vm33_vm0, %v135_v15  ;;  %201 = vst.msk [vmem:[#allocation2 + $0xc9] sm:$0xff] %vm33_vm0, %v136_v16  ;;  %v180_v13 = vld [vmem:[%s18880_s0 + $0x1d8] sm:$0xff]  ;;  %v181_v14 = vld [vmem:[%s18880_s0 + $0x1e0] sm:$0xff] }
  0x2f   :  { %202 = vst.msk [vmem:[#allocation2 + $0xd9] sm:$0xff] %vm33_vm0, %v137_v17  ;;  %203 = vst.msk [vmem:[#allocation2 + $0xe1] sm:$0xff] %vm33_vm0, %v138_v18  ;;  %v10721_v27 = vld [vmem:[#allocation2 + $0x38] sm:$0xff]  ;;  %v253_v28 = vld [vmem:[#allocation2 + $0x20] sm:$0xff] }
  0x30   :  { %204 = vst.msk [vmem:[#allocation2 + $0xf1] sm:$0xff] %vm33_vm0, %v139_v19  ;;  %205 = vst.msk [vmem:[#allocation2 + $0xf9] sm:$0xff] %vm33_vm0, %v140_v20  ;;  %v10726_v29 = vld [vmem:[#allocation2 + $0x50] sm:$0xff]  ;;  %v10728_v30 = vld [vmem:[#allocation2 + $0x48] sm:$0xff] }
  0x31   :  { %206 = vst.msk [vmem:[#allocation2 + $0x109] sm:$0xff] %vm33_vm0, %v141_v21  ;;  %207 = vst.msk [vmem:[#allocation2 + $0x111] sm:$0xff] %vm33_vm0, %v142_v22  ;;  %536 = vrot.lane.b32.xlu1 %v10721_v27, %s10407_s15  ;;  %532 = vrot.lane.b32.xlu0 %v253_v28, %s10407_s15  ;;  %v10730_v31 = vld [vmem:[#allocation2 + $0x68] sm:$0xff]  ;;  %v10745_v35 = vld [vmem:[#allocation2 + $0x60] sm:$0xff] }
  0x32   :  { %208 = vst.msk [vmem:[#allocation2 + $0x121] sm:$0xff] %vm33_vm0, %v143_v23  ;;  %209 = vst.msk [vmem:[#allocation2 + $0x129] sm:$0xff] %vm33_vm0, %v144_v24  ;;  %v10779_v44 = vld [vmem:[#allocation2 + $0x78] sm:$0xff]  ;;  %v10797_v48 = vld [vmem:[#allocation2 + $0x80] sm:$0xff] }
  0x33   :  { %210 = vst.msk [vmem:[#allocation2 + $0x139] sm:$0xff] %vm33_vm0, %v145_v32  ;;  %211 = vst.msk [vmem:[#allocation2 + $0x141] sm:$0xff] %vm33_vm0, %v146_v33  ;;  %v10841_v58 = vld [vmem:[#allocation2 + $0x98] sm:$0xff]  ;;  %v10843_v59 = vld [vmem:[#allocation2 + $0x90] sm:$0xff] }
  0x34   :  { %212 = vst.msk [vmem:[#allocation2 + $0x151] sm:$0xff] %vm33_vm0, %v147_v34  ;;  %213 = vst.msk [vmem:[#allocation2 + $0x159] sm:$0xff] %vm33_vm0, %v148_v36  ;;  %v10853_v61 = vld [vmem:[#allocation2 + $0xb0] sm:$0xff]  ;;  %v10855_v62 = vld [vmem:[#allocation2 + $0xa8] sm:$0xff] }
  0x35   :  { %540 = vrot.lane.b32.xlu1 %v10726_v29, %s10407_s15  ;;  %538 = vrot.lane.b32.xlu0 %v10728_v30, %s10407_s15  ;;  %214 = vst.msk [vmem:[#allocation2 + $0x169] sm:$0xff] %vm33_vm0, %v149_v37  ;;  %215 = vst.msk [vmem:[#allocation2 + $0x171] sm:$0xff] %vm33_vm0, %v150_v38  ;;  %v10858_v63 = vld [vmem:[#allocation2 + $0xc0] sm:$0xff]  ;;  %v10873_v4 = vld [vmem:[#allocation2 + $0xc8] sm:$0xff] }
  0x36   :  { %216 = vst.msk [vmem:[#allocation2 + $0x181] sm:$0xff] %vm33_vm0, %v151_v39  ;;  %217 = vst.msk [vmem:[#allocation2 + $0x189] sm:$0xff] %vm33_vm0, %v152_v40  ;;  %v182_v15 = vld [vmem:[%s18880_s0 + $0x1e8] sm:$0xff]  ;;  %v183_v16 = vld [vmem:[%s18880_s0 + $0x1f0] sm:$0xff] }
  0x37   :  { %218 = vst.msk [vmem:[#allocation2 + $0x1c9] sm:$0xff] %vm33_vm0, %v153_v41  ;;  %219 = vst.msk [vmem:[#allocation2 + $0x1d1] sm:$0xff] %vm33_vm0, %v154_v42  ;;  %v184_v17 = vld [vmem:[%s18880_s0 + $0x1f8] sm:$0xff]  ;;  %v10932_v18 = vld [vmem:[#allocation2 + $0xe0] sm:$0xff] }
  0x38   :  { %220 = vst.msk [vmem:[#allocation2 + $0x1e1] sm:$0xff] %vm33_vm0, %v155_v43  ;;  %221 = vst.msk [vmem:[#allocation2 + $0x1e9] sm:$0xff] %vm33_vm0, %v156_v45  ;;  %v10934_v19 = vld [vmem:[#allocation2 + $0xd8] sm:$0xff]  ;;  %v10944_v21 = vld [vmem:[#allocation2 + $0xf0] sm:$0xff] }
  0x39   :  { %544 = vrot.lane.b32.xlu1 %v10730_v31, %s10407_s15  ;;  %542 = vrot.lane.b32.xlu0 %v10745_v35, %s10407_s15  ;;  %222 = vst.msk [vmem:[#allocation2 + $0x1f9] sm:$0xff] %vm33_vm0, %v157_v46  ;;  %223 = vst.msk [vmem:[#allocation2 + $0x201] sm:$0xff] %vm33_vm0, %v158_v47  ;;  %v10942_v20 = vld [vmem:[#allocation2 + $0xf8] sm:$0xff]  ;;  %v10950_v22 = vld [vmem:[#allocation2 + $0x110] sm:$0xff] }
  0x3a   :  { %224 = vst.msk [vmem:[#allocation2 + $0x211] sm:$0xff] %vm33_vm0, %v159_v49  ;;  %225 = vst.msk [vmem:[#allocation2 + $0x219] sm:$0xff] %vm33_vm0, %v160_v50  ;;  %v10952_v23 = vld [vmem:[#allocation2 + $0x108] sm:$0xff]  ;;  %v10960_v26 = vld [vmem:[#allocation2 + $0x120] sm:$0xff] }
  0x3b   :  { %226 = vst.msk [vmem:[#allocation2 + $0x229] sm:$0xff] %vm33_vm0, %v161_v51  ;;  %227 = vst.msk [vmem:[#allocation2 + $0x231] sm:$0xff] %vm33_vm0, %v162_v52  ;;  %v10958_v24 = vld [vmem:[#allocation2 + $0x128] sm:$0xff]  ;;  %v10966_v28 = vld [vmem:[#allocation2 + $0x140] sm:$0xff] }
  0x3c   :  { %228 = vst.msk [vmem:[#allocation2 + $0x241] sm:$0xff] %vm33_vm0, %v163_v53  ;;  %229 = vst.msk [vmem:[#allocation2 + $0x249] sm:$0xff] %vm33_vm0, %v164_v54  ;;  %v10968_v32 = vld [vmem:[#allocation2 + $0x138] sm:$0xff]  ;;  %v10976_v34 = vld [vmem:[#allocation2 + $0x150] sm:$0xff] }
  0x3d   :  { %230 = vst.msk [vmem:[#allocation2 + $0x259] sm:$0xff] %vm33_vm0, %v165_v55  ;;  %231 = vst.msk [vmem:[#allocation2 + $0x261] sm:$0xff] %vm33_vm0, %v166_v56  ;;  %548 = vrot.lane.b32.xlu1 %v10797_v48, %s10407_s15  ;;  %546 = vrot.lane.b32.xlu0 %v10779_v44, %s10407_s15  ;;  %v10974_v33 = vld [vmem:[#allocation2 + $0x158] sm:$0xff]  ;;  %v10982_v36 = vld [vmem:[#allocation2 + $0x170] sm:$0xff] }
  0x3e   :  { %232 = vst.msk [vmem:[#allocation2 + $0x271] sm:$0xff] %vm33_vm0, %v167_v57  ;;  %233 = vst.msk [vmem:[#allocation2 + $0x279] sm:$0xff] %vm33_vm0, %v168_v60  ;;  %v10984_v37 = vld [vmem:[#allocation2 + $0x168] sm:$0xff]  ;;  %v10992_v39 = vld [vmem:[#allocation2 + $0x180] sm:$0xff] }
  0x3f   :  { %234 = vst.msk [vmem:[#allocation2 + $0x289] sm:$0xff] %vm33_vm0, %v169_v1  ;;  %235 = vst.msk [vmem:[#allocation2 + $0x291] sm:$0xff] %vm33_vm0, %v170_v2  ;;  %v10990_v38 = vld [vmem:[#allocation2 + $0x188] sm:$0xff]  ;;  %v289_v40 = vld [vmem:[#allocation2 + $0x1d0] sm:$0xff] }
  0x40   :  { %236 = vst.msk [vmem:[#allocation2 + $0x2a1] sm:$0xff] %vm33_vm0, %v171_v3  ;;  %237 = vst.msk [vmem:[#allocation2 + $0x2a9] sm:$0xff] %vm33_vm0, %v172_v5  ;;  %v288_v41 = vld [vmem:[#allocation2 + $0x1c8] sm:$0xff]  ;;  %v11002_v43 = vld [vmem:[#allocation2 + $0x1e0] sm:$0xff] }
  0x41   :  { %552 = vrot.lane.b32.xlu1 %v10841_v58, %s10407_s15  ;;  %550 = vrot.lane.b32.xlu0 %v10843_v59, %s10407_s15  ;;  %238 = vst.msk [vmem:[#allocation2 + $0x2b9] sm:$0xff] %vm33_vm0, %v173_v6  ;;  %239 = vst.msk [vmem:[#allocation2 + $0x2c1] sm:$0xff] %vm33_vm0, %v174_v7  ;;  %v11000_v42 = vld [vmem:[#allocation2 + $0x1e8] sm:$0xff]  ;;  %v11008_v45 = vld [vmem:[#allocation2 + $0x200] sm:$0xff] }
  0x42   :  { %240 = vst.msk [vmem:[#allocation2 + $0x2d1] sm:$0xff] %vm33_vm0, %v175_v8  ;;  %241 = vst.msk [vmem:[#allocation2 + $0x2d9] sm:$0xff] %vm33_vm0, %v176_v9  ;;  %v11010_v46 = vld [vmem:[#allocation2 + $0x1f8] sm:$0xff]  ;;  %v11018_v49 = vld [vmem:[#allocation2 + $0x210] sm:$0xff] }
  0x43   :  { %242 = vst.msk [vmem:[#allocation2 + $0x2e9] sm:$0xff] %vm33_vm0, %v177_v10  ;;  %243 = vst.msk [vmem:[#allocation2 + $0x2f1] sm:$0xff] %vm33_vm0, %v178_v11  ;;  %v11016_v47 = vld [vmem:[#allocation2 + $0x218] sm:$0xff]  ;;  %v11024_v50 = vld [vmem:[#allocation2 + $0x230] sm:$0xff] }
  0x44   :  { %244 = vst.msk [vmem:[#allocation2 + $0x301] sm:$0xff] %vm33_vm0, %v179_v12  ;;  %245 = vst.msk [vmem:[#allocation2 + $0x309] sm:$0xff] %vm33_vm0, %v180_v13  ;;  %v11026_v51 = vld [vmem:[#allocation2 + $0x228] sm:$0xff]  ;;  %v11034_v53 = vld [vmem:[#allocation2 + $0x240] sm:$0xff] }
  0x45   :  { %556 = vrot.lane.b32.xlu1 %v10853_v61, %s10407_s15  ;;  %554 = vrot.lane.b32.xlu0 %v10855_v62, %s10407_s15  ;;  %246 = vst.msk [vmem:[#allocation2 + $0x319] sm:$0xff] %vm33_vm0, %v181_v14  ;;  %247 = vst.msk [vmem:[#allocation2 + $0x321] sm:$0xff] %vm33_vm0, %v182_v15  ;;  %v11032_v52 = vld [vmem:[#allocation2 + $0x248] sm:$0xff]  ;;  %v11040_v54 = vld [vmem:[#allocation2 + $0x260] sm:$0xff] }
  0x46   :  { %248 = vst.msk [vmem:[#allocation2 + $0x331] sm:$0xff] %vm33_vm0, %v183_v16  ;;  %249 = vst.msk [vmem:[#allocation2 + $0x339] sm:$0xff] %vm33_vm0, %v184_v17  ;;  %v11042_v55 = vld [vmem:[#allocation2 + $0x258] sm:$0xff]  ;;  %v11050_v57 = vld [vmem:[#allocation2 + $0x270] sm:$0xff] }
  0x47   :  { %v11048_v56 = vld [vmem:[#allocation2 + $0x278] sm:$0xff]  ;;  %v11056_v60 = vld [vmem:[#allocation2 + $0x290] sm:$0xff]  ;;  %v11058_v1 = vld [vmem:[#allocation2 + $0x288] sm:$0xff]  ;;  %37 = vst.msk [vmem:[#allocation2 + $0x10] sm:$0x3] %vm36_vm2, %v10406_v0 }
  0x48   :  { %v11064_v2 = vld [vmem:[#allocation2 + $0x2a8] sm:$0xff]  ;;  %v11066_v3 = vld [vmem:[#allocation2 + $0x2a0] sm:$0xff]  ;;  %v11074_v6 = vld [vmem:[#allocation2 + $0x2b8] sm:$0xff]  ;;  %40 = vst.msk [vmem:[#allocation2 + $0x1c0] sm:$0x3] %vm36_vm2, %v10406_v0 }
  0x49   :  { %560 = vrot.lane.b32.xlu1 %v10873_v4, %s10407_s15  ;;  %558 = vrot.lane.b32.xlu0 %v10858_v63, %s10407_s15  ;;  %v11072_v5 = vld [vmem:[#allocation2 + $0x2c0] sm:$0xff]  ;;  %v11080_v7 = vld [vmem:[#allocation2 + $0x2d8] sm:$0xff]  ;;  %v11082_v8 = vld [vmem:[#allocation2 + $0x2d0] sm:$0xff]  ;;  %44 = vst.msk [vmem:[#allocation2 + $0x1a8] sm:$0x3] %vm36_vm2, %v10406_v0 }
  0x4a   :  { %v11088_v9 = vld [vmem:[#allocation2 + $0x2f0] sm:$0xff]  ;;  %v11090_v10 = vld [vmem:[#allocation2 + $0x2e8] sm:$0xff]  ;;  %47 = vst.msk [vmem:[#allocation2 + $0x358] sm:$0x3] %vm36_vm2, %v10406_v0 }
  0x4b   :  { %v11096_v11 = vld [vmem:[#allocation2 + $0x308] sm:$0xff]  ;;  %v11098_v12 = vld [vmem:[#allocation2 + $0x300] sm:$0xff]  ;;  %85 = vst.msk [vmem:[#allocation2 + $0x11] sm:$0x1] %vm48_vm1, %v10406_v0  ;;  %102 = vst.msk [vmem:[#allocation2 + $0x1a9] sm:$0x1] %vm48_vm1, %v10406_v0 }
  0x4c   :  { %v11108_v15 = vld [vmem:[#allocation2 + $0x320] sm:$0xff]  ;;  %v11110_v16 = vld [vmem:[#allocation2 + $0x318] sm:$0xff]  ;;  %103 = vst.msk [vmem:[#allocation2 + $0x1c1] sm:$0x1] %vm48_vm1, %v10406_v0  ;;  %120 = vst.msk [vmem:[#allocation2 + $0x359] sm:$0x1] %vm48_vm1, %v10406_v0 }
  0x4d   :  { %564 = vrot.lane.b32.xlu1 %v10932_v18, %s10407_s15  ;;  %562 = vrot.lane.b32.xlu0 %v10934_v19, %s10407_s15  ;;  %19111 = vst [vmem:[#allocation5_spill] sm:$0xff] %v11110_v16 }
  0x51   :  { %568 = vrot.lane.b32.xlu1 %v10942_v20, %s10407_s15  ;;  %566 = vrot.lane.b32.xlu0 %v10944_v21, %s10407_s15 }
  0x55   :  { %572 = vrot.lane.b32.xlu1 %v10950_v22, %s10407_s15  ;;  %570 = vrot.lane.b32.xlu0 %v10952_v23, %s10407_s15 }
  0x59   :  { %576 = vrot.lane.b32.xlu1 %v10958_v24, %s10407_s15  ;;  %574 = vrot.lane.b32.xlu0 %v10960_v26, %s10407_s15 }
  0x5d   :  { %580 = vrot.lane.b32.xlu1 %v10966_v28, %s10407_s15  ;;  %578 = vrot.lane.b32.xlu0 %v10968_v32, %s10407_s15 }
  0x61   :  { %584 = vrot.lane.b32.xlu1 %v10974_v33, %s10407_s15  ;;  %582 = vrot.lane.b32.xlu0 %v10976_v34, %s10407_s15 }
  0x65   :  { %588 = vrot.lane.b32.xlu1 %v10982_v36, %s10407_s15  ;;  %586 = vrot.lane.b32.xlu0 %v10984_v37, %s10407_s15 }
  0x69   :  { %592 = vrot.lane.b32.xlu1 %v10990_v38, %s10407_s15  ;;  %590 = vrot.lane.b32.xlu0 %v10992_v39, %s10407_s15 }
  0x6d   :  { %596 = vrot.lane.b32.xlu1 %v289_v40, %s10407_s15  ;;  %594 = vrot.lane.b32.xlu0 %v288_v41, %s10407_s15  ;;  %v11124_v41 = vld [vmem:[#allocation2 + $0x338] sm:$0xff] }
  0x71   :  { %600 = vrot.lane.b32.xlu1 %v11000_v42, %s10407_s15  ;;  %598 = vrot.lane.b32.xlu0 %v11002_v43, %s10407_s15 }
  0x75   :  { %604 = vrot.lane.b32.xlu1 %v11008_v45, %s10407_s15  ;;  %602 = vrot.lane.b32.xlu0 %v11010_v46, %s10407_s15 }
  0x79   :  { %608 = vrot.lane.b32.xlu1 %v11016_v47, %s10407_s15  ;;  %606 = vrot.lane.b32.xlu0 %v11018_v49, %s10407_s15 }
  0x7d   :  { %612 = vrot.lane.b32.xlu1 %v11024_v50, %s10407_s15  ;;  %610 = vrot.lane.b32.xlu0 %v11026_v51, %s10407_s15 }
  0x81   :  { %616 = vrot.lane.b32.xlu1 %v11032_v52, %s10407_s15  ;;  %614 = vrot.lane.b32.xlu0 %v11034_v53, %s10407_s15 }
  0x85   :  { %620 = vrot.lane.b32.xlu1 %v11040_v54, %s10407_s15  ;;  %618 = vrot.lane.b32.xlu0 %v11042_v55, %s10407_s15 }
  0x89   :  { %624 = vrot.lane.b32.xlu1 %v11048_v56, %s10407_s15  ;;  %622 = vrot.lane.b32.xlu0 %v11050_v57, %s10407_s15 }
  0x8d   :  { %628 = vrot.lane.b32.xlu1 %v11056_v60, %s10407_s15  ;;  %626 = vrot.lane.b32.xlu0 %v11058_v1, %s10407_s15 }
  0x91   :  { %632 = vrot.lane.b32.xlu1 %v11064_v2, %s10407_s15  ;;  %630 = vrot.lane.b32.xlu0 %v11066_v3, %s10407_s15 }
  0x95   :  { %636 = vrot.lane.b32.xlu1 %v11072_v5, %s10407_s15  ;;  %634 = vrot.lane.b32.xlu0 %v11074_v6, %s10407_s15 }
  0x99   :  { %640 = vrot.lane.b32.xlu1 %v11080_v7, %s10407_s15  ;;  %638 = vrot.lane.b32.xlu0 %v11082_v8, %s10407_s15 }
  0x9d   :  { %644 = vrot.lane.b32.xlu1 %v11088_v9, %s10407_s15  ;;  %642 = vrot.lane.b32.xlu0 %v11090_v10, %s10407_s15 }
  0x9f   :  { %v11100_v13 = vpop.permute.xlu1 %534  ;;  %v11102_v14 = vpop.permute.xlu0 %530 }
  0xa0   :  { %19109 = vst [vmem:[#allocation3_spill] sm:$0xff] %v11100_v13  ;;  %19110 = vst [vmem:[#allocation4_spill] sm:$0xff] %v11102_v14 }
  0xa1   :  { %648 = vrot.lane.b32.xlu1 %v11096_v11, %s10407_s15  ;;  %646 = vrot.lane.b32.xlu0 %v11098_v12, %s10407_s15 }
  0xa3   :  { %v11112_v17 = vpop.permute.xlu1 %536  ;;  %v11114_v40 = vpop.permute.xlu0 %532 }
  0xa4   :  { %19112 = vst [vmem:[#allocation6_spill] sm:$0xff] %v11112_v17  ;;  %19113 = vst [vmem:[#allocation7_spill] sm:$0xff] %v11114_v40  ;;  %v11126_v17 = vld [vmem:[#allocation2 + $0x330] sm:$0xff] }
  0xa5   :  { %652 = vrot.lane.b32.xlu1 %v11108_v15, %s10407_s15  ;;  %650 = vrot.lane.b32.xlu0 %v11110_v16, %s10407_s15 }
  0xa7   :  { %v11136_v13 = vpop.permute.xlu1 %540  ;;  %v11138_v40 = vpop.permute.xlu0 %538 }
  0xa8   :  { %19114 = vst [vmem:[#allocation8_spill] sm:$0xff] %v11138_v40 }
  0xa9   :  { %656 = vrot.lane.b32.xlu1 %v11124_v41, %s10407_s15  ;;  %654 = vrot.lane.b32.xlu0 %v11126_v17, %s10407_s15 }
  0xab   :  { %v11144_v14 = vpop.permute.xlu1 %544  ;;  %v11146_v16 = vpop.permute.xlu0 %542 }
  0xac   :  { %19115 = vst [vmem:[#allocation9_spill] sm:$0xff] %v11144_v14  ;;  %19116 = vst [vmem:[#allocation10_spill] sm:$0xff] %v11146_v16 }
  0xad   :  { %728 = vrot.lane.b32.xlu1 %v10721_v27, %s10408_s16  ;;  %726 = vrot.lane.b32.xlu0 %v10713_v25, %s10408_s16 }
  0xaf   :  { %v11152_v0 = vpop.permute.xlu1 %548  ;;  %v11154_v40 = vpop.permute.xlu0 %546 }
  0xb1   :  { %732 = vrot.lane.b32.xlu1 %v10726_v29, %s10408_s16  ;;  %730 = vrot.lane.b32.xlu0 %v10728_v30, %s10408_s16 }
  0xb3   :  { %v11160_v14 = vpop.permute.xlu1 %552  ;;  %v11162_v16 = vpop.permute.xlu0 %550 }
  0xb5   :  { %736 = vrot.lane.b32.xlu1 %v10730_v31, %s10408_s16  ;;  %734 = vrot.lane.b32.xlu0 %v10745_v35, %s10408_s16 }
  0xb7   :  { %v11168_v25 = vpop.permute.xlu1 %556  ;;  %v11170_v27 = vpop.permute.xlu0 %554 }
  0xb8   :  { %19117 = vst [vmem:[#allocation11_spill] sm:$0xff] %v11168_v25  ;;  %19118 = vst [vmem:[#allocation12_spill] sm:$0xff] %v11170_v27  ;;  %v251_v27 = vld [vmem:[#allocation2 + $0x8] sm:$0xff] }
  0xb9   :  { %740 = vrot.lane.b32.xlu1 %v10797_v48, %s10408_s16  ;;  %738 = vrot.lane.b32.xlu0 %v10779_v44, %s10408_s16 }
  0xbb   :  { %v11176_v29 = vpop.permute.xlu1 %560  ;;  %v11178_v30 = vpop.permute.xlu0 %558 }
  0xbc   :  { %19119 = vst [vmem:[#allocation13_spill] sm:$0xff] %v11176_v29  ;;  %19120 = vst [vmem:[#allocation14_spill] sm:$0xff] %v11178_v30 }
  0xbd   :  { %744 = vrot.lane.b32.xlu1 %v10841_v58, %s10408_s16  ;;  %742 = vrot.lane.b32.xlu0 %v10843_v59, %s10408_s16 }
  0xbf   :  { %v11184_v31 = vpop.permute.xlu1 %564  ;;  %v11186_v35 = vpop.permute.xlu0 %562 }
  0xc0   :  { %19121 = vst [vmem:[#allocation15_spill] sm:$0xff] %v11184_v31  ;;  %19122 = vst [vmem:[#allocation16_spill] sm:$0xff] %v11186_v35  ;;  %v363_v31 = vld [vmem:[#allocation2 + $0x1e9] sm:$0xff] }
  0xc1   :  { %748 = vrot.lane.b32.xlu1 %v10853_v61, %s10408_s16  ;;  %746 = vrot.lane.b32.xlu0 %v10855_v62, %s10408_s16 }
  0xc3   :  { %v11192_v44 = vpop.permute.xlu1 %568  ;;  %v11194_v48 = vpop.permute.xlu0 %566 }
  0xc4   :  { %19123 = vst [vmem:[#allocation17_spill] sm:$0xff] %v11192_v44  ;;  %19124 = vst [vmem:[#allocation18_spill] sm:$0xff] %v11194_v48 }
  0xc5   :  { %752 = vrot.lane.b32.xlu1 %v10873_v4, %s10408_s16  ;;  %750 = vrot.lane.b32.xlu0 %v10858_v63, %s10408_s16 }
  0xc7   :  { %v11200_v58 = vpop.permute.xlu1 %572  ;;  %v11202_v59 = vpop.permute.xlu0 %570 }
  0xc8   :  { %19125 = vst [vmem:[#allocation19_spill] sm:$0xff] %v11200_v58  ;;  %19126 = vst [vmem:[#allocation20_spill] sm:$0xff] %v11202_v59 }
  0xc9   :  { %756 = vrot.lane.b32.xlu1 %v10932_v18, %s10408_s16  ;;  %754 = vrot.lane.b32.xlu0 %v10934_v19, %s10408_s16 }
  0xcb   :  { %v11208_v61 = vpop.permute.xlu1 %576  ;;  %v11210_v62 = vpop.permute.xlu0 %574 }
  0xcc   :  { %19127 = vst [vmem:[#allocation21_spill] sm:$0xff] %v11208_v61  ;;  %19128 = vst [vmem:[#allocation22_spill] sm:$0xff] %v11210_v62 }
  0xcd   :  { %760 = vrot.lane.b32.xlu1 %v10942_v20, %s10408_s16  ;;  %758 = vrot.lane.b32.xlu0 %v10944_v21, %s10408_s16 }
  0xcf   :  { %v11216_v63 = vpop.permute.xlu1 %580  ;;  %v11218_v4 = vpop.permute.xlu0 %578 }
  0xd0   :  { %19129 = vst [vmem:[#allocation23_spill] sm:$0xff] %v11216_v63  ;;  %19130 = vst [vmem:[#allocation24_spill] sm:$0xff] %v11218_v4  ;;  %v11512_v4 = vld [vmem:[#allocation2 + $0xf1] sm:$0xff] }
  0xd1   :  { %764 = vrot.lane.b32.xlu1 %v10950_v22, %s10408_s16  ;;  %762 = vrot.lane.b32.xlu0 %v10952_v23, %s10408_s16 }
  0xd3   :  { %v11224_v18 = vpop.permute.xlu1 %584  ;;  %v11226_v19 = vpop.permute.xlu0 %582 }
  0xd4   :  { %19131 = vst [vmem:[#allocation25_spill] sm:$0xff] %v11224_v18  ;;  %19132 = vst [vmem:[#allocation26_spill] sm:$0xff] %v11226_v19  ;;  %v11510_v18 = vld [vmem:[#allocation2 + $0xf9] sm:$0xff] }
  0xd5   :  { %768 = vrot.lane.b32.xlu1 %v10958_v24, %s10408_s16  ;;  %766 = vrot.lane.b32.xlu0 %v10960_v26, %s10408_s16 }
  0xd7   :  { %v11232_v20 = vpop.permute.xlu1 %588  ;;  %v11234_v21 = vpop.permute.xlu0 %586 }
  0xd8   :  { %19133 = vst [vmem:[#allocation27_spill] sm:$0xff] %v11232_v20  ;;  %19134 = vst [vmem:[#allocation28_spill] sm:$0xff] %v11234_v21  ;;  %v11500_v21 = vld [vmem:[#allocation2 + $0xd9] sm:$0xff] }
  0xd9   :  { %772 = vrot.lane.b32.xlu1 %v10966_v28, %s10408_s16  ;;  %770 = vrot.lane.b32.xlu0 %v10968_v32, %s10408_s16 }
  0xdb   :  { %v11240_v22 = vpop.permute.xlu1 %592  ;;  %v11242_v23 = vpop.permute.xlu0 %590 }
  0xdc   :  { %19135 = vst [vmem:[#allocation29_spill] sm:$0xff] %v11240_v22  ;;  %19136 = vst [vmem:[#allocation30_spill] sm:$0xff] %v11242_v23  ;;  %v11498_v22 = vld [vmem:[#allocation2 + $0xe1] sm:$0xff] }
  0xdd   :  { %776 = vrot.lane.b32.xlu1 %v10974_v33, %s10408_s16  ;;  %774 = vrot.lane.b32.xlu0 %v10976_v34, %s10408_s16  ;;  %v285_v33 = vld [vmem:[#allocation2 + $0x1a0] sm:$0xff]  ;;  %v284_v34 = vld [vmem:[#allocation2 + $0x198] sm:$0xff] }
  0xdf   :  { %v11248_v24 = vpop.permute.xlu1 %596  ;;  %v11250_v26 = vpop.permute.xlu0 %594 }
  0xe0   :  { %19137 = vst [vmem:[#allocation31_spill] sm:$0xff] %v11248_v24  ;;  %19138 = vst [vmem:[#allocation32_spill] sm:$0xff] %v11250_v26 }
  0xe1   :  { %780 = vrot.lane.b32.xlu1 %v10982_v36, %s10408_s16  ;;  %778 = vrot.lane.b32.xlu0 %v10984_v37, %s10408_s16 }
  0xe3   :  { %v11256_v28 = vpop.permute.xlu1 %600  ;;  %v11258_v32 = vpop.permute.xlu0 %598 }
  0xe4   :  { %19139 = vst [vmem:[#allocation33_spill] sm:$0xff] %v11256_v28  ;;  %19140 = vst [vmem:[#allocation34_spill] sm:$0xff] %v11258_v32  ;;  %v11488_v32 = vld [vmem:[#allocation2 + $0xc1] sm:$0xff] }
  0xe5   :  { %784 = vrot.lane.b32.xlu1 %v10990_v38, %s10408_s16  ;;  %782 = vrot.lane.b32.xlu0 %v10992_v39, %s10408_s16 }
  0xe7   :  { %v11264_v24 = vpop.permute.xlu1 %604  ;;  %v11266_v26 = vpop.permute.xlu0 %602 }
  0xe8   :  { %19141 = vst [vmem:[#allocation35_spill] sm:$0xff] %v11264_v24  ;;  %19142 = vst [vmem:[#allocation36_spill] sm:$0xff] %v11266_v26  ;;  %v11486_v24 = vld [vmem:[#allocation2 + $0xc9] sm:$0xff] }
  0xe9   :  { %788 = vrot.lane.b32.xlu1 %v285_v33, %s10408_s16  ;;  %786 = vrot.lane.b32.xlu0 %v284_v34, %s10408_s16 }
  0xeb   :  { %v11270_v36 = vpop.permute.xlu1 %608  ;;  %v11272_v37 = vpop.permute.xlu0 %606 }
  0xec   :  { %19143 = vst [vmem:[#allocation37_spill] sm:$0xff] %v11270_v36  ;;  %19144 = vst [vmem:[#allocation38_spill] sm:$0xff] %v11272_v37  ;;  %v11476_v37 = vld [vmem:[#allocation2 + $0xa9] sm:$0xff] }
  0xed   :  { %792 = vrot.lane.b32.xlu1 %v11000_v42, %s10408_s16  ;;  %790 = vrot.lane.b32.xlu0 %v11002_v43, %s10408_s16 }
  0xef   :  { %v11278_v38 = vpop.permute.xlu1 %612  ;;  %v11280_v39 = vpop.permute.xlu0 %610 }
  0xf0   :  { %19145 = vst [vmem:[#allocation39_spill] sm:$0xff] %v11278_v38  ;;  %19146 = vst [vmem:[#allocation40_spill] sm:$0xff] %v11280_v39  ;;  %v11474_v38 = vld [vmem:[#allocation2 + $0xb1] sm:$0xff] }
  0xf1   :  { %796 = vrot.lane.b32.xlu1 %v11008_v45, %s10408_s16  ;;  %794 = vrot.lane.b32.xlu0 %v11010_v46, %s10408_s16 }
  0xf3   :  { %v11286_v33 = vpop.permute.xlu1 %616  ;;  %v11288_v34 = vpop.permute.xlu0 %614 }
  0xf4   :  { %19147 = vst [vmem:[#allocation41_spill] sm:$0xff] %v11286_v33  ;;  %19148 = vst [vmem:[#allocation42_spill] sm:$0xff] %v11288_v34  ;;  %v11464_v34 = vld [vmem:[#allocation2 + $0x91] sm:$0xff] }
  0xf5   :  { %800 = vrot.lane.b32.xlu1 %v11016_v47, %s10408_s16  ;;  %798 = vrot.lane.b32.xlu0 %v11018_v49, %s10408_s16 }
  0xf7   :  { %v11294_v42 = vpop.permute.xlu1 %620  ;;  %v11296_v43 = vpop.permute.xlu0 %618 }
  0xf8   :  { %19149 = vst [vmem:[#allocation43_spill] sm:$0xff] %v11294_v42  ;;  %19150 = vst [vmem:[#allocation44_spill] sm:$0xff] %v11296_v43  ;;  %v11462_v42 = vld [vmem:[#allocation2 + $0x99] sm:$0xff] }
  0xf9   :  { %804 = vrot.lane.b32.xlu1 %v11024_v50, %s10408_s16  ;;  %802 = vrot.lane.b32.xlu0 %v11026_v51, %s10408_s16 }
  0xfb   :  { %v11302_v45 = vpop.permute.xlu1 %624  ;;  %v11304_v46 = vpop.permute.xlu0 %622 }
  0xfc   :  { %19151 = vst [vmem:[#allocation45_spill] sm:$0xff] %v11302_v45  ;;  %19152 = vst [vmem:[#allocation46_spill] sm:$0xff] %v11304_v46  ;;  %v11452_v46 = vld [vmem:[#allocation2 + $0x79] sm:$0xff] }
  0xfd   :  { %808 = vrot.lane.b32.xlu1 %v11032_v52, %s10408_s16  ;;  %806 = vrot.lane.b32.xlu0 %v11034_v53, %s10408_s16 }
  0xff   :  { %v11310_v47 = vpop.permute.xlu1 %628  ;;  %v11312_v49 = vpop.permute.xlu0 %626 }
 0x100   :  { %19153 = vst [vmem:[#allocation47_spill] sm:$0xff] %v11310_v47  ;;  %19154 = vst [vmem:[#allocation48_spill] sm:$0xff] %v11312_v49  ;;  %v11450_v47 = vld [vmem:[#allocation2 + $0x81] sm:$0xff] }
 0x101   :  { %812 = vrot.lane.b32.xlu1 %v11040_v54, %s10408_s16  ;;  %810 = vrot.lane.b32.xlu0 %v11042_v55, %s10408_s16 }
 0x103   :  { %v11318_v50 = vpop.permute.xlu1 %632  ;;  %v11320_v51 = vpop.permute.xlu0 %630 }
 0x104   :  { %19155 = vst [vmem:[#allocation49_spill] sm:$0xff] %v11318_v50  ;;  %19156 = vst [vmem:[#allocation50_spill] sm:$0xff] %v11320_v51  ;;  %v11440_v51 = vld [vmem:[#allocation2 + $0x61] sm:$0xff] }
 0x105   :  { %816 = vrot.lane.b32.xlu1 %v11048_v56, %s10408_s16  ;;  %814 = vrot.lane.b32.xlu0 %v11050_v57, %s10408_s16 }
 0x107   :  { %v11326_v52 = vpop.permute.xlu1 %636  ;;  %v11328_v53 = vpop.permute.xlu0 %634 }
 0x108   :  { %19157 = vst [vmem:[#allocation51_spill] sm:$0xff] %v11326_v52  ;;  %19158 = vst [vmem:[#allocation52_spill] sm:$0xff] %v11328_v53  ;;  %v11438_v52 = vld [vmem:[#allocation2 + $0x69] sm:$0xff] }
 0x109   :  { %820 = vrot.lane.b32.xlu1 %v11056_v60, %s10408_s16  ;;  %818 = vrot.lane.b32.xlu0 %v11058_v1, %s10408_s16 }
 0x10b   :  { %v11334_v54 = vpop.permute.xlu1 %640  ;;  %v11336_v55 = vpop.permute.xlu0 %638 }
 0x10c   :  { %19159 = vst [vmem:[#allocation53_spill] sm:$0xff] %v11334_v54  ;;  %19160 = vst [vmem:[#allocation54_spill] sm:$0xff] %v11336_v55  ;;  %v11428_v55 = vld [vmem:[#allocation2 + $0x49] sm:$0xff] }
 0x10d   :  { %824 = vrot.lane.b32.xlu1 %v11064_v2, %s10408_s16  ;;  %822 = vrot.lane.b32.xlu0 %v11066_v3, %s10408_s16 }
 0x10f   :  { %v11342_v56 = vpop.permute.xlu1 %644  ;;  %v11344_v57 = vpop.permute.xlu0 %642 }
 0x110   :  { %19161 = vst [vmem:[#allocation55_spill] sm:$0xff] %v11342_v56  ;;  %19162 = vst [vmem:[#allocation56_spill] sm:$0xff] %v11344_v57  ;;  %v11416_v57 = vld [vmem:[#allocation2 + $0x31] sm:$0xff] }
 0x111   :  { %828 = vrot.lane.b32.xlu1 %v11072_v5, %s10408_s16  ;;  %826 = vrot.lane.b32.xlu0 %v11074_v6, %s10408_s16  ;;  %v11426_v56 = vld [vmem:[#allocation2 + $0x51] sm:$0xff] }
 0x113   :  { %v11350_v60 = vpop.permute.xlu1 %648  ;;  %v11352_v1 = vpop.permute.xlu0 %646 }
 0x114   :  { %19163 = vst [vmem:[#allocation57_spill] sm:$0xff] %v11350_v60  ;;  %19164 = vst [vmem:[#allocation58_spill] sm:$0xff] %v11352_v1 }
 0x115   :  { %832 = vrot.lane.b32.xlu1 %v11080_v7, %s10408_s16  ;;  %830 = vrot.lane.b32.xlu0 %v11082_v8, %s10408_s16 }
 0x117   :  { %v11358_v2 = vpop.permute.xlu1 %652  ;;  %v11360_v3 = vpop.permute.xlu0 %650 }
 0x118   :  { %19165 = vst [vmem:[#allocation59_spill] sm:$0xff] %v11358_v2  ;;  %19166 = vst [vmem:[#allocation60_spill] sm:$0xff] %v11360_v3 }
 0x119   :  { %836 = vrot.lane.b32.xlu1 %v11088_v9, %s10408_s16  ;;  %834 = vrot.lane.b32.xlu0 %v11090_v10, %s10408_s16  ;;  %v19169_v9 = vld [vmem:[#allocation5_spill] sm:$0xff] }
 0x11b   :  { %v11366_v5 = vpop.permute.xlu1 %656  ;;  %v11368_v6 = vpop.permute.xlu0 %654 }
 0x11c   :  { %19167 = vst [vmem:[#allocation61_spill] sm:$0xff] %v11366_v5  ;;  %19168 = vst [vmem:[#allocation62_spill] sm:$0xff] %v11368_v6 }
 0x11d   :  { %840 = vrot.lane.b32.xlu1 %v11096_v11, %s10408_s16  ;;  %838 = vrot.lane.b32.xlu0 %v11098_v12, %s10408_s16  ;;  %v321_v11 = vld [vmem:[#allocation2 + $0x350] sm:$0xff]  ;;  %v320_v12 = vld [vmem:[#allocation2 + $0x348] sm:$0xff] }
 0x11f   :  { %v11374_v7 = vpop.permute.xlu1 %728  ;;  %v11376_v8 = vpop.permute.xlu0 %726 }
 0x121   :  { %844 = vrot.lane.b32.xlu1 %v11108_v15, %s10408_s16  ;;  %842 = vrot.lane.b32.xlu0 %v19169_v9, %s10408_s16  ;;  %v323_v15 = vld [vmem:[#allocation2 + $0x9] sm:$0xff]  ;;  %v322_v9 = vld [vmem:[#allocation2 + $0x1] sm:$0xff] }
 0x123   :  { %v11382_v10 = vpop.permute.xlu1 %732  ;;  %v11384_v5 = vpop.permute.xlu0 %730 }
 0x125   :  { %848 = vrot.lane.b32.xlu1 %v11124_v41, %s10408_s16  ;;  %846 = vrot.lane.b32.xlu0 %v11126_v17, %s10408_s16  ;;  %v11402_v17 = vld [vmem:[#allocation2 + $0x21] sm:$0xff]  ;;  %v11404_v41 = vld [vmem:[#allocation2 + $0x19] sm:$0xff] }
 0x127   :  { %v11390_v6 = vpop.permute.xlu1 %736  ;;  %v11392_v3 = vpop.permute.xlu0 %734 }
 0x129   :  { %852 = vrot.lane.b32.xlu1 %v321_v11, %s10408_s16  ;;  %850 = vrot.lane.b32.xlu0 %v320_v12, %s10408_s16  ;;  %v11414_v12 = vld [vmem:[#allocation2 + $0x39] sm:$0xff] }
 0x12b   :  { %v11396_v2 = vpop.permute.xlu1 %740  ;;  %v11398_v1 = vpop.permute.xlu0 %738 }
 0x12d   :  { %984 = vrot.lane.b32.xlu1 %v323_v15, %s10409_s17  ;;  %982 = vrot.lane.b32.xlu0 %v322_v9, %s10409_s17 }
 0x12f   :  { %v11406_v60 = vpop.permute.xlu1 %744  ;;  %v11408_v11 = vpop.permute.xlu0 %742 }
 0x131   :  { %988 = vrot.lane.b32.xlu1 %v11402_v17, %s10409_s17  ;;  %986 = vrot.lane.b32.xlu0 %v11404_v41, %s10409_s17 }
 0x133   :  { %v11418_v15 = vpop.permute.xlu1 %748  ;;  %v11420_v9 = vpop.permute.xlu0 %746 }
 0x134   :  { %19170 = vst [vmem:[#allocation5_spill] sm:$0xff] %v11418_v15  ;;  %19171 = vst [vmem:[#allocation63_spill] sm:$0xff] %v11420_v9  ;;  %v10273_v9 = vld [vmem:[#allocation2 + $0x20] sm:$0xff]  ;;  %v19265_v15 = vld [vmem:[#allocation6_spill] sm:$0xff] }
 0x135   :  { %992 = vrot.lane.b32.xlu1 %v11414_v12, %s10409_s17  ;;  %990 = vrot.lane.b32.xlu0 %v11416_v57, %s10409_s17 }
 0x137   :  { %v11430_v54 = vpop.permute.xlu1 %752  ;;  %v11432_v53 = vpop.permute.xlu0 %750 }
 0x138   :  { %19172 = vst [vmem:[#allocation64_spill] sm:$0xff] %v11430_v54  ;;  %19173 = vst [vmem:[#allocation65_spill] sm:$0xff] %v11432_v53  ;;  %v250_v54 = vld [vmem:[#allocation2] sm:$0xff] }
 0x139   :  { %996 = vrot.lane.b32.xlu1 %v11426_v56, %s10409_s17  ;;  %994 = vrot.lane.b32.xlu0 %v11428_v55, %s10409_s17 }
 0x13b   :  { %v11442_v50 = vpop.permute.xlu1 %756  ;;  %v11444_v49 = vpop.permute.xlu0 %754 }
 0x13c   :  { %19174 = vst [vmem:[#allocation66_spill] sm:$0xff] %v11442_v50  ;;  %19175 = vst [vmem:[#allocation67_spill] sm:$0xff] %v11444_v49  ;;  %v362_v49 = vld [vmem:[#allocation2 + $0x1e1] sm:$0xff] }
 0x13d   :  { %1000 = vrot.lane.b32.xlu1 %v11438_v52, %s10409_s17  ;;  %998 = vrot.lane.b32.xlu0 %v11440_v51, %s10409_s17 }
 0x13f   :  { %v11454_v45 = vpop.permute.xlu1 %760  ;;  %v11456_v43 = vpop.permute.xlu0 %758 }
 0x140   :  { %19176 = vst [vmem:[#allocation68_spill] sm:$0xff] %v11454_v45  ;;  %19177 = vst [vmem:[#allocation69_spill] sm:$0xff] %v11456_v43  ;;  %v361_v45 = vld [vmem:[#allocation2 + $0x1d1] sm:$0xff] }
 0x141   :  { %1004 = vrot.lane.b32.xlu1 %v11450_v47, %s10409_s17  ;;  %1002 = vrot.lane.b32.xlu0 %v11452_v46, %s10409_s17 }
 0x143   :  { %v11466_v33 = vpop.permute.xlu1 %764  ;;  %v11468_v39 = vpop.permute.xlu0 %762 }
 0x144   :  { %19178 = vst [vmem:[#allocation70_spill] sm:$0xff] %v11466_v33  ;;  %19179 = vst [vmem:[#allocation71_spill] sm:$0xff] %v11468_v39 }
 0x145   :  { %1008 = vrot.lane.b32.xlu1 %v11462_v42, %s10409_s17  ;;  %1006 = vrot.lane.b32.xlu0 %v11464_v34, %s10409_s17 }
 0x147   :  { %v11478_v36 = vpop.permute.xlu1 %768  ;;  %v11480_v26 = vpop.permute.xlu0 %766 }
 0x148   :  { %19180 = vst [vmem:[#allocation72_spill] sm:$0xff] %v11478_v36  ;;  %19181 = vst [vmem:[#allocation73_spill] sm:$0xff] %v11480_v26 }
 0x149   :  { %1012 = vrot.lane.b32.xlu1 %v11474_v38, %s10409_s17  ;;  %1010 = vrot.lane.b32.xlu0 %v11476_v37, %s10409_s17 }
 0x14b   :  { %v11490_v28 = vpop.permute.xlu1 %772  ;;  %v11492_v23 = vpop.permute.xlu0 %770 }
 0x14c   :  { %19182 = vst [vmem:[#allocation74_spill] sm:$0xff] %v11490_v28  ;;  %19183 = vst [vmem:[#allocation75_spill] sm:$0xff] %v11492_v23 }
 0x14d   :  { %1016 = vrot.lane.b32.xlu1 %v11486_v24, %s10409_s17  ;;  %1014 = vrot.lane.b32.xlu0 %v11488_v32, %s10409_s17 }
 0x14f   :  { %v11502_v20 = vpop.permute.xlu1 %776  ;;  %v11504_v19 = vpop.permute.xlu0 %774 }
 0x150   :  { %19184 = vst [vmem:[#allocation76_spill] sm:$0xff] %v11502_v20  ;;  %19185 = vst [vmem:[#allocation77_spill] sm:$0xff] %v11504_v19  ;;  %v11522_v19 = vld [vmem:[#allocation2 + $0x111] sm:$0xff]  ;;  %v11524_v20 = vld [vmem:[#allocation2 + $0x109] sm:$0xff] }
 0x151   :  { %1020 = vrot.lane.b32.xlu1 %v11498_v22, %s10409_s17  ;;  %1018 = vrot.lane.b32.xlu0 %v11500_v21, %s10409_s17 }
 0x153   :  { %v11514_v63 = vpop.permute.xlu1 %780  ;;  %v11516_v23 = vpop.permute.xlu0 %778 }
 0x154   :  { %19186 = vst [vmem:[#allocation78_spill] sm:$0xff] %v11514_v63  ;;  %19187 = vst [vmem:[#allocation79_spill] sm:$0xff] %v11516_v23  ;;  %v11534_v23 = vld [vmem:[#allocation2 + $0x129] sm:$0xff]  ;;  %v11536_v63 = vld [vmem:[#allocation2 + $0x121] sm:$0xff] }
 0x155   :  { %1024 = vrot.lane.b32.xlu1 %v11510_v18, %s10409_s17  ;;  %1022 = vrot.lane.b32.xlu0 %v11512_v4, %s10409_s17 }
 0x157   :  { %v11526_v28 = vpop.permute.xlu1 %784  ;;  %v11528_v62 = vpop.permute.xlu0 %782 }
 0x158   :  { %19188 = vst [vmem:[#allocation80_spill] sm:$0xff] %v11526_v28  ;;  %19189 = vst [vmem:[#allocation81_spill] sm:$0xff] %v11528_v62  ;;  %v11546_v62 = vld [vmem:[#allocation2 + $0x141] sm:$0xff]  ;;  %v11548_v28 = vld [vmem:[#allocation2 + $0x139] sm:$0xff] }
 0x159   :  { %1028 = vrot.lane.b32.xlu1 %v11522_v19, %s10409_s17  ;;  %1026 = vrot.lane.b32.xlu0 %v11524_v20, %s10409_s17 }
 0x15b   :  { %v11538_v61 = vpop.permute.xlu1 %788  ;;  %v11540_v26 = vpop.permute.xlu0 %786 }
 0x15c   :  { %19190 = vst [vmem:[#allocation82_spill] sm:$0xff] %v11538_v61  ;;  %19191 = vst [vmem:[#allocation83_spill] sm:$0xff] %v11540_v26  ;;  %v11558_v26 = vld [vmem:[#allocation2 + $0x159] sm:$0xff]  ;;  %v11560_v61 = vld [vmem:[#allocation2 + $0x151] sm:$0xff] }
 0x15d   :  { %1032 = vrot.lane.b32.xlu1 %v11534_v23, %s10409_s17  ;;  %1030 = vrot.lane.b32.xlu0 %v11536_v63, %s10409_s17  ;;  %19194 = vst [vmem:[#allocation86_spill] sm:$0xff] %v11558_v26  ;;  %19195 = vst [vmem:[#allocation87_spill] sm:$0xff] %v11560_v61 }
 0x15f   :  { %v11550_v36 = vpop.permute.xlu1 %792  ;;  %v11552_v59 = vpop.permute.xlu0 %790 }
 0x160   :  { %19192 = vst [vmem:[#allocation84_spill] sm:$0xff] %v11550_v36  ;;  %19193 = vst [vmem:[#allocation85_spill] sm:$0xff] %v11552_v59  ;;  %v11570_v59 = vld [vmem:[#allocation2 + $0x171] sm:$0xff]  ;;  %v11572_v36 = vld [vmem:[#allocation2 + $0x169] sm:$0xff] }
 0x161   :  { %1036 = vrot.lane.b32.xlu1 %v11546_v62, %s10409_s17  ;;  %1034 = vrot.lane.b32.xlu0 %v11548_v28, %s10409_s17  ;;  %19198 = vst [vmem:[#allocation90_spill] sm:$0xff] %v11570_v59  ;;  %19199 = vst [vmem:[#allocation91_spill] sm:$0xff] %v11572_v36 }
 0x163   :  { %v11562_v58 = vpop.permute.xlu1 %796  ;;  %v11564_v39 = vpop.permute.xlu0 %794 }
 0x164   :  { %19196 = vst [vmem:[#allocation88_spill] sm:$0xff] %v11562_v58  ;;  %19197 = vst [vmem:[#allocation89_spill] sm:$0xff] %v11564_v39  ;;  %v359_v39 = vld [vmem:[#allocation2 + $0x1b9] sm:$0xff]  ;;  %v358_v58 = vld [vmem:[#allocation2 + $0x1b1] sm:$0xff] }
 0x165   :  { %1040 = vrot.lane.b32.xlu1 %v11558_v26, %s10409_s17  ;;  %1038 = vrot.lane.b32.xlu0 %v11560_v61, %s10409_s17  ;;  %v10272_v26 = vld [vmem:[#allocation2 + $0x18] sm:$0xff] }
 0x167   :  { %v11574_v33 = vpop.permute.xlu1 %800  ;;  %v11576_v48 = vpop.permute.xlu0 %798 }
 0x168   :  { %19200 = vst [vmem:[#allocation92_spill] sm:$0xff] %v11574_v33  ;;  %19201 = vst [vmem:[#allocation93_spill] sm:$0xff] %v11576_v48  ;;  %v360_v33 = vld [vmem:[#allocation2 + $0x1c9] sm:$0xff] }
 0x169   :  { %1044 = vrot.lane.b32.xlu1 %v11570_v59, %s10409_s17  ;;  %1042 = vrot.lane.b32.xlu0 %v11572_v36, %s10409_s17  ;;  %v19263_v59 = vld [vmem:[#allocation7_spill] sm:$0xff] }
 0x16a   :  { %v2215_v61 = vsel %vm33_vm0, %v251_v27, %v19263_v59 }
 0x16b   :  { %v11582_v44 = vpop.permute.xlu1 %804  ;;  %v11584_v43 = vpop.permute.xlu0 %802 }
 0x16c   :  { %19202 = vst [vmem:[#allocation94_spill] sm:$0xff] %v11582_v44  ;;  %19203 = vst [vmem:[#allocation95_spill] sm:$0xff] %v11584_v43 }
 0x16d   :  { %1048 = vrot.lane.b32.xlu1 %v359_v39, %s10409_s17  ;;  %1046 = vrot.lane.b32.xlu0 %v358_v58, %s10409_s17  ;;  %v365_v58 = vld [vmem:[#allocation2 + $0x201] sm:$0xff]  ;;  %v364_v39 = vld [vmem:[#allocation2 + $0x1f9] sm:$0xff] }
 0x16f   :  { %v11588_v35 = vpop.permute.xlu1 %808  ;;  %v11590_v48 = vpop.permute.xlu0 %806 }
 0x170   :  { %19204 = vst [vmem:[#allocation96_spill] sm:$0xff] %v11588_v35  ;;  %19205 = vst [vmem:[#allocation97_spill] sm:$0xff] %v11590_v48 }
 0x171   :  { %1052 = vrot.lane.b32.xlu1 %v361_v45, %s10409_s17  ;;  %1050 = vrot.lane.b32.xlu0 %v360_v33, %s10409_s17  ;;  %v367_v33 = vld [vmem:[#allocation2 + $0x219] sm:$0xff]  ;;  %v366_v45 = vld [vmem:[#allocation2 + $0x211] sm:$0xff] }
 0x173   :  { %v11594_v50 = vpop.permute.xlu1 %812  ;;  %v11596_v44 = vpop.permute.xlu0 %810 }
 0x174   :  { %19206 = vst [vmem:[#allocation98_spill] sm:$0xff] %v11594_v50  ;;  %19207 = vst [vmem:[#allocation99_spill] sm:$0xff] %v11596_v44 }
 0x175   :  { %1056 = vrot.lane.b32.xlu1 %v363_v31, %s10409_s17  ;;  %1054 = vrot.lane.b32.xlu0 %v362_v49, %s10409_s17  ;;  %v369_v31 = vld [vmem:[#allocation2 + $0x231] sm:$0xff]  ;;  %v368_v49 = vld [vmem:[#allocation2 + $0x229] sm:$0xff] }
 0x177   :  { %v11600_v43 = vpop.permute.xlu1 %816  ;;  %v11602_v35 = vpop.permute.xlu0 %814 }
 0x178   :  { %19208 = vst [vmem:[#allocation100_spill] sm:$0xff] %v11600_v43  ;;  %19209 = vst [vmem:[#allocation101_spill] sm:$0xff] %v11602_v35 }
 0x179   :  { %1060 = vrot.lane.b32.xlu1 %v365_v58, %s10409_s17  ;;  %1058 = vrot.lane.b32.xlu0 %v364_v39, %s10409_s17 }
 0x17b   :  { %v11606_v48 = vpop.permute.xlu1 %820  ;;  %v11608_v50 = vpop.permute.xlu0 %818 }
 0x17c   :  { %19210 = vst [vmem:[#allocation102_spill] sm:$0xff] %v11606_v48  ;;  %19211 = vst [vmem:[#allocation103_spill] sm:$0xff] %v11608_v50 }
 0x17d   :  { %1064 = vrot.lane.b32.xlu1 %v367_v33, %s10409_s17  ;;  %1062 = vrot.lane.b32.xlu0 %v366_v45, %s10409_s17 }
 0x17f   :  { %v11612_v44 = vpop.permute.xlu1 %824  ;;  %v11614_v43 = vpop.permute.xlu0 %822 }
 0x180   :  { %19212 = vst [vmem:[#allocation104_spill] sm:$0xff] %v11612_v44  ;;  %19213 = vst [vmem:[#allocation105_spill] sm:$0xff] %v11614_v43 }
 0x181   :  { %1068 = vrot.lane.b32.xlu1 %v369_v31, %s10409_s17  ;;  %1066 = vrot.lane.b32.xlu0 %v368_v49, %s10409_s17 }
 0x183   :  { %v11618_v58 = vpop.permute.xlu1 %828  ;;  %v11620_v39 = vpop.permute.xlu0 %826 }
 0x184   :  { %19214 = vst [vmem:[#allocation106_spill] sm:$0xff] %v11618_v58  ;;  %19215 = vst [vmem:[#allocation107_spill] sm:$0xff] %v11620_v39 }
 0x185   :  { %1180 = vrot.lane.b32.xlu1 %v11402_v17, %s10410_s18  ;;  %1178 = vrot.lane.b32.xlu0 %v11404_v41, %s10410_s18 }
 0x187   :  { %v11626_v33 = vpop.permute.xlu1 %832  ;;  %v11628_v45 = vpop.permute.xlu0 %830 }
 0x188   :  { %19216 = vst [vmem:[#allocation108_spill] sm:$0xff] %v11626_v33  ;;  %19217 = vst [vmem:[#allocation109_spill] sm:$0xff] %v11628_v45  ;;  %v395_v45 = vld [vmem:[#allocation2 + $0xa] sm:$0xff] }
 0x189   :  { %1184 = vrot.lane.b32.xlu1 %v11414_v12, %s10410_s18  ;;  %1182 = vrot.lane.b32.xlu0 %v11416_v57, %s10410_s18 }
 0x18b   :  { %v11634_v31 = vpop.permute.xlu1 %836  ;;  %v11636_v49 = vpop.permute.xlu0 %834 }
 0x18c   :  { %19218 = vst [vmem:[#allocation110_spill] sm:$0xff] %v11634_v31  ;;  %19219 = vst [vmem:[#allocation111_spill] sm:$0xff] %v11636_v49  ;;  %v394_v31 = vld [vmem:[#allocation2 + $0x2] sm:$0xff] }
 0x18d   :  { %1376 = vrot.lane.b32.xlu1 %v11414_v12, %s10411_s19  ;;  %1374 = vrot.lane.b32.xlu0 %v11416_v57, %s10411_s19  ;;  %v10256_v49 = vld [vmem:[%s18881_s2] sm:$0xff]   ;;  %v10257_v57 = vld [vmem:[%s18881_s2 + $0x8] sm:$0xff]  }
 0x18e   :  { %9565 = vmatprep.subr.bf16.mxu0 %v10256_v49 }
 0x18f   :  { %v11642_v17 = vpop.permute.xlu1 %840  ;;  %v11644_v41 = vpop.permute.xlu0 %838  ;;  %9566 = vmatpush3.bf16.msra.mxu0 %v10256_v49 }
 0x190   :  { %19220 = vst [vmem:[#allocation112_spill] sm:$0xff] %v11642_v17  ;;  %19221 = vst [vmem:[#allocation113_spill] sm:$0xff] %v11644_v41  ;;  %v397_v41 = vld [vmem:[#allocation2 + $0x22] sm:$0xff]  ;;  %v396_v17 = vld [vmem:[#allocation2 + $0x1a] sm:$0xff]  ;;  %9567 = vmatprep.subr.bf16.mxu0 %v10257_v57 }
 0x191   :  { %1380 = vrot.lane.b32.xlu1 %v11426_v56, %s10411_s19  ;;  %1378 = vrot.lane.b32.xlu0 %v11428_v55, %s10411_s19 }
 0x193   :  { %v11653_v12 = vpop.permute.xlu1 %844  ;;  %v11655_v33 = vpop.permute.xlu0 %842  ;;  %9568 = vmatpush3.bf16.msra.mxu0 %v10257_v57 }
 0x194   :  { %19222 = vst [vmem:[#allocation114_spill] sm:$0xff] %v11653_v12  ;;  %19223 = vst [vmem:[#allocation115_spill] sm:$0xff] %v11655_v33 }
 0x195   :  { %1632 = vrot.lane.b32.xlu1 %v395_v45, %s10412_s22  ;;  %1630 = vrot.lane.b32.xlu0 %v394_v31, %s10412_s22  ;;  %v10258_v45 = vld [vmem:[%s18881_s2 + $0x10] ss:$0 sps:$4 sm:$0x33]   ;;  %s10414_s2 = smov 32  }
 0x196   :  { %10241 = vmatprep.subr.msk.bf16.mxu0 %vm3047_vm3, %v10258_v45  ;;  %v3049_v49 = vsel %vm3047_vm3, %v10258_v45, 0 }
 0x197   :  { %v11662_v39 = vpop.permute.xlu1 %848  ;;  %v11664_v58 = vpop.permute.xlu0 %846  ;;  %9570 = vmatpush3.bf16.msra.mxu0 %v3049_v49 }
 0x198   :  { %19224 = vst [vmem:[#allocation116_spill] sm:$0xff] %v11662_v39  ;;  %19225 = vst [vmem:[#allocation117_spill] sm:$0xff] %v11664_v58  ;;  %v399_v58 = vld [vmem:[#allocation2 + $0x3a] sm:$0xff]  ;;  %v398_v39 = vld [vmem:[#allocation2 + $0x32] sm:$0xff] }
 0x199   :  { %1636 = vrot.lane.b32.xlu1 %v397_v41, %s10412_s22  ;;  %1634 = vrot.lane.b32.xlu0 %v396_v17, %s10412_s22 }
 0x19b   :  { %v11671_v31 = vpop.permute.xlu1 %852  ;;  %v11673_v33 = vpop.permute.xlu0 %850 }
 0x19c   :  { %19226 = vst [vmem:[#allocation118_spill] sm:$0xff] %v11671_v31  ;;  %19227 = vst [vmem:[#allocation119_spill] sm:$0xff] %v11673_v33 }
 0x19d   :  { %1828 = vrot.lane.b32.xlu1 %v397_v41, %s10413_s27  ;;  %1826 = vrot.lane.b32.xlu0 %v396_v17, %s10413_s27  ;;  %v401_v17 = vld [vmem:[#allocation2 + $0x52] sm:$0xff]  ;;  %v400_v41 = vld [vmem:[#allocation2 + $0x4a] sm:$0xff] }
 0x19f   :  { %v11679_v12 = vpop.permute.xlu1 %984  ;;  %v11681_v57 = vpop.permute.xlu0 %982 }
 0x1a1   :  { %1832 = vrot.lane.b32.xlu1 %v399_v58, %s10413_s27  ;;  %1830 = vrot.lane.b32.xlu0 %v398_v39, %s10413_s27 }
 0x1a3   :  { %v11685_v33 = vpop.permute.xlu1 %988  ;;  %v11687_v31 = vpop.permute.xlu0 %986 }
 0x1a5   :  { %2024 = vrot.lane.b32.xlu1 %v399_v58, %s10414_s2  ;;  %2022 = vrot.lane.b32.xlu0 %v398_v39, %s10414_s2 }
 0x1a7   :  { %v11691_v45 = vpop.permute.xlu1 %992  ;;  %v11693_v49 = vpop.permute.xlu0 %990 }
 0x1a9   :  { %2028 = vrot.lane.b32.xlu1 %v401_v17, %s10414_s2  ;;  %2026 = vrot.lane.b32.xlu0 %v400_v41, %s10414_s2 }
 0x1ab   :  { %v11697_v43 = vpop.permute.xlu1 %996  ;;  %v11699_v44 = vpop.permute.xlu0 %994 }
 0x1ad   :  { %1188 = vrot.lane.b32.xlu1 %v11426_v56, %s10410_s18  ;;  %1186 = vrot.lane.b32.xlu0 %v11428_v55, %s10410_s18 }
 0x1af   :  { %v11705_v50 = vpop.permute.xlu1 %1000  ;;  %v11707_v48 = vpop.permute.xlu0 %998 }
 0x1b1   :  { %1192 = vrot.lane.b32.xlu1 %v11438_v52, %s10410_s18  ;;  %1190 = vrot.lane.b32.xlu0 %v11440_v51, %s10410_s18 }
 0x1b3   :  { %v11713_v35 = vpop.permute.xlu1 %1004  ;;  %v11715_v30 = vpop.permute.xlu0 %1002 }
 0x1b4   :  { %19228 = vst [vmem:[#allocation120_spill] sm:$0xff] %v11713_v35  ;;  %19229 = vst [vmem:[#allocation121_spill] sm:$0xff] %v11715_v30  ;;  %v19264_v30 = vld [vmem:[#allocation3_spill] sm:$0xff] }
 0x1b5   :  { %1384 = vrot.lane.b32.xlu1 %v11438_v52, %s10411_s19  ;;  %1382 = vrot.lane.b32.xlu0 %v11440_v51, %s10411_s19  ;;  %v2216_v35 = vsel %vm33_vm0, %v10272_v26, %v19264_v30 }
 0x1b7   :  { %v11721_v55 = vpop.permute.xlu1 %1008  ;;  %v11723_v56 = vpop.permute.xlu0 %1006 }
 0x1b8   :  { %19230 = vst [vmem:[#allocation122_spill] sm:$0xff] %v11721_v55  ;;  %19231 = vst [vmem:[#allocation123_spill] sm:$0xff] %v11723_v56 }
 0x1b9   :  { %1388 = vrot.lane.b32.xlu1 %v11450_v47, %s10411_s19  ;;  %1386 = vrot.lane.b32.xlu0 %v11452_v46, %s10411_s19 }
 0x1bb   :  { %v11729_v29 = vpop.permute.xlu1 %1012  ;;  %v11731_v53 = vpop.permute.xlu0 %1010 }
 0x1bc   :  { %19232 = vst [vmem:[#allocation124_spill] sm:$0xff] %v11729_v29  ;;  %19233 = vst [vmem:[#allocation125_spill] sm:$0xff] %v11731_v53  ;;  %v403_v53 = vld [vmem:[#allocation2 + $0x6a] sm:$0xff] }
 0x1bd   :  { %1640 = vrot.lane.b32.xlu1 %v399_v58, %s10412_s22  ;;  %1638 = vrot.lane.b32.xlu0 %v398_v39, %s10412_s22  ;;  %v402_v58 = vld [vmem:[#allocation2 + $0x62] sm:$0xff] }
 0x1bf   :  { %v11735_v52 = vpop.permute.xlu1 %1016  ;;  %v11737_v51 = vpop.permute.xlu0 %1014 }
 0x1c0   :  { %19234 = vst [vmem:[#allocation126_spill] sm:$0xff] %v11735_v52  ;;  %19235 = vst [vmem:[#allocation127_spill] sm:$0xff] %v11737_v51 }
 0x1c1   :  { %1644 = vrot.lane.b32.xlu1 %v401_v17, %s10412_s22  ;;  %1642 = vrot.lane.b32.xlu0 %v400_v41, %s10412_s22 }
 0x1c3   :  { %v11741_v56 = vpop.permute.xlu1 %1020  ;;  %v11743_v55 = vpop.permute.xlu0 %1018 }
 0x1c4   :  { %19236 = vst [vmem:[#allocation128_spill] sm:$0xff] %v11741_v56  ;;  %19237 = vst [vmem:[#allocation129_spill] sm:$0xff] %v11743_v55 }
 0x1c5   :  { %1836 = vrot.lane.b32.xlu1 %v401_v17, %s10413_s27  ;;  %1834 = vrot.lane.b32.xlu0 %v400_v41, %s10413_s27  ;;  %v405_v17 = vld [vmem:[#allocation2 + $0x82] sm:$0xff]  ;;  %v404_v41 = vld [vmem:[#allocation2 + $0x7a] sm:$0xff] }
 0x1c7   :  { %v11747_v29 = vpop.permute.xlu1 %1024  ;;  %v11749_v39 = vpop.permute.xlu0 %1022 }
 0x1c8   :  { %19238 = vst [vmem:[#allocation130_spill] sm:$0xff] %v11747_v29  ;;  %19239 = vst [vmem:[#allocation131_spill] sm:$0xff] %v11749_v39 }
 0x1c9   :  { %1840 = vrot.lane.b32.xlu1 %v403_v53, %s10413_s27  ;;  %1838 = vrot.lane.b32.xlu0 %v402_v58, %s10413_s27 }
 0x1cb   :  { %v11753_v51 = vpop.permute.xlu1 %1028  ;;  %v11755_v52 = vpop.permute.xlu0 %1026 }
 0x1cc   :  { %19240 = vst [vmem:[#allocation132_spill] sm:$0xff] %v11753_v51  ;;  %19241 = vst [vmem:[#allocation133_spill] sm:$0xff] %v11755_v52 }
 0x1cd   :  { %2032 = vrot.lane.b32.xlu1 %v403_v53, %s10414_s2  ;;  %2030 = vrot.lane.b32.xlu0 %v402_v58, %s10414_s2 }
 0x1cf   :  { %v11759_v55 = vpop.permute.xlu1 %1032  ;;  %v11761_v56 = vpop.permute.xlu0 %1030 }
 0x1d0   :  { %19242 = vst [vmem:[#allocation134_spill] sm:$0xff] %v11759_v55  ;;  %19243 = vst [vmem:[#allocation135_spill] sm:$0xff] %v11761_v56 }
 0x1d1   :  { %2036 = vrot.lane.b32.xlu1 %v405_v17, %s10414_s2  ;;  %2034 = vrot.lane.b32.xlu0 %v404_v41, %s10414_s2 }
 0x1d3   :  { %v11765_v39 = vpop.permute.xlu1 %1036  ;;  %v11767_v29 = vpop.permute.xlu0 %1034 }
 0x1d4   :  { %19244 = vst [vmem:[#allocation136_spill] sm:$0xff] %v11765_v39  ;;  %19245 = vst [vmem:[#allocation137_spill] sm:$0xff] %v11767_v29 }
 0x1d5   :  { %1196 = vrot.lane.b32.xlu1 %v11450_v47, %s10410_s18  ;;  %1194 = vrot.lane.b32.xlu0 %v11452_v46, %s10410_s18 }
 0x1d7   :  { %v11773_v52 = vpop.permute.xlu1 %1040  ;;  %v11775_v51 = vpop.permute.xlu0 %1038 }
 0x1d8   :  { %19246 = vst [vmem:[#allocation138_spill] sm:$0xff] %v11773_v52  ;;  %19247 = vst [vmem:[#allocation139_spill] sm:$0xff] %v11775_v51 }
 0x1d9   :  { %1200 = vrot.lane.b32.xlu1 %v11462_v42, %s10410_s18  ;;  %1198 = vrot.lane.b32.xlu0 %v11464_v34, %s10410_s18 }
 0x1db   :  { %v11781_v56 = vpop.permute.xlu1 %1044  ;;  %v11783_v39 = vpop.permute.xlu0 %1042 }
 0x1dc   :  { %19248 = vst [vmem:[#allocation140_spill] sm:$0xff] %v11781_v56  ;;  %19249 = vst [vmem:[#allocation141_spill] sm:$0xff] %v11783_v39 }
 0x1dd   :  { %1392 = vrot.lane.b32.xlu1 %v11462_v42, %s10411_s19  ;;  %1390 = vrot.lane.b32.xlu0 %v11464_v34, %s10411_s19 }
 0x1df   :  { %v11789_v46 = vpop.permute.xlu1 %1048  ;;  %v11791_v47 = vpop.permute.xlu0 %1046 }
 0x1e0   :  { %19250 = vst [vmem:[#allocation142_spill] sm:$0xff] %v11789_v46  ;;  %19251 = vst [vmem:[#allocation143_spill] sm:$0xff] %v11791_v47 }
 0x1e1   :  { %1396 = vrot.lane.b32.xlu1 %v11474_v38, %s10411_s19  ;;  %1394 = vrot.lane.b32.xlu0 %v11476_v37, %s10411_s19 }
 0x1e3   :  { %v11797_v51 = vpop.permute.xlu1 %1052  ;;  %v11799_v56 = vpop.permute.xlu0 %1050 }
 0x1e4   :  { %19252 = vst [vmem:[#allocation144_spill] sm:$0xff] %v11797_v51  ;;  %19253 = vst [vmem:[#allocation145_spill] sm:$0xff] %v11799_v56  ;;  %v407_v56 = vld [vmem:[#allocation2 + $0x9a] sm:$0xff] }
 0x1e5   :  { %1648 = vrot.lane.b32.xlu1 %v403_v53, %s10412_s22  ;;  %1646 = vrot.lane.b32.xlu0 %v402_v58, %s10412_s22  ;;  %v406_v53 = vld [vmem:[#allocation2 + $0x92] sm:$0xff] }
 0x1e7   :  { %v11803_v42 = vpop.permute.xlu1 %1056  ;;  %v11805_v34 = vpop.permute.xlu0 %1054 }
 0x1e8   :  { %19254 = vst [vmem:[#allocation146_spill] sm:$0xff] %v11803_v42  ;;  %19255 = vst [vmem:[#allocation147_spill] sm:$0xff] %v11805_v34 }
 0x1e9   :  { %1652 = vrot.lane.b32.xlu1 %v405_v17, %s10412_s22  ;;  %1650 = vrot.lane.b32.xlu0 %v404_v41, %s10412_s22 }
 0x1eb   :  { %v11809_v47 = vpop.permute.xlu1 %1060  ;;  %v11811_v46 = vpop.permute.xlu0 %1058 }
 0x1ec   :  { %19256 = vst [vmem:[#allocation148_spill] sm:$0xff] %v11809_v47  ;;  %19257 = vst [vmem:[#allocation149_spill] sm:$0xff] %v11811_v46 }
 0x1ed   :  { %1844 = vrot.lane.b32.xlu1 %v405_v17, %s10413_s27  ;;  %1842 = vrot.lane.b32.xlu0 %v404_v41, %s10413_s27  ;;  %v409_v17 = vld [vmem:[#allocation2 + $0xb2] sm:$0xff]  ;;  %v408_v41 = vld [vmem:[#allocation2 + $0xaa] sm:$0xff] }
 0x1ef   :  { %v11815_v51 = vpop.permute.xlu1 %1064  ;;  %v11817_v58 = vpop.permute.xlu0 %1062 }
 0x1f0   :  { %19258 = vst [vmem:[#allocation150_spill] sm:$0xff] %v11815_v51  ;;  %19259 = vst [vmem:[#allocation151_spill] sm:$0xff] %v11817_v58 }
 0x1f1   :  { %1848 = vrot.lane.b32.xlu1 %v407_v56, %s10413_s27  ;;  %1846 = vrot.lane.b32.xlu0 %v406_v53, %s10413_s27 }
 0x1f3   :  { %v11821_v34 = vpop.permute.xlu1 %1068  ;;  %v11823_v42 = vpop.permute.xlu0 %1066 }
 0x1f4   :  { %19260 = vst [vmem:[#allocation152_spill] sm:$0xff] %v11821_v34  ;;  %19261 = vst [vmem:[#allocation153_spill] sm:$0xff] %v11823_v42 }
 0x1f5   :  { %2040 = vrot.lane.b32.xlu1 %v407_v56, %s10414_s2  ;;  %2038 = vrot.lane.b32.xlu0 %v406_v53, %s10414_s2 }
 0x1f7   :  { %v1181_v46 = vpop.permute.xlu1 %1180  ;;  %v1179_v47 = vpop.permute.xlu0 %1178 }
 0x1f9   :  { %2044 = vrot.lane.b32.xlu1 %v409_v17, %s10414_s2  ;;  %2042 = vrot.lane.b32.xlu0 %v408_v41, %s10414_s2 }
 0x1fb   :  { %v11829_v58 = vpop.permute.xlu1 %1184  ;;  %v11831_v51 = vpop.permute.xlu0 %1182 }
 0x1fd   :  { %1204 = vrot.lane.b32.xlu1 %v11474_v38, %s10410_s18  ;;  %1202 = vrot.lane.b32.xlu0 %v11476_v37, %s10410_s18 }
 0x1ff   :  { %v1377_v42 = vpop.permute.xlu1 %1376  ;;  %v1375_v34 = vpop.permute.xlu0 %1374 }
 0x201   :  { %1208 = vrot.lane.b32.xlu1 %v11486_v24, %s10410_s18  ;;  %1206 = vrot.lane.b32.xlu0 %v11488_v32, %s10410_s18 }
 0x203   :  { %v1381_v39 = vpop.permute.xlu1 %1380  ;;  %v1379_v52 = vpop.permute.xlu0 %1378 }
 0x205   :  { %1400 = vrot.lane.b32.xlu1 %v11486_v24, %s10411_s19  ;;  %1398 = vrot.lane.b32.xlu0 %v11488_v32, %s10411_s19  ;;  %v19262_v32 = vld [vmem:[#allocation4_spill] sm:$0xff] }
 0x206   :  { %v2214_v36 = vsel %vm33_vm0, %v250_v54, %v19262_v32 }
 0x207   :  { %v1633_v38 = vpop.permute.xlu1 %1632  ;;  %v1631_v29 = vpop.permute.xlu0 %1630 }
 0x209   :  { %1404 = vrot.lane.b32.xlu1 %v11498_v22, %s10411_s19  ;;  %1402 = vrot.lane.b32.xlu0 %v11500_v21, %s10411_s19 }
 0x20b   :  { %v1637_v37 = vpop.permute.xlu1 %1636  ;;  %v1635_v55 = vpop.permute.xlu0 %1634 }
 0x20d   :  { %1656 = vrot.lane.b32.xlu1 %v407_v56, %s10412_s22  ;;  %1654 = vrot.lane.b32.xlu0 %v406_v53, %s10412_s22  ;;  %v2280_v56 = vsel %vm2278_vm4, %v2215_v61, %v11374_v7  ;;  %v2279_v53 = vsel %vm2278_vm4, %v2214_v36, %v11376_v8  ;;  %v2217_v61 = vsel %vm33_vm0, %v10273_v9, %v19265_v15 }
 0x20e   :  { %v2345_v54 = vsel %vm2343_vm5, %v2280_v56, %v11679_v12  ;;  %v2344_v27 = vsel %vm2343_vm5, %v2279_v53, %v11681_v57  ;;  %v2282_v30 = vsel %vm2278_vm4, %v2217_v61, %v11382_v10  ;;  %v2281_v15 = vsel %vm2278_vm4, %v2216_v35, %v11384_v5  ;;  %v11881_v57 = vld [vmem:[#allocation2 + $0xca] sm:$0xff] }
 0x20f   :  { %v1829_v24 = vpop.permute.xlu1 %1828  ;;  %v1827_v25 = vpop.permute.xlu0 %1826  ;;  %v2410_v36 = vsel %vm2408_vm6, %v2345_v54, %v1181_v46  ;;  %v2409_v7 = vsel %vm2408_vm6, %v2344_v27, %v1179_v47  ;;  %v11883_v46 = vld [vmem:[#allocation2 + $0xc2] sm:$0xff]  ;;  %v2347_v10 = vsel %vm2343_vm5, %v2282_v30, %v11685_v33  ;;  %v2346_v47 = vsel %vm2343_vm5, %v2281_v15, %v11687_v31 }
 0x210   :  { %v2475_v26 = vsel %vm2473_vm7, %v2410_v36, %v1377_v42  ;;  %v2474_v8 = vsel %vm2473_vm7, %v2409_v7, %v1375_v34  ;;  %v412_v36 = vld [vmem:[#allocation2 + $0xda] sm:$0xff] }
 0x211   :  { %1660 = vrot.lane.b32.xlu1 %v409_v17, %s10412_s22  ;;  %1658 = vrot.lane.b32.xlu0 %v408_v41, %s10412_s22  ;;  %v2540_v9 = vsel %vm2538_vm8, %v2475_v26, %v1633_v38  ;;  %v2539_v12 = vsel %vm2538_vm8, %v2474_v8, %v1631_v29  ;;  %v2412_v29 = vsel %vm2408_vm6, %v2347_v10, %v11829_v58  ;;  %v10300_v10 = vld [vmem:[#allocation2 + $0x110] sm:$0xff] }
 0x212   :  { %v2605_v42 = vsel %vm2603_vm9, %v2540_v9, %v1829_v24  ;;  %v2604_v34 = vsel %vm2603_vm9, %v2539_v12, %v1827_v25  ;;  %v2477_v33 = vsel %vm2473_vm7, %v2412_v29, %v1381_v39 }
 0x213   :  { %v1833_v59 = vpop.permute.xlu1 %1832  ;;  %v1831_v32 = vpop.permute.xlu0 %1830  ;;  %v2542_v25 = vsel %vm2538_vm8, %v2477_v33, %v1637_v37  ;;  %v10274_v33 = vld [vmem:[#allocation2 + $0x38] sm:$0xff] }
 0x214   :  { %v2607_v58 = vsel %vm2603_vm9, %v2542_v25, %v1833_v59  ;;  %v19270_v25 = vld [vmem:[#allocation8_spill] sm:$0xff] }
 0x215   :  { %1852 = vrot.lane.b32.xlu1 %v409_v17, %s10413_s27  ;;  %1850 = vrot.lane.b32.xlu0 %v408_v41, %s10413_s27  ;;  %v2411_v17 = vsel %vm2408_vm6, %v2346_v47, %v11831_v51 }
 0x216   :  { %v2476_v31 = vsel %vm2473_vm7, %v2411_v17, %v1379_v52 }
 0x217   :  { %v2025_v35 = vpop.permute.xlu1 %2024  ;;  %v2023_v5 = vpop.permute.xlu0 %2022  ;;  %v2541_v51 = vsel %vm2538_vm8, %v2476_v31, %v1635_v55  ;;  %v10275_v31 = vld [vmem:[#allocation2 + $0x30] sm:$0xff] }
 0x218   :  { %v2670_v41 = vsel %vm2668_vm10, %v2605_v42, %v2025_v35  ;;  %v2669_v38 = vsel %vm2668_vm10, %v2604_v34, %v2023_v5  ;;  %v2606_v24 = vsel %vm2603_vm9, %v2541_v51, %v1831_v32  ;;  %v413_v32 = vld [vmem:[#allocation2 + $0xe2] sm:$0xff]  ;;  %v2218_v51 = vsel %vm33_vm0, %v10275_v31, %v19270_v25  ;;  %v11991_v31 = vld [vmem:[#allocation2 + $0xf2] sm:$0xff] }
 0x219   :  { %v11899_v56 = vpack.c.bf16 %v2670_v41, %v2669_v38  ;;  %1856 = vrot.lane.b32.xlu1 %v11881_v57, %s10413_s27  ;;  %1854 = vrot.lane.b32.xlu0 %v11883_v46, %s10413_s27 }
 0x21b   :  { %v2765_v39 = vunpack.c.l.bf16 %v11899_v56  ;;  %v2766_v52 = vunpack.c.h.bf16 %v11899_v56  ;;  %v2029_v53 = vpop.permute.xlu1 %2028  ;;  %9571 = vmatprep.mubr.msk.bf16.mxu0 %vm2950_vm11, %v11899_v56  ;;  %v2027_v54 = vpop.permute.xlu0 %2026 }
 0x21c   :  { %v2672_v27 = vsel %vm2668_vm10, %v2607_v58, %v2029_v53  ;;  %v2671_v61 = vsel %vm2668_vm10, %v2606_v24, %v2027_v54  ;;  %v19271_v53 = vld [vmem:[#allocation9_spill] sm:$0xff] }
 0x21d   :  { %v11915_v37 = vsub.f32 %v2669_v38, %v2765_v39  ;;  %v11917_v55 = vsub.f32 %v2670_v41, %v2766_v52  ;;  %v11919_v59 = vpack.c.bf16 %v2672_v27, %v2671_v61  ;;  %2048 = vrot.lane.b32.xlu1 %v11881_v57, %s10414_s2  ;;  %2046 = vrot.lane.b32.xlu0 %v11883_v46, %s10414_s2  ;;  %v10276_v52 = vld [vmem:[#allocation2 + $0x50] sm:$0xff] }
 0x21e   :  { %v2221_v54 = vsel %vm33_vm0, %v10276_v52, %v19271_v53  ;;  %v416_v53 = vld [vmem:[#allocation2 + $0x10a] sm:$0xff] }
 0x21f   :  { %19266 = vst [vmem:[#allocation4_spill] sm:$0xff] %v11915_v37  ;;  %19267 = vst [vmem:[#allocation7_spill] sm:$0xff] %v11917_v55  ;;  %v2767_v30 = vunpack.c.l.bf16 %v11919_v59  ;;  %v2768_v26 = vunpack.c.h.bf16 %v11919_v59  ;;  %v1189_v8 = vpop.permute.xlu1 %1188  ;;  %v1187_v15 = vpop.permute.xlu0 %1186  ;;  %9572 = vmatmul.mubr.msk.bf16.vlgmr.msra.gmra.mrb[0].mxu0 %vm2950_vm11, %v11919_v59 }
 0x221   :  { %v11931_v9 = vsub.f32 %v2671_v61, %v2767_v30  ;;  %v11933_v12 = vsub.f32 %v2672_v27, %v2768_v26  ;;  %2052 = vrot.lane.b32.xlu1 %v413_v32, %s10414_s2  ;;  %2050 = vrot.lane.b32.xlu0 %v412_v36, %s10414_s2  ;;  %v19272_v30 = vld [vmem:[#allocation10_spill] sm:$0xff] }
 0x223   :  { %19268 = vst [vmem:[#allocation3_spill] sm:$0xff] %v11931_v9  ;;  %19269 = vst [vmem:[#allocation6_spill] sm:$0xff] %v11933_v12  ;;  %v1193_v47 = vpop.permute.xlu1 %1192  ;;  %v1191_v42 = vpop.permute.xlu0 %1190 }
 0x225   :  { %1212 = vrot.lane.b32.xlu1 %v11498_v22, %s10410_s18  ;;  %1210 = vrot.lane.b32.xlu0 %v11500_v21, %s10410_s18 }
 0x227   :  { %v1385_v34 = vpop.permute.xlu1 %1384  ;;  %v1383_v35 = vpop.permute.xlu0 %1382 }
 0x229   :  { %1216 = vrot.lane.b32.xlu1 %v11510_v18, %s10410_s18  ;;  %1214 = vrot.lane.b32.xlu0 %v11512_v4, %s10410_s18 }
 0x22b   :  { %v1389_v5 = vpop.permute.xlu1 %1388  ;;  %v1387_v29 = vpop.permute.xlu0 %1386 }
 0x22d   :  { %1408 = vrot.lane.b32.xlu1 %v11510_v18, %s10411_s19  ;;  %1406 = vrot.lane.b32.xlu0 %v11512_v4, %s10411_s19  ;;  %v2219_v4 = vsel %vm33_vm0, %v10274_v33, %v11136_v13 }
 0x22f   :  { %v1641_v22 = vpop.permute.xlu1 %1640  ;;  %v1639_v17 = vpop.permute.xlu0 %1638 }
 0x231   :  { %1412 = vrot.lane.b32.xlu1 %v11522_v19, %s10411_s19  ;;  %1410 = vrot.lane.b32.xlu0 %v11524_v20, %s10411_s19 }
 0x233   :  { %v1645_v21 = vpop.permute.xlu1 %1644  ;;  %v1643_v41 = vpop.permute.xlu0 %1642 }
 0x235   :  { %1664 = vrot.lane.b32.xlu1 %v11881_v57, %s10412_s22  ;;  %1662 = vrot.lane.b32.xlu0 %v11883_v46, %s10412_s22  ;;  %v2284_v57 = vsel %vm2278_vm4, %v2219_v4, %v11390_v6  ;;  %v2283_v46 = vsel %vm2278_vm4, %v2218_v51, %v11392_v3  ;;  %v10277_v6 = vld [vmem:[#allocation2 + $0x48] sm:$0xff]  ;;  %v11989_v4 = vld [vmem:[#allocation2 + $0xfa] sm:$0xff] }
 0x236   :  { %v2349_v58 = vsel %vm2343_vm5, %v2284_v57, %v11691_v45  ;;  %v2348_v13 = vsel %vm2343_vm5, %v2283_v46, %v11693_v49  ;;  %v2220_v3 = vsel %vm33_vm0, %v10277_v6, %v19272_v30  ;;  %v2286_v49 = vsel %vm2278_vm4, %v2221_v54, %v11396_v2 }
 0x237   :  { %v1837_v18 = vpop.permute.xlu1 %1836  ;;  %v1835_v38 = vpop.permute.xlu0 %1834  ;;  %v2414_v27 = vsel %vm2408_vm6, %v2349_v58, %v1189_v8  ;;  %v2413_v61 = vsel %vm2408_vm6, %v2348_v13, %v1187_v15  ;;  %v2285_v8 = vsel %vm2278_vm4, %v2220_v3, %v11398_v1 }
 0x238   :  { %v2479_v26 = vsel %vm2473_vm7, %v2414_v27, %v1385_v34  ;;  %v2478_v45 = vsel %vm2473_vm7, %v2413_v61, %v1383_v35  ;;  %v2351_v34 = vsel %vm2343_vm5, %v2286_v49, %v11697_v43 }
 0x239   :  { %1668 = vrot.lane.b32.xlu1 %v413_v32, %s10412_s22  ;;  %1666 = vrot.lane.b32.xlu0 %v412_v36, %s10412_s22  ;;  %v2544_v15 = vsel %vm2538_vm8, %v2479_v26, %v1641_v22  ;;  %v2543_v33 = vsel %vm2538_vm8, %v2478_v45, %v1639_v17  ;;  %v2416_v22 = vsel %vm2408_vm6, %v2351_v34, %v1193_v47  ;;  %v19326_v45 = vld [vmem:[#allocation131_spill] sm:$0xff] }
 0x23a   :  { %v2608_v2 = vsel %vm2603_vm9, %v2543_v33, %v1835_v38  ;;  %v2481_v57 = vsel %vm2473_vm7, %v2416_v22, %v1389_v5  ;;  %v10279_v22 = vld [vmem:[#allocation2 + $0x60] sm:$0xff] }
 0x23b   :  { %v1841_v24 = vpop.permute.xlu1 %1840  ;;  %v1839_v39 = vpop.permute.xlu0 %1838 }
 0x23d   :  { %1860 = vrot.lane.b32.xlu1 %v413_v32, %s10413_s27  ;;  %1858 = vrot.lane.b32.xlu0 %v412_v36, %s10413_s27  ;;  %v2350_v32 = vsel %vm2343_vm5, %v2285_v8, %v11699_v44  ;;  %v2609_v36 = vsel %vm2603_vm9, %v2544_v15, %v1837_v18  ;;  %v2546_v44 = vsel %vm2538_vm8, %v2481_v57, %v1645_v21 }
 0x23e   :  { %v2415_v17 = vsel %vm2408_vm6, %v2350_v32, %v1191_v42  ;;  %v2611_v42 = vsel %vm2603_vm9, %v2546_v44, %v1841_v24 }
 0x23f   :  { %v2033_v35 = vpop.permute.xlu1 %2032  ;;  %v2031_v1 = vpop.permute.xlu0 %2030  ;;  %v2480_v43 = vsel %vm2473_vm7, %v2415_v17, %v1387_v29  ;;  %v2222_v17 = vsel %vm33_vm0, %v10279_v22, %v11154_v40 }
 0x240   :  { %v2674_v25 = vsel %vm2668_vm10, %v2609_v36, %v2033_v35  ;;  %v2673_v51 = vsel %vm2668_vm10, %v2608_v2, %v2031_v1  ;;  %v2545_v47 = vsel %vm2538_vm8, %v2480_v43, %v1643_v41  ;;  %v10278_v1 = vld [vmem:[#allocation2 + $0x68] sm:$0xff]  ;;  %v10280_v43 = vld [vmem:[#allocation2 + $0x80] sm:$0xff] }
 0x241   :  { %v12005_v46 = vpack.c.bf16 %v2674_v25, %v2673_v51  ;;  %1864 = vrot.lane.b32.xlu1 %v11989_v4, %s10413_s27  ;;  %1862 = vrot.lane.b32.xlu0 %v11991_v31, %s10413_s27  ;;  %v2610_v18 = vsel %vm2603_vm9, %v2545_v47, %v1839_v39  ;;  %v417_v39 = vld [vmem:[#allocation2 + $0x112] sm:$0xff]  ;;  %v2225_v40 = vsel %vm33_vm0, %v10280_v43, %v11160_v14  ;;  %v19278_v14 = vld [vmem:[#allocation63_spill] sm:$0xff] }
 0x243   :  { %v2769_v5 = vunpack.c.l.bf16 %v12005_v46  ;;  %v2770_v29 = vunpack.c.h.bf16 %v12005_v46  ;;  %v2037_v38 = vpop.permute.xlu1 %2036  ;;  %v2035_v58 = vpop.permute.xlu0 %2034  ;;  %9575 = vmatprep.mubr.msk.bf16.mxu0 %vm2950_vm11, %v12005_v46 }
 0x244   :  { %v2676_v13 = vsel %vm2668_vm10, %v2611_v42, %v2037_v38  ;;  %v2675_v52 = vsel %vm2668_vm10, %v2610_v18, %v2035_v58  ;;  %v12095_v58 = vld [vmem:[#allocation2 + $0x12a] sm:$0xff] }
 0x245   :  { %v12021_v21 = vsub.f32 %v2673_v51, %v2769_v5  ;;  %v12023_v41 = vsub.f32 %v2674_v25, %v2770_v29  ;;  %v12025_v24 = vpack.c.bf16 %v2676_v13, %v2675_v52  ;;  %2056 = vrot.lane.b32.xlu1 %v11989_v4, %s10414_s2  ;;  %2054 = vrot.lane.b32.xlu0 %v11991_v31, %s10414_s2 }
 0x247   :  { %19273 = vst [vmem:[#allocation8_spill] sm:$0xff] %v12021_v21  ;;  %19274 = vst [vmem:[#allocation9_spill] sm:$0xff] %v12023_v41  ;;  %v2771_v27 = vunpack.c.l.bf16 %v12025_v24  ;;  %v2772_v61 = vunpack.c.h.bf16 %v12025_v24  ;;  %v1197_v6 = vpop.permute.xlu1 %1196  ;;  %v1195_v30 = vpop.permute.xlu0 %1194  ;;  %9576 = vmatmul.mubr.msk.bf16.gmra.mrb[4].mxu0 %vm2950_vm11, %v12025_v24  ;;  %v19424_v41 = vld [vmem:[#allocation45_spill] sm:$0xff] }
 0x249   :  { %v12037_v3 = vsub.f32 %v2675_v52, %v2771_v27  ;;  %v12039_v26 = vsub.f32 %v2676_v13, %v2772_v61  ;;  %2060 = vrot.lane.b32.xlu1 %v417_v39, %s10414_s2  ;;  %2058 = vrot.lane.b32.xlu0 %v416_v53, %s10414_s2  ;;  %v19279_v13 = vld [vmem:[#allocation120_spill] sm:$0xff] }
 0x24b   :  { %19275 = vst [vmem:[#allocation10_spill] sm:$0xff] %v12037_v3  ;;  %19276 = vst [vmem:[#allocation154_spill] sm:$0xff] %v12039_v26  ;;  %v1201_v49 = vpop.permute.xlu1 %1200  ;;  %v1199_v8 = vpop.permute.xlu0 %1198 }
 0x24d   :  { %1220 = vrot.lane.b32.xlu1 %v11522_v19, %s10410_s18  ;;  %1218 = vrot.lane.b32.xlu0 %v11524_v20, %s10410_s18 }
 0x24f   :  { %v1393_v15 = vpop.permute.xlu1 %1392  ;;  %v1391_v33 = vpop.permute.xlu0 %1390 }
 0x251   :  { %1224 = vrot.lane.b32.xlu1 %v11534_v23, %s10410_s18  ;;  %1222 = vrot.lane.b32.xlu0 %v11536_v63, %s10410_s18 }
 0x253   :  { %v1397_v34 = vpop.permute.xlu1 %1396  ;;  %v1395_v32 = vpop.permute.xlu0 %1394 }
 0x255   :  { %1416 = vrot.lane.b32.xlu1 %v11534_v23, %s10411_s19  ;;  %1414 = vrot.lane.b32.xlu0 %v11536_v63, %s10411_s19  ;;  %v2223_v63 = vsel %vm33_vm0, %v10278_v1, %v11152_v0 }
 0x257   :  { %v1649_v19 = vpop.permute.xlu1 %1648  ;;  %v1647_v36 = vpop.permute.xlu0 %1646 }
 0x259   :  { %1420 = vrot.lane.b32.xlu1 %v11546_v62, %s10411_s19  ;;  %1418 = vrot.lane.b32.xlu0 %v11548_v28, %s10411_s19 }
 0x25b   :  { %v1653_v20 = vpop.permute.xlu1 %1652  ;;  %v1651_v2 = vpop.permute.xlu0 %1650 }
 0x25d   :  { %1672 = vrot.lane.b32.xlu1 %v11989_v4, %s10412_s22  ;;  %1670 = vrot.lane.b32.xlu0 %v11991_v31, %s10412_s22  ;;  %v2288_v4 = vsel %vm2278_vm4, %v2223_v63, %v11406_v60  ;;  %v2287_v31 = vsel %vm2278_vm4, %v2222_v17, %v11408_v11  ;;  %v10281_v60 = vld [vmem:[#allocation2 + $0x78] sm:$0xff] }
 0x25e   :  { %v2353_v25 = vsel %vm2343_vm5, %v2288_v4, %v11705_v50  ;;  %v2352_v0 = vsel %vm2343_vm5, %v2287_v31, %v11707_v48  ;;  %v2224_v11 = vsel %vm33_vm0, %v10281_v60, %v11162_v16  ;;  %v19277_v48 = vld [vmem:[#allocation5_spill] sm:$0xff]  ;;  %v12097_v16 = vld [vmem:[#allocation2 + $0x122] sm:$0xff] }
 0x25f   :  { %v1845_v23 = vpop.permute.xlu1 %1844  ;;  %v1843_v35 = vpop.permute.xlu0 %1842  ;;  %v2418_v44 = vsel %vm2408_vm6, %v2353_v25, %v1197_v6  ;;  %v2417_v47 = vsel %vm2408_vm6, %v2352_v0, %v1195_v30  ;;  %v2290_v18 = vsel %vm2278_vm4, %v2225_v40, %v19277_v48  ;;  %v2289_v5 = vsel %vm2278_vm4, %v2224_v11, %v19278_v14 }
 0x260   :  { %v2483_v42 = vsel %vm2473_vm7, %v2418_v44, %v1393_v15  ;;  %v2482_v50 = vsel %vm2473_vm7, %v2417_v47, %v1391_v33  ;;  %v2355_v52 = vsel %vm2343_vm5, %v2290_v18, %v19279_v13 }
 0x261   :  { %1676 = vrot.lane.b32.xlu1 %v417_v39, %s10412_s22  ;;  %1674 = vrot.lane.b32.xlu0 %v416_v53, %s10412_s22  ;;  %v2548_v29 = vsel %vm2538_vm8, %v2483_v42, %v1649_v19  ;;  %v2547_v38 = vsel %vm2538_vm8, %v2482_v50, %v1647_v36  ;;  %v2420_v15 = vsel %vm2408_vm6, %v2355_v52, %v1201_v49  ;;  %v19325_v50 = vld [vmem:[#allocation130_spill] sm:$0xff] }
 0x262   :  { %v2613_v27 = vsel %vm2603_vm9, %v2548_v29, %v1845_v23  ;;  %v2612_v61 = vsel %vm2603_vm9, %v2547_v38, %v1843_v35  ;;  %v2485_v1 = vsel %vm2473_vm7, %v2420_v15, %v1397_v34  ;;  %v19285_v29 = vld [vmem:[#allocation86_spill] sm:$0xff]  ;;  %v19286_v38 = vld [vmem:[#allocation87_spill] sm:$0xff] }
 0x263   :  { %v1849_v51 = vpop.permute.xlu1 %1848  ;;  %v1847_v57 = vpop.permute.xlu0 %1846  ;;  %v2550_v49 = vsel %vm2538_vm8, %v2485_v1, %v1653_v20  ;;  %v10282_v15 = vld [vmem:[#allocation2 + $0x98] sm:$0xff]  ;;  %v19290_v1 = vld [vmem:[#allocation12_spill] sm:$0xff] }
 0x264   :  { %v2615_v23 = vsel %vm2603_vm9, %v2550_v49, %v1849_v51  ;;  %v421_v51 = vld [vmem:[#allocation2 + $0x142] sm:$0xff] }
 0x265   :  { %1868 = vrot.lane.b32.xlu1 %v417_v39, %s10413_s27  ;;  %1866 = vrot.lane.b32.xlu0 %v416_v53, %s10413_s27  ;;  %v19280_v39 = vld [vmem:[#allocation121_spill] sm:$0xff]  ;;  %v19291_v49 = vld [vmem:[#allocation64_spill] sm:$0xff] }
 0x266   :  { %v2354_v53 = vsel %vm2343_vm5, %v2289_v5, %v19280_v39 }
 0x267   :  { %v2041_v6 = vpop.permute.xlu1 %2040  ;;  %v2039_v30 = vpop.permute.xlu0 %2038  ;;  %v2419_v33 = vsel %vm2408_vm6, %v2354_v53, %v1199_v8  ;;  %v19288_v53 = vld [vmem:[#allocation91_spill] sm:$0xff] }
 0x268   :  { %v2678_v19 = vsel %vm2668_vm10, %v2613_v27, %v2041_v6  ;;  %v2677_v36 = vsel %vm2668_vm10, %v2612_v61, %v2039_v30  ;;  %v2484_v63 = vsel %vm2473_vm7, %v2419_v33, %v1395_v32  ;;  %v19289_v33 = vld [vmem:[#allocation11_spill] sm:$0xff] }
 0x269   :  { %v12111_v22 = vpack.c.bf16 %v2678_v19, %v2677_v36  ;;  %1872 = vrot.lane.b32.xlu1 %v12095_v58, %s10413_s27  ;;  %1870 = vrot.lane.b32.xlu0 %v12097_v16, %s10413_s27  ;;  %v2549_v8 = vsel %vm2538_vm8, %v2484_v63, %v1651_v2 }
 0x26a   :  { %v2614_v35 = vsel %vm2603_vm9, %v2549_v8, %v1847_v57  ;;  %v420_v57 = vld [vmem:[#allocation2 + $0x13a] sm:$0xff]  ;;  %v19292_v8 = vld [vmem:[#allocation65_spill] sm:$0xff] }
 0x26b   :  { %v2773_v34 = vunpack.c.l.bf16 %v12111_v22  ;;  %v2774_v32 = vunpack.c.h.bf16 %v12111_v22  ;;  %v2045_v17 = vpop.permute.xlu1 %2044  ;;  %v2043_v4 = vpop.permute.xlu0 %2042  ;;  %9579 = vmatprep.mubr.msk.bf16.mxu0 %vm2950_vm11, %v12111_v22 }
 0x26c   :  { %v2680_v31 = vsel %vm2668_vm10, %v2615_v23, %v2045_v17  ;;  %v2679_v25 = vsel %vm2668_vm10, %v2614_v35, %v2043_v4  ;;  %v19293_v23 = vld [vmem:[#allocation122_spill] sm:$0xff] }
 0x26d   :  { %v12127_v20 = vsub.f32 %v2677_v36, %v2773_v34  ;;  %v12129_v2 = vsub.f32 %v2678_v19, %v2774_v32  ;;  %v12131_v0 = vpack.c.bf16 %v2680_v31, %v2679_v25  ;;  %2064 = vrot.lane.b32.xlu1 %v12095_v58, %s10414_s2  ;;  %2062 = vrot.lane.b32.xlu0 %v12097_v16, %s10414_s2  ;;  %v10283_v36 = vld [vmem:[#allocation2 + $0x90] sm:$0xff]  ;;  %v19294_v34 = vld [vmem:[#allocation123_spill] sm:$0xff] }
 0x26e   :  { %v2227_v19 = vsel %vm33_vm0, %v10282_v15, %v19289_v33  ;;  %v2226_v63 = vsel %vm33_vm0, %v10283_v36, %v19290_v1  ;;  %v19298_v1 = vld [vmem:[#allocation67_spill] sm:$0xff] }
 0x26f   :  { %19281 = vst [vmem:[#allocation5_spill] sm:$0xff] %v12127_v20  ;;  %19282 = vst [vmem:[#allocation63_spill] sm:$0xff] %v12129_v2  ;;  %v2775_v40 = vunpack.c.l.bf16 %v12131_v0  ;;  %v2776_v44 = vunpack.c.h.bf16 %v12131_v0  ;;  %v1205_v47 = vpop.permute.xlu1 %1204  ;;  %v1203_v60 = vpop.permute.xlu0 %1202  ;;  %9580 = vmatmul.mubr.msk.bf16.gmra.mrb[8].mxu0 %vm2950_vm11, %v12131_v0 }
 0x271   :  { %v12143_v11 = vsub.f32 %v2679_v25, %v2775_v40  ;;  %v12145_v42 = vsub.f32 %v2680_v31, %v2776_v44  ;;  %2068 = vrot.lane.b32.xlu1 %v421_v51, %s10414_s2  ;;  %2066 = vrot.lane.b32.xlu0 %v420_v57, %s10414_s2  ;;  %v10284_v31 = vld [vmem:[#allocation2 + $0xb0] sm:$0xff] }
 0x272   :  { %v19295_v25 = vld [vmem:[#allocation13_spill] sm:$0xff] }
 0x273   :  { %19283 = vst [vmem:[#allocation120_spill] sm:$0xff] %v12143_v11  ;;  %19284 = vst [vmem:[#allocation121_spill] sm:$0xff] %v12145_v42  ;;  %v1209_v48 = vpop.permute.xlu1 %1208  ;;  %v1207_v18 = vpop.permute.xlu0 %1206  ;;  %v2229_v40 = vsel %vm33_vm0, %v10284_v31, %v19295_v25 }
 0x275   :  { %1228 = vrot.lane.b32.xlu1 %v11546_v62, %s10410_s18  ;;  %1226 = vrot.lane.b32.xlu0 %v11548_v28, %s10410_s18  ;;  %v19287_v28 = vld [vmem:[#allocation90_spill] sm:$0xff] }
 0x277   :  { %v1401_v14 = vpop.permute.xlu1 %1400  ;;  %v1399_v5 = vpop.permute.xlu0 %1398 }
 0x279   :  { %1232 = vrot.lane.b32.xlu1 %v19285_v29, %s10410_s18  ;;  %1230 = vrot.lane.b32.xlu0 %v19286_v38, %s10410_s18 }
 0x27b   :  { %v1405_v13 = vpop.permute.xlu1 %1404  ;;  %v1403_v52 = vpop.permute.xlu0 %1402 }
 0x27d   :  { %1424 = vrot.lane.b32.xlu1 %v19285_v29, %s10411_s19  ;;  %1422 = vrot.lane.b32.xlu0 %v19286_v38, %s10411_s19  ;;  %v10285_v38 = vld [vmem:[#allocation2 + $0xa8] sm:$0xff] }
 0x27f   :  { %v1657_v62 = vpop.permute.xlu1 %1656  ;;  %v1655_v39 = vpop.permute.xlu0 %1654 }
 0x281   :  { %1428 = vrot.lane.b32.xlu1 %v19287_v28, %s10411_s19  ;;  %1426 = vrot.lane.b32.xlu0 %v19288_v53, %s10411_s19  ;;  %v19296_v28 = vld [vmem:[#allocation14_spill] sm:$0xff] }
 0x282   :  { %v2228_v53 = vsel %vm33_vm0, %v10285_v38, %v19296_v28 }
 0x283   :  { %v1661_v27 = vpop.permute.xlu1 %1660  ;;  %v1659_v61 = vpop.permute.xlu0 %1658 }
 0x285   :  { %1680 = vrot.lane.b32.xlu1 %v12095_v58, %s10412_s22  ;;  %1678 = vrot.lane.b32.xlu0 %v12097_v16, %s10412_s22  ;;  %v2292_v58 = vsel %vm2278_vm4, %v2227_v19, %v19291_v49  ;;  %v2291_v16 = vsel %vm2278_vm4, %v2226_v63, %v19292_v8  ;;  %v19297_v19 = vld [vmem:[#allocation66_spill] sm:$0xff] }
 0x286   :  { %v2357_v35 = vsel %vm2343_vm5, %v2292_v58, %v19293_v23  ;;  %v2356_v32 = vsel %vm2343_vm5, %v2291_v16, %v19294_v34  ;;  %v2294_v36 = vsel %vm2278_vm4, %v2229_v40, %v19297_v19  ;;  %v12201_v49 = vld [vmem:[#allocation2 + $0x15a] sm:$0xff]  ;;  %v12203_v58 = vld [vmem:[#allocation2 + $0x152] sm:$0xff] }
 0x287   :  { %v1853_v6 = vpop.permute.xlu1 %1852  ;;  %v1851_v30 = vpop.permute.xlu0 %1850  ;;  %v2422_v44 = vsel %vm2408_vm6, %v2357_v35, %v1205_v47  ;;  %v2421_v29 = vsel %vm2408_vm6, %v2356_v32, %v1203_v60  ;;  %v2293_v47 = vsel %vm2278_vm4, %v2228_v53, %v19298_v1  ;;  %v424_v53 = vld [vmem:[#allocation2 + $0x16a] sm:$0xff] }
 0x288   :  { %v2487_v15 = vsel %vm2473_vm7, %v2422_v44, %v1401_v14  ;;  %v2486_v33 = vsel %vm2473_vm7, %v2421_v29, %v1399_v5  ;;  %v19299_v14 = vld [vmem:[#allocation124_spill] sm:$0xff] }
 0x289   :  { %1684 = vrot.lane.b32.xlu1 %v421_v51, %s10412_s22  ;;  %1682 = vrot.lane.b32.xlu0 %v420_v57, %s10412_s22  ;;  %v2552_v60 = vsel %vm2538_vm8, %v2487_v15, %v1657_v62  ;;  %v2551_v63 = vsel %vm2538_vm8, %v2486_v33, %v1655_v39  ;;  %v2359_v5 = vsel %vm2343_vm5, %v2294_v36, %v19299_v14 }
 0x28a   :  { %v2617_v8 = vsel %vm2603_vm9, %v2552_v60, %v1853_v6  ;;  %v2616_v16 = vsel %vm2603_vm9, %v2551_v63, %v1851_v30  ;;  %v2424_v62 = vsel %vm2408_vm6, %v2359_v5, %v1209_v48 }
 0x28b   :  { %v1857_v17 = vpop.permute.xlu1 %1856  ;;  %v1855_v4 = vpop.permute.xlu0 %1854  ;;  %v2489_v31 = vsel %vm2473_vm7, %v2424_v62, %v1405_v13 }
 0x28c   :  { %v2554_v48 = vsel %vm2538_vm8, %v2489_v31, %v1661_v27 }
 0x28d   :  { %1876 = vrot.lane.b32.xlu1 %v421_v51, %s10413_s27  ;;  %1874 = vrot.lane.b32.xlu0 %v420_v57, %s10413_s27  ;;  %v19300_v51 = vld [vmem:[#allocation125_spill] sm:$0xff]  ;;  %v2619_v6 = vsel %vm2603_vm9, %v2554_v48, %v1857_v17 }
 0x28e   :  { %v2358_v57 = vsel %vm2343_vm5, %v2293_v47, %v19300_v51  ;;  %v10286_v51 = vld [vmem:[#allocation2 + $0x171] sm:$0xff] }
 0x28f   :  { %v2049_v23 = vpop.permute.xlu1 %2048  ;;  %v2047_v35 = vpop.permute.xlu0 %2046  ;;  %v2423_v39 = vsel %vm2408_vm6, %v2358_v57, %v1207_v18  ;;  %v10287_v57 = vld [vmem:[#allocation2 + $0x169] sm:$0xff] }
 0x290   :  { %v2682_v34 = vsel %vm2668_vm10, %v2617_v8, %v2049_v23  ;;  %v2681_v32 = vsel %vm2668_vm10, %v2616_v16, %v2047_v35  ;;  %v2488_v25 = vsel %vm2473_vm7, %v2423_v39, %v1403_v52  ;;  %v355_v8 = vld [vmem:[#allocation2 + $0x189] sm:$0xff]  ;;  %v354_v16 = vld [vmem:[#allocation2 + $0x181] sm:$0xff] }
 0x291   :  { %v12217_v40 = vpack.c.bf16 %v2682_v34, %v2681_v32  ;;  %1880 = vrot.lane.b32.xlu1 %v12201_v49, %s10413_s27  ;;  %1878 = vrot.lane.b32.xlu0 %v12203_v58, %s10413_s27  ;;  %v2553_v18 = vsel %vm2538_vm8, %v2488_v25, %v1659_v61 }
 0x292   :  { %v2618_v30 = vsel %vm2603_vm9, %v2553_v18, %v1855_v4  ;;  %v425_v4 = vld [vmem:[#allocation2 + $0x172] sm:$0xff] }
 0x293   :  { %v2777_v13 = vunpack.c.l.bf16 %v12217_v40  ;;  %v2778_v52 = vunpack.c.h.bf16 %v12217_v40  ;;  %v2053_v44 = vpop.permute.xlu1 %2052  ;;  %v2051_v29 = vpop.permute.xlu0 %2050  ;;  %9583 = vmatprep.mubr.msk.bf16.mxu0 %vm2950_vm11, %v12217_v40 }
 0x294   :  { %v2684_v38 = vsel %vm2668_vm10, %v2619_v6, %v2053_v44  ;;  %v2683_v28 = vsel %vm2668_vm10, %v2618_v30, %v2051_v29  ;;  %v10289_v29 = vld [vmem:[#allocation2 + $0xc0] sm:$0xff] }
 0x295   :  { %v12233_v27 = vsub.f32 %v2681_v32, %v2777_v13  ;;  %v12235_v61 = vsub.f32 %v2682_v34, %v2778_v52  ;;  %v12237_v17 = vpack.c.bf16 %v2684_v38, %v2683_v28  ;;  %2072 = vrot.lane.b32.xlu1 %v12201_v49, %s10414_s2  ;;  %2070 = vrot.lane.b32.xlu0 %v12203_v58, %s10414_s2  ;;  %v357_v34 = vld [vmem:[#allocation2 + $0x1a1] sm:$0xff]  ;;  %v356_v32 = vld [vmem:[#allocation2 + $0x199] sm:$0xff] }
 0x296   :  { %v10288_v13 = vld [vmem:[#allocation2 + $0xc8] sm:$0xff]  ;;  %v19305_v52 = vld [vmem:[#allocation15_spill] sm:$0xff] }
 0x297   :  { %19301 = vst [vmem:[#allocation86_spill] sm:$0xff] %v12233_v27  ;;  %19302 = vst [vmem:[#allocation87_spill] sm:$0xff] %v12235_v61  ;;  %v2779_v33 = vunpack.c.l.bf16 %v12237_v17  ;;  %v2780_v19 = vunpack.c.h.bf16 %v12237_v17  ;;  %v1213_v36 = vpop.permute.xlu1 %1212  ;;  %v1211_v1 = vpop.permute.xlu0 %1210  ;;  %9584 = vmatmul.mubr.msk.bf16.gmra.mrb[12].mxu0 %vm2950_vm11, %v12237_v17  ;;  %v2231_v44 = vsel %vm33_vm0, %v10288_v13, %v19305_v52  ;;  %v10290_v13 = vld [vmem:[#allocation2 + $0xe0] sm:$0xff]  ;;  %v19311_v52 = vld [vmem:[#allocation17_spill] sm:$0xff] }
 0x298   :  { %v19375_v61 = vld [vmem:[#allocation33_spill] sm:$0xff] }
 0x299   :  { %v12249_v47 = vsub.f32 %v2683_v28, %v2779_v33  ;;  %v12251_v60 = vsub.f32 %v2684_v38, %v2780_v19  ;;  %2076 = vrot.lane.b32.xlu1 %v425_v4, %s10414_s2  ;;  %2074 = vrot.lane.b32.xlu0 %v424_v53, %s10414_s2  ;;  %v19306_v38 = vld [vmem:[#allocation16_spill] sm:$0xff]  ;;  %v19308_v19 = vld [vmem:[#allocation69_spill] sm:$0xff] }
 0x29a   :  { %v2230_v28 = vsel %vm33_vm0, %v10289_v29, %v19306_v38  ;;  %v19307_v33 = vld [vmem:[#allocation68_spill] sm:$0xff]  ;;  %v2233_v29 = vsel %vm33_vm0, %v10290_v13, %v19311_v52 }
 0x29b   :  { %19303 = vst [vmem:[#allocation90_spill] sm:$0xff] %v12249_v47  ;;  %19304 = vst [vmem:[#allocation91_spill] sm:$0xff] %v12251_v60  ;;  %v12257_v14 = vpop.permute.xlu1 %1216  ;;  %v12259_v5 = vpop.permute.xlu0 %1214  ;;  %v426_v13 = vld [vmem:[#allocation2 + $0x182] sm:$0xff]  ;;  %v10312_v47 = vld [vmem:[#allocation2 + $0x170] sm:$0xff] }
 0x29c   :  { %v19315_v52 = vld [vmem:[#allocation128_spill] sm:$0xff] }
 0x29d   :  { %1236 = vrot.lane.b32.xlu1 %v10286_v51, %s10410_s18  ;;  %1234 = vrot.lane.b32.xlu0 %v10287_v57, %s10410_s18  ;;  %v19309_v51 = vld [vmem:[#allocation126_spill] sm:$0xff] }
 0x29f   :  { %v1409_v23 = vpop.permute.xlu1 %1408  ;;  %v1407_v35 = vpop.permute.xlu0 %1406 }
 0x2a1   :  { %1240 = vrot.lane.b32.xlu1 %v355_v8, %s10410_s18  ;;  %1238 = vrot.lane.b32.xlu0 %v354_v16, %s10410_s18 }
 0x2a3   :  { %v1413_v62 = vpop.permute.xlu1 %1412  ;;  %v1411_v39 = vpop.permute.xlu0 %1410 }
 0x2a5   :  { %1432 = vrot.lane.b32.xlu1 %v355_v8, %s10411_s19  ;;  %1430 = vrot.lane.b32.xlu0 %v354_v16, %s10411_s19  ;;  %v19310_v8 = vld [vmem:[#allocation127_spill] sm:$0xff] }
 0x2a7   :  { %v1665_v31 = vpop.permute.xlu1 %1664  ;;  %v1663_v25 = vpop.permute.xlu0 %1662 }
 0x2a9   :  { %1436 = vrot.lane.b32.xlu1 %v357_v34, %s10411_s19  ;;  %1434 = vrot.lane.b32.xlu0 %v356_v32, %s10411_s19 }
 0x2ab   :  { %v1669_v48 = vpop.permute.xlu1 %1668  ;;  %v1667_v18 = vpop.permute.xlu0 %1666 }
 0x2ad   :  { %1688 = vrot.lane.b32.xlu1 %v12201_v49, %s10412_s22  ;;  %1686 = vrot.lane.b32.xlu0 %v12203_v58, %s10412_s22  ;;  %v2296_v49 = vsel %vm2278_vm4, %v2231_v44, %v19307_v33  ;;  %v2295_v58 = vsel %vm2278_vm4, %v2230_v28, %v19308_v19  ;;  %v10291_v44 = vld [vmem:[#allocation2 + $0xd8] sm:$0xff] }
 0x2ae   :  { %v2361_v57 = vsel %vm2343_vm5, %v2296_v49, %v19309_v51  ;;  %v2360_v16 = vsel %vm2343_vm5, %v2295_v58, %v19310_v8  ;;  %v19312_v33 = vld [vmem:[#allocation18_spill] sm:$0xff]  ;;  %v19314_v8 = vld [vmem:[#allocation71_spill] sm:$0xff] }
 0x2af   :  { %v1861_v6 = vpop.permute.xlu1 %1860  ;;  %v1859_v30 = vpop.permute.xlu0 %1858  ;;  %v2426_v38 = vsel %vm2408_vm6, %v2361_v57, %v1213_v36  ;;  %v2425_v63 = vsel %vm2408_vm6, %v2360_v16, %v1211_v1  ;;  %v2232_v28 = vsel %vm33_vm0, %v10291_v44, %v19312_v33  ;;  %v19313_v58 = vld [vmem:[#allocation70_spill] sm:$0xff]  ;;  %v427_v16 = vld [vmem:[#allocation2 + $0x18a] sm:$0xff] }
 0x2b0   :  { %v2491_v19 = vsel %vm2473_vm7, %v2426_v38, %v1409_v23  ;;  %v2490_v49 = vsel %vm2473_vm7, %v2425_v63, %v1407_v35  ;;  %v2298_v51 = vsel %vm2278_vm4, %v2233_v29, %v19313_v58  ;;  %v2297_v36 = vsel %vm2278_vm4, %v2232_v28, %v19314_v8  ;;  %v19316_v63 = vld [vmem:[#allocation129_spill] sm:$0xff] }
 0x2b1   :  { %1692 = vrot.lane.b32.xlu1 %v425_v4, %s10412_s22  ;;  %1690 = vrot.lane.b32.xlu0 %v424_v53, %s10412_s22  ;;  %v2556_v1 = vsel %vm2538_vm8, %v2491_v19, %v1665_v31  ;;  %v2555_v57 = vsel %vm2538_vm8, %v2490_v49, %v1663_v25  ;;  %v2363_v23 = vsel %vm2343_vm5, %v2298_v51, %v19315_v52 }
 0x2b2   :  { %v2620_v35 = vsel %vm2603_vm9, %v2555_v57, %v1859_v30  ;;  %v2428_v44 = vsel %vm2408_vm6, %v2363_v23, %v12257_v14  ;;  %v19323_v57 = vld [vmem:[#allocation72_spill] sm:$0xff] }
 0x2b3   :  { %v1865_v34 = vpop.permute.xlu1 %1864  ;;  %v1863_v32 = vpop.permute.xlu0 %1862  ;;  %v2493_v28 = vsel %vm2473_vm7, %v2428_v44, %v1413_v62  ;;  %v10293_v44 = vld [vmem:[#allocation2 + $0x1c9] sm:$0xff] }
 0x2b5   :  { %1884 = vrot.lane.b32.xlu1 %v425_v4, %s10413_s27  ;;  %1882 = vrot.lane.b32.xlu0 %v424_v53, %s10413_s27  ;;  %v2362_v4 = vsel %vm2343_vm5, %v2297_v36, %v19316_v63  ;;  %v2621_v53 = vsel %vm2603_vm9, %v2556_v1, %v1861_v6  ;;  %v2558_v6 = vsel %vm2538_vm8, %v2493_v28, %v1669_v48  ;;  %v428_v1 = vld [vmem:[#allocation2 + $0x19a] sm:$0xff] }
 0x2b6   :  { %v2427_v31 = vsel %vm2408_vm6, %v2362_v4, %v12259_v5  ;;  %v2623_v5 = vsel %vm2603_vm9, %v2558_v6, %v1865_v34  ;;  %v10295_v28 = vld [vmem:[#allocation2 + $0x1e1] sm:$0xff] }
 0x2b7   :  { %v2057_v29 = vpop.permute.xlu1 %2056  ;;  %v2055_v38 = vpop.permute.xlu0 %2054  ;;  %v2492_v19 = vsel %vm2473_vm7, %v2427_v31, %v1411_v39 }
 0x2b8   :  { %v2686_v25 = vsel %vm2668_vm10, %v2621_v53, %v2057_v29  ;;  %v2685_v33 = vsel %vm2668_vm10, %v2620_v35, %v2055_v38  ;;  %v2557_v14 = vsel %vm2538_vm8, %v2492_v19, %v1667_v18  ;;  %v10292_v38 = vld [vmem:[#allocation2 + $0x1d1] sm:$0xff] }
 0x2b9   :  { %v12317_v49 = vpack.c.bf16 %v2686_v25, %v2685_v33  ;;  %1888 = vrot.lane.b32.xlu1 %v427_v16, %s10413_s27  ;;  %1886 = vrot.lane.b32.xlu0 %v426_v13, %s10413_s27  ;;  %v2622_v30 = vsel %vm2603_vm9, %v2557_v14, %v1863_v32  ;;  %v429_v32 = vld [vmem:[#allocation2 + $0x1a2] sm:$0xff] }
 0x2bb   :  { %v2781_v58 = vunpack.c.l.bf16 %v12317_v49  ;;  %v2782_v62 = vunpack.c.h.bf16 %v12317_v49  ;;  %v2061_v51 = vpop.permute.xlu1 %2060  ;;  %v2059_v39 = vpop.permute.xlu0 %2058  ;;  %9587 = vmatprep.mubr.msk.bf16.mxu0 %vm2950_vm11, %v12317_v49 }
 0x2bc   :  { %v2688_v8 = vsel %vm2668_vm10, %v2623_v5, %v2061_v51  ;;  %v2687_v36 = vsel %vm2668_vm10, %v2622_v30, %v2059_v39  ;;  %v12363_v30 = vld [vmem:[#allocation2 + $0x201] sm:$0xff]  ;;  %v430_v51 = vld [vmem:[#allocation2 + $0x1b2] sm:$0xff] }
 0x2bd   :  { %v12331_v48 = vsub.f32 %v2685_v33, %v2781_v58  ;;  %v12333_v18 = vsub.f32 %v2686_v25, %v2782_v62  ;;  %v12335_v34 = vpack.c.bf16 %v2688_v8, %v2687_v36  ;;  %2080 = vrot.lane.b32.xlu1 %v427_v16, %s10414_s2  ;;  %2078 = vrot.lane.b32.xlu0 %v426_v13, %s10414_s2  ;;  %v10294_v33 = vld [vmem:[#allocation2 + $0x1e9] sm:$0xff]  ;;  %v12367_v58 = vld [vmem:[#allocation2 + $0x1f9] sm:$0xff] }
 0x2be   :  { %v431_v62 = vld [vmem:[#allocation2 + $0x1ba] sm:$0xff] }
 0x2bf   :  { %19317 = vst [vmem:[#allocation11_spill] sm:$0xff] %v12331_v48  ;;  %19318 = vst [vmem:[#allocation12_spill] sm:$0xff] %v12333_v18  ;;  %v2783_v52 = vunpack.c.l.bf16 %v12335_v34  ;;  %v2784_v23 = vunpack.c.h.bf16 %v12335_v34  ;;  %v1221_v63 = vpop.permute.xlu1 %1220  ;;  %v1219_v4 = vpop.permute.xlu0 %1218  ;;  %9588 = vmatmul.mubr.msk.bf16.gmra.mrb[16].mxu0 %vm2950_vm11, %v12335_v34 }
 0x2c1   :  { %v12345_v53 = vsub.f32 %v2687_v36, %v2783_v52  ;;  %v12347_v35 = vsub.f32 %v2688_v8, %v2784_v23  ;;  %2084 = vrot.lane.b32.xlu1 %v429_v32, %s10414_s2  ;;  %2082 = vrot.lane.b32.xlu0 %v428_v1, %s10414_s2  ;;  %v433_v36 = vld [vmem:[#allocation2 + $0x1d2] sm:$0xff]  ;;  %v432_v32 = vld [vmem:[#allocation2 + $0x1ca] sm:$0xff] }
 0x2c2   :  { %v10298_v23 = vld [vmem:[#allocation2 + $0xf8] sm:$0xff] }
 0x2c3   :  { %19319 = vst [vmem:[#allocation64_spill] sm:$0xff] %v12345_v53  ;;  %19320 = vst [vmem:[#allocation65_spill] sm:$0xff] %v12347_v35  ;;  %v12353_v13 = vpop.permute.xlu1 %1224  ;;  %v12355_v29 = vpop.permute.xlu0 %1222 }
 0x2c5   :  { %1244 = vrot.lane.b32.xlu1 %v10292_v38, %s10410_s18  ;;  %1242 = vrot.lane.b32.xlu0 %v10293_v44, %s10410_s18  ;;  %v19321_v38 = vld [vmem:[#allocation19_spill] sm:$0xff] }
 0x2c6   :  { %v2235_v44 = vsel %vm33_vm0, %v10298_v23, %v19321_v38 }
 0x2c7   :  { %v1417_v31 = vpop.permute.xlu1 %1416  ;;  %v1415_v25 = vpop.permute.xlu0 %1414 }
 0x2c9   :  { %1248 = vrot.lane.b32.xlu1 %v10294_v33, %s10410_s18  ;;  %1246 = vrot.lane.b32.xlu0 %v10295_v28, %s10410_s18 }
 0x2cb   :  { %v1421_v19 = vpop.permute.xlu1 %1420  ;;  %v1419_v6 = vpop.permute.xlu0 %1418 }
 0x2cd   :  { %1440 = vrot.lane.b32.xlu1 %v10294_v33, %s10411_s19  ;;  %1438 = vrot.lane.b32.xlu0 %v10295_v28, %s10411_s19  ;;  %v10299_v33 = vld [vmem:[#allocation2 + $0xf0] sm:$0xff]  ;;  %v19322_v28 = vld [vmem:[#allocation20_spill] sm:$0xff] }
 0x2ce   :  { %v2234_v16 = vsel %vm33_vm0, %v10299_v33, %v19322_v28  ;;  %v19327_v33 = vld [vmem:[#allocation21_spill] sm:$0xff] }
 0x2cf   :  { %v1673_v14 = vpop.permute.xlu1 %1672  ;;  %v1671_v5 = vpop.permute.xlu0 %1670  ;;  %v2237_v28 = vsel %vm33_vm0, %v10300_v10, %v19327_v33  ;;  %v19330_v10 = vld [vmem:[#allocation75_spill] sm:$0xff] }
 0x2d1   :  { %1444 = vrot.lane.b32.xlu1 %v12363_v30, %s10411_s19  ;;  %1442 = vrot.lane.b32.xlu0 %v12367_v58, %s10411_s19 }
 0x2d3   :  { %v1677_v39 = vpop.permute.xlu1 %1676  ;;  %v1675_v8 = vpop.permute.xlu0 %1674 }
 0x2d5   :  { %1696 = vrot.lane.b32.xlu1 %v431_v62, %s10412_s22  ;;  %1694 = vrot.lane.b32.xlu0 %v430_v51, %s10412_s22  ;;  %v2300_v62 = vsel %vm2278_vm4, %v2235_v44, %v19323_v57  ;;  %v19324_v51 = vld [vmem:[#allocation73_spill] sm:$0xff]  ;;  %v10301_v57 = vld [vmem:[#allocation2 + $0x108] sm:$0xff]  ;;  %v19328_v44 = vld [vmem:[#allocation22_spill] sm:$0xff] }
 0x2d6   :  { %v2299_v15 = vsel %vm2278_vm4, %v2234_v16, %v19324_v51  ;;  %v2365_v43 = vsel %vm2343_vm5, %v2300_v62, %v19325_v50  ;;  %v2236_v16 = vsel %vm33_vm0, %v10301_v57, %v19328_v44  ;;  %v12403_v62 = vld [vmem:[#allocation2 + $0x1ea] sm:$0xff] }
 0x2d7   :  { %v1869_v1 = vpop.permute.xlu1 %1868  ;;  %v1867_v52 = vpop.permute.xlu0 %1866  ;;  %v2364_v23 = vsel %vm2343_vm5, %v2299_v15, %v19326_v45  ;;  %v2430_v7 = vsel %vm2408_vm6, %v2365_v43, %v1221_v63  ;;  %v19329_v45 = vld [vmem:[#allocation74_spill] sm:$0xff]  ;;  %v2301_v43 = vsel %vm2278_vm4, %v2236_v16, %v19330_v10 }
 0x2d8   :  { %v2429_v53 = vsel %vm2408_vm6, %v2364_v23, %v1219_v4  ;;  %v2495_v51 = vsel %vm2473_vm7, %v2430_v7, %v1417_v31  ;;  %v2302_v15 = vsel %vm2278_vm4, %v2237_v28, %v19329_v45  ;;  %v12405_v23 = vld [vmem:[#allocation2 + $0x1e2] sm:$0xff]  ;;  %v19332_v31 = vld [vmem:[#allocation133_spill] sm:$0xff] }
 0x2d9   :  { %1700 = vrot.lane.b32.xlu1 %v433_v36, %s10412_s22  ;;  %1698 = vrot.lane.b32.xlu0 %v432_v32, %s10412_s22  ;;  %v2494_v50 = vsel %vm2473_vm7, %v2429_v53, %v1415_v25  ;;  %v2560_v63 = vsel %vm2538_vm8, %v2495_v51, %v1673_v14  ;;  %v19331_v7 = vld [vmem:[#allocation132_spill] sm:$0xff]  ;;  %v2366_v25 = vsel %vm2343_vm5, %v2301_v43, %v19332_v31 }
 0x2da   :  { %v2559_v4 = vsel %vm2538_vm8, %v2494_v50, %v1671_v5  ;;  %v2367_v53 = vsel %vm2343_vm5, %v2302_v15, %v19331_v7  ;;  %v2431_v5 = vsel %vm2408_vm6, %v2366_v25, %v12355_v29 }
 0x2db   :  { %v1873_v38 = vpop.permute.xlu1 %1872  ;;  %v1871_v54 = vpop.permute.xlu0 %1870  ;;  %v2432_v14 = vsel %vm2408_vm6, %v2367_v53, %v12353_v13  ;;  %v2496_v51 = vsel %vm2473_vm7, %v2431_v5, %v1419_v6 }
 0x2dc   :  { %v2497_v16 = vsel %vm2473_vm7, %v2432_v14, %v1421_v19  ;;  %v2561_v29 = vsel %vm2538_vm8, %v2496_v51, %v1675_v8 }
 0x2dd   :  { %1892 = vrot.lane.b32.xlu1 %v433_v36, %s10413_s27  ;;  %1890 = vrot.lane.b32.xlu0 %v432_v32, %s10413_s27  ;;  %v2625_v36 = vsel %vm2603_vm9, %v2560_v63, %v1869_v1  ;;  %v2624_v32 = vsel %vm2603_vm9, %v2559_v4, %v1867_v52  ;;  %v2562_v13 = vsel %vm2538_vm8, %v2497_v16, %v1677_v39  ;;  %v436_v63 = vld [vmem:[#allocation2 + $0x1fa] sm:$0xff]  ;;  %v10303_v16 = vld [vmem:[#allocation2 + $0x211] sm:$0xff] }
 0x2de   :  { %v2627_v1 = vsel %vm2603_vm9, %v2562_v13, %v1873_v38  ;;  %v2626_v52 = vsel %vm2603_vm9, %v2561_v29, %v1871_v54  ;;  %v437_v54 = vld [vmem:[#allocation2 + $0x202] sm:$0xff]  ;;  %v19341_v4 = vld [vmem:[#allocation134_spill] sm:$0xff] }
 0x2df   :  { %v2065_v33 = vpop.permute.xlu1 %2064  ;;  %v2063_v28 = vpop.permute.xlu0 %2062 }
 0x2e0   :  { %v2690_v57 = vsel %vm2668_vm10, %v2625_v36, %v2065_v33  ;;  %v2689_v44 = vsel %vm2668_vm10, %v2624_v32, %v2063_v28  ;;  %v19340_v33 = vld [vmem:[#allocation77_spill] sm:$0xff] }
 0x2e1   :  { %v12421_v50 = vpack.c.bf16 %v2690_v57, %v2689_v44  ;;  %1896 = vrot.lane.b32.xlu1 %v12403_v62, %s10413_s27  ;;  %1894 = vrot.lane.b32.xlu0 %v12405_v23, %s10413_s27 }
 0x2e3   :  { %v2785_v19 = vunpack.c.l.bf16 %v12421_v50  ;;  %v2786_v6 = vunpack.c.h.bf16 %v12421_v50  ;;  %v2069_v45 = vpop.permute.xlu1 %2068  ;;  %v2067_v15 = vpop.permute.xlu0 %2066  ;;  %9591 = vmatprep.mubr.msk.bf16.mxu0 %vm2950_vm11, %v12421_v50 }
 0x2e4   :  { %v2692_v10 = vsel %vm2668_vm10, %v2627_v1, %v2069_v45  ;;  %v2691_v43 = vsel %vm2668_vm10, %v2626_v52, %v2067_v15  ;;  %v10306_v15 = vld [vmem:[#allocation2 + $0x128] sm:$0xff] }
 0x2e5   :  { %v12437_v39 = vsub.f32 %v2689_v44, %v2785_v19  ;;  %v12439_v8 = vsub.f32 %v2690_v57, %v2786_v6  ;;  %v12441_v38 = vpack.c.bf16 %v2692_v10, %v2691_v43  ;;  %2088 = vrot.lane.b32.xlu1 %v12403_v62, %s10414_s2  ;;  %2086 = vrot.lane.b32.xlu0 %v12405_v23, %s10414_s2  ;;  %v10302_v44 = vld [vmem:[#allocation2 + $0x219] sm:$0xff] }
 0x2e7   :  { %19333 = vst [vmem:[#allocation122_spill] sm:$0xff] %v12437_v39  ;;  %19334 = vst [vmem:[#allocation123_spill] sm:$0xff] %v12439_v8  ;;  %v2787_v7 = vunpack.c.l.bf16 %v12441_v38  ;;  %v2788_v53 = vunpack.c.h.bf16 %v12441_v38  ;;  %v1229_v31 = vpop.permute.xlu1 %1228  ;;  %v1227_v25 = vpop.permute.xlu0 %1226  ;;  %9592 = vmatmul.mubr.msk.bf16.gmra.mrb[20].mxu0 %vm2950_vm11, %v12441_v38  ;;  %v10308_v8 = vld [vmem:[#allocation2 + $0x140] sm:$0xff] }
 0x2e9   :  { %v12453_v36 = vsub.f32 %v2691_v43, %v2787_v7  ;;  %v12455_v32 = vsub.f32 %v2692_v10, %v2788_v53  ;;  %2092 = vrot.lane.b32.xlu1 %v437_v54, %s10414_s2  ;;  %2090 = vrot.lane.b32.xlu0 %v436_v63, %s10414_s2  ;;  %v19337_v10 = vld [vmem:[#allocation23_spill] sm:$0xff]  ;;  %v19338_v53 = vld [vmem:[#allocation24_spill] sm:$0xff] }
 0x2ea   :  { %v2239_v43 = vsel %vm33_vm0, %v10306_v15, %v19337_v10  ;;  %v10307_v7 = vld [vmem:[#allocation2 + $0x120] sm:$0xff] }
 0x2eb   :  { %19335 = vst [vmem:[#allocation13_spill] sm:$0xff] %v12453_v36  ;;  %19336 = vst [vmem:[#allocation14_spill] sm:$0xff] %v12455_v32  ;;  %v1233_v28 = vpop.permute.xlu1 %1232  ;;  %v1231_v14 = vpop.permute.xlu0 %1230  ;;  %v19342_v32 = vld [vmem:[#allocation135_spill] sm:$0xff] }
 0x2ed   :  { %1252 = vrot.lane.b32.xlu1 %v12363_v30, %s10410_s18  ;;  %1250 = vrot.lane.b32.xlu0 %v12367_v58, %s10410_s18  ;;  %v12469_v30 = vld [vmem:[#allocation2 + $0x231] sm:$0xff]  ;;  %v12473_v58 = vld [vmem:[#allocation2 + $0x229] sm:$0xff] }
 0x2ef   :  { %v1425_v5 = vpop.permute.xlu1 %1424  ;;  %v1423_v57 = vpop.permute.xlu0 %1422 }
 0x2f1   :  { %1256 = vrot.lane.b32.xlu1 %v10302_v44, %s10410_s18  ;;  %1254 = vrot.lane.b32.xlu0 %v10303_v16, %s10410_s18 }
 0x2f3   :  { %v1429_v51 = vpop.permute.xlu1 %1428  ;;  %v1427_v13 = vpop.permute.xlu0 %1426 }
 0x2f5   :  { %1448 = vrot.lane.b32.xlu1 %v10302_v44, %s10411_s19  ;;  %1446 = vrot.lane.b32.xlu0 %v10303_v16, %s10411_s19  ;;  %v2238_v44 = vsel %vm33_vm0, %v10307_v7, %v19338_v53  ;;  %v19339_v16 = vld [vmem:[#allocation76_spill] sm:$0xff]  ;;  %v19343_v7 = vld [vmem:[#allocation25_spill] sm:$0xff] }
 0x2f6   :  { %v2241_v53 = vsel %vm33_vm0, %v10308_v8, %v19343_v7  ;;  %v19346_v8 = vld [vmem:[#allocation79_spill] sm:$0xff] }
 0x2f7   :  { %v1681_v29 = vpop.permute.xlu1 %1680  ;;  %v1679_v1 = vpop.permute.xlu0 %1678 }
 0x2f9   :  { %1452 = vrot.lane.b32.xlu1 %v12469_v30, %s10411_s19  ;;  %1450 = vrot.lane.b32.xlu0 %v12473_v58, %s10411_s19 }
 0x2fb   :  { %v1685_v52 = vpop.permute.xlu1 %1684  ;;  %v1683_v19 = vpop.permute.xlu0 %1682 }
 0x2fd   :  { %1704 = vrot.lane.b32.xlu1 %v12403_v62, %s10412_s22  ;;  %1702 = vrot.lane.b32.xlu0 %v12405_v23, %s10412_s22  ;;  %v2304_v62 = vsel %vm2278_vm4, %v2239_v43, %v19339_v16  ;;  %v2303_v23 = vsel %vm2278_vm4, %v2238_v44, %v19340_v33  ;;  %v10309_v43 = vld [vmem:[#allocation2 + $0x138] sm:$0xff] }
 0x2fe   :  { %v2369_v36 = vsel %vm2343_vm5, %v2304_v62, %v19341_v4  ;;  %v2368_v15 = vsel %vm2343_vm5, %v2303_v23, %v19342_v32  ;;  %v19344_v16 = vld [vmem:[#allocation26_spill] sm:$0xff] }
 0x2ff   :  { %v1877_v6 = vpop.permute.xlu1 %1876  ;;  %v1875_v45 = vpop.permute.xlu0 %1874  ;;  %v2434_v35 = vsel %vm2408_vm6, %v2369_v36, %v1229_v31  ;;  %v2433_v48 = vsel %vm2408_vm6, %v2368_v15, %v1227_v25  ;;  %v2240_v33 = vsel %vm33_vm0, %v10309_v43, %v19344_v16  ;;  %v19345_v32 = vld [vmem:[#allocation78_spill] sm:$0xff] }
 0x300   :  { %v2499_v44 = vsel %vm2473_vm7, %v2434_v35, %v1425_v5  ;;  %v2498_v4 = vsel %vm2473_vm7, %v2433_v48, %v1423_v57  ;;  %v2306_v62 = vsel %vm2278_vm4, %v2241_v53, %v19345_v32  ;;  %v2305_v31 = vsel %vm2278_vm4, %v2240_v33, %v19346_v8  ;;  %v12511_v23 = vld [vmem:[#allocation2 + $0x21a] sm:$0xff]  ;;  %v12513_v15 = vld [vmem:[#allocation2 + $0x212] sm:$0xff]  ;;  %v19347_v35 = vld [vmem:[#allocation136_spill] sm:$0xff] }
 0x301   :  { %1708 = vrot.lane.b32.xlu1 %v437_v54, %s10412_s22  ;;  %1706 = vrot.lane.b32.xlu0 %v436_v63, %s10412_s22  ;;  %v2564_v25 = vsel %vm2538_vm8, %v2499_v44, %v1681_v29  ;;  %v2563_v36 = vsel %vm2538_vm8, %v2498_v4, %v1679_v1  ;;  %v2371_v48 = vsel %vm2343_vm5, %v2306_v62, %v19347_v35 }
 0x302   :  { %v2629_v5 = vsel %vm2603_vm9, %v2564_v25, %v1877_v6  ;;  %v2628_v57 = vsel %vm2603_vm9, %v2563_v36, %v1875_v45  ;;  %v2436_v29 = vsel %vm2408_vm6, %v2371_v48, %v1233_v28  ;;  %v440_v25 = vld [vmem:[#allocation2 + $0x22a] sm:$0xff] }
 0x303   :  { %v1881_v10 = vpop.permute.xlu1 %1880  ;;  %v1879_v39 = vpop.permute.xlu0 %1878  ;;  %v2501_v33 = vsel %vm2473_vm7, %v2436_v29, %v1429_v51  ;;  %v19355_v36 = vld [vmem:[#allocation80_spill] sm:$0xff] }
 0x304   :  { %v2566_v28 = vsel %vm2538_vm8, %v2501_v33, %v1685_v52 }
 0x305   :  { %1900 = vrot.lane.b32.xlu1 %v437_v54, %s10413_s27  ;;  %1898 = vrot.lane.b32.xlu0 %v436_v63, %s10413_s27  ;;  %v19348_v54 = vld [vmem:[#allocation137_spill] sm:$0xff]  ;;  %v2631_v6 = vsel %vm2603_vm9, %v2566_v28, %v1881_v10 }
 0x306   :  { %v2370_v63 = vsel %vm2343_vm5, %v2305_v31, %v19348_v54 }
 0x307   :  { %v2073_v7 = vpop.permute.xlu1 %2072  ;;  %v2071_v53 = vpop.permute.xlu0 %2070  ;;  %v2435_v1 = vsel %vm2408_vm6, %v2370_v63, %v1231_v14 }
 0x308   :  { %v2694_v43 = vsel %vm2668_vm10, %v2629_v5, %v2073_v7  ;;  %v2693_v16 = vsel %vm2668_vm10, %v2628_v57, %v2071_v53  ;;  %v2500_v44 = vsel %vm2473_vm7, %v2435_v1, %v1427_v13  ;;  %v12571_v1 = vld [vmem:[#allocation2 + $0x249] sm:$0xff] }
 0x309   :  { %v12527_v4 = vpack.c.bf16 %v2694_v43, %v2693_v16  ;;  %1904 = vrot.lane.b32.xlu1 %v12511_v23, %s10413_s27  ;;  %1902 = vrot.lane.b32.xlu0 %v12513_v15, %s10413_s27  ;;  %v2565_v14 = vsel %vm2538_vm8, %v2500_v44, %v1683_v19 }
 0x30a   :  { %v2630_v45 = vsel %vm2603_vm9, %v2565_v14, %v1879_v39  ;;  %v441_v39 = vld [vmem:[#allocation2 + $0x232] sm:$0xff] }
 0x30b   :  { %v2789_v51 = vunpack.c.l.bf16 %v12527_v4  ;;  %v2790_v13 = vunpack.c.h.bf16 %v12527_v4  ;;  %v2077_v32 = vpop.permute.xlu1 %2076  ;;  %v2075_v62 = vpop.permute.xlu0 %2074  ;;  %9595 = vmatprep.mubr.msk.bf16.mxu0 %vm2950_vm11, %v12527_v4 }
 0x30c   :  { %v2696_v8 = vsel %vm2668_vm10, %v2631_v6, %v2077_v32  ;;  %v2695_v31 = vsel %vm2668_vm10, %v2630_v45, %v2075_v62  ;;  %v10310_v62 = vld [vmem:[#allocation2 + $0x158] sm:$0xff] }
 0x30d   :  { %v12543_v52 = vsub.f32 %v2693_v16, %v2789_v51  ;;  %v12545_v19 = vsub.f32 %v2694_v43, %v2790_v13  ;;  %v12547_v10 = vpack.c.bf16 %v2696_v8, %v2695_v31  ;;  %2096 = vrot.lane.b32.xlu1 %v12511_v23, %s10414_s2  ;;  %2094 = vrot.lane.b32.xlu0 %v12513_v15, %s10414_s2  ;;  %v12573_v43 = vld [vmem:[#allocation2 + $0x241] sm:$0xff] }
 0x30f   :  { %19349 = vst [vmem:[#allocation66_spill] sm:$0xff] %v12543_v52  ;;  %19350 = vst [vmem:[#allocation67_spill] sm:$0xff] %v12545_v19  ;;  %v2791_v35 = vunpack.c.l.bf16 %v12547_v10  ;;  %v2792_v48 = vunpack.c.h.bf16 %v12547_v10  ;;  %v1237_v54 = vpop.permute.xlu1 %1236  ;;  %v1235_v63 = vpop.permute.xlu0 %1234  ;;  %9596 = vmatmul.mubr.msk.bf16.gmra.mrb[24].mxu0 %vm2950_vm11, %v12547_v10  ;;  %v19358_v19 = vld [vmem:[#allocation139_spill] sm:$0xff] }
 0x311   :  { %v12559_v5 = vsub.f32 %v2695_v31, %v2791_v35  ;;  %v12561_v57 = vsub.f32 %v2696_v8, %v2792_v48  ;;  %2100 = vrot.lane.b32.xlu1 %v441_v39, %s10414_s2  ;;  %2098 = vrot.lane.b32.xlu0 %v440_v25, %s10414_s2  ;;  %v19353_v8 = vld [vmem:[#allocation27_spill] sm:$0xff]  ;;  %v10311_v35 = vld [vmem:[#allocation2 + $0x150] sm:$0xff]  ;;  %v19354_v48 = vld [vmem:[#allocation28_spill] sm:$0xff] }
 0x312   :  { %v2243_v31 = vsel %vm33_vm0, %v10310_v62, %v19353_v8  ;;  %v2242_v7 = vsel %vm33_vm0, %v10311_v35, %v19354_v48  ;;  %v19359_v35 = vld [vmem:[#allocation29_spill] sm:$0xff] }
 0x313   :  { %19351 = vst [vmem:[#allocation124_spill] sm:$0xff] %v12559_v5  ;;  %19352 = vst [vmem:[#allocation125_spill] sm:$0xff] %v12561_v57  ;;  %v1241_v53 = vpop.permute.xlu1 %1240  ;;  %v1239_v29 = vpop.permute.xlu0 %1238  ;;  %v19356_v5 = vld [vmem:[#allocation81_spill] sm:$0xff]  ;;  %v19357_v57 = vld [vmem:[#allocation138_spill] sm:$0xff]  ;;  %v2245_v48 = vsel %vm33_vm0, %v10312_v47, %v19359_v35 }
 0x314   :  { %v19362_v47 = vld [vmem:[#allocation83_spill] sm:$0xff] }
 0x315   :  { %1260 = vrot.lane.b32.xlu1 %v12469_v30, %s10410_s18  ;;  %1258 = vrot.lane.b32.xlu0 %v12473_v58, %s10410_s18  ;;  %v12583_v30 = vld [vmem:[#allocation2 + $0x261] sm:$0xff]  ;;  %v12585_v58 = vld [vmem:[#allocation2 + $0x259] sm:$0xff] }
 0x317   :  { %v1433_v16 = vpop.permute.xlu1 %1432  ;;  %v1431_v33 = vpop.permute.xlu0 %1430 }
 0x319   :  { %1264 = vrot.lane.b32.xlu1 %v12571_v1, %s10410_s18  ;;  %1262 = vrot.lane.b32.xlu0 %v12573_v43, %s10410_s18 }
 0x31b   :  { %v1437_v44 = vpop.permute.xlu1 %1436  ;;  %v1435_v28 = vpop.permute.xlu0 %1434 }
 0x31d   :  { %1456 = vrot.lane.b32.xlu1 %v12571_v1, %s10411_s19  ;;  %1454 = vrot.lane.b32.xlu0 %v12573_v43, %s10411_s19 }
 0x31f   :  { %v1689_v14 = vpop.permute.xlu1 %1688  ;;  %v1687_v6 = vpop.permute.xlu0 %1686 }
 0x321   :  { %1460 = vrot.lane.b32.xlu1 %v12583_v30, %s10411_s19  ;;  %1458 = vrot.lane.b32.xlu0 %v12585_v58, %s10411_s19 }
 0x323   :  { %v1693_v45 = vpop.permute.xlu1 %1692  ;;  %v1691_v51 = vpop.permute.xlu0 %1690 }
 0x325   :  { %1712 = vrot.lane.b32.xlu1 %v12511_v23, %s10412_s22  ;;  %1710 = vrot.lane.b32.xlu0 %v12513_v15, %s10412_s22  ;;  %v2308_v23 = vsel %vm2278_vm4, %v2243_v31, %v19355_v36  ;;  %v2307_v15 = vsel %vm2278_vm4, %v2242_v7, %v19356_v5  ;;  %v10313_v36 = vld [vmem:[#allocation2 + $0x168] sm:$0xff]  ;;  %v19360_v31 = vld [vmem:[#allocation30_spill] sm:$0xff] }
 0x326   :  { %v2373_v52 = vsel %vm2343_vm5, %v2308_v23, %v19357_v57  ;;  %v2372_v62 = vsel %vm2343_vm5, %v2307_v15, %v19358_v19  ;;  %v2244_v5 = vsel %vm33_vm0, %v10313_v36, %v19360_v31  ;;  %v19361_v19 = vld [vmem:[#allocation82_spill] sm:$0xff]  ;;  %v12625_v15 = vld [vmem:[#allocation2 + $0x24a] sm:$0xff] }
 0x327   :  { %v1885_v13 = vpop.permute.xlu1 %1884  ;;  %v1883_v32 = vpop.permute.xlu0 %1882  ;;  %v2438_v60 = vsel %vm2408_vm6, %v2373_v52, %v1237_v54  ;;  %v2437_v27 = vsel %vm2408_vm6, %v2372_v62, %v1235_v63  ;;  %v2310_v23 = vsel %vm2278_vm4, %v2245_v48, %v19361_v19  ;;  %v2309_v52 = vsel %vm2278_vm4, %v2244_v5, %v19362_v47  ;;  %v12627_v62 = vld [vmem:[#allocation2 + $0x242] sm:$0xff] }
 0x328   :  { %v2503_v7 = vsel %vm2473_vm7, %v2438_v60, %v1433_v16  ;;  %v2502_v57 = vsel %vm2473_vm7, %v2437_v27, %v1431_v33  ;;  %v19363_v60 = vld [vmem:[#allocation140_spill] sm:$0xff] }
 0x329   :  { %1716 = vrot.lane.b32.xlu1 %v441_v39, %s10412_s22  ;;  %1714 = vrot.lane.b32.xlu0 %v440_v25, %s10412_s22  ;;  %v2568_v54 = vsel %vm2538_vm8, %v2503_v7, %v1689_v14  ;;  %v2567_v63 = vsel %vm2538_vm8, %v2502_v57, %v1687_v6  ;;  %v2375_v27 = vsel %vm2343_vm5, %v2310_v23, %v19363_v60 }
 0x32a   :  { %v2633_v16 = vsel %vm2603_vm9, %v2568_v54, %v1885_v13  ;;  %v2632_v33 = vsel %vm2603_vm9, %v2567_v63, %v1883_v32  ;;  %v2440_v14 = vsel %vm2408_vm6, %v2375_v27, %v1241_v53  ;;  %v12669_v54 = vld [vmem:[#allocation2 + $0x25a] sm:$0xff]  ;;  %v19372_v63 = vld [vmem:[#allocation85_spill] sm:$0xff] }
 0x32b   :  { %v1889_v8 = vpop.permute.xlu1 %1888  ;;  %v1887_v18 = vpop.permute.xlu0 %1886  ;;  %v2505_v5 = vsel %vm2473_vm7, %v2440_v14, %v1437_v44 }
 0x32c   :  { %v2570_v53 = vsel %vm2538_vm8, %v2505_v5, %v1693_v45 }
 0x32d   :  { %1908 = vrot.lane.b32.xlu1 %v441_v39, %s10413_s27  ;;  %1906 = vrot.lane.b32.xlu0 %v440_v25, %s10413_s27  ;;  %v19364_v39 = vld [vmem:[#allocation141_spill] sm:$0xff]  ;;  %v2635_v13 = vsel %vm2603_vm9, %v2570_v53, %v1889_v8 }
 0x32e   :  { %v2374_v25 = vsel %vm2343_vm5, %v2309_v52, %v19364_v39 }
 0x32f   :  { %v2081_v35 = vpop.permute.xlu1 %2080  ;;  %v2079_v48 = vpop.permute.xlu0 %2078  ;;  %v2439_v6 = vsel %vm2408_vm6, %v2374_v25, %v1239_v29 }
 0x330   :  { %v2698_v36 = vsel %vm2668_vm10, %v2633_v16, %v2081_v35  ;;  %v2697_v31 = vsel %vm2668_vm10, %v2632_v33, %v2079_v48  ;;  %v2504_v7 = vsel %vm2473_vm7, %v2439_v6, %v1435_v28 }
 0x331   :  { %v12641_v57 = vpack.c.bf16 %v2698_v36, %v2697_v31  ;;  %1912 = vrot.lane.b32.xlu1 %v12625_v15, %s10413_s27  ;;  %1910 = vrot.lane.b32.xlu0 %v12627_v62, %s10413_s27  ;;  %v2569_v29 = vsel %vm2538_vm8, %v2504_v7, %v1691_v51  ;;  %v12701_v7 = vld [vmem:[#allocation2 + $0x271] sm:$0xff] }
 0x332   :  { %v2634_v32 = vsel %vm2603_vm9, %v2569_v29, %v1887_v18  ;;  %v12667_v18 = vld [vmem:[#allocation2 + $0x262] sm:$0xff] }
 0x333   :  { %v2793_v44 = vunpack.c.l.bf16 %v12641_v57  ;;  %v2794_v28 = vunpack.c.h.bf16 %v12641_v57  ;;  %v2085_v19 = vpop.permute.xlu1 %2084  ;;  %v2083_v23 = vpop.permute.xlu0 %2082  ;;  %9599 = vmatprep.mubr.msk.bf16.mxu0 %vm2950_vm11, %v12641_v57 }
 0x334   :  { %v2700_v47 = vsel %vm2668_vm10, %v2635_v13, %v2085_v19  ;;  %v2699_v52 = vsel %vm2668_vm10, %v2634_v32, %v2083_v23  ;;  %v287_v32 = vld [vmem:[#allocation2 + $0x1b8] sm:$0xff]  ;;  %v19369_v23 = vld [vmem:[#allocation31_spill] sm:$0xff] }
 0x335   :  { %v12657_v45 = vsub.f32 %v2697_v31, %v2793_v44  ;;  %v12659_v51 = vsub.f32 %v2698_v36, %v2794_v28  ;;  %v12661_v8 = vpack.c.bf16 %v2700_v47, %v2699_v52  ;;  %2104 = vrot.lane.b32.xlu1 %v12625_v15, %s10414_s2  ;;  %2102 = vrot.lane.b32.xlu0 %v12627_v62, %s10414_s2  ;;  %v12713_v44 = vld [vmem:[#allocation2 + $0x289] sm:$0xff] }
 0x337   :  { %19365 = vst [vmem:[#allocation15_spill] sm:$0xff] %v12657_v45  ;;  %19366 = vst [vmem:[#allocation16_spill] sm:$0xff] %v12659_v51  ;;  %v2795_v60 = vunpack.c.l.bf16 %v12661_v8  ;;  %v2796_v27 = vunpack.c.h.bf16 %v12661_v8  ;;  %v1245_v39 = vpop.permute.xlu1 %1244  ;;  %v1243_v25 = vpop.permute.xlu0 %1242  ;;  %9600 = vmatmul.mubr.msk.bf16.gmra.mrb[28].mxu0 %vm2950_vm11, %v12661_v8  ;;  %v19374_v51 = vld [vmem:[#allocation143_spill] sm:$0xff] }
 0x339   :  { %v12677_v16 = vsub.f32 %v2699_v52, %v2795_v60  ;;  %v12679_v33 = vsub.f32 %v2700_v47, %v2796_v27  ;;  %2108 = vrot.lane.b32.xlu1 %v12667_v18, %s10414_s2  ;;  %2106 = vrot.lane.b32.xlu0 %v12669_v54, %s10414_s2  ;;  %v2247_v47 = vsel %vm33_vm0, %v287_v32, %v19369_v23  ;;  %v19370_v52 = vld [vmem:[#allocation32_spill] sm:$0xff] }
 0x33a   :  { %v19371_v27 = vld [vmem:[#allocation84_spill] sm:$0xff] }
 0x33b   :  { %19367 = vst [vmem:[#allocation68_spill] sm:$0xff] %v12677_v16  ;;  %19368 = vst [vmem:[#allocation69_spill] sm:$0xff] %v12679_v33  ;;  %v1249_v48 = vpop.permute.xlu1 %1248  ;;  %v1247_v14 = vpop.permute.xlu0 %1246  ;;  %v2312_v35 = vsel %vm2278_vm4, %v2247_v47, %v19371_v27  ;;  %v19373_v33 = vld [vmem:[#allocation142_spill] sm:$0xff]  ;;  %v10315_v47 = vld [vmem:[#allocation2 + $0x1c8] sm:$0xff] }
 0x33c   :  { %v2377_v45 = vsel %vm2343_vm5, %v2312_v35, %v19373_v33  ;;  %v19376_v27 = vld [vmem:[#allocation34_spill] sm:$0xff]  ;;  %v19379_v35 = vld [vmem:[#allocation144_spill] sm:$0xff] }
 0x33d   :  { %1072 = vrot.lane.b32.xlu1 %v12571_v1, %s10409_s17  ;;  %1070 = vrot.lane.b32.xlu0 %v12573_v43, %s10409_s17  ;;  %v12699_v1 = vld [vmem:[#allocation2 + $0x279] sm:$0xff]  ;;  %v2442_v42 = vsel %vm2408_vm6, %v2377_v45, %v1245_v39  ;;  %v19378_v45 = vld [vmem:[#allocation89_spill] sm:$0xff] }
 0x33f   :  { %v1441_v6 = vpop.permute.xlu1 %1440  ;;  %v1439_v36 = vpop.permute.xlu0 %1438 }
 0x341   :  { %1076 = vrot.lane.b32.xlu1 %v12583_v30, %s10409_s17  ;;  %1074 = vrot.lane.b32.xlu0 %v12585_v58, %s10409_s17 }
 0x343   :  { %v1445_v31 = vpop.permute.xlu1 %1444  ;;  %v1443_v5 = vpop.permute.xlu0 %1442 }
 0x345   :  { %1268 = vrot.lane.b32.xlu1 %v12583_v30, %s10410_s18  ;;  %1266 = vrot.lane.b32.xlu0 %v12585_v58, %s10410_s18  ;;  %v286_v30 = vld [vmem:[#allocation2 + $0x1b0] sm:$0xff] }
 0x346   :  { %v12711_v58 = vld [vmem:[#allocation2 + $0x291] sm:$0xff]  ;;  %v2246_v60 = vsel %vm33_vm0, %v286_v30, %v19370_v52 }
 0x347   :  { %v1697_v43 = vpop.permute.xlu1 %1696  ;;  %v1695_v53 = vpop.permute.xlu0 %1694  ;;  %v2311_v16 = vsel %vm2278_vm4, %v2246_v60, %v19372_v63  ;;  %v10314_v52 = vld [vmem:[#allocation2 + $0x1d0] sm:$0xff]  ;;  %v2248_v63 = vsel %vm33_vm0, %v10315_v47, %v19376_v27  ;;  %v2507_v60 = vsel %vm2473_vm7, %v2442_v42, %v1441_v6 }
 0x348   :  { %v2376_v32 = vsel %vm2343_vm5, %v2311_v16, %v19374_v51  ;;  %v2249_v11 = vsel %vm33_vm0, %v10314_v52, %v19375_v61  ;;  %v19377_v51 = vld [vmem:[#allocation88_spill] sm:$0xff]  ;;  %v2313_v39 = vsel %vm2278_vm4, %v2248_v63, %v19378_v45  ;;  %v12789_v45 = vld [vmem:[#allocation2 + $0x272] sm:$0xff] }
 0x349   :  { %1272 = vrot.lane.b32.xlu1 %v12699_v1, %s10410_s18  ;;  %1270 = vrot.lane.b32.xlu0 %v12701_v7, %s10410_s18  ;;  %v2441_v20 = vsel %vm2408_vm6, %v2376_v32, %v1243_v25  ;;  %v2314_v61 = vsel %vm2278_vm4, %v2249_v11, %v19377_v51  ;;  %v2572_v25 = vsel %vm2538_vm8, %v2507_v60, %v1697_v43 }
 0x34a   :  { %v2506_v33 = vsel %vm2473_vm7, %v2441_v20, %v1439_v36  ;;  %v2379_v42 = vsel %vm2343_vm5, %v2314_v61, %v19379_v35  ;;  %v19380_v20 = vld [vmem:[#allocation145_spill] sm:$0xff] }
 0x34b   :  { %v1701_v29 = vpop.permute.xlu1 %1700  ;;  %v1699_v13 = vpop.permute.xlu0 %1698  ;;  %v2571_v16 = vsel %vm2538_vm8, %v2506_v33, %v1695_v53  ;;  %v2378_v6 = vsel %vm2343_vm5, %v2313_v39, %v19380_v20  ;;  %v2444_v11 = vsel %vm2408_vm6, %v2379_v42, %v1249_v48 }
 0x34c   :  { %v2443_v52 = vsel %vm2408_vm6, %v2378_v6, %v1247_v14  ;;  %v2509_v47 = vsel %vm2473_vm7, %v2444_v11, %v1445_v31 }
 0x34d   :  { %1464 = vrot.lane.b32.xlu1 %v12699_v1, %s10411_s19  ;;  %1462 = vrot.lane.b32.xlu0 %v12701_v7, %s10411_s19  ;;  %v2508_v27 = vsel %vm2473_vm7, %v2443_v52, %v1443_v5  ;;  %v2574_v48 = vsel %vm2538_vm8, %v2509_v47, %v1701_v29 }
 0x34e   :  { %v2573_v14 = vsel %vm2538_vm8, %v2508_v27, %v1699_v13 }
 0x34f   :  { %v1893_v28 = vpop.permute.xlu1 %1892  ;;  %v1891_v19 = vpop.permute.xlu0 %1890 }
 0x351   :  { %1468 = vrot.lane.b32.xlu1 %v12711_v58, %s10411_s19  ;;  %1466 = vrot.lane.b32.xlu0 %v12713_v44, %s10411_s19 }
 0x353   :  { %v1897_v23 = vpop.permute.xlu1 %1896  ;;  %v1895_v30 = vpop.permute.xlu0 %1894 }
 0x355   :  { %1720 = vrot.lane.b32.xlu1 %v12625_v15, %s10412_s22  ;;  %1718 = vrot.lane.b32.xlu0 %v12627_v62, %s10412_s22  ;;  %v2637_v15 = vsel %vm2603_vm9, %v2572_v25, %v1893_v28  ;;  %v2636_v62 = vsel %vm2603_vm9, %v2571_v16, %v1891_v19  ;;  %v2639_v28 = vsel %vm2603_vm9, %v2574_v48, %v1897_v23 }
 0x356   :  { %v2638_v19 = vsel %vm2603_vm9, %v2573_v14, %v1895_v30  ;;  %v12787_v30 = vld [vmem:[#allocation2 + $0x27a] sm:$0xff] }
 0x357   :  { %v2089_v36 = vpop.permute.xlu1 %2088  ;;  %v2087_v32 = vpop.permute.xlu0 %2086  ;;  %v12833_v14 = vld [vmem:[#allocation2 + $0x2a1] sm:$0xff] }
 0x358   :  { %v2702_v43 = vsel %vm2668_vm10, %v2637_v15, %v2089_v36  ;;  %v2701_v53 = vsel %vm2668_vm10, %v2636_v62, %v2087_v32  ;;  %v12811_v62 = vld [vmem:[#allocation2 + $0x292] sm:$0xff]  ;;  %v12813_v36 = vld [vmem:[#allocation2 + $0x28a] sm:$0xff] }
 0x359   :  { %v12761_v63 = vpack.c.bf16 %v2702_v43, %v2701_v53  ;;  %1724 = vrot.lane.b32.xlu1 %v12667_v18, %s10412_s22  ;;  %1722 = vrot.lane.b32.xlu0 %v12669_v54, %s10412_s22 }
 0x35b   :  { %v2797_v31 = vunpack.c.l.bf16 %v12761_v63  ;;  %v2798_v5 = vunpack.c.h.bf16 %v12761_v63  ;;  %v2093_v60 = vpop.permute.xlu1 %2092  ;;  %v2091_v33 = vpop.permute.xlu0 %2090  ;;  %9603 = vmatprep.mubr.msk.bf16.mxu0 %vm2950_vm11, %v12761_v63 }
 0x35c   :  { %v2704_v51 = vsel %vm2668_vm10, %v2639_v28, %v2093_v60  ;;  %v2703_v61 = vsel %vm2668_vm10, %v2638_v19, %v2091_v33  ;;  %v10316_v19 = vld [vmem:[#allocation2 + $0x1e8] sm:$0xff]  ;;  %v10317_v60 = vld [vmem:[#allocation2 + $0x1e0] sm:$0xff] }
 0x35d   :  { %v12777_v29 = vsub.f32 %v2701_v53, %v2797_v31  ;;  %v12779_v13 = vsub.f32 %v2702_v43, %v2798_v5  ;;  %v12781_v23 = vpack.c.bf16 %v2704_v51, %v2703_v61  ;;  %1916 = vrot.lane.b32.xlu1 %v12667_v18, %s10413_s27  ;;  %1914 = vrot.lane.b32.xlu0 %v12669_v54, %s10413_s27  ;;  %v19385_v31 = vld [vmem:[#allocation35_spill] sm:$0xff]  ;;  %v19386_v33 = vld [vmem:[#allocation36_spill] sm:$0xff] }
 0x35e   :  { %v2251_v5 = vsel %vm33_vm0, %v10316_v19, %v19385_v31  ;;  %v19390_v19 = vld [vmem:[#allocation147_spill] sm:$0xff] }
 0x35f   :  { %19381 = vst [vmem:[#allocation126_spill] sm:$0xff] %v12777_v29  ;;  %19382 = vst [vmem:[#allocation127_spill] sm:$0xff] %v12779_v13  ;;  %v2799_v25 = vunpack.c.l.bf16 %v12781_v23  ;;  %v2800_v16 = vunpack.c.h.bf16 %v12781_v23  ;;  %v1253_v35 = vpop.permute.xlu1 %1252  ;;  %v1251_v42 = vpop.permute.xlu0 %1250  ;;  %9604 = vmatmul.mubr.msk.bf16.gmra.mrb[32].mxu0 %vm2950_vm11, %v12781_v23 }
 0x361   :  { %v12797_v18 = vsub.f32 %v2703_v61, %v2799_v25  ;;  %v12799_v20 = vsub.f32 %v2704_v51, %v2800_v16  ;;  %1920 = vrot.lane.b32.xlu1 %v12787_v30, %s10413_s27  ;;  %1918 = vrot.lane.b32.xlu0 %v12789_v45, %s10413_s27  ;;  %v2250_v51 = vsel %vm33_vm0, %v10317_v60, %v19386_v33  ;;  %v19388_v61 = vld [vmem:[#allocation93_spill] sm:$0xff]  ;;  %v19389_v16 = vld [vmem:[#allocation146_spill] sm:$0xff]  ;;  %v10318_v33 = vld [vmem:[#allocation2 + $0x200] sm:$0xff] }
 0x362   :  { %v2315_v25 = vsel %vm2278_vm4, %v2250_v51, %v19388_v61 }
 0x363   :  { %19383 = vst [vmem:[#allocation17_spill] sm:$0xff] %v12797_v18  ;;  %19384 = vst [vmem:[#allocation18_spill] sm:$0xff] %v12799_v20  ;;  %v1257_v6 = vpop.permute.xlu1 %1256  ;;  %v1255_v15 = vpop.permute.xlu0 %1254  ;;  %v2380_v31 = vsel %vm2343_vm5, %v2315_v25, %v19390_v19  ;;  %v19391_v18 = vld [vmem:[#allocation37_spill] sm:$0xff]  ;;  %v19393_v25 = vld [vmem:[#allocation94_spill] sm:$0xff] }
 0x364   :  { %v2253_v20 = vsel %vm33_vm0, %v10318_v33, %v19391_v18  ;;  %v2445_v13 = vsel %vm2408_vm6, %v2380_v31, %v1251_v42  ;;  %v12869_v19 = vld [vmem:[#allocation2 + $0x2c1] sm:$0xff] }
 0x365   :  { %2112 = vrot.lane.b32.xlu1 %v12787_v30, %s10414_s2  ;;  %2110 = vrot.lane.b32.xlu0 %v12789_v45, %s10414_s2  ;;  %v2318_v18 = vsel %vm2278_vm4, %v2253_v20, %v19393_v25 }
 0x367   :  { %v1449_v32 = vpop.permute.xlu1 %1448  ;;  %v1447_v11 = vpop.permute.xlu0 %1446 }
 0x369   :  { %2116 = vrot.lane.b32.xlu1 %v12811_v62, %s10414_s2  ;;  %2114 = vrot.lane.b32.xlu0 %v12813_v36, %s10414_s2 }
 0x36b   :  { %v1453_v52 = vpop.permute.xlu1 %1452  ;;  %v1451_v43 = vpop.permute.xlu0 %1450 }
 0x36d   :  { %1080 = vrot.lane.b32.xlu1 %v12699_v1, %s10409_s17  ;;  %1078 = vrot.lane.b32.xlu0 %v12701_v7, %s10409_s17  ;;  %v12831_v1 = vld [vmem:[#allocation2 + $0x2a9] sm:$0xff] }
 0x36f   :  { %v1705_v53 = vpop.permute.xlu1 %1704  ;;  %v1703_v47 = vpop.permute.xlu0 %1702 }
 0x371   :  { %1084 = vrot.lane.b32.xlu1 %v12711_v58, %s10409_s17  ;;  %1082 = vrot.lane.b32.xlu0 %v12713_v44, %s10409_s17 }
 0x373   :  { %v1709_v27 = vpop.permute.xlu1 %1708  ;;  %v1707_v48 = vpop.permute.xlu0 %1706 }
 0x375   :  { %1276 = vrot.lane.b32.xlu1 %v12711_v58, %s10410_s18  ;;  %1274 = vrot.lane.b32.xlu0 %v12713_v44, %s10410_s18  ;;  %v19387_v58 = vld [vmem:[#allocation92_spill] sm:$0xff] }
 0x376   :  { %v2316_v44 = vsel %vm2278_vm4, %v2251_v5, %v19387_v58  ;;  %v10319_v5 = vld [vmem:[#allocation2 + $0x1f8] sm:$0xff] }
 0x377   :  { %v1901_v7 = vpop.permute.xlu1 %1900  ;;  %v1899_v28 = vpop.permute.xlu0 %1898  ;;  %v2381_v54 = vsel %vm2343_vm5, %v2316_v44, %v19389_v16  ;;  %v19392_v58 = vld [vmem:[#allocation38_spill] sm:$0xff]  ;;  %v2510_v44 = vsel %vm2473_vm7, %v2445_v13, %v1447_v11  ;;  %v19395_v13 = vld [vmem:[#allocation148_spill] sm:$0xff]  ;;  %v19396_v11 = vld [vmem:[#allocation149_spill] sm:$0xff] }
 0x378   :  { %v2446_v29 = vsel %vm2408_vm6, %v2381_v54, %v1253_v35  ;;  %v2252_v51 = vsel %vm33_vm0, %v10319_v5, %v19392_v58  ;;  %v19394_v35 = vld [vmem:[#allocation95_spill] sm:$0xff]  ;;  %v2575_v16 = vsel %vm2538_vm8, %v2510_v44, %v1703_v47 }
 0x379   :  { %1280 = vrot.lane.b32.xlu1 %v12831_v1, %s10410_s18  ;;  %1278 = vrot.lane.b32.xlu0 %v12833_v14, %s10410_s18  ;;  %v2511_v61 = vsel %vm2473_vm7, %v2446_v29, %v1449_v32  ;;  %v2317_v42 = vsel %vm2278_vm4, %v2252_v51, %v19394_v35  ;;  %v12871_v29 = vld [vmem:[#allocation2 + $0x2b9] sm:$0xff]  ;;  %v2383_v32 = vsel %vm2343_vm5, %v2318_v18, %v19395_v13 }
 0x37a   :  { %v2576_v54 = vsel %vm2538_vm8, %v2511_v61, %v1705_v53  ;;  %v2382_v31 = vsel %vm2343_vm5, %v2317_v42, %v19396_v11  ;;  %v2640_v20 = vsel %vm2603_vm9, %v2575_v16, %v1899_v28  ;;  %v2448_v53 = vsel %vm2408_vm6, %v2383_v32, %v1257_v6 }
 0x37b   :  { %v1905_v39 = vpop.permute.xlu1 %1904  ;;  %v1903_v60 = vpop.permute.xlu0 %1902  ;;  %v2641_v33 = vsel %vm2603_vm9, %v2576_v54, %v1901_v7  ;;  %v2447_v47 = vsel %vm2408_vm6, %v2382_v31, %v1255_v15  ;;  %v2513_v44 = vsel %vm2473_vm7, %v2448_v53, %v1453_v52  ;;  %v12937_v53 = vld [vmem:[#allocation2 + $0x2a2] sm:$0xff] }
 0x37c   :  { %v2512_v25 = vsel %vm2473_vm7, %v2447_v47, %v1451_v43  ;;  %v2578_v6 = vsel %vm2538_vm8, %v2513_v44, %v1709_v27 }
 0x37d   :  { %1472 = vrot.lane.b32.xlu1 %v12831_v1, %s10411_s19  ;;  %1470 = vrot.lane.b32.xlu0 %v12833_v14, %s10411_s19  ;;  %v2577_v15 = vsel %vm2538_vm8, %v2512_v25, %v1707_v48  ;;  %v2643_v7 = vsel %vm2603_vm9, %v2578_v6, %v1905_v39 }
 0x37e   :  { %v2642_v28 = vsel %vm2603_vm9, %v2577_v15, %v1903_v60  ;;  %v19406_v60 = vld [vmem:[#allocation150_spill] sm:$0xff] }
 0x37f   :  { %v2097_v5 = vpop.permute.xlu1 %2096  ;;  %v2095_v58 = vpop.permute.xlu0 %2094 }
 0x380   :  { %v2706_v51 = vsel %vm2668_vm10, %v2641_v33, %v2097_v5  ;;  %v2705_v61 = vsel %vm2668_vm10, %v2640_v20, %v2095_v58  ;;  %v12935_v58 = vld [vmem:[#allocation2 + $0x2aa] sm:$0xff] }
 0x381   :  { %v12885_v18 = vpack.c.bf16 %v2706_v51, %v2705_v61  ;;  %1476 = vrot.lane.b32.xlu1 %v12869_v19, %s10411_s19  ;;  %1474 = vrot.lane.b32.xlu0 %v12871_v29, %s10411_s19 }
 0x383   :  { %v2801_v52 = vunpack.c.l.bf16 %v12885_v18  ;;  %v2802_v43 = vunpack.c.h.bf16 %v12885_v18  ;;  %v2101_v35 = vpop.permute.xlu1 %2100  ;;  %v2099_v42 = vpop.permute.xlu0 %2098  ;;  %9607 = vmatprep.mubr.msk.bf16.mxu0 %vm2950_vm11, %v12885_v18 }
 0x384   :  { %v2708_v54 = vsel %vm2668_vm10, %v2643_v7, %v2101_v35  ;;  %v2707_v16 = vsel %vm2668_vm10, %v2642_v28, %v2099_v42  ;;  %v19402_v35 = vld [vmem:[#allocation39_spill] sm:$0xff] }
 0x385   :  { %v12901_v27 = vsub.f32 %v2705_v61, %v2801_v52  ;;  %v12903_v48 = vsub.f32 %v2706_v51, %v2802_v43  ;;  %v12905_v39 = vpack.c.bf16 %v2708_v54, %v2707_v16  ;;  %1728 = vrot.lane.b32.xlu1 %v12787_v30, %s10412_s22  ;;  %1726 = vrot.lane.b32.xlu0 %v12789_v45, %s10412_s22  ;;  %v10320_v43 = vld [vmem:[#allocation2 + $0x218] sm:$0xff] }
 0x386   :  { %v2255_v42 = vsel %vm33_vm0, %v10320_v43, %v19402_v35  ;;  %v19407_v43 = vld [vmem:[#allocation151_spill] sm:$0xff] }
 0x387   :  { %19397 = vst [vmem:[#allocation70_spill] sm:$0xff] %v12901_v27  ;;  %19398 = vst [vmem:[#allocation71_spill] sm:$0xff] %v12903_v48  ;;  %v2803_v13 = vunpack.c.l.bf16 %v12905_v39  ;;  %v2804_v32 = vunpack.c.h.bf16 %v12905_v39  ;;  %v1261_v11 = vpop.permute.xlu1 %1260  ;;  %v1259_v31 = vpop.permute.xlu0 %1258  ;;  %9608 = vmatmul.mubr.msk.bf16.gmra.mrb[36].mxu0 %vm2950_vm11, %v12905_v39  ;;  %v19408_v27 = vld [vmem:[#allocation41_spill] sm:$0xff] }
 0x388   :  { %19399 = vst [vmem:[#allocation128_spill] sm:$0xff] %v12905_v39  ;;  %v19439_v39 = vld [vmem:[#allocation50_spill] sm:$0xff] }
 0x389   :  { %v12917_v33 = vsub.f32 %v2707_v16, %v2803_v13  ;;  %v12919_v20 = vsub.f32 %v2708_v54, %v2804_v32  ;;  %1732 = vrot.lane.b32.xlu1 %v12811_v62, %s10412_s22  ;;  %1730 = vrot.lane.b32.xlu0 %v12813_v36, %s10412_s22  ;;  %v10321_v54 = vld [vmem:[#allocation2 + $0x210] sm:$0xff]  ;;  %v19403_v16 = vld [vmem:[#allocation40_spill] sm:$0xff] }
 0x38a   :  { %v2254_v13 = vsel %vm33_vm0, %v10321_v54, %v19403_v16  ;;  %v10322_v16 = vld [vmem:[#allocation2 + $0x230] sm:$0xff] }
 0x38b   :  { %19400 = vst [vmem:[#allocation129_spill] sm:$0xff] %v12917_v33  ;;  %19401 = vst [vmem:[#allocation19_spill] sm:$0xff] %v12919_v20  ;;  %v12927_v45 = vpop.permute.xlu1 %1264  ;;  %v12929_v5 = vpop.permute.xlu0 %1262  ;;  %v2257_v48 = vsel %vm33_vm0, %v10322_v16, %v19408_v27  ;;  %v12989_v27 = vld [vmem:[#allocation2 + $0x2d1] sm:$0xff] }
 0x38d   :  { %1924 = vrot.lane.b32.xlu1 %v12811_v62, %s10413_s27  ;;  %1922 = vrot.lane.b32.xlu0 %v12813_v36, %s10413_s27  ;;  %v12947_v62 = vld [vmem:[#allocation2 + $0x2c2] sm:$0xff]  ;;  %v12949_v36 = vld [vmem:[#allocation2 + $0x2ba] sm:$0xff] }
 0x38f   :  { %v1457_v47 = vpop.permute.xlu1 %1456  ;;  %v1455_v51 = vpop.permute.xlu0 %1454 }
 0x391   :  { %1928 = vrot.lane.b32.xlu1 %v12935_v58, %s10413_s27  ;;  %1926 = vrot.lane.b32.xlu0 %v12937_v53, %s10413_s27 }
 0x393   :  { %v1461_v61 = vpop.permute.xlu1 %1460  ;;  %v1459_v44 = vpop.permute.xlu0 %1458 }
 0x395   :  { %2120 = vrot.lane.b32.xlu1 %v12935_v58, %s10414_s2  ;;  %2118 = vrot.lane.b32.xlu0 %v12937_v53, %s10414_s2 }
 0x397   :  { %v1713_v25 = vpop.permute.xlu1 %1712  ;;  %v1711_v6 = vpop.permute.xlu0 %1710 }
 0x399   :  { %2124 = vrot.lane.b32.xlu1 %v12947_v62, %s10414_s2  ;;  %2122 = vrot.lane.b32.xlu0 %v12949_v36, %s10414_s2 }
 0x39b   :  { %v1717_v15 = vpop.permute.xlu1 %1716  ;;  %v1715_v7 = vpop.permute.xlu0 %1714 }
 0x39d   :  { %1088 = vrot.lane.b32.xlu1 %v12831_v1, %s10409_s17  ;;  %1086 = vrot.lane.b32.xlu0 %v12833_v14, %s10409_s17  ;;  %v19404_v1 = vld [vmem:[#allocation96_spill] sm:$0xff]  ;;  %v19405_v14 = vld [vmem:[#allocation97_spill] sm:$0xff] }
 0x39e   :  { %v2320_v32 = vsel %vm2278_vm4, %v2255_v42, %v19404_v1  ;;  %v2319_v30 = vsel %vm2278_vm4, %v2254_v13, %v19405_v14  ;;  %v10323_v42 = vld [vmem:[#allocation2 + $0x228] sm:$0xff]  ;;  %v19409_v1 = vld [vmem:[#allocation42_spill] sm:$0xff] }
 0x39f   :  { %v1909_v28 = vpop.permute.xlu1 %1908  ;;  %v1907_v52 = vpop.permute.xlu0 %1906  ;;  %v2385_v33 = vsel %vm2343_vm5, %v2320_v32, %v19406_v60  ;;  %v2384_v35 = vsel %vm2343_vm5, %v2319_v30, %v19407_v43  ;;  %v2256_v13 = vsel %vm33_vm0, %v10323_v42, %v19409_v1  ;;  %v12987_v30 = vld [vmem:[#allocation2 + $0x2d9] sm:$0xff] }
 0x3a0   :  { %v2450_v2 = vsel %vm2408_vm6, %v2385_v33, %v1261_v11  ;;  %v2449_v3 = vsel %vm2408_vm6, %v2384_v35, %v1259_v31  ;;  %v19410_v11 = vld [vmem:[#allocation98_spill] sm:$0xff]  ;;  %v19411_v33 = vld [vmem:[#allocation99_spill] sm:$0xff] }
 0x3a1   :  { %1092 = vrot.lane.b32.xlu1 %v12869_v19, %s10409_s17  ;;  %1090 = vrot.lane.b32.xlu0 %v12871_v29, %s10409_s17  ;;  %v2515_v14 = vsel %vm2473_vm7, %v2450_v2, %v1457_v47  ;;  %v2514_v60 = vsel %vm2473_vm7, %v2449_v3, %v1455_v51  ;;  %v2322_v31 = vsel %vm2278_vm4, %v2257_v48, %v19410_v11  ;;  %v19413_v51 = vld [vmem:[#allocation153_spill] sm:$0xff] }
 0x3a2   :  { %v2321_v32 = vsel %vm2278_vm4, %v2256_v13, %v19411_v33  ;;  %v2580_v2 = vsel %vm2538_vm8, %v2515_v14, %v1713_v25  ;;  %v2579_v3 = vsel %vm2538_vm8, %v2514_v60, %v1711_v6 }
 0x3a3   :  { %v1913_v20 = vpop.permute.xlu1 %1912  ;;  %v1911_v54 = vpop.permute.xlu0 %1910  ;;  %v2386_v43 = vsel %vm2343_vm5, %v2321_v32, %v19413_v51  ;;  %v2645_v48 = vsel %vm2603_vm9, %v2580_v2, %v1909_v28  ;;  %v2644_v35 = vsel %vm2603_vm9, %v2579_v3, %v1907_v52  ;;  %v13046_v3 = vld [vmem:[#allocation2 + $0x2e9] sm:$0xff] }
 0x3a4   :  { %v2451_v6 = vsel %vm2408_vm6, %v2386_v43, %v12929_v5 }
 0x3a5   :  { %1284 = vrot.lane.b32.xlu1 %v12869_v19, %s10410_s18  ;;  %1282 = vrot.lane.b32.xlu0 %v12871_v29, %s10410_s18  ;;  %v13000_v19 = vld [vmem:[%s18882_s1] sm:$0xff]   ;;  %v19412_v29 = vld [vmem:[#allocation152_spill] sm:$0xff]  ;;  %v2516_v28 = vsel %vm2473_vm7, %v2451_v6, %v1459_v44 }
 0x3a6   :  { %v2387_v47 = vsel %vm2343_vm5, %v2322_v31, %v19412_v29  ;;  %9635 = vmatprep.subr.bf16.mxu0 %v13000_v19  ;;  %v2581_v5 = vsel %vm2538_vm8, %v2516_v28, %v1715_v7 }
 0x3a7   :  { %v2105_v16 = vpop.permute.xlu1 %2104  ;;  %v2103_v42 = vpop.permute.xlu0 %2102  ;;  %v2452_v25 = vsel %vm2408_vm6, %v2387_v47, %v12927_v45  ;;  %9636 = vmatpush3.bf16.msra.mxu0 %v13000_v19 }
 0x3a8   :  { %v2710_v1 = vsel %vm2668_vm10, %v2645_v48, %v2105_v16  ;;  %v2709_v13 = vsel %vm2668_vm10, %v2644_v35, %v2103_v42  ;;  %v2517_v14 = vsel %vm2473_vm7, %v2452_v25, %v1461_v61  ;;  %v2646_v61 = vsel %vm2603_vm9, %v2581_v5, %v1911_v54  ;;  %v13044_v54 = vld [vmem:[#allocation2 + $0x2f1] sm:$0xff]  ;;  %v19420_v42 = vld [vmem:[#allocation43_spill] sm:$0xff] }
 0x3a9   :  { %v13017_v60 = vpack.c.bf16 %v2710_v1, %v2709_v13  ;;  %1288 = vrot.lane.b32.xlu1 %v12987_v30, %s10410_s18  ;;  %1286 = vrot.lane.b32.xlu0 %v12989_v27, %s10410_s18  ;;  %v2582_v45 = vsel %vm2538_vm8, %v2517_v14, %v1717_v15 }
 0x3aa   :  { %v2647_v52 = vsel %vm2603_vm9, %v2582_v45, %v1913_v20 }
 0x3ab   :  { %19414 = vst [vmem:[#allocation20_spill] sm:$0xff] %v13017_v60  ;;  %v2805_v44 = vunpack.c.l.bf16 %v13017_v60  ;;  %v2806_v11 = vunpack.c.h.bf16 %v13017_v60  ;;  %v2109_v31 = vpop.permute.xlu1 %2108  ;;  %v2107_v33 = vpop.permute.xlu0 %2106  ;;  %9611 = vmatprep.mubr.msk.bf16.mxu0 %vm2950_vm11, %v13017_v60  ;;  %v10331_v60 = vld [vmem:[#allocation2 + $0x288] sm:$0xff] }
 0x3ac   :  { %v2712_v32 = vsel %vm2668_vm10, %v2647_v52, %v2109_v31  ;;  %v2711_v15 = vsel %vm2668_vm10, %v2646_v61, %v2107_v33 }
 0x3ad   :  { %v13034_v7 = vsub.f32 %v2709_v13, %v2805_v44  ;;  %v13036_v2 = vsub.f32 %v2710_v1, %v2806_v11  ;;  %v13038_v20 = vpack.c.bf16 %v2712_v32, %v2711_v15  ;;  %1480 = vrot.lane.b32.xlu1 %v12987_v30, %s10411_s19  ;;  %1478 = vrot.lane.b32.xlu0 %v12989_v27, %s10411_s19 }
 0x3af   :  { %19415 = vst [vmem:[#allocation72_spill] sm:$0xff] %v13034_v7  ;;  %19416 = vst [vmem:[#allocation73_spill] sm:$0xff] %v13036_v2  ;;  %v2807_v47 = vunpack.c.l.bf16 %v13038_v20  ;;  %v2808_v51 = vunpack.c.h.bf16 %v13038_v20  ;;  %v1073_v43 = vpop.permute.xlu1 %1072  ;;  %v1071_v48 = vpop.permute.xlu0 %1070  ;;  %9612 = vmatmul.mubr.msk.bf16.gmra.mrb[40].mxu0 %vm2950_vm11, %v13038_v20  ;;  %v19423_v2 = vld [vmem:[#allocation101_spill] sm:$0xff] }
 0x3b0   :  { %19417 = vst [vmem:[#allocation130_spill] sm:$0xff] %v13038_v20 }
 0x3b1   :  { %v13054_v35 = vsub.f32 %v2711_v15, %v2807_v47  ;;  %v13056_v16 = vsub.f32 %v2712_v32, %v2808_v51  ;;  %1484 = vrot.lane.b32.xlu1 %v13044_v54, %s10411_s19  ;;  %1482 = vrot.lane.b32.xlu0 %v13046_v3, %s10411_s19  ;;  %v13111_v47 = vld [vmem:[%s18882_s1 + $0x8] sm:$0xff]  }
 0x3b2   :  { %v10324_v51 = vld [vmem:[#allocation2 + $0x248] sm:$0xff]  ;;  %9637 = vmatprep.subr.bf16.mxu0 %v13111_v47 }
 0x3b3   :  { %19418 = vst [vmem:[#allocation131_spill] sm:$0xff] %v13054_v35  ;;  %19419 = vst [vmem:[#allocation21_spill] sm:$0xff] %v13056_v16  ;;  %v13064_v25 = vpop.permute.xlu1 %1076  ;;  %v13066_v6 = vpop.permute.xlu0 %1074  ;;  %v2259_v29 = vsel %vm33_vm0, %v10324_v51, %v19420_v42  ;;  %v10325_v35 = vld [vmem:[#allocation2 + $0x240] sm:$0xff]  ;;  %v19421_v16 = vld [vmem:[#allocation44_spill] sm:$0xff]  ;;  %9638 = vmatpush3.bf16.msra.mxu0 %v13111_v47 }
 0x3b4   :  { %v2258_v7 = vsel %vm33_vm0, %v10325_v35, %v19421_v16  ;;  %v10326_v16 = vld [vmem:[#allocation2 + $0x260] sm:$0xff] }
 0x3b5   :  { %1736 = vrot.lane.b32.xlu1 %v12935_v58, %s10412_s22  ;;  %1734 = vrot.lane.b32.xlu0 %v12937_v53, %s10412_s22  ;;  %v13084_v58 = vld [vmem:[#allocation2 + $0x2da] sm:$0xff]  ;;  %v13086_v53 = vld [vmem:[#allocation2 + $0x2d2] sm:$0xff]  ;;  %v2323_v26 = vsel %vm2278_vm4, %v2258_v7, %v19423_v2  ;;  %v2261_v9 = vsel %vm33_vm0, %v10326_v16, %v19424_v41 }
 0x3b6   :  { %v2388_v51 = vsel %vm2343_vm5, %v2323_v26, %v1071_v48  ;;  %v19425_v7 = vld [vmem:[#allocation46_spill] sm:$0xff] }
 0x3b7   :  { %v1269_v1 = vpop.permute.xlu1 %1268  ;;  %v1267_v13 = vpop.permute.xlu0 %1266  ;;  %v19426_v48 = vld [vmem:[#allocation102_spill] sm:$0xff] }
 0x3b8   :  { %v2326_v41 = vsel %vm2278_vm4, %v2261_v9, %v19426_v48 }
 0x3b9   :  { %1740 = vrot.lane.b32.xlu1 %v12947_v62, %s10412_s22  ;;  %1738 = vrot.lane.b32.xlu0 %v12949_v36, %s10412_s22 }
 0x3bb   :  { %v13076_v14 = vpop.permute.xlu1 %1272  ;;  %v13078_v28 = vpop.permute.xlu0 %1270 }
 0x3bd   :  { %1932 = vrot.lane.b32.xlu1 %v12947_v62, %s10413_s27  ;;  %1930 = vrot.lane.b32.xlu0 %v12949_v36, %s10413_s27  ;;  %v13096_v62 = vld [vmem:[#allocation2 + $0x2f2] sm:$0xff]  ;;  %v13098_v36 = vld [vmem:[#allocation2 + $0x2ea] sm:$0xff] }
 0x3bf   :  { %v1465_v45 = vpop.permute.xlu1 %1464  ;;  %v1463_v5 = vpop.permute.xlu0 %1462 }
 0x3c1   :  { %1936 = vrot.lane.b32.xlu1 %v13084_v58, %s10413_s27  ;;  %1934 = vrot.lane.b32.xlu0 %v13086_v53, %s10413_s27 }
 0x3c3   :  { %v1469_v52 = vpop.permute.xlu1 %1468  ;;  %v1467_v61 = vpop.permute.xlu0 %1466 }
 0x3c5   :  { %2128 = vrot.lane.b32.xlu1 %v13084_v58, %s10414_s2  ;;  %2126 = vrot.lane.b32.xlu0 %v13086_v53, %s10414_s2 }
 0x3c7   :  { %v1721_v44 = vpop.permute.xlu1 %1720  ;;  %v1719_v11 = vpop.permute.xlu0 %1718 }
 0x3c9   :  { %2132 = vrot.lane.b32.xlu1 %v13096_v62, %s10414_s2  ;;  %2130 = vrot.lane.b32.xlu0 %v13098_v36, %s10414_s2 }
 0x3cb   :  { %v1725_v31 = vpop.permute.xlu1 %1724  ;;  %v1723_v33 = vpop.permute.xlu0 %1722 }
 0x3cd   :  { %1096 = vrot.lane.b32.xlu1 %v12987_v30, %s10409_s17  ;;  %1094 = vrot.lane.b32.xlu0 %v12989_v27, %s10409_s17  ;;  %v19422_v30 = vld [vmem:[#allocation100_spill] sm:$0xff] }
 0x3ce   :  { %v2324_v27 = vsel %vm2278_vm4, %v2259_v29, %v19422_v30  ;;  %v2453_v29 = vsel %vm2408_vm6, %v2388_v51, %v1267_v13  ;;  %v10327_v30 = vld [vmem:[#allocation2 + $0x258] sm:$0xff]  ;;  %v13147_v51 = vld [vmem:[#allocation2 + $0x309] sm:$0xff] }
 0x3cf   :  { %v1917_v32 = vpop.permute.xlu1 %1916  ;;  %v1915_v15 = vpop.permute.xlu0 %1914  ;;  %v2389_v42 = vsel %vm2343_vm5, %v2324_v27, %v1073_v43  ;;  %v2260_v2 = vsel %vm33_vm0, %v10327_v30, %v19425_v7  ;;  %v2518_v26 = vsel %vm2473_vm7, %v2453_v29, %v1463_v5 }
 0x3d0   :  { %v2454_v12 = vsel %vm2408_vm6, %v2389_v42, %v1269_v1  ;;  %v19427_v1 = vld [vmem:[#allocation103_spill] sm:$0xff]  ;;  %v2583_v42 = vsel %vm2538_vm8, %v2518_v26, %v1719_v11 }
 0x3d1   :  { %1100 = vrot.lane.b32.xlu1 %v13044_v54, %s10409_s17  ;;  %1098 = vrot.lane.b32.xlu0 %v13046_v3, %s10409_s17  ;;  %v2519_v43 = vsel %vm2473_vm7, %v2454_v12, %v1465_v45  ;;  %v2325_v13 = vsel %vm2278_vm4, %v2260_v2, %v19427_v1  ;;  %v13149_v12 = vld [vmem:[#allocation2 + $0x301] sm:$0xff]  ;;  %v2648_v9 = vsel %vm2603_vm9, %v2583_v42, %v1915_v15 }
 0x3d2   :  { %v2584_v27 = vsel %vm2538_vm8, %v2519_v43, %v1721_v44  ;;  %v19435_v1 = vld [vmem:[#allocation48_spill] sm:$0xff] }
 0x3d3   :  { %v1921_v21 = vpop.permute.xlu1 %1920  ;;  %v1919_v35 = vpop.permute.xlu0 %1918  ;;  %v2649_v45 = vsel %vm2603_vm9, %v2584_v27, %v1917_v32 }
 0x3d5   :  { %1292 = vrot.lane.b32.xlu1 %v13044_v54, %s10410_s18  ;;  %1290 = vrot.lane.b32.xlu0 %v13046_v3, %s10410_s18  ;;  %v2391_v54 = vsel %vm2343_vm5, %v2326_v41, %v13064_v25  ;;  %v2390_v3 = vsel %vm2343_vm5, %v2325_v13, %v13066_v6  ;;  %v13193_v41 = vld [vmem:[#allocation2 + $0x319] sm:$0xff] }
 0x3d6   :  { %v2456_v44 = vsel %vm2408_vm6, %v2391_v54, %v13076_v14  ;;  %v2455_v11 = vsel %vm2408_vm6, %v2390_v3, %v13078_v28 }
 0x3d7   :  { %v2113_v5 = vpop.permute.xlu1 %2112  ;;  %v2111_v16 = vpop.permute.xlu0 %2110  ;;  %v2521_v25 = vsel %vm2473_vm7, %v2456_v44, %v1469_v52  ;;  %v2520_v6 = vsel %vm2473_vm7, %v2455_v11, %v1467_v61 }
 0x3d8   :  { %v2714_v29 = vsel %vm2668_vm10, %v2649_v45, %v2113_v5  ;;  %v2713_v30 = vsel %vm2668_vm10, %v2648_v9, %v2111_v16  ;;  %v2586_v14 = vsel %vm2538_vm8, %v2521_v25, %v1725_v31  ;;  %v2585_v28 = vsel %vm2538_vm8, %v2520_v6, %v1723_v33  ;;  %v10329_v9 = vld [vmem:[#allocation2 + $0x270] sm:$0xff] }
 0x3d9   :  { %v13165_v7 = vpack.c.bf16 %v2714_v29, %v2713_v30  ;;  %1296 = vrot.lane.b32.xlu1 %v13147_v51, %s10410_s18  ;;  %1294 = vrot.lane.b32.xlu0 %v13149_v12, %s10410_s18  ;;  %v2651_v32 = vsel %vm2603_vm9, %v2586_v14, %v1921_v21  ;;  %v2650_v15 = vsel %vm2603_vm9, %v2585_v28, %v1919_v35  ;;  %v13191_v35 = vld [vmem:[#allocation2 + $0x321] sm:$0xff] }
 0x3db   :  { %19428 = vst [vmem:[#allocation22_spill] sm:$0xff] %v13165_v7  ;;  %v2809_v52 = vunpack.c.l.bf16 %v13165_v7  ;;  %v2810_v61 = vunpack.c.h.bf16 %v13165_v7  ;;  %v2117_v2 = vpop.permute.xlu1 %2116  ;;  %v2115_v43 = vpop.permute.xlu0 %2114  ;;  %9615 = vmatprep.mubr.msk.bf16.mxu0 %vm2950_vm11, %v13165_v7 }
 0x3dc   :  { %v2716_v26 = vsel %vm2668_vm10, %v2651_v32, %v2117_v2  ;;  %v2715_v48 = vsel %vm2668_vm10, %v2650_v15, %v2115_v43  ;;  %v13254_v2 = vld [vmem:[%s18882_s1 + $0x10] ss:$0 sps:$4 sm:$0x33]  }
 0x3dd   :  { %v13181_v31 = vsub.f32 %v2713_v30, %v2809_v52  ;;  %v13183_v33 = vsub.f32 %v2714_v29, %v2810_v61  ;;  %v13185_v21 = vpack.c.bf16 %v2716_v26, %v2715_v48  ;;  %1488 = vrot.lane.b32.xlu1 %v13147_v51, %s10411_s19  ;;  %1486 = vrot.lane.b32.xlu0 %v13149_v12, %s10411_s19  ;;  %v13264_v43 = vsel %vm3047_vm3, %v13254_v2, 0 }
 0x3de   :  { %10242 = vmatprep.subr.msk.bf16.mxu0 %vm3047_vm3, %v13254_v2 }
 0x3df   :  { %19429 = vst [vmem:[#allocation74_spill] sm:$0xff] %v13181_v31  ;;  %19430 = vst [vmem:[#allocation75_spill] sm:$0xff] %v13183_v33  ;;  %v2811_v13 = vunpack.c.l.bf16 %v13185_v21  ;;  %v2812_v27 = vunpack.c.h.bf16 %v13185_v21  ;;  %v1081_v42 = vpop.permute.xlu1 %1080  ;;  %v1079_v54 = vpop.permute.xlu0 %1078  ;;  %9616 = vmatmul.mubr.msk.bf16.gmra.mrb[44].mxu0 %vm2950_vm11, %v13185_v21  ;;  %v19437_v31 = vld [vmem:[#allocation105_spill] sm:$0xff] }
 0x3e0   :  { %19431 = vst [vmem:[#allocation132_spill] sm:$0xff] %v13185_v21  ;;  %9640 = vmatpush3.bf16.msra.mxu0 %v13264_v43  ;;  %v10330_v21 = vld [vmem:[#allocation2 + $0x290] sm:$0xff] }
 0x3e1   :  { %v13201_v3 = vsub.f32 %v2715_v48, %v2811_v13  ;;  %v13203_v45 = vsub.f32 %v2716_v26, %v2812_v27  ;;  %1492 = vrot.lane.b32.xlu1 %v13191_v35, %s10411_s19  ;;  %1490 = vrot.lane.b32.xlu0 %v13193_v41, %s10411_s19  ;;  %v10328_v13 = vld [vmem:[#allocation2 + $0x278] sm:$0xff]  ;;  %v19434_v27 = vld [vmem:[#allocation47_spill] sm:$0xff] }
 0x3e2   :  { %9705 = vmatprep.subr.bf16.mxu0 %v13000_v19 }
 0x3e3   :  { %19432 = vst [vmem:[#allocation133_spill] sm:$0xff] %v13201_v3  ;;  %19433 = vst [vmem:[#allocation23_spill] sm:$0xff] %v13203_v45  ;;  %v13211_v5 = vpop.permute.xlu1 %1084  ;;  %v13213_v16 = vpop.permute.xlu0 %1082  ;;  %v19436_v3 = vld [vmem:[#allocation104_spill] sm:$0xff] }
 0x3e5   :  { %1744 = vrot.lane.b32.xlu1 %v13084_v58, %s10412_s22  ;;  %1742 = vrot.lane.b32.xlu0 %v13086_v53, %s10412_s22  ;;  %v13231_v58 = vld [vmem:[#allocation2 + $0x30a] sm:$0xff]  ;;  %v13233_v53 = vld [vmem:[#allocation2 + $0x302] sm:$0xff] }
 0x3e7   :  { %v1277_v44 = vpop.permute.xlu1 %1276  ;;  %v1275_v11 = vpop.permute.xlu0 %1274 }
 0x3e9   :  { %1748 = vrot.lane.b32.xlu1 %v13096_v62, %s10412_s22  ;;  %1746 = vrot.lane.b32.xlu0 %v13098_v36, %s10412_s22 }
 0x3eb   :  { %v13223_v29 = vpop.permute.xlu1 %1280  ;;  %v13225_v30 = vpop.permute.xlu0 %1278 }
 0x3ed   :  { %1940 = vrot.lane.b32.xlu1 %v13096_v62, %s10413_s27  ;;  %1938 = vrot.lane.b32.xlu0 %v13098_v36, %s10413_s27  ;;  %v13243_v62 = vld [vmem:[#allocation2 + $0x322] sm:$0xff]  ;;  %v13245_v36 = vld [vmem:[#allocation2 + $0x31a] sm:$0xff] }
 0x3ef   :  { %v1473_v25 = vpop.permute.xlu1 %1472  ;;  %v1471_v6 = vpop.permute.xlu0 %1470 }
 0x3f1   :  { %1944 = vrot.lane.b32.xlu1 %v13231_v58, %s10413_s27  ;;  %1942 = vrot.lane.b32.xlu0 %v13233_v53, %s10413_s27 }
 0x3f3   :  { %v1477_v14 = vpop.permute.xlu1 %1476  ;;  %v1475_v28 = vpop.permute.xlu0 %1474 }
 0x3f5   :  { %2136 = vrot.lane.b32.xlu1 %v13231_v58, %s10414_s2  ;;  %2134 = vrot.lane.b32.xlu0 %v13233_v53, %s10414_s2 }
 0x3f7   :  { %v1729_v32 = vpop.permute.xlu1 %1728  ;;  %v1727_v15 = vpop.permute.xlu0 %1726 }
 0x3f9   :  { %2140 = vrot.lane.b32.xlu1 %v13243_v62, %s10414_s2  ;;  %2138 = vrot.lane.b32.xlu0 %v13245_v36, %s10414_s2 }
 0x3fb   :  { %v1733_v52 = vpop.permute.xlu1 %1732  ;;  %v1731_v61 = vpop.permute.xlu0 %1730 }
 0x3fd   :  { %1104 = vrot.lane.b32.xlu1 %v13147_v51, %s10409_s17  ;;  %1102 = vrot.lane.b32.xlu0 %v13149_v12, %s10409_s17  ;;  %v2263_v51 = vsel %vm33_vm0, %v10328_v13, %v19434_v27  ;;  %v2262_v12 = vsel %vm33_vm0, %v10329_v9, %v19435_v1  ;;  %v19438_v1 = vld [vmem:[#allocation49_spill] sm:$0xff] }
 0x3fe   :  { %v2328_v45 = vsel %vm2278_vm4, %v2263_v51, %v19436_v3  ;;  %v2327_v33 = vsel %vm2278_vm4, %v2262_v12, %v19437_v31  ;;  %v2265_v9 = vsel %vm33_vm0, %v10330_v21, %v19438_v1  ;;  %v2264_v3 = vsel %vm33_vm0, %v10331_v60, %v19439_v39  ;;  %v391_v60 = vld [vmem:[#allocation2 + $0x339] sm:$0xff] }
 0x3ff   :  { %v1925_v26 = vpop.permute.xlu1 %1924  ;;  %v1923_v48 = vpop.permute.xlu0 %1922  ;;  %v2393_v37 = vsel %vm2343_vm5, %v2328_v45, %v1081_v42  ;;  %v2392_v13 = vsel %vm2343_vm5, %v2327_v33, %v1079_v54  ;;  %v19440_v33 = vld [vmem:[#allocation106_spill] sm:$0xff] }
 0x400   :  { %v2458_v7 = vsel %vm2408_vm6, %v2393_v37, %v1277_v44  ;;  %v2457_v20 = vsel %vm2408_vm6, %v2392_v13, %v1275_v11  ;;  %v2330_v21 = vsel %vm2278_vm4, %v2265_v9, %v19440_v33  ;;  %v19441_v37 = vld [vmem:[#allocation107_spill] sm:$0xff] }
 0x401   :  { %1108 = vrot.lane.b32.xlu1 %v13191_v35, %s10409_s17  ;;  %1106 = vrot.lane.b32.xlu0 %v13193_v41, %s10409_s17  ;;  %v2523_v31 = vsel %vm2473_vm7, %v2458_v7, %v1473_v25  ;;  %v2522_v42 = vsel %vm2473_vm7, %v2457_v20, %v1471_v6  ;;  %v2329_v54 = vsel %vm2278_vm4, %v2264_v3, %v19441_v37  ;;  %v390_v7 = vld [vmem:[#allocation2 + $0x331] sm:$0xff] }
 0x402   :  { %v2588_v45 = vsel %vm2538_vm8, %v2523_v31, %v1729_v32  ;;  %v2587_v39 = vsel %vm2538_vm8, %v2522_v42, %v1727_v15  ;;  %v2395_v20 = vsel %vm2343_vm5, %v2330_v21, %v13211_v5  ;;  %v392_v31 = vld [vmem:[#allocation2 + $0x349] sm:$0xff]  ;;  %v19451_v42 = vld [vmem:[#allocation54_spill] sm:$0xff] }
 0x403   :  { %v1929_v27 = vpop.permute.xlu1 %1928  ;;  %v1927_v55 = vpop.permute.xlu0 %1926  ;;  %v2652_v44 = vsel %vm2603_vm9, %v2587_v39, %v1923_v48  ;;  %v2460_v6 = vsel %vm2408_vm6, %v2395_v20, %v13223_v29 }
 0x404   :  { %v2525_v5 = vsel %vm2473_vm7, %v2460_v6, %v1477_v14 }
 0x405   :  { %1300 = vrot.lane.b32.xlu1 %v13191_v35, %s10410_s18  ;;  %1298 = vrot.lane.b32.xlu0 %v13193_v41, %s10410_s18  ;;  %v2394_v35 = vsel %vm2343_vm5, %v2329_v54, %v13213_v16  ;;  %v2653_v41 = vsel %vm2603_vm9, %v2588_v45, %v1925_v26  ;;  %v2590_v26 = vsel %vm2538_vm8, %v2525_v5, %v1733_v52  ;;  %v464_v5 = vld [vmem:[#allocation2 + $0x34a] sm:$0xff] }
 0x406   :  { %v2459_v32 = vsel %vm2408_vm6, %v2394_v35, %v13225_v30  ;;  %v2655_v30 = vsel %vm2603_vm9, %v2590_v26, %v1929_v27 }
 0x407   :  { %v2121_v11 = vpop.permute.xlu1 %2120  ;;  %v2119_v25 = vpop.permute.xlu0 %2118  ;;  %v2524_v16 = vsel %vm2473_vm7, %v2459_v32, %v1475_v28 }
 0x408   :  { %v2718_v15 = vsel %vm2668_vm10, %v2653_v41, %v2121_v11  ;;  %v2717_v51 = vsel %vm2668_vm10, %v2652_v44, %v2119_v25  ;;  %v2589_v29 = vsel %vm2538_vm8, %v2524_v16, %v1731_v61  ;;  %v462_v25 = vld [vmem:[#allocation2 + $0x332] sm:$0xff] }
 0x409   :  { %v13314_v12 = vpack.c.bf16 %v2718_v15, %v2717_v51  ;;  %1304 = vrot.lane.b32.xlu1 %v391_v60, %s10410_s18  ;;  %1302 = vrot.lane.b32.xlu0 %v390_v7, %s10410_s18  ;;  %v2654_v48 = vsel %vm2603_vm9, %v2589_v29, %v1927_v55  ;;  %v393_v55 = vld [vmem:[#allocation2 + $0x351] sm:$0xff] }
 0x40b   :  { %v2813_v13 = vunpack.c.l.bf16 %v13314_v12  ;;  %v2814_v14 = vunpack.c.h.bf16 %v13314_v12  ;;  %v2125_v1 = vpop.permute.xlu1 %2124  ;;  %v2123_v28 = vpop.permute.xlu0 %2122  ;;  %9619 = vmatprep.mubr.msk.bf16.mxu0 %vm2950_vm11, %v13314_v12 }
 0x40c   :  { %v2720_v9 = vsel %vm2668_vm10, %v2655_v30, %v2125_v1  ;;  %v2719_v3 = vsel %vm2668_vm10, %v2654_v48, %v2123_v28  ;;  %v10332_v48 = vld [vmem:[#allocation2 + $0x2a8] sm:$0xff]  ;;  %v10333_v1 = vld [vmem:[#allocation2 + $0x2a0] sm:$0xff] }
 0x40d   :  { %v13328_v52 = vsub.f32 %v2717_v51, %v2813_v13  ;;  %v13330_v61 = vsub.f32 %v2718_v15, %v2814_v14  ;;  %v13332_v27 = vpack.c.bf16 %v2720_v9, %v2719_v3  ;;  %1496 = vrot.lane.b32.xlu1 %v391_v60, %s10411_s19  ;;  %1494 = vrot.lane.b32.xlu0 %v390_v7, %s10411_s19  ;;  %v465_v51 = vld [vmem:[#allocation2 + $0x352] sm:$0xff]  ;;  %v19446_v13 = vld [vmem:[#allocation51_spill] sm:$0xff]  ;;  %v19447_v28 = vld [vmem:[#allocation52_spill] sm:$0xff] }
 0x40e   :  { %v2267_v14 = vsel %vm33_vm0, %v10332_v48, %v19446_v13  ;;  %v10334_v13 = vld [vmem:[#allocation2 + $0x2c0] sm:$0xff]  ;;  %v19450_v60 = vld [vmem:[#allocation53_spill] sm:$0xff] }
 0x40f   :  { %19442 = vst [vmem:[#allocation24_spill] sm:$0xff] %v13328_v52  ;;  %19443 = vst [vmem:[#allocation76_spill] sm:$0xff] %v13330_v61  ;;  %v2815_v33 = vunpack.c.l.bf16 %v13332_v27  ;;  %v2816_v21 = vunpack.c.h.bf16 %v13332_v27  ;;  %v1089_v37 = vpop.permute.xlu1 %1088  ;;  %v1087_v54 = vpop.permute.xlu0 %1086  ;;  %9620 = vmatmul.mubr.msk.bf16.gmra.mrb[48].mxu0 %vm2950_vm11, %v13332_v27  ;;  %v19474_v52 = vld [vmem:[#allocation61_spill] sm:$0xff]  ;;  %v19475_v61 = vld [vmem:[#allocation62_spill] sm:$0xff] }
 0x411   :  { %v13342_v45 = vsub.f32 %v2719_v3, %v2815_v33  ;;  %v13344_v39 = vsub.f32 %v2720_v9, %v2816_v21  ;;  %1500 = vrot.lane.b32.xlu1 %v393_v55, %s10411_s19  ;;  %1498 = vrot.lane.b32.xlu0 %v392_v31, %s10411_s19  ;;  %v2266_v9 = vsel %vm33_vm0, %v10333_v1, %v19447_v28  ;;  %v19448_v3 = vld [vmem:[#allocation108_spill] sm:$0xff]  ;;  %v19449_v31 = vld [vmem:[#allocation109_spill] sm:$0xff]  ;;  %v10335_v28 = vld [vmem:[#allocation2 + $0x2b8] sm:$0xff] }
 0x412   :  { %v2332_v55 = vsel %vm2278_vm4, %v2267_v14, %v19448_v3  ;;  %v2331_v33 = vsel %vm2278_vm4, %v2266_v9, %v19449_v31  ;;  %v2269_v1 = vsel %vm33_vm0, %v10334_v13, %v19450_v60  ;;  %v2268_v14 = vsel %vm33_vm0, %v10335_v28, %v19451_v42  ;;  %v19452_v3 = vld [vmem:[#allocation110_spill] sm:$0xff] }
 0x413   :  { %19444 = vst [vmem:[#allocation77_spill] sm:$0xff] %v13342_v45  ;;  %19445 = vst [vmem:[#allocation134_spill] sm:$0xff] %v13344_v39  ;;  %v1093_v7 = vpop.permute.xlu1 %1092  ;;  %v1091_v20 = vpop.permute.xlu0 %1090  ;;  %v2397_v21 = vsel %vm2343_vm5, %v2332_v55, %v1089_v37  ;;  %v19453_v55 = vld [vmem:[#allocation111_spill] sm:$0xff]  ;;  %v19462_v45 = vld [vmem:[#allocation57_spill] sm:$0xff] }
 0x414   :  { %v19463_v39 = vld [vmem:[#allocation58_spill] sm:$0xff] }
 0x415   :  { %1752 = vrot.lane.b32.xlu1 %v13231_v58, %s10412_s22  ;;  %1750 = vrot.lane.b32.xlu0 %v13233_v53, %s10412_s22  ;;  %v463_v58 = vld [vmem:[#allocation2 + $0x33a] sm:$0xff] }
 0x417   :  { %v1285_v35 = vpop.permute.xlu1 %1284  ;;  %v1283_v41 = vpop.permute.xlu0 %1282 }
 0x419   :  { %1756 = vrot.lane.b32.xlu1 %v13243_v62, %s10412_s22  ;;  %1754 = vrot.lane.b32.xlu0 %v13245_v36, %s10412_s22 }
 0x41b   :  { %v1289_v44 = vpop.permute.xlu1 %1288  ;;  %v1287_v11 = vpop.permute.xlu0 %1286 }
 0x41d   :  { %1948 = vrot.lane.b32.xlu1 %v13243_v62, %s10413_s27  ;;  %1946 = vrot.lane.b32.xlu0 %v13245_v36, %s10413_s27 }
 0x41f   :  { %v1481_v6 = vpop.permute.xlu1 %1480  ;;  %v1479_v53 = vpop.permute.xlu0 %1478 }
 0x421   :  { %1952 = vrot.lane.b32.xlu1 %v463_v58, %s10413_s27  ;;  %1950 = vrot.lane.b32.xlu0 %v462_v25, %s10413_s27 }
 0x423   :  { %v1485_v32 = vpop.permute.xlu1 %1484  ;;  %v1483_v15 = vpop.permute.xlu0 %1482 }
 0x425   :  { %2144 = vrot.lane.b32.xlu1 %v463_v58, %s10414_s2  ;;  %2142 = vrot.lane.b32.xlu0 %v462_v25, %s10414_s2  ;;  %v2396_v58 = vsel %vm2343_vm5, %v2331_v33, %v1087_v54  ;;  %v2334_v54 = vsel %vm2278_vm4, %v2269_v1, %v19452_v3 }
 0x426   :  { %v2461_v48 = vsel %vm2408_vm6, %v2396_v58, %v1283_v41  ;;  %v2399_v60 = vsel %vm2343_vm5, %v2334_v54, %v1093_v7 }
 0x427   :  { %v1737_v62 = vpop.permute.xlu1 %1736  ;;  %v1735_v16 = vpop.permute.xlu0 %1734  ;;  %v2526_v37 = vsel %vm2473_vm7, %v2461_v48, %v1479_v53  ;;  %v2464_v58 = vsel %vm2408_vm6, %v2399_v60, %v1289_v44 }
 0x428   :  { %v2591_v31 = vsel %vm2538_vm8, %v2526_v37, %v1735_v16  ;;  %v2529_v16 = vsel %vm2473_vm7, %v2464_v58, %v1485_v32 }
 0x429   :  { %2148 = vrot.lane.b32.xlu1 %v465_v51, %s10414_s2  ;;  %2146 = vrot.lane.b32.xlu0 %v464_v5, %s10414_s2  ;;  %v2462_v5 = vsel %vm2408_vm6, %v2397_v21, %v1285_v35  ;;  %v2333_v35 = vsel %vm2278_vm4, %v2268_v14, %v19453_v55 }
 0x42a   :  { %v2527_v9 = vsel %vm2473_vm7, %v2462_v5, %v1481_v6  ;;  %v2398_v33 = vsel %vm2343_vm5, %v2333_v35, %v1091_v20 }
 0x42b   :  { %v1741_v36 = vpop.permute.xlu1 %1740  ;;  %v1739_v26 = vpop.permute.xlu0 %1738  ;;  %v2592_v41 = vsel %vm2538_vm8, %v2527_v9, %v1737_v62  ;;  %v2463_v5 = vsel %vm2408_vm6, %v2398_v33, %v1287_v11 }
 0x42c   :  { %v2528_v7 = vsel %vm2473_vm7, %v2463_v5, %v1483_v15  ;;  %v2594_v20 = vsel %vm2538_vm8, %v2529_v16, %v1741_v36 }
 0x42f   :  { %v1933_v29 = vpop.permute.xlu1 %1932  ;;  %v1931_v30 = vpop.permute.xlu0 %1930 }
 0x430   :  { %v2657_v42 = vsel %vm2603_vm9, %v2592_v41, %v1933_v29  ;;  %v2656_v6 = vsel %vm2603_vm9, %v2591_v31, %v1931_v30  ;;  %v2593_v29 = vsel %vm2538_vm8, %v2528_v7, %v1739_v26 }
 0x433   :  { %v1937_v25 = vpop.permute.xlu1 %1936  ;;  %v1935_v51 = vpop.permute.xlu0 %1934 }
 0x434   :  { %v2659_v30 = vsel %vm2603_vm9, %v2594_v20, %v1937_v25  ;;  %v2658_v44 = vsel %vm2603_vm9, %v2593_v29, %v1935_v51 }
 0x437   :  { %v2129_v21 = vpop.permute.xlu1 %2128  ;;  %v2127_v53 = vpop.permute.xlu0 %2126 }
 0x438   :  { %v2722_v48 = vsel %vm2668_vm10, %v2657_v42, %v2129_v21  ;;  %v2721_v62 = vsel %vm2668_vm10, %v2656_v6, %v2127_v53 }
 0x439   :  { %v13402_v13 = vpack.c.bf16 %v2722_v48, %v2721_v62 }
 0x43b   :  { %v2817_v11 = vunpack.c.l.bf16 %v13402_v13  ;;  %v2818_v1 = vunpack.c.h.bf16 %v13402_v13  ;;  %v2133_v28 = vpop.permute.xlu1 %2132  ;;  %v2131_v14 = vpop.permute.xlu0 %2130  ;;  %9623 = vmatprep.mubr.msk.bf16.mxu0 %vm2950_vm11, %v13402_v13 }
 0x43c   :  { %v2724_v32 = vsel %vm2668_vm10, %v2659_v30, %v2133_v28  ;;  %v2723_v15 = vsel %vm2668_vm10, %v2658_v44, %v2131_v14  ;;  %v10336_v44 = vld [vmem:[#allocation2 + $0x2d8] sm:$0xff]  ;;  %v10337_v28 = vld [vmem:[#allocation2 + $0x2d0] sm:$0xff]  ;;  %v19459_v14 = vld [vmem:[#allocation56_spill] sm:$0xff] }
 0x43d   :  { %v13414_v36 = vsub.f32 %v2721_v62, %v2817_v11  ;;  %v13416_v26 = vsub.f32 %v2722_v48, %v2818_v1  ;;  %v13418_v25 = vpack.c.bf16 %v2724_v32, %v2723_v15  ;;  %v19458_v11 = vld [vmem:[#allocation55_spill] sm:$0xff] }
 0x43e   :  { %v2271_v1 = vsel %vm33_vm0, %v10336_v44, %v19458_v11  ;;  %v10338_v11 = vld [vmem:[#allocation2 + $0x2f0] sm:$0xff] }
 0x43f   :  { %19454 = vst [vmem:[#allocation135_spill] sm:$0xff] %v13414_v36  ;;  %19455 = vst [vmem:[#allocation25_spill] sm:$0xff] %v13416_v26  ;;  %v2819_v9 = vunpack.c.l.bf16 %v13418_v25  ;;  %v2820_v37 = vunpack.c.h.bf16 %v13418_v25  ;;  %v1097_v3 = vpop.permute.xlu1 %1096  ;;  %v1095_v54 = vpop.permute.xlu0 %1094  ;;  %9624 = vmatmul.mubr.msk.bf16.gmra.mrb[52].mxu0 %vm2950_vm11, %v13418_v25 }
 0x441   :  { %v13426_v55 = vsub.f32 %v2723_v15, %v2819_v9  ;;  %v13428_v35 = vsub.f32 %v2724_v32, %v2820_v37  ;;  %v2270_v32 = vsel %vm33_vm0, %v10337_v28, %v19459_v14  ;;  %v19460_v15 = vld [vmem:[#allocation112_spill] sm:$0xff]  ;;  %v19461_v37 = vld [vmem:[#allocation113_spill] sm:$0xff]  ;;  %v2273_v28 = vsel %vm33_vm0, %v10338_v11, %v19462_v45 }
 0x442   :  { %v2336_v9 = vsel %vm2278_vm4, %v2271_v1, %v19460_v15  ;;  %v2335_v41 = vsel %vm2278_vm4, %v2270_v32, %v19461_v37  ;;  %v10339_v14 = vld [vmem:[#allocation2 + $0x2e8] sm:$0xff]  ;;  %v19464_v15 = vld [vmem:[#allocation114_spill] sm:$0xff] }
 0x443   :  { %19456 = vst [vmem:[#allocation26_spill] sm:$0xff] %v13426_v55  ;;  %19457 = vst [vmem:[#allocation78_spill] sm:$0xff] %v13428_v35  ;;  %v1101_v31 = vpop.permute.xlu1 %1100  ;;  %v1099_v60 = vpop.permute.xlu0 %1098  ;;  %v2401_v51 = vsel %vm2343_vm5, %v2336_v9, %v1097_v3  ;;  %v2400_v55 = vsel %vm2343_vm5, %v2335_v41, %v1095_v54  ;;  %v2272_v1 = vsel %vm33_vm0, %v10339_v14, %v19463_v39  ;;  %v19465_v41 = vld [vmem:[#allocation115_spill] sm:$0xff] }
 0x444   :  { %v2338_v54 = vsel %vm2278_vm4, %v2273_v28, %v19464_v15 }
 0x445   :  { %v2403_v45 = vsel %vm2343_vm5, %v2338_v54, %v1101_v31 }
 0x447   :  { %v1293_v33 = vpop.permute.xlu1 %1292  ;;  %v1291_v42 = vpop.permute.xlu0 %1290 }
 0x448   :  { %v2466_v26 = vsel %vm2408_vm6, %v2401_v51, %v1293_v33  ;;  %v2465_v44 = vsel %vm2408_vm6, %v2400_v55, %v1291_v42  ;;  %v2337_v51 = vsel %vm2278_vm4, %v2272_v1, %v19465_v41 }
 0x449   :  { %v2402_v42 = vsel %vm2343_vm5, %v2337_v51, %v1099_v60 }
 0x44b   :  { %v1297_v6 = vpop.permute.xlu1 %1296  ;;  %v1295_v21 = vpop.permute.xlu0 %1294 }
 0x44c   :  { %v2468_v9 = vsel %vm2408_vm6, %v2403_v45, %v1297_v6  ;;  %v2467_v37 = vsel %vm2408_vm6, %v2402_v42, %v1295_v21 }
 0x44f   :  { %v1489_v53 = vpop.permute.xlu1 %1488  ;;  %v1487_v58 = vpop.permute.xlu0 %1486 }
 0x450   :  { %v2531_v32 = vsel %vm2473_vm7, %v2466_v26, %v1489_v53  ;;  %v2530_v3 = vsel %vm2473_vm7, %v2465_v44, %v1487_v58 }
 0x453   :  { %v1493_v5 = vpop.permute.xlu1 %1492  ;;  %v1491_v48 = vpop.permute.xlu0 %1490 }
 0x454   :  { %v2532_v31 = vsel %vm2473_vm7, %v2467_v37, %v1491_v48 }
 0x457   :  { %v1745_v62 = vpop.permute.xlu1 %1744  ;;  %v1743_v16 = vpop.permute.xlu0 %1742 }
 0x458   :  { %v2596_v55 = vsel %vm2538_vm8, %v2531_v32, %v1745_v62  ;;  %v2595_v33 = vsel %vm2538_vm8, %v2530_v3, %v1743_v16  ;;  %v2533_v16 = vsel %vm2473_vm7, %v2468_v9, %v1493_v5 }
 0x45b   :  { %v1749_v7 = vpop.permute.xlu1 %1748  ;;  %v1747_v20 = vpop.permute.xlu0 %1746 }
 0x45c   :  { %v2598_v60 = vsel %vm2538_vm8, %v2533_v16, %v1749_v7 }
 0x45f   :  { %v1941_v29 = vpop.permute.xlu1 %1940  ;;  %v1939_v30 = vpop.permute.xlu0 %1938 }
 0x460   :  { %v2661_v39 = vsel %vm2603_vm9, %v2596_v55, %v1941_v29  ;;  %v2660_v26 = vsel %vm2603_vm9, %v2595_v33, %v1939_v30  ;;  %v2597_v29 = vsel %vm2538_vm8, %v2532_v31, %v1747_v20 }
 0x463   :  { %v1945_v35 = vpop.permute.xlu1 %1944  ;;  %v1943_v36 = vpop.permute.xlu0 %1942 }
 0x464   :  { %v2663_v30 = vsel %vm2603_vm9, %v2598_v60, %v1945_v35  ;;  %v2662_v6 = vsel %vm2603_vm9, %v2597_v29, %v1943_v36 }
 0x467   :  { %v2137_v53 = vpop.permute.xlu1 %2136  ;;  %v2135_v58 = vpop.permute.xlu0 %2134 }
 0x468   :  { %v2726_v44 = vsel %vm2668_vm10, %v2661_v39, %v2137_v53  ;;  %v2725_v62 = vsel %vm2668_vm10, %v2660_v26, %v2135_v58 }
 0x469   :  { %v13466_v11 = vpack.c.bf16 %v2726_v44, %v2725_v62 }
 0x46b   :  { %v2821_v21 = vunpack.c.l.bf16 %v13466_v11  ;;  %v2822_v28 = vunpack.c.h.bf16 %v13466_v11  ;;  %v2141_v14 = vpop.permute.xlu1 %2140  ;;  %v2139_v1 = vpop.permute.xlu0 %2138  ;;  %9627 = vmatprep.mubr.msk.bf16.mxu0 %vm2950_vm11, %v13466_v11 }
 0x46c   :  { %v2728_v5 = vsel %vm2668_vm10, %v2663_v30, %v2141_v14  ;;  %v2727_v48 = vsel %vm2668_vm10, %v2662_v6, %v2139_v1  ;;  %v10340_v6 = vld [vmem:[#allocation2 + $0x308] sm:$0xff]  ;;  %v10341_v14 = vld [vmem:[#allocation2 + $0x300] sm:$0xff] }
 0x46d   :  { %v13478_v7 = vsub.f32 %v2725_v62, %v2821_v21  ;;  %v13480_v20 = vsub.f32 %v2726_v44, %v2822_v28  ;;  %v13482_v35 = vpack.c.bf16 %v2728_v5, %v2727_v48  ;;  %v19470_v21 = vld [vmem:[#allocation59_spill] sm:$0xff]  ;;  %v19471_v1 = vld [vmem:[#allocation60_spill] sm:$0xff] }
 0x46e   :  { %v2275_v28 = vsel %vm33_vm0, %v10340_v6, %v19470_v21  ;;  %v10342_v21 = vld [vmem:[#allocation2 + $0x320] sm:$0xff] }
 0x46f   :  { %19466 = vst [vmem:[#allocation79_spill] sm:$0xff] %v13478_v7  ;;  %19467 = vst [vmem:[#allocation136_spill] sm:$0xff] %v13480_v20  ;;  %v2823_v32 = vunpack.c.l.bf16 %v13482_v35  ;;  %v2824_v3 = vunpack.c.h.bf16 %v13482_v35  ;;  %v1105_v15 = vpop.permute.xlu1 %1104  ;;  %v1103_v54 = vpop.permute.xlu0 %1102  ;;  %9628 = vmatmul.mubr.msk.bf16.gmra.mrb[56].mxu0 %vm2950_vm11, %v13482_v35 }
 0x471   :  { %v13490_v41 = vsub.f32 %v2727_v48, %v2823_v32  ;;  %v13492_v51 = vsub.f32 %v2728_v5, %v2824_v3  ;;  %v2274_v5 = vsel %vm33_vm0, %v10341_v14, %v19471_v1  ;;  %v19472_v48 = vld [vmem:[#allocation116_spill] sm:$0xff]  ;;  %v19473_v3 = vld [vmem:[#allocation117_spill] sm:$0xff]  ;;  %v2277_v14 = vsel %vm33_vm0, %v10342_v21, %v19474_v52  ;;  %v10343_v1 = vld [vmem:[#allocation2 + $0x318] sm:$0xff] }
 0x472   :  { %v2340_v32 = vsel %vm2278_vm4, %v2275_v28, %v19472_v48  ;;  %v2339_v55 = vsel %vm2278_vm4, %v2274_v5, %v19473_v3  ;;  %v2276_v28 = vsel %vm33_vm0, %v10343_v1, %v19475_v61  ;;  %v19476_v48 = vld [vmem:[#allocation118_spill] sm:$0xff] }
 0x473   :  { %19468 = vst [vmem:[#allocation137_spill] sm:$0xff] %v13490_v41  ;;  %19469 = vst [vmem:[#allocation27_spill] sm:$0xff] %v13492_v51  ;;  %v1109_v33 = vpop.permute.xlu1 %1108  ;;  %v1107_v45 = vpop.permute.xlu0 %1106  ;;  %v2405_v36 = vsel %vm2343_vm5, %v2340_v32, %v1105_v15  ;;  %v2404_v41 = vsel %vm2343_vm5, %v2339_v55, %v1103_v54  ;;  %v2342_v54 = vsel %vm2278_vm4, %v2277_v14, %v19476_v48  ;;  %v19477_v55 = vld [vmem:[#allocation119_spill] sm:$0xff] }
 0x474   :  { %v2407_v52 = vsel %vm2343_vm5, %v2342_v54, %v1109_v33 }
 0x477   :  { %v1301_v42 = vpop.permute.xlu1 %1300  ;;  %v1299_v39 = vpop.permute.xlu0 %1298 }
 0x478   :  { %v2470_v20 = vsel %vm2408_vm6, %v2405_v36, %v1301_v42  ;;  %v2469_v6 = vsel %vm2408_vm6, %v2404_v41, %v1299_v39  ;;  %v2341_v36 = vsel %vm2278_vm4, %v2276_v28, %v19477_v55 }
 0x479   :  { %v2406_v39 = vsel %vm2343_vm5, %v2341_v36, %v1107_v45  ;;  %v19507_v36 = vld [vmem:[#allocation12_spill] sm:$0xff] }
 0x47b   :  { %v1305_v26 = vpop.permute.xlu1 %1304  ;;  %v1303_v53 = vpop.permute.xlu0 %1302 }
 0x47c   :  { %v2472_v32 = vsel %vm2408_vm6, %v2407_v52, %v1305_v26  ;;  %v2471_v3 = vsel %vm2408_vm6, %v2406_v39, %v1303_v53  ;;  %v19510_v52 = vld [vmem:[#allocation65_spill] sm:$0xff]  ;;  %v19511_v39 = vld [vmem:[#allocation64_spill] sm:$0xff] }
 0x47f   :  { %v1497_v58 = vpop.permute.xlu1 %1496  ;;  %v1495_v9 = vpop.permute.xlu0 %1494 }
 0x480   :  { %v2535_v5 = vsel %vm2473_vm7, %v2470_v20, %v1497_v58  ;;  %v2534_v15 = vsel %vm2473_vm7, %v2469_v6, %v1495_v9 }
 0x483   :  { %v1501_v37 = vpop.permute.xlu1 %1500  ;;  %v1499_v44 = vpop.permute.xlu0 %1498 }
 0x484   :  { %v2536_v33 = vsel %vm2473_vm7, %v2471_v3, %v1499_v44  ;;  %v19517_v3 = vld [vmem:[#allocation13_spill] sm:$0xff] }
 0x487   :  { %v1753_v62 = vpop.permute.xlu1 %1752  ;;  %v1751_v16 = vpop.permute.xlu0 %1750 }
 0x488   :  { %v2600_v41 = vsel %vm2538_vm8, %v2535_v5, %v1753_v62  ;;  %v2599_v42 = vsel %vm2538_vm8, %v2534_v15, %v1751_v16  ;;  %v2537_v16 = vsel %vm2473_vm7, %v2472_v32, %v1501_v37  ;;  %v19516_v32 = vld [vmem:[#allocation14_spill] sm:$0xff] }
 0x48b   :  { %v1757_v31 = vpop.permute.xlu1 %1756  ;;  %v1755_v60 = vpop.permute.xlu0 %1754 }
 0x48c   :  { %v2602_v45 = vsel %vm2538_vm8, %v2537_v16, %v1757_v31  ;;  %v19520_v16 = vld [vmem:[#allocation66_spill] sm:$0xff] }
 0x48f   :  { %v1949_v29 = vpop.permute.xlu1 %1948  ;;  %v1947_v30 = vpop.permute.xlu0 %1946 }
 0x490   :  { %v2665_v61 = vsel %vm2603_vm9, %v2600_v41, %v1949_v29  ;;  %v2664_v20 = vsel %vm2603_vm9, %v2599_v42, %v1947_v30  ;;  %v2601_v29 = vsel %vm2538_vm8, %v2536_v33, %v1755_v60  ;;  %v19508_v41 = vld [vmem:[#allocation11_spill] sm:$0xff] }
 0x491   :  { %v19509_v42 = vpack.c.bf16 %v19507_v36, %v19508_v41  ;;  %v19565_v36 = vld [vmem:[#allocation26_spill] sm:$0xff] }
 0x493   :  { %v1953_v51 = vpop.permute.xlu1 %1952  ;;  %v1951_v7 = vpop.permute.xlu0 %1950 }
 0x494   :  { %v2667_v30 = vsel %vm2603_vm9, %v2602_v45, %v1953_v51  ;;  %v2666_v14 = vsel %vm2603_vm9, %v2601_v29, %v1951_v7  ;;  %v19523_v45 = vld [vmem:[#allocation124_spill] sm:$0xff] }
 0x497   :  { %v2145_v58 = vpop.permute.xlu1 %2144  ;;  %v2143_v9 = vpop.permute.xlu0 %2142 }
 0x498   :  { %v2730_v6 = vsel %vm2668_vm10, %v2665_v61, %v2145_v58  ;;  %v2729_v62 = vsel %vm2668_vm10, %v2664_v20, %v2143_v9  ;;  %v19512_v61 = vpack.c.bf16 %v19510_v52, %v19511_v39  ;;  %v19513_v20 = vld [vmem:[#allocation123_spill] sm:$0xff]  ;;  %v19514_v58 = vld [vmem:[#allocation122_spill] sm:$0xff] }
 0x499   :  { %v2763_v21 = vpack.c.bf16 %v2730_v6, %v2729_v62  ;;  %v19515_v9 = vpack.c.bf16 %v19513_v20, %v19514_v58  ;;  %v19568_v52 = vld [vmem:[#allocation79_spill] sm:$0xff]  ;;  %v19571_v20 = vld [vmem:[#allocation137_spill] sm:$0xff] }
 0x49b   :  { %v2825_v26 = vunpack.c.l.bf16 %v2763_v21  ;;  %v2826_v1 = vunpack.c.h.bf16 %v2763_v21  ;;  %v2149_v53 = vpop.permute.xlu1 %2148  ;;  %v2147_v28 = vpop.permute.xlu0 %2146  ;;  %9631 = vmatprep.mubr.msk.bf16.mxu0 %vm2950_vm11, %v2763_v21 }
 0x49c   :  { %v2732_v5 = vsel %vm2668_vm10, %v2667_v30, %v2149_v53  ;;  %v2731_v37 = vsel %vm2668_vm10, %v2666_v14, %v2147_v28  ;;  %v19525_v30 = vld [vmem:[#allocation16_spill] sm:$0xff]  ;;  %v19526_v14 = vld [vmem:[#allocation15_spill] sm:$0xff] }
 0x49d   :  { %v13537_v44 = vsub.f32 %v2729_v62, %v2825_v26  ;;  %v13539_v15 = vsub.f32 %v2730_v6, %v2826_v1  ;;  %v2764_v31 = vpack.c.bf16 %v2732_v5, %v2731_v37  ;;  %v19518_v6 = vpack.c.bf16 %v19516_v32, %v19517_v3  ;;  %v19519_v62 = vld [vmem:[#allocation67_spill] sm:$0xff]  ;;  %v19528_v1 = vld [vmem:[#allocation69_spill] sm:$0xff]  ;;  %v19529_v53 = vld [vmem:[#allocation68_spill] sm:$0xff] }
 0x49e   :  { %v19521_v33 = vpack.c.bf16 %v19519_v62, %v19520_v16  ;;  %v19527_v26 = vpack.c.bf16 %v19525_v30, %v19526_v14  ;;  %v19530_v28 = vpack.c.bf16 %v19528_v1, %v19529_v53 }
 0x49f   :  { %v2923_v51 = vpack.c.bf16 %v13539_v15, %v13537_v44  ;;  %v2827_v60 = vunpack.c.l.bf16 %v2764_v31  ;;  %v2828_v7 = vunpack.c.h.bf16 %v2764_v31  ;;  %9632 = vmatmul.mubr.msk.bf16.gmra.mrb[60].mxu0 %vm2950_vm11, %v2764_v31 }
 0x4a0   :  { %9641 = vmatprep.mubr.msk.bf16.mxu0 %vm2950_vm11, %v11899_v56  ;;  %v19478_v56 = vld [vmem:[#allocation128_spill] sm:$0xff] }
 0x4a1   :  { %v13546_v48 = vsub.f32 %v2731_v37, %v2827_v60  ;;  %v13548_v54 = vsub.f32 %v2732_v5, %v2828_v7  ;;  %v19531_v5 = vld [vmem:[#allocation127_spill] sm:$0xff]  ;;  %v19532_v37 = vld [vmem:[#allocation126_spill] sm:$0xff]  ;;  %v19535_v7 = vld [vmem:[#allocation17_spill] sm:$0xff] }
 0x4a2   :  { %v19534_v60 = vld [vmem:[#allocation18_spill] sm:$0xff] }
 0x4a3   :  { %v2924_v55 = vpack.c.bf16 %v13548_v54, %v13546_v48 }
 0x4a7   :  { %9642 = vmatmul.mubr.msk.bf16.vlgmr.msra.gmra.mrb[0].mxu0 %vm2950_vm11, %v11919_v59  ;;  %v19479_v59 = vld [vmem:[#allocation20_spill] sm:$0xff] }
 0x4a8   :  { %9706 = vmatpush3.bf16.msra.mxu0 %v13000_v19  ;;  %9645 = vmatprep.mubr.msk.bf16.mxu0 %vm2950_vm11, %v12005_v46  ;;  %v19480_v46 = vld [vmem:[#allocation130_spill] sm:$0xff] }
 0x4a9   :  { %9707 = vmatprep.subr.bf16.mxu0 %v13111_v47 }
 0x4ac   :  { %9708 = vmatpush3.bf16.msra.mxu0 %v13111_v47  ;;  %v19498_v47 = vld [vmem:[#allocation121_spill] sm:$0xff] }
 0x4ad   :  { %10243 = vmatprep.subr.msk.bf16.mxu0 %vm3047_vm3, %v13254_v2  ;;  %v19499_v2 = vld [vmem:[#allocation120_spill] sm:$0xff] }
 0x4af   :  { %9646 = vmatmul.mubr.msk.bf16.gmra.mrb[4].mxu0 %vm2950_vm11, %v12025_v24  ;;  %v19481_v24 = vld [vmem:[#allocation22_spill] sm:$0xff] }
 0x4b0   :  { %9649 = vmatprep.mubr.msk.bf16.mxu0 %vm2950_vm11, %v12111_v22  ;;  %9710 = vmatpush3.bf16.msra.mxu0 %v13264_v43  ;;  %v19482_v22 = vld [vmem:[#allocation132_spill] sm:$0xff]  ;;  %v19500_v43 = vpack.c.bf16 %v19498_v47, %v19499_v2 }
 0x4b1   :  { %v19556_v47 = vld [vmem:[#allocation24_spill] sm:$0xff] }
 0x4b7   :  { %9650 = vmatmul.mubr.msk.bf16.gmra.mrb[8].mxu0 %vm2950_vm11, %v12131_v0  ;;  %v19483_v0 = vld [vmem:[#allocation7_spill] sm:$0xff] }
 0x4b8   :  { %9653 = vmatprep.mubr.msk.bf16.mxu0 %vm2950_vm11, %v12217_v40  ;;  %v19484_v40 = vld [vmem:[#allocation4_spill] sm:$0xff] }
 0x4bf   :  { %9654 = vmatmul.mubr.msk.bf16.gmra.mrb[12].mxu0 %vm2950_vm11, %v12237_v17  ;;  %v19485_v17 = vpack.c.bf16 %v19483_v0, %v19484_v40  ;;  %v19541_v0 = vld [vmem:[#allocation129_spill] sm:$0xff] }
 0x4c0   :  { %9657 = vmatprep.mubr.msk.bf16.mxu0 %vm2950_vm11, %v12317_v49  ;;  %v19486_v49 = vld [vmem:[#allocation6_spill] sm:$0xff] }
 0x4c7   :  { %9658 = vmatmul.mubr.msk.bf16.gmra.mrb[16].mxu0 %vm2950_vm11, %v12335_v34  ;;  %v19487_v34 = vld [vmem:[#allocation3_spill] sm:$0xff] }
 0x4c8   :  { %9661 = vmatprep.mubr.msk.bf16.mxu0 %vm2950_vm11, %v12421_v50  ;;  %v19488_v50 = vpack.c.bf16 %v19486_v49, %v19487_v34  ;;  %v19544_v49 = vld [vmem:[#allocation72_spill] sm:$0xff] }
 0x4cf   :  { %9662 = vmatmul.mubr.msk.bf16.gmra.mrb[20].mxu0 %vm2950_vm11, %v12441_v38  ;;  %v19489_v38 = vld [vmem:[#allocation9_spill] sm:$0xff] }
 0x4d0   :  { %9665 = vmatprep.mubr.msk.bf16.mxu0 %vm2950_vm11, %v12527_v4  ;;  %v19490_v4 = vld [vmem:[#allocation8_spill] sm:$0xff] }
 0x4d7   :  { %9666 = vmatmul.mubr.msk.bf16.gmra.mrb[24].mxu0 %vm2950_vm11, %v12547_v10  ;;  %v19491_v10 = vpack.c.bf16 %v19489_v38, %v19490_v4  ;;  %v19547_v38 = vld [vmem:[#allocation131_spill] sm:$0xff] }
 0x4d8   :  { %9669 = vmatprep.mubr.msk.bf16.mxu0 %vm2950_vm11, %v12641_v57  ;;  %v19492_v57 = vld [vmem:[#allocation154_spill] sm:$0xff] }
 0x4df   :  { %9670 = vmatmul.mubr.msk.bf16.gmra.mrb[28].mxu0 %vm2950_vm11, %v12661_v8  ;;  %v19493_v8 = vld [vmem:[#allocation10_spill] sm:$0xff] }
 0x4e0   :  { %9673 = vmatprep.mubr.msk.bf16.mxu0 %vm2950_vm11, %v12761_v63  ;;  %v19494_v63 = vpack.c.bf16 %v19492_v57, %v19493_v8  ;;  %v19550_v57 = vld [vmem:[#allocation74_spill] sm:$0xff] }
 0x4e7   :  { %9674 = vmatmul.mubr.msk.bf16.gmra.mrb[32].mxu0 %vm2950_vm11, %v12781_v23  ;;  %v19495_v23 = vld [vmem:[#allocation63_spill] sm:$0xff] }
 0x4e8   :  { %9677 = vmatprep.mubr.msk.bf16.mxu0 %vm2950_vm11, %v12885_v18  ;;  %v19496_v18 = vld [vmem:[#allocation5_spill] sm:$0xff] }
 0x4e9   :  { %v19497_v19 = vpack.c.bf16 %v19495_v23, %v19496_v18  ;;  %v19553_v23 = vld [vmem:[#allocation133_spill] sm:$0xff] }
 0x4ef   :  { %9678 = vmatmul.mubr.msk.bf16.gmra.mrb[36].mxu0 %vm2950_vm11, %v19478_v56  ;;  %v19536_v56 = vpack.c.bf16 %v19534_v60, %v19535_v7 }
 0x4f0   :  { %9681 = vmatprep.mubr.msk.bf16.mxu0 %vm2950_vm11, %v19479_v59  ;;  %v19537_v59 = vld [vmem:[#allocation71_spill] sm:$0xff] }
 0x4f7   :  { %9682 = vmatmul.mubr.msk.bf16.gmra.mrb[40].mxu0 %vm2950_vm11, %v19480_v46  ;;  %v19538_v46 = vld [vmem:[#allocation70_spill] sm:$0xff] }
 0x4f8   :  { %9685 = vmatprep.mubr.msk.bf16.mxu0 %vm2950_vm11, %v19481_v24  ;;  %v19539_v24 = vpack.c.bf16 %v19537_v59, %v19538_v46 }
 0x4ff   :  { %9686 = vmatmul.mubr.msk.bf16.gmra.mrb[44].mxu0 %vm2950_vm11, %v19482_v22  ;;  %v19540_v22 = vld [vmem:[#allocation19_spill] sm:$0xff] }
 0x500   :  { %9689 = vmatprep.mubr.msk.bf16.mxu0 %vm2950_vm11, %v13314_v12  ;;  %v19501_v12 = vld [vmem:[#allocation87_spill] sm:$0xff]  ;;  %v19542_v40 = vpack.c.bf16 %v19540_v22, %v19541_v0 }
 0x507   :  { %9690 = vmatmul.mubr.msk.bf16.gmra.mrb[48].mxu0 %vm2950_vm11, %v13332_v27  ;;  %v19502_v27 = vld [vmem:[#allocation86_spill] sm:$0xff] }
 0x508   :  { %9693 = vmatprep.mubr.msk.bf16.mxu0 %vm2950_vm11, %v13402_v13  ;;  %v19503_v13 = vpack.c.bf16 %v19501_v12, %v19502_v27  ;;  %v19559_v12 = vld [vmem:[#allocation77_spill] sm:$0xff] }
 0x50f   :  { %9694 = vmatmul.mubr.msk.bf16.gmra.mrb[52].mxu0 %vm2950_vm11, %v13418_v25  ;;  %v19504_v25 = vld [vmem:[#allocation91_spill] sm:$0xff] }
 0x510   :  { %9697 = vmatprep.mubr.msk.bf16.mxu0 %vm2950_vm11, %v13466_v11  ;;  %v19505_v11 = vld [vmem:[#allocation90_spill] sm:$0xff] }
 0x517   :  { %9698 = vmatmul.mubr.msk.bf16.gmra.mrb[56].mxu0 %vm2950_vm11, %v13482_v35  ;;  %v19506_v35 = vpack.c.bf16 %v19504_v25, %v19505_v11  ;;  %v19562_v25 = vld [vmem:[#allocation135_spill] sm:$0xff] }
 0x518   :  { %9701 = vmatprep.mubr.msk.bf16.mxu0 %vm2950_vm11, %v2763_v21  ;;  %v19522_v21 = vld [vmem:[#allocation125_spill] sm:$0xff] }
 0x519   :  { %v19524_v29 = vpack.c.bf16 %v19522_v21, %v19523_v45 }
 0x51f   :  { %9702 = vmatmul.mubr.msk.bf16.gmra.mrb[60].mxu0 %vm2950_vm11, %v2764_v31  ;;  %v19533_v31 = vpack.c.bf16 %v19531_v5, %v19532_v37 }
 0x520   :  { %9711 = vmatprep.mubr.msk.bf16.mxu0 %vm2950_vm11, %v19485_v17  ;;  %v19543_v17 = vld [vmem:[#allocation73_spill] sm:$0xff] }
 0x521   :  { %v19545_v34 = vpack.c.bf16 %v19543_v17, %v19544_v49 }
 0x527   :  { %9712 = vmatmul.mubr.msk.bf16.vlgmr.msra.gmra.mrb[0].mxu0 %vm2950_vm11, %v19488_v50  ;;  %v19546_v50 = vld [vmem:[#allocation21_spill] sm:$0xff] }
 0x528   :  { %9715 = vmatprep.mubr.msk.bf16.mxu0 %vm2950_vm11, %v19491_v10  ;;  %v19548_v4 = vpack.c.bf16 %v19546_v50, %v19547_v38  ;;  %v19549_v10 = vld [vmem:[#allocation75_spill] sm:$0xff] }
 0x529   :  { %v19551_v8 = vpack.c.bf16 %v19549_v10, %v19550_v57 }
 0x52f   :  { %9716 = vmatmul.mubr.msk.bf16.gmra.mrb[4].mxu0 %vm2950_vm11, %v19494_v63  ;;  %v19552_v63 = vld [vmem:[#allocation23_spill] sm:$0xff] }
 0x530   :  { %9719 = vmatprep.mubr.msk.bf16.mxu0 %vm2950_vm11, %v19497_v19  ;;  %v19554_v18 = vpack.c.bf16 %v19552_v63, %v19553_v23  ;;  %v19555_v19 = vld [vmem:[#allocation76_spill] sm:$0xff] }
 0x531   :  { %v19557_v2 = vpack.c.bf16 %v19555_v19, %v19556_v47 }
 0x537   :  { %9720 = vmatmul.mubr.msk.bf16.gmra.mrb[8].mxu0 %vm2950_vm11, %v19500_v43  ;;  %v19558_v43 = vld [vmem:[#allocation134_spill] sm:$0xff] }
 0x538   :  { %9723 = vmatprep.mubr.msk.bf16.mxu0 %vm2950_vm11, %v19503_v13  ;;  %v19560_v27 = vpack.c.bf16 %v19558_v43, %v19559_v12  ;;  %v19561_v13 = vld [vmem:[#allocation25_spill] sm:$0xff] }
 0x539   :  { %v19563_v11 = vpack.c.bf16 %v19561_v13, %v19562_v25 }
 0x53f   :  { %9724 = vmatmul.mubr.msk.bf16.gmra.mrb[12].mxu0 %vm2950_vm11, %v19506_v35  ;;  %v19564_v35 = vld [vmem:[#allocation78_spill] sm:$0xff] }
 0x540   :  { %9727 = vmatprep.mubr.msk.bf16.mxu0 %vm2950_vm11, %v19509_v42  ;;  %v19566_v41 = vpack.c.bf16 %v19564_v35, %v19565_v36  ;;  %v19567_v42 = vld [vmem:[#allocation136_spill] sm:$0xff] }
 0x541   :  { %v19569_v39 = vpack.c.bf16 %v19567_v42, %v19568_v52 }
 0x547   :  { %9728 = vmatmul.mubr.msk.bf16.gmra.mrb[16].mxu0 %vm2950_vm11, %v19512_v61  ;;  %v19570_v61 = vld [vmem:[#allocation27_spill] sm:$0xff] }
 0x548   :  { %9731 = vmatprep.mubr.msk.bf16.mxu0 %vm2950_vm11, %v19515_v9  ;;  %v19572_v58 = vpack.c.bf16 %v19570_v61, %v19571_v20 }
 0x54f   :  { %9732 = vmatmul.mubr.msk.bf16.gmra.mrb[20].mxu0 %vm2950_vm11, %v19518_v6 }
 0x550   :  { %9735 = vmatprep.mubr.msk.bf16.mxu0 %vm2950_vm11, %v19521_v33 }
 0x557   :  { %9736 = vmatmul.mubr.msk.bf16.gmra.mrb[24].mxu0 %vm2950_vm11, %v19524_v29 }
 0x558   :  { %9739 = vmatprep.mubr.msk.bf16.mxu0 %vm2950_vm11, %v19527_v26 }
 0x55f   :  { %9740 = vmatmul.mubr.msk.bf16.gmra.mrb[28].mxu0 %vm2950_vm11, %v19530_v28 }
 0x560   :  { %9743 = vmatprep.mubr.msk.bf16.mxu0 %vm2950_vm11, %v19533_v31 }
 0x567   :  { %9744 = vmatmul.mubr.msk.bf16.gmra.mrb[32].mxu0 %vm2950_vm11, %v19536_v56 }
 0x568   :  { %9747 = vmatprep.mubr.msk.bf16.mxu0 %vm2950_vm11, %v19539_v24 }
 0x56f   :  { %9748 = vmatmul.mubr.msk.bf16.gmra.mrb[36].mxu0 %vm2950_vm11, %v19542_v40 }
 0x570   :  { %9751 = vmatprep.mubr.msk.bf16.mxu0 %vm2950_vm11, %v19545_v34 }
 0x577   :  { %9752 = vmatmul.mubr.msk.bf16.gmra.mrb[40].mxu0 %vm2950_vm11, %v19548_v4 }
 0x578   :  { %9755 = vmatprep.mubr.msk.bf16.mxu0 %vm2950_vm11, %v19551_v8 }
 0x57f   :  { %9756 = vmatmul.mubr.msk.bf16.gmra.mrb[44].mxu0 %vm2950_vm11, %v19554_v18 }
 0x580   :  { %9759 = vmatprep.mubr.msk.bf16.mxu0 %vm2950_vm11, %v19557_v2 }
 0x587   :  { %9760 = vmatmul.mubr.msk.bf16.gmra.mrb[48].mxu0 %vm2950_vm11, %v19560_v27 }
 0x588   :  { %9763 = vmatprep.mubr.msk.bf16.mxu0 %vm2950_vm11, %v19563_v11 }
 0x58f   :  { %9764 = vmatmul.mubr.msk.bf16.gmra.mrb[52].mxu0 %vm2950_vm11, %v19566_v41 }
 0x590   :  { %9767 = vmatprep.mubr.msk.bf16.mxu0 %vm2950_vm11, %v19569_v39 }
 0x597   :  { %9768 = vmatmul.mubr.msk.bf16.gmra.mrb[56].mxu0 %vm2950_vm11, %v19572_v58 }
 0x598   :  { %9771 = vmatprep.mubr.msk.bf16.mxu0 %vm2950_vm11, %v2923_v51 }
 0x59f   :  { %9772 = vmatmul.mubr.msk.bf16.gmra.mrb[60].mxu0 %vm2950_vm11, %v2924_v55 }
 0x5fa   :  { %v13746_v9 = vpop.f32.mrb[0].mxu0 }
 0x5fb   :  { %19573 = vst [vmem:[#allocation28_spill] sm:$0xff] %v13746_v9  ;;  %v13748_v32 = vpop.f32.mrb[1].mxu0 }
 0x5fc   :  { %v13750_v3 = vpop.f32.mrb[2].mxu0 }
 0x5fd   :  { %19574 = vst [vmem:[#allocation80_spill] sm:$0xff] %v13750_v3  ;;  %v13752_v6 = vpop.f32.mrb[3].mxu0 }
 0x5fe   :  { %19575 = vst [vmem:[#allocation81_spill] sm:$0xff] %v13752_v6  ;;  %v4098_v62 = vadd.f32 %v13752_v6, %v13748_v32 }
 0x600   :  { %v4099_v44 = vadd.f32 %v13746_v9, %v4098_v62 }
 0x602   :  { %v13757_v15 = vpop.f32.mrb[4].mxu0  ;;  %v4100_v51 = vadd.f32 %v13750_v3, %v4099_v44 }
 0x603   :  { %v13760_v48 = vpop.f32.mrb[5].mxu0 }
 0x604   :  { %19576 = vst [vmem:[#allocation138_spill] sm:$0xff] %v13760_v48  ;;  %v4101_v54 = vadd.f32 %v4100_v51, %v13760_v48  ;;  %v13763_v55 = vpop.f32.mrb[6].mxu0 }
 0x605   :  { %v13765_v16 = vpop.f32.mrb[7].mxu0 }
 0x606   :  { %v4102_v33 = vadd.f32 %v4101_v54, %v13765_v16 }
 0x608   :  { %v4103_v21 = vadd.f32 %v13757_v15, %v4102_v33 }
 0x60a   :  { %v13769_v45 = vpop.f32.mrb[8].mxu0  ;;  %v4104_v29 = vadd.f32 %v13763_v55, %v4103_v21 }
 0x60b   :  { %v13772_v30 = vpop.f32.mrb[9].mxu0 }
 0x60c   :  { %v4105_v14 = vadd.f32 %v4104_v29, %v13772_v30  ;;  %v13775_v26 = vpop.f32.mrb[10].mxu0 }
 0x60d   :  { %v13777_v1 = vpop.f32.mrb[11].mxu0 }
 0x60e   :  { %v4106_v53 = vadd.f32 %v4105_v14, %v13777_v1 }
 0x610   :  { %v4107_v28 = vadd.f32 %v13769_v45, %v4106_v53 }
 0x612   :  { %v13781_v5 = vpop.f32.mrb[12].mxu0  ;;  %v4108_v37 = vadd.f32 %v13775_v26, %v4107_v28 }
 0x613   :  { %v13784_v31 = vpop.f32.mrb[13].mxu0 }
 0x614   :  { %v4109_v60 = vadd.f32 %v4108_v37, %v13784_v31  ;;  %v13787_v7 = vpop.f32.mrb[14].mxu0 }
 0x615   :  { %v13789_v56 = vpop.f32.mrb[15].mxu0 }
 0x616   :  { %v4110_v59 = vadd.f32 %v4109_v60, %v13789_v56 }
 0x618   :  { %v4111_v46 = vadd.f32 %v13781_v5, %v4110_v59 }
 0x61a   :  { %v13793_v24 = vpop.f32.mrb[16].mxu0  ;;  %v4112_v22 = vadd.f32 %v13787_v7, %v4111_v46 }
 0x61b   :  { %v13796_v0 = vpop.f32.mrb[17].mxu0 }
 0x61c   :  { %v4113_v40 = vadd.f32 %v4112_v22, %v13796_v0  ;;  %v13799_v17 = vpop.f32.mrb[18].mxu0 }
 0x61d   :  { %v13801_v49 = vpop.f32.mrb[19].mxu0 }
 0x61e   :  { %v4114_v34 = vadd.f32 %v4113_v40, %v13801_v49 }
 0x620   :  { %v4115_v50 = vadd.f32 %v13793_v24, %v4114_v34 }
 0x622   :  { %v13805_v38 = vpop.f32.mrb[20].mxu0  ;;  %v4116_v4 = vadd.f32 %v13799_v17, %v4115_v50 }
 0x623   :  { %v13808_v10 = vpop.f32.mrb[21].mxu0 }
 0x624   :  { %v4117_v57 = vadd.f32 %v4116_v4, %v13808_v10  ;;  %v13811_v8 = vpop.f32.mrb[22].mxu0 }
 0x625   :  { %v13813_v63 = vpop.f32.mrb[23].mxu0 }
 0x626   :  { %v4118_v23 = vadd.f32 %v4117_v57, %v13813_v63 }
 0x628   :  { %v4119_v18 = vadd.f32 %v13805_v38, %v4118_v23 }
 0x62a   :  { %v13817_v19 = vpop.f32.mrb[24].mxu0  ;;  %v4120_v47 = vadd.f32 %v13811_v8, %v4119_v18 }
 0x62b   :  { %v13820_v2 = vpop.f32.mrb[25].mxu0 }
 0x62c   :  { %v4121_v43 = vadd.f32 %v4120_v47, %v13820_v2  ;;  %v13823_v12 = vpop.f32.mrb[26].mxu0 }
 0x62d   :  { %v13825_v27 = vpop.f32.mrb[27].mxu0 }
 0x62e   :  { %v4122_v13 = vadd.f32 %v4121_v43, %v13825_v27 }
 0x630   :  { %v4123_v25 = vadd.f32 %v13817_v19, %v4122_v13 }
 0x632   :  { %v13829_v11 = vpop.f32.mrb[28].mxu0  ;;  %v4124_v35 = vadd.f32 %v13823_v12, %v4123_v25 }
 0x633   :  { %v13832_v36 = vpop.f32.mrb[29].mxu0 }
 0x634   :  { %v4125_v41 = vadd.f32 %v4124_v35, %v13832_v36  ;;  %v13835_v42 = vpop.f32.mrb[30].mxu0 }
 0x635   :  { %v13837_v52 = vpop.f32.mrb[31].mxu0 }
 0x636   :  { %v4126_v39 = vadd.f32 %v4125_v41, %v13837_v52 }
 0x638   :  { %v4127_v61 = vadd.f32 %v13829_v11, %v4126_v39 }
 0x63a   :  { %v13841_v20 = vpop.f32.mrb[32].mxu0  ;;  %v4128_v58 = vadd.f32 %v13835_v42, %v4127_v61 }
 0x63b   :  { %v13844_v62 = vpop.f32.mrb[33].mxu0 }
 0x63c   :  { %v4129_v44 = vadd.f32 %v4128_v58, %v13844_v62  ;;  %v13847_v51 = vpop.f32.mrb[34].mxu0 }
 0x63d   :  { %v13849_v54 = vpop.f32.mrb[35].mxu0 }
 0x63e   :  { %v4130_v33 = vadd.f32 %v4129_v44, %v13849_v54 }
 0x640   :  { %v4131_v21 = vadd.f32 %v13841_v20, %v4130_v33 }
 0x642   :  { %v13853_v29 = vpop.f32.mrb[36].mxu0  ;;  %v4132_v14 = vadd.f32 %v13847_v51, %v4131_v21 }
 0x643   :  { %v13856_v53 = vpop.f32.mrb[37].mxu0 }
 0x644   :  { %v4133_v28 = vadd.f32 %v4132_v14, %v13856_v53  ;;  %v13859_v37 = vpop.f32.mrb[38].mxu0 }
 0x645   :  { %v13861_v60 = vpop.f32.mrb[39].mxu0 }
 0x646   :  { %v4134_v59 = vadd.f32 %v4133_v28, %v13861_v60 }
 0x648   :  { %v4135_v46 = vadd.f32 %v13853_v29, %v4134_v59 }
 0x64a   :  { %v13865_v22 = vpop.f32.mrb[40].mxu0  ;;  %v4136_v40 = vadd.f32 %v13859_v37, %v4135_v46 }
 0x64b   :  { %19577 = vst [vmem:[#allocation139_spill] sm:$0xff] %v13865_v22  ;;  %v13868_v34 = vpop.f32.mrb[41].mxu0 }
 0x64c   :  { %v4137_v50 = vadd.f32 %v4136_v40, %v13868_v34  ;;  %v13871_v4 = vpop.f32.mrb[42].mxu0 }
 0x64d   :  { %19578 = vst [vmem:[#allocation29_spill] sm:$0xff] %v13871_v4  ;;  %v13873_v57 = vpop.f32.mrb[43].mxu0 }
 0x64e   :  { %v4138_v23 = vadd.f32 %v4137_v50, %v13873_v57 }
 0x650   :  { %v4139_v18 = vadd.f32 %v13865_v22, %v4138_v23 }
 0x652   :  { %v13877_v47 = vpop.f32.mrb[44].mxu0  ;;  %v4140_v43 = vadd.f32 %v13871_v4, %v4139_v18 }
 0x653   :  { %19579 = vst [vmem:[#allocation30_spill] sm:$0xff] %v13877_v47  ;;  %v13880_v13 = vpop.f32.mrb[45].mxu0 }
 0x654   :  { %19580 = vst [vmem:[#allocation82_spill] sm:$0xff] %v13880_v13  ;;  %v4141_v25 = vadd.f32 %v4140_v43, %v13880_v13  ;;  %v13883_v35 = vpop.f32.mrb[46].mxu0 }
 0x655   :  { %19581 = vst [vmem:[#allocation83_spill] sm:$0xff] %v13883_v35  ;;  %v13885_v41 = vpop.f32.mrb[47].mxu0 }
 0x656   :  { %19582 = vst [vmem:[#allocation140_spill] sm:$0xff] %v13885_v41  ;;  %v4142_v39 = vadd.f32 %v4141_v25, %v13885_v41 }
 0x658   :  { %v4143_v61 = vadd.f32 %v13877_v47, %v4142_v39 }
 0x65a   :  { %v13889_v58 = vpop.f32.mrb[48].mxu0  ;;  %v4144_v44 = vadd.f32 %v13883_v35, %v4143_v61 }
 0x65b   :  { %19583 = vst [vmem:[#allocation141_spill] sm:$0xff] %v13889_v58  ;;  %v13892_v33 = vpop.f32.mrb[49].mxu0 }
 0x65c   :  { %19584 = vst [vmem:[#allocation31_spill] sm:$0xff] %v13892_v33  ;;  %v4145_v21 = vadd.f32 %v4144_v44, %v13892_v33  ;;  %v13895_v14 = vpop.f32.mrb[50].mxu0 }
 0x65d   :  { %19585 = vst [vmem:[#allocation32_spill] sm:$0xff] %v13895_v14  ;;  %v13897_v28 = vpop.f32.mrb[51].mxu0 }
 0x65e   :  { %19586 = vst [vmem:[#allocation84_spill] sm:$0xff] %v13897_v28  ;;  %v4146_v59 = vadd.f32 %v4145_v21, %v13897_v28 }
 0x660   :  { %v4147_v46 = vadd.f32 %v13889_v58, %v4146_v59 }
 0x662   :  { %v13901_v40 = vpop.f32.mrb[52].mxu0  ;;  %v4148_v50 = vadd.f32 %v13895_v14, %v4147_v46 }
 0x663   :  { %19587 = vst [vmem:[#allocation85_spill] sm:$0xff] %v13901_v40  ;;  %v13904_v23 = vpop.f32.mrb[53].mxu0 }
 0x664   :  { %19588 = vst [vmem:[#allocation142_spill] sm:$0xff] %v13904_v23  ;;  %v4149_v18 = vadd.f32 %v4148_v50, %v13904_v23  ;;  %v13907_v43 = vpop.f32.mrb[54].mxu0 }
 0x665   :  { %19589 = vst [vmem:[#allocation143_spill] sm:$0xff] %v13907_v43  ;;  %v13909_v25 = vpop.f32.mrb[55].mxu0 }
 0x666   :  { %19590 = vst [vmem:[#allocation33_spill] sm:$0xff] %v13909_v25  ;;  %v4150_v39 = vadd.f32 %v4149_v18, %v13909_v25 }
 0x668   :  { %v4151_v61 = vadd.f32 %v13901_v40, %v4150_v39 }
 0x66a   :  { %v13913_v44 = vpop.f32.mrb[56].mxu0  ;;  %v4152_v21 = vadd.f32 %v13907_v43, %v4151_v61 }
 0x66b   :  { %19591 = vst [vmem:[#allocation34_spill] sm:$0xff] %v13913_v44  ;;  %v13916_v59 = vpop.f32.mrb[57].mxu0 }
 0x66c   :  { %19592 = vst [vmem:[#allocation88_spill] sm:$0xff] %v13916_v59  ;;  %v4153_v46 = vadd.f32 %v4152_v21, %v13916_v59  ;;  %v13919_v14 = vpop.f32.mrb[58].mxu0 }
 0x66d   :  { %19593 = vst [vmem:[#allocation89_spill] sm:$0xff] %v13919_v14  ;;  %v13921_v58 = vpop.f32.mrb[59].mxu0 }
 0x66e   :  { %19594 = vst [vmem:[#allocation144_spill] sm:$0xff] %v13921_v58  ;;  %v4154_v50 = vadd.f32 %v4153_v46, %v13921_v58 }
 0x670   :  { %v4155_v23 = vadd.f32 %v13913_v44, %v4154_v50 }
 0x672   :  { %v13925_v28 = vpop.f32.mrb[60].mxu0  ;;  %v4156_v18 = vadd.f32 %v13919_v14, %v4155_v23 }
 0x673   :  { %19595 = vst [vmem:[#allocation145_spill] sm:$0xff] %v13925_v28  ;;  %v13928_v39 = vpop.f32.mrb[61].mxu0 }
 0x674   :  { %19596 = vst [vmem:[#allocation35_spill] sm:$0xff] %v13928_v39  ;;  %v4157_v61 = vadd.f32 %v4156_v18, %v13928_v39  ;;  %v13931_v43 = vpop.f32.mrb[62].mxu0 }
 0x675   :  { %v13933_v40 = vpop.f32.mrb[63].mxu0 }
 0x676   :  { %v4158_v21 = vadd.f32 %v4157_v61, %v13933_v40 }
 0x678   :  { %v4159_v59 = vadd.f32 %v13925_v28, %v4158_v21 }
 0x67a   :  { %v4160_v46 = vadd.f32 %v13931_v43, %v4159_v59 }
 0x67c   :  { %v4161_v58 = vrot.slane %v4160_v46, 4 }
 0x67e   :  { %v4162_v50 = vadd.f32 %v4161_v58, %v4160_v46 }
 0x680   :  { %v4163_v44 = vrot.slane %v4162_v50, 2 }
 0x682   :  { %v4164_v25 = vadd.f32 %v4163_v44, %v4162_v50 }
 0x684   :  { %v4165_v33 = vrot.slane %v4164_v25, 1 }
 0x686   :  { %v4166_v23 = vadd.f32 %v4165_v33, %v4164_v25 }
 0x688   :  { %v13938_v14 = vmul.f32 0.001953125, %v4166_v23 }
 0x68a   :  { %v4168_v18 = vsub.f32 %v13748_v32, %v13938_v14  ;;  %v4169_v39 = vsub.f32 %v13752_v6, %v13938_v14  ;;  %v4170_v61 = vsub.f32 %v13746_v9, %v13938_v14  ;;  %v4171_v58 = vsub.f32 %v13750_v3, %v13938_v14 }
 0x68b   :  { %v4172_v44 = vsub.f32 %v13760_v48, %v13938_v14  ;;  %v4173_v59 = vsub.f32 %v13765_v16, %v13938_v14  ;;  %v4174_v23 = vsub.f32 %v13757_v15, %v13938_v14  ;;  %v4176_v48 = vsub.f32 %v13772_v30, %v13938_v14 }
 0x68c   :  { %v4232_v21 = vmul.f32 %v4168_v18, %v4168_v18  ;;  %v4233_v28 = vmul.f32 %v4169_v39, %v4169_v39  ;;  %v4234_v33 = vmul.f32 %v4170_v61, %v4170_v61  ;;  %v4235_v46 = vmul.f32 %v4171_v58, %v4171_v58 }
 0x68d   :  { %v4236_v6 = vmul.f32 %v4172_v44, %v4172_v44  ;;  %v4175_v39 = vsub.f32 %v13763_v55, %v13938_v14  ;;  %v4237_v18 = vmul.f32 %v4173_v59, %v4173_v59  ;;  %v4238_v61 = vmul.f32 %v4174_v23, %v4174_v23 }
 0x68e   :  { %v4296_v25 = vadd.f32 %v4233_v28, %v4232_v21  ;;  %v4177_v21 = vsub.f32 %v13777_v1, %v13938_v14  ;;  %v4240_v44 = vmul.f32 %v4176_v48, %v4176_v48 }
 0x68f   :  { %v4239_v58 = vmul.f32 %v4175_v39, %v4175_v39 }
 0x690   :  { %v4297_v50 = vadd.f32 %v4296_v25, %v4234_v33  ;;  %v4178_v25 = vsub.f32 %v13769_v45, %v13938_v14  ;;  %v4241_v59 = vmul.f32 %v4177_v21, %v4177_v21 }
 0x692   :  { %v4298_v9 = vadd.f32 %v4297_v50, %v4235_v46  ;;  %v4179_v50 = vsub.f32 %v13775_v26, %v13938_v14  ;;  %v4242_v23 = vmul.f32 %v4178_v25, %v4178_v25 }
 0x694   :  { %v4299_v3 = vadd.f32 %v4298_v9, %v4236_v6  ;;  %v4180_v6 = vsub.f32 %v13784_v31, %v13938_v14  ;;  %v4243_v39 = vmul.f32 %v4179_v50, %v4179_v50 }
 0x696   :  { %v4300_v28 = vadd.f32 %v4299_v3, %v4237_v18  ;;  %v4181_v18 = vsub.f32 %v13789_v56, %v13938_v14  ;;  %v4244_v48 = vmul.f32 %v4180_v6, %v4180_v6 }
 0x698   :  { %v4301_v33 = vadd.f32 %v4300_v28, %v4238_v61  ;;  %v4182_v28 = vsub.f32 %v13781_v5, %v13938_v14  ;;  %v4245_v21 = vmul.f32 %v4181_v18, %v4181_v18 }
 0x69a   :  { %v4302_v46 = vadd.f32 %v4301_v33, %v4239_v58  ;;  %v4183_v33 = vsub.f32 %v13787_v7, %v13938_v14  ;;  %v4246_v25 = vmul.f32 %v4182_v28, %v4182_v28 }
 0x69c   :  { %v4303_v9 = vadd.f32 %v4302_v46, %v4240_v44  ;;  %v4184_v46 = vsub.f32 %v13796_v0, %v13938_v14  ;;  %v4247_v50 = vmul.f32 %v4183_v33, %v4183_v33 }
 0x69e   :  { %v4304_v3 = vadd.f32 %v4303_v9, %v4241_v59  ;;  %v4185_v9 = vsub.f32 %v13801_v49, %v13938_v14  ;;  %v4248_v6 = vmul.f32 %v4184_v46, %v4184_v46 }
 0x6a0   :  { %v4305_v61 = vadd.f32 %v4304_v3, %v4242_v23  ;;  %v4186_v3 = vsub.f32 %v13793_v24, %v13938_v14  ;;  %v4249_v18 = vmul.f32 %v4185_v9, %v4185_v9 }
 0x6a2   :  { %v4306_v58 = vadd.f32 %v4305_v61, %v4243_v39  ;;  %v4187_v61 = vsub.f32 %v13799_v17, %v13938_v14  ;;  %v4250_v28 = vmul.f32 %v4186_v3, %v4186_v3 }
 0x6a4   :  { %v4307_v44 = vadd.f32 %v4306_v58, %v4244_v48  ;;  %v4188_v58 = vsub.f32 %v13808_v10, %v13938_v14  ;;  %v4251_v33 = vmul.f32 %v4187_v61, %v4187_v61 }
 0x6a6   :  { %v4308_v59 = vadd.f32 %v4307_v44, %v4245_v21  ;;  %v4189_v44 = vsub.f32 %v13813_v63, %v13938_v14  ;;  %v4252_v46 = vmul.f32 %v4188_v58, %v4188_v58 }
 0x6a8   :  { %v4309_v23 = vadd.f32 %v4308_v59, %v4246_v25  ;;  %v4190_v59 = vsub.f32 %v13805_v38, %v13938_v14  ;;  %v4253_v9 = vmul.f32 %v4189_v44, %v4189_v44 }
 0x6aa   :  { %v4310_v39 = vadd.f32 %v4309_v23, %v4247_v50  ;;  %v4191_v23 = vsub.f32 %v13811_v8, %v13938_v14  ;;  %v4254_v3 = vmul.f32 %v4190_v59, %v4190_v59 }
 0x6ac   :  { %v4311_v48 = vadd.f32 %v4310_v39, %v4248_v6  ;;  %v4192_v39 = vsub.f32 %v13820_v2, %v13938_v14  ;;  %v4255_v61 = vmul.f32 %v4191_v23, %v4191_v23 }
 0x6ae   :  { %v4312_v21 = vadd.f32 %v4311_v48, %v4249_v18  ;;  %v4193_v48 = vsub.f32 %v13825_v27, %v13938_v14  ;;  %v4256_v58 = vmul.f32 %v4192_v39, %v4192_v39 }
 0x6b0   :  { %v4313_v25 = vadd.f32 %v4312_v21, %v4250_v28  ;;  %v4194_v21 = vsub.f32 %v13817_v19, %v13938_v14  ;;  %v4257_v44 = vmul.f32 %v4193_v48, %v4193_v48 }
 0x6b2   :  { %v4314_v50 = vadd.f32 %v4313_v25, %v4251_v33  ;;  %v4195_v25 = vsub.f32 %v13823_v12, %v13938_v14  ;;  %v4258_v59 = vmul.f32 %v4194_v21, %v4194_v21 }
 0x6b4   :  { %v4315_v6 = vadd.f32 %v4314_v50, %v4252_v46  ;;  %v4196_v50 = vsub.f32 %v13832_v36, %v13938_v14  ;;  %v4259_v23 = vmul.f32 %v4195_v25, %v4195_v25 }
 0x6b6   :  { %v4316_v18 = vadd.f32 %v4315_v6, %v4253_v9  ;;  %v4197_v6 = vsub.f32 %v13837_v52, %v13938_v14  ;;  %v4260_v39 = vmul.f32 %v4196_v50, %v4196_v50 }
 0x6b8   :  { %v4317_v28 = vadd.f32 %v4316_v18, %v4254_v3  ;;  %v4198_v18 = vsub.f32 %v13829_v11, %v13938_v14  ;;  %v4261_v48 = vmul.f32 %v4197_v6, %v4197_v6 }
 0x6ba   :  { %v4318_v33 = vadd.f32 %v4317_v28, %v4255_v61  ;;  %v4199_v28 = vsub.f32 %v13835_v42, %v13938_v14  ;;  %v4262_v21 = vmul.f32 %v4198_v18, %v4198_v18 }
 0x6bc   :  { %v4319_v46 = vadd.f32 %v4318_v33, %v4256_v58  ;;  %v4200_v33 = vsub.f32 %v13844_v62, %v13938_v14  ;;  %v4263_v25 = vmul.f32 %v4199_v28, %v4199_v28 }
 0x6be   :  { %v4320_v9 = vadd.f32 %v4319_v46, %v4257_v44  ;;  %v4201_v46 = vsub.f32 %v13849_v54, %v13938_v14  ;;  %v4264_v50 = vmul.f32 %v4200_v33, %v4200_v33 }
 0x6c0   :  { %v4321_v3 = vadd.f32 %v4320_v9, %v4258_v59  ;;  %v4202_v9 = vsub.f32 %v13841_v20, %v13938_v14  ;;  %v4265_v6 = vmul.f32 %v4201_v46, %v4201_v46 }
 0x6c2   :  { %v4322_v61 = vadd.f32 %v4321_v3, %v4259_v23  ;;  %v4203_v3 = vsub.f32 %v13847_v51, %v13938_v14  ;;  %v4266_v18 = vmul.f32 %v4202_v9, %v4202_v9 }
 0x6c4   :  { %v4323_v58 = vadd.f32 %v4322_v61, %v4260_v39  ;;  %v4204_v61 = vsub.f32 %v13856_v53, %v13938_v14  ;;  %v4267_v28 = vmul.f32 %v4203_v3, %v4203_v3 }
 0x6c6   :  { %v4324_v44 = vadd.f32 %v4323_v58, %v4261_v48  ;;  %v4205_v58 = vsub.f32 %v13861_v60, %v13938_v14  ;;  %v4268_v33 = vmul.f32 %v4204_v61, %v4204_v61 }
 0x6c8   :  { %v4325_v59 = vadd.f32 %v4324_v44, %v4262_v21  ;;  %v4206_v44 = vsub.f32 %v13853_v29, %v13938_v14  ;;  %v4269_v46 = vmul.f32 %v4205_v58, %v4205_v58 }
 0x6ca   :  { %v4326_v23 = vadd.f32 %v4325_v59, %v4263_v25  ;;  %v4207_v59 = vsub.f32 %v13859_v37, %v13938_v14  ;;  %v4270_v9 = vmul.f32 %v4206_v44, %v4206_v44 }
 0x6cc   :  { %v4327_v39 = vadd.f32 %v4326_v23, %v4264_v50  ;;  %v4208_v23 = vsub.f32 %v13868_v34, %v13938_v14  ;;  %v4271_v3 = vmul.f32 %v4207_v59, %v4207_v59 }
 0x6ce   :  { %v4328_v48 = vadd.f32 %v4327_v39, %v4265_v6  ;;  %v4209_v39 = vsub.f32 %v13873_v57, %v13938_v14  ;;  %v4272_v61 = vmul.f32 %v4208_v23, %v4208_v23 }
 0x6d0   :  { %v4329_v21 = vadd.f32 %v4328_v48, %v4266_v18  ;;  %v4210_v48 = vsub.f32 %v13865_v22, %v13938_v14  ;;  %v4273_v58 = vmul.f32 %v4209_v39, %v4209_v39 }
 0x6d2   :  { %v4330_v25 = vadd.f32 %v4329_v21, %v4267_v28  ;;  %v4211_v21 = vsub.f32 %v13871_v4, %v13938_v14  ;;  %v4274_v44 = vmul.f32 %v4210_v48, %v4210_v48 }
 0x6d4   :  { %v4331_v50 = vadd.f32 %v4330_v25, %v4268_v33  ;;  %v4212_v25 = vsub.f32 %v13880_v13, %v13938_v14  ;;  %v4275_v59 = vmul.f32 %v4211_v21, %v4211_v21 }
 0x6d6   :  { %v4332_v6 = vadd.f32 %v4331_v50, %v4269_v46  ;;  %v4213_v50 = vsub.f32 %v13885_v41, %v13938_v14  ;;  %v4276_v23 = vmul.f32 %v4212_v25, %v4212_v25 }
 0x6d8   :  { %v4333_v18 = vadd.f32 %v4332_v6, %v4270_v9  ;;  %v4214_v6 = vsub.f32 %v13877_v47, %v13938_v14  ;;  %v4277_v39 = vmul.f32 %v4213_v50, %v4213_v50 }
 0x6da   :  { %v4334_v28 = vadd.f32 %v4333_v18, %v4271_v3  ;;  %v4215_v18 = vsub.f32 %v13883_v35, %v13938_v14  ;;  %v4278_v48 = vmul.f32 %v4214_v6, %v4214_v6 }
 0x6dc   :  { %v4335_v33 = vadd.f32 %v4334_v28, %v4272_v61  ;;  %v19597_v28 = vld [vmem:[#allocation31_spill] sm:$0xff]  ;;  %v4279_v21 = vmul.f32 %v4215_v18, %v4215_v18 }
 0x6dd   :  { %v4216_v13 = vsub.f32 %v19597_v28, %v13938_v14 }
 0x6de   :  { %v4336_v46 = vadd.f32 %v4335_v33, %v4273_v58  ;;  %v19598_v33 = vld [vmem:[#allocation84_spill] sm:$0xff] }
 0x6df   :  { %v4217_v41 = vsub.f32 %v19598_v33, %v13938_v14  ;;  %v4280_v25 = vmul.f32 %v4216_v13, %v4216_v13 }
 0x6e0   :  { %v4337_v9 = vadd.f32 %v4336_v46, %v4274_v44  ;;  %v19599_v46 = vld [vmem:[#allocation141_spill] sm:$0xff] }
 0x6e1   :  { %v4218_v47 = vsub.f32 %v19599_v46, %v13938_v14  ;;  %v4281_v50 = vmul.f32 %v4217_v41, %v4217_v41 }
 0x6e2   :  { %v4338_v3 = vadd.f32 %v4337_v9, %v4275_v59  ;;  %v19600_v9 = vld [vmem:[#allocation32_spill] sm:$0xff] }
 0x6e3   :  { %v4219_v35 = vsub.f32 %v19600_v9, %v13938_v14  ;;  %v4282_v6 = vmul.f32 %v4218_v47, %v4218_v47 }
 0x6e4   :  { %v4339_v61 = vadd.f32 %v4338_v3, %v4276_v23  ;;  %v19601_v3 = vld [vmem:[#allocation142_spill] sm:$0xff] }
 0x6e5   :  { %v4220_v28 = vsub.f32 %v19601_v3, %v13938_v14  ;;  %v4283_v18 = vmul.f32 %v4219_v35, %v4219_v35 }
 0x6e6   :  { %v4340_v58 = vadd.f32 %v4339_v61, %v4277_v39  ;;  %v19602_v61 = vld [vmem:[#allocation33_spill] sm:$0xff] }
 0x6e7   :  { %v4221_v33 = vsub.f32 %v19602_v61, %v13938_v14  ;;  %v4284_v13 = vmul.f32 %v4220_v28, %v4220_v28 }
 0x6e8   :  { %v4341_v44 = vadd.f32 %v4340_v58, %v4278_v48  ;;  %v19603_v58 = vld [vmem:[#allocation85_spill] sm:$0xff] }
 0x6e9   :  { %v4222_v46 = vsub.f32 %v19603_v58, %v13938_v14  ;;  %v4285_v41 = vmul.f32 %v4221_v33, %v4221_v33 }
 0x6ea   :  { %v4342_v59 = vadd.f32 %v4341_v44, %v4279_v21  ;;  %v19604_v44 = vld [vmem:[#allocation143_spill] sm:$0xff] }
 0x6eb   :  { %v4223_v9 = vsub.f32 %v19604_v44, %v13938_v14  ;;  %v4286_v47 = vmul.f32 %v4222_v46, %v4222_v46 }
 0x6ec   :  { %v4343_v23 = vadd.f32 %v4342_v59, %v4280_v25  ;;  %v19605_v59 = vld [vmem:[#allocation88_spill] sm:$0xff] }
 0x6ed   :  { %v4224_v3 = vsub.f32 %v19605_v59, %v13938_v14  ;;  %v4287_v35 = vmul.f32 %v4223_v9, %v4223_v9 }
 0x6ee   :  { %v4344_v39 = vadd.f32 %v4343_v23, %v4281_v50  ;;  %v19606_v23 = vld [vmem:[#allocation144_spill] sm:$0xff] }
 0x6ef   :  { %v4225_v61 = vsub.f32 %v19606_v23, %v13938_v14  ;;  %v4288_v28 = vmul.f32 %v4224_v3, %v4224_v3 }
 0x6f0   :  { %v4345_v48 = vadd.f32 %v4344_v39, %v4282_v6  ;;  %v19607_v39 = vld [vmem:[#allocation34_spill] sm:$0xff] }
 0x6f1   :  { %v4226_v58 = vsub.f32 %v19607_v39, %v13938_v14  ;;  %v4289_v33 = vmul.f32 %v4225_v61, %v4225_v61 }
 0x6f2   :  { %v4346_v21 = vadd.f32 %v4345_v48, %v4283_v18  ;;  %v19608_v48 = vld [vmem:[#allocation89_spill] sm:$0xff] }
 0x6f3   :  { %v4227_v44 = vsub.f32 %v19608_v48, %v13938_v14  ;;  %v4290_v46 = vmul.f32 %v4226_v58, %v4226_v58 }
 0x6f4   :  { %v4347_v25 = vadd.f32 %v4346_v21, %v4284_v13  ;;  %v19609_v21 = vld [vmem:[#allocation35_spill] sm:$0xff] }
 0x6f5   :  { %v4228_v59 = vsub.f32 %v19609_v21, %v13938_v14  ;;  %v4291_v9 = vmul.f32 %v4227_v44, %v4227_v44 }
 0x6f6   :  { %v4348_v50 = vadd.f32 %v4347_v25, %v4285_v41  ;;  %v4229_v25 = vsub.f32 %v13933_v40, %v13938_v14 }
 0x6f7   :  { %v4292_v3 = vmul.f32 %v4228_v59, %v4228_v59  ;;  %v4372_v59 = vlaneseq }
 0x6f8   :  { %v4349_v6 = vadd.f32 %v4348_v50, %v4286_v47  ;;  %v19610_v50 = vld [vmem:[#allocation145_spill] sm:$0xff]  ;;  %v4293_v61 = vmul.f32 %v4229_v25, %v4229_v25  ;;  %v4096_v25 = vld [vmem:[%s18883_s5] sm:$0x1] }
 0x6f9   :  { %v4230_v39 = vsub.f32 %v19610_v50, %v13938_v14 }
 0x6fa   :  { %v4350_v18 = vadd.f32 %v4349_v6, %v4287_v35  ;;  %v4231_v6 = vsub.f32 %v13931_v43, %v13938_v14 }
 0x6fc   :  { %v4351_v13 = vadd.f32 %v4350_v18, %v4288_v28  ;;  %v4294_v18 = vmul.f32 %v4230_v39, %v4230_v39  ;;  %v4295_v21 = vmul.f32 %v4231_v6, %v4231_v6 }
 0x6fe   :  { %v4352_v41 = vadd.f32 %v4351_v13, %v4289_v33 }
 0x700   :  { %v4353_v47 = vadd.f32 %v4352_v41, %v4290_v46 }
 0x702   :  { %v4354_v35 = vadd.f32 %v4353_v47, %v4291_v9  ;;  %v4373_v9 = vshrl.u32 %v4372_v59, 7 }
 0x704   :  { %v4355_v28 = vadd.f32 %v4354_v35, %v4292_v3  ;;  %v14071_v39 = vsub.s32 0, %v4373_v9  ;;  %v19612_v35 = vld [vmem:[#allocation81_spill] sm:$0xff] }
 0x706   :  { %v4356_v48 = vadd.f32 %v4355_v28, %v4293_v61  ;;  %19611 = vst [vmem:[#allocation36_spill] sm:$0xff] %v14071_v39  ;;  %v19613_v61 = vld [vmem:[#allocation28_spill] sm:$0xff] }
 0x708   :  { %v4357_v58 = vadd.f32 %v4356_v48, %v4294_v18 }
 0x70a   :  { %v4358_v33 = vadd.f32 %v4357_v58, %v4295_v21  ;;  %v4097_v21 = vld [vmem:[%s18884_s6] sm:$0x1]  ;;  %v19615_v58 = vld [vmem:[#allocation138_spill] sm:$0xff] }
 0x70c   :  { %v4359_v13 = vrot.slane %v4358_v33, 4 }
 0x70e   :  { %v4360_v23 = vadd.f32 %v4359_v13, %v4358_v33 }
 0x710   :  { %v4361_v4 = vrot.slane %v4360_v23, 2 }
 0x712   :  { %v4362_v44 = vadd.f32 %v4361_v4, %v4360_v23 }
 0x714   :  { %v4363_v46 = vrot.slane %v4362_v44, 1 }
 0x716   :  { %v4364_v41 = vadd.f32 %v4363_v46, %v4362_v44 }
 0x718   :  { %v4365_v22 = vmul.f32 0.001953125, %v4364_v41 }
 0x71a   :  { %v4366_v50 = vadd.f32 1e-05, %v4365_v22 }
 0x71c   :  { %10268 = vrsqrt.f32 %v4366_v50 }
 0x726   :  { %v10269_v47 = vpop.eup %10268 }
 0x727   :  { %v4368_v48 = vmul.f32 %v10269_v47, %v4096_v25  ;;  %v19616_v25 = vld [vmem:[#allocation139_spill] sm:$0xff]  ;;  %v19617_v47 = vld [vmem:[#allocation29_spill] sm:$0xff] }
 0x729   :  { %v4369_v4 = vmul.f32 %v4368_v48, %v13938_v14  ;;  %v14078_v23 = vrot.slane %v4368_v48, %v14071_v39  ;;  %v19614_v14 = vld [vmem:[#allocation80_spill] sm:$0xff]  ;;  %v19618_v48 = vld [vmem:[#allocation82_spill] sm:$0xff] }
 0x72b   :  { %v4370_v22 = vsub.f32 %v4097_v21, %v4369_v4  ;;  %v4438_v50 = vmul.f32 %v14078_v23, %v13933_v40  ;;  %v14084_v3 = vmul.f32 %v14078_v23, %v13748_v32  ;;  %v14088_v6 = vmul.f32 %v14078_v23, %v19612_v35  ;;  %v19619_v21 = vld [vmem:[#allocation140_spill] sm:$0xff]  ;;  %v19620_v4 = vld [vmem:[#allocation30_spill] sm:$0xff]  ;;  %v19622_v35 = vld [vmem:[#allocation31_spill] sm:$0xff] }
 0x72c   :  { %v14092_v28 = vmul.f32 %v19613_v61, %v14078_v23  ;;  %v14096_v18 = vmul.f32 %v19614_v14, %v14078_v23  ;;  %v14100_v33 = vmul.f32 %v14078_v23, %v19615_v58  ;;  %v14104_v32 = vmul.f32 %v14078_v23, %v13765_v16  ;;  %v19623_v14 = vld [vmem:[#allocation84_spill] sm:$0xff] }
 0x72d   :  { %v14107_v40 = vrot.slane %v4370_v22, %v14071_v39  ;;  %v14111_v13 = vmul.f32 %v13757_v15, %v14078_v23  ;;  %v14115_v44 = vmul.f32 %v13763_v55, %v14078_v23  ;;  %v14119_v46 = vmul.f32 %v14078_v23, %v13772_v30  ;;  %v19621_v22 = vld [vmem:[#allocation83_spill] sm:$0xff] }
 0x72e   :  { %v14123_v41 = vmul.f32 %v14078_v23, %v13777_v1  ;;  %v14127_v16 = vmul.f32 %v13769_v45, %v14078_v23  ;;  %v14131_v15 = vmul.f32 %v13775_v26, %v14078_v23  ;;  %v14135_v55 = vmul.f32 %v14078_v23, %v13784_v31  ;;  %v19634_v39 = vld [vmem:[#allocation143_spill] sm:$0xff] }
 0x72f   :  { %v4508_v59 = vadd.f32 %v14107_v40, %v4438_v50  ;;  %v14140_v30 = vmul.f32 %v14078_v23, %v13789_v56  ;;  %v14144_v1 = vmul.f32 %v13781_v5, %v14078_v23  ;;  %v14148_v45 = vmul.f32 %v13787_v7, %v14078_v23 }
 0x730   :  { %v14152_v26 = vmul.f32 %v14078_v23, %v13796_v0  ;;  %v14156_v31 = vmul.f32 %v14078_v23, %v13801_v49  ;;  %v14160_v56 = vmul.f32 %v13793_v24, %v14078_v23  ;;  %v14164_v5 = vmul.f32 %v13799_v17, %v14078_v23 }
 0x731   :  { %v4572_v9 = vmax.f32 %v4508_v59, 0.0  ;;  %v14168_v7 = vmul.f32 %v14078_v23, %v13808_v10  ;;  %v14172_v0 = vmul.f32 %v14078_v23, %v13813_v63  ;;  %v14176_v49 = vmul.f32 %v13805_v38, %v14078_v23  ;;  %v19624_v59 = vld [vmem:[#allocation141_spill] sm:$0xff] }
 0x732   :  { %v14180_v24 = vmul.f32 %v13811_v8, %v14078_v23  ;;  %v14184_v17 = vmul.f32 %v14078_v23, %v13820_v2  ;;  %v14188_v10 = vmul.f32 %v14078_v23, %v13825_v27  ;;  %v14192_v63 = vmul.f32 %v13817_v19, %v14078_v23 }
 0x733   :  { %4636 = vst.msk [vmem:[#allocation2 + $0x321] sm:$0xff] %vm33_vm0, %v4572_v9  ;;  %v14197_v38 = vmul.f32 %v13823_v12, %v14078_v23  ;;  %v14201_v8 = vmul.f32 %v14078_v23, %v13832_v36  ;;  %v14205_v2 = vmul.f32 %v14078_v23, %v13837_v52  ;;  %v14209_v27 = vmul.f32 %v13829_v11, %v14078_v23 }
 0x734   :  { %v14213_v19 = vmul.f32 %v13835_v42, %v14078_v23  ;;  %v14217_v12 = vmul.f32 %v14078_v23, %v13844_v62  ;;  %v14221_v36 = vmul.f32 %v14078_v23, %v13849_v54  ;;  %v14225_v52 = vmul.f32 %v13841_v20, %v14078_v23 }
 0x735   :  { %v14229_v11 = vmul.f32 %v13847_v51, %v14078_v23  ;;  %v14233_v42 = vmul.f32 %v14078_v23, %v13856_v53  ;;  %v14237_v62 = vmul.f32 %v14078_v23, %v13861_v60  ;;  %v14241_v54 = vmul.f32 %v13853_v29, %v14078_v23 }
 0x736   :  { %v14245_v20 = vmul.f32 %v13859_v37, %v14078_v23  ;;  %v14249_v51 = vmul.f32 %v14078_v23, %v13868_v34  ;;  %v14253_v53 = vmul.f32 %v14078_v23, %v13873_v57  ;;  %v14257_v60 = vmul.f32 %v19616_v25, %v14078_v23  ;;  %v19626_v25 = vld [vmem:[#allocation32_spill] sm:$0xff] }
 0x737   :  { %v14261_v29 = vmul.f32 %v19617_v47, %v14078_v23  ;;  %v14265_v37 = vmul.f32 %v14078_v23, %v19618_v48  ;;  %v14269_v34 = vmul.f32 %v14078_v23, %v19619_v21  ;;  %v14273_v57 = vmul.f32 %v19620_v4, %v14078_v23  ;;  %v19628_v48 = vld [vmem:[#allocation142_spill] sm:$0xff]  ;;  %v19630_v4 = vld [vmem:[#allocation33_spill] sm:$0xff] }
 0x738   :  { %v14277_v50 = vmul.f32 %v19621_v22, %v14078_v23  ;;  %v14281_v61 = vmul.f32 %v14078_v23, %v19622_v35  ;;  %v14285_v58 = vmul.f32 %v14078_v23, %v19623_v14  ;;  %v14289_v9 = vmul.f32 %v19624_v59, %v14078_v23  ;;  %v19632_v35 = vld [vmem:[#allocation85_spill] sm:$0xff] }
 0x739   :  { %v14293_v47 = vmul.f32 %v19626_v25, %v14078_v23  ;;  %v14297_v21 = vmul.f32 %v14078_v23, %v19628_v48  ;;  %v14301_v22 = vmul.f32 %v14078_v23, %v19630_v4  ;;  %v14305_v14 = vmul.f32 %v19632_v35, %v14078_v23 }
 0x73a   :  { %19625 = vst [vmem:[#allocation92_spill] sm:$0xff] %v14289_v9  ;;  %v14309_v59 = vmul.f32 %v19634_v39, %v14078_v23  ;;  %v19636_v9 = vld [vmem:[#allocation88_spill] sm:$0xff] }
 0x73b   :  { %19627 = vst [vmem:[#allocation93_spill] sm:$0xff] %v14293_v47  ;;  %19629 = vst [vmem:[#allocation146_spill] sm:$0xff] %v14297_v21  ;;  %v14313_v25 = vmul.f32 %v14078_v23, %v19636_v9  ;;  %v19637_v47 = vld [vmem:[#allocation144_spill] sm:$0xff]  ;;  %v19638_v21 = vld [vmem:[#allocation34_spill] sm:$0xff] }
 0x73c   :  { %19631 = vst [vmem:[#allocation147_spill] sm:$0xff] %v14301_v22  ;;  %19633 = vst [vmem:[#allocation37_spill] sm:$0xff] %v14305_v14  ;;  %v14317_v48 = vmul.f32 %v14078_v23, %v19637_v47  ;;  %v14321_v4 = vmul.f32 %v19638_v21, %v14078_v23  ;;  %v19640_v22 = vld [vmem:[#allocation89_spill] sm:$0xff]  ;;  %v19641_v14 = vld [vmem:[#allocation35_spill] sm:$0xff]  ;;  %v14337_v47 = vmul.f32 %v13931_v43, %v14078_v23 }
 0x73d   :  { %19635 = vst [vmem:[#allocation38_spill] sm:$0xff] %v14309_v59  ;;  %v14325_v35 = vmul.f32 %v19640_v22, %v14078_v23  ;;  %v14329_v39 = vmul.f32 %v14078_v23, %v19641_v14  ;;  %v19642_v59 = vld [vmem:[#allocation145_spill] sm:$0xff]  ;;  %v4447_v21 = vadd.f32 %v14107_v40, %v14084_v3  ;;  %v14345_v22 = vadd.f32 %v14107_v40, %v14092_v28 }
 0x73e   :  { %19639 = vst [vmem:[#allocation94_spill] sm:$0xff] %v14321_v4  ;;  %v14333_v9 = vmul.f32 %v19642_v59, %v14078_v23  ;;  %v4448_v4 = vadd.f32 %v14107_v40, %v14088_v6  ;;  %v14349_v14 = vadd.f32 %v14107_v40, %v14096_v18  ;;  %v14353_v59 = vadd.f32 %v14107_v40, %v14100_v33 }
 0x73f   :  { %v14357_v43 = vadd.f32 %v14107_v40, %v14104_v32  ;;  %v14361_v23 = vadd.f32 %v14107_v40, %v14111_v13  ;;  %v14365_v3 = vadd.f32 %v14107_v40, %v14115_v44  ;;  %v4511_v6 = vmax.f32 %v4447_v21, 0.0 }
 0x740   :  { %v4512_v28 = vmax.f32 %v4448_v4, 0.0  ;;  %v14369_v18 = vadd.f32 %v14107_v40, %v14119_v46  ;;  %v14373_v33 = vadd.f32 %v14107_v40, %v14123_v41  ;;  %v14377_v32 = vadd.f32 %v14107_v40, %v14127_v16 }
 0x741   :  { %v14381_v13 = vadd.f32 %v14107_v40, %v14131_v15  ;;  %v14385_v44 = vadd.f32 %v14107_v40, %v14135_v55  ;;  %v14389_v46 = vadd.f32 %v14107_v40, %v14140_v30  ;;  %4575 = vst.msk [vmem:[#allocation2 + $0x19] sm:$0xff] %vm33_vm0, %v4511_v6  ;;  %v14395_v41 = vadd.f32 %v14107_v40, %v14144_v1 }
 0x742   :  { %4576 = vst.msk [vmem:[#allocation2 + $0x21] sm:$0xff] %vm33_vm0, %v4512_v28  ;;  %v14399_v16 = vadd.f32 %v14107_v40, %v14148_v45  ;;  %v14403_v15 = vadd.f32 %v14107_v40, %v14152_v26  ;;  %v14407_v55 = vadd.f32 %v14107_v40, %v14156_v31  ;;  %v14411_v30 = vadd.f32 %v14107_v40, %v14160_v56  ;;  %v19647_v28 = vld [vmem:[#allocation93_spill] sm:$0xff] }
 0x743   :  { %v14415_v1 = vadd.f32 %v14107_v40, %v14164_v5  ;;  %v14419_v45 = vadd.f32 %v14107_v40, %v14168_v7  ;;  %v14423_v26 = vadd.f32 %v14107_v40, %v14172_v0  ;;  %v14427_v31 = vadd.f32 %v14107_v40, %v14176_v49 }
 0x744   :  { %v14431_v56 = vadd.f32 %v14107_v40, %v14180_v24  ;;  %v14435_v5 = vadd.f32 %v14107_v40, %v14184_v17  ;;  %v14439_v7 = vadd.f32 %v14107_v40, %v14188_v10  ;;  %v14443_v0 = vadd.f32 %v14107_v40, %v14192_v63 }
 0x745   :  { %v14447_v49 = vadd.f32 %v14107_v40, %v14197_v38  ;;  %v14451_v24 = vadd.f32 %v14107_v40, %v14201_v8  ;;  %v14455_v17 = vadd.f32 %v14107_v40, %v14205_v2  ;;  %v14459_v10 = vadd.f32 %v14107_v40, %v14209_v27 }
 0x746   :  { %v14463_v63 = vadd.f32 %v14107_v40, %v14213_v19  ;;  %v14467_v38 = vadd.f32 %v14107_v40, %v14217_v12  ;;  %v14471_v8 = vadd.f32 %v14107_v40, %v14221_v36  ;;  %v14475_v2 = vadd.f32 %v14107_v40, %v14225_v52 }
 0x747   :  { %v14479_v27 = vadd.f32 %v14107_v40, %v14229_v11  ;;  %v14483_v19 = vadd.f32 %v14107_v40, %v14233_v42  ;;  %v14487_v12 = vadd.f32 %v14107_v40, %v14237_v62  ;;  %v14491_v36 = vadd.f32 %v14107_v40, %v14241_v54 }
 0x748   :  { %v14495_v52 = vadd.f32 %v14107_v40, %v14245_v20  ;;  %v14499_v11 = vadd.f32 %v14107_v40, %v14249_v51  ;;  %v14503_v42 = vadd.f32 %v14107_v40, %v14253_v53  ;;  %v14507_v62 = vadd.f32 %v14107_v40, %v14257_v60  ;;  %v4641_v21 = vld [vmem:[#allocation2 + $0x18] sm:$0xff] }
 0x749   :  { %v4642_v4 = vld [vmem:[#allocation2 + $0x20] sm:$0xff]  ;;  %v14511_v54 = vadd.f32 %v14107_v40, %v14261_v29  ;;  %v14515_v20 = vadd.f32 %v14107_v40, %v14265_v37  ;;  %v14519_v51 = vadd.f32 %v14107_v40, %v14269_v34  ;;  %v14524_v53 = vadd.f32 %v14107_v40, %v14273_v57  ;;  %v19645_v34 = vld [vmem:[#allocation92_spill] sm:$0xff]  ;;  %4919 = vrot.lane.b32.xlu0 %v4641_v21, %s10407_s15 }
 0x74a   :  { %4921 = vrot.lane.b32.xlu1 %v4642_v4, %s10407_s15  ;;  %v14528_v60 = vadd.f32 %v14107_v40, %v14277_v50  ;;  %v14532_v29 = vadd.f32 %v14107_v40, %v14281_v61  ;;  %v14536_v37 = vadd.f32 %v14107_v40, %v14285_v58  ;;  %v14540_v6 = vadd.f32 %v14107_v40, %v19645_v34  ;;  %v19648_v4 = vld [vmem:[#allocation146_spill] sm:$0xff]  ;;  %v19651_v58 = vld [vmem:[#allocation37_spill] sm:$0xff] }
 0x74b   :  { %v14544_v57 = vadd.f32 %v14107_v40, %v19647_v28  ;;  %v14548_v50 = vadd.f32 %v14107_v40, %v19648_v4  ;;  %v19652_v34 = vld [vmem:[#allocation38_spill] sm:$0xff]  ;;  %v14565_v28 = vadd.f32 %v14107_v40, %v14313_v25  ;;  %v14569_v4 = vadd.f32 %v14107_v40, %v14317_v48 }
 0x74c   :  { %19643 = vst [vmem:[#allocation95_spill] sm:$0xff] %v14528_v60  ;;  %19644 = vst [vmem:[#allocation148_spill] sm:$0xff] %v14536_v37  ;;  %v19649_v60 = vld [vmem:[#allocation147_spill] sm:$0xff]  ;;  %v14557_v37 = vadd.f32 %v14107_v40, %v19651_v58  ;;  %v14577_v21 = vadd.f32 %v14107_v40, %v14325_v35  ;;  %v14581_v58 = vadd.f32 %v14107_v40, %v14329_v39  ;;  %v4516_v35 = vmax.f32 %v14357_v43, 0.0 }
 0x74d   :  { %19646 = vst [vmem:[#allocation149_spill] sm:$0xff] %v14540_v6  ;;  %v14552_v61 = vadd.f32 %v14107_v40, %v19649_v60  ;;  %v14561_v6 = vadd.f32 %v14107_v40, %v19652_v34  ;;  %v19653_v60 = vld [vmem:[#allocation94_spill] sm:$0xff]  ;;  %v14585_v25 = vadd.f32 %v14107_v40, %v14333_v9  ;;  %v14589_v48 = vadd.f32 %v14107_v40, %v14337_v47 }
 0x74e   :  { %19655 = vst [vmem:[#allocation96_spill] sm:$0xff] %v14577_v21  ;;  %19656 = vst [vmem:[#allocation97_spill] sm:$0xff] %v14581_v58  ;;  %v4513_v34 = vmax.f32 %v14345_v22, 0.0  ;;  %v4517_v21 = vmax.f32 %v14361_v23, 0.0  ;;  %v4518_v39 = vmax.f32 %v14365_v3, 0.0  ;;  %v4519_v58 = vmax.f32 %v14369_v18, 0.0 }
 0x74f   :  { %19650 = vst [vmem:[#allocation39_spill] sm:$0xff] %v14552_v61  ;;  %v14573_v61 = vadd.f32 %v14107_v40, %v19653_v60  ;;  %19657 = vst [vmem:[#allocation150_spill] sm:$0xff] %v14585_v25  ;;  %v4514_v60 = vmax.f32 %v14349_v14, 0.0  ;;  %v4520_v9 = vmax.f32 %v14373_v33, 0.0  ;;  %v4521_v25 = vmax.f32 %v14377_v32, 0.0 }
 0x750   :  { %v4522_v40 = vmax.f32 %v14381_v13, 0.0  ;;  %v4523_v47 = vmax.f32 %v14385_v44, 0.0  ;;  %4577 = vst.msk [vmem:[#allocation2 + $0x31] sm:$0xff] %vm33_vm0, %v4513_v34  ;;  %v4524_v22 = vmax.f32 %v14389_v46, 0.0  ;;  %v4525_v14 = vmax.f32 %v14395_v41, 0.0  ;;  %4580 = vst.msk [vmem:[#allocation2 + $0x51] sm:$0xff] %vm33_vm0, %v4516_v35 }
 0x751   :  { %19654 = vst [vmem:[#allocation40_spill] sm:$0xff] %v14573_v61  ;;  %v4515_v61 = vmax.f32 %v14353_v59, 0.0  ;;  %4578 = vst.msk [vmem:[#allocation2 + $0x39] sm:$0xff] %vm33_vm0, %v4514_v60  ;;  %v4526_v59 = vmax.f32 %v14399_v16, 0.0  ;;  %v4527_v43 = vmax.f32 %v14403_v15, 0.0  ;;  %v4528_v23 = vmax.f32 %v14407_v55, 0.0 }
 0x752   :  { %4581 = vst.msk [vmem:[#allocation2 + $0x61] sm:$0xff] %vm33_vm0, %v4517_v21  ;;  %4582 = vst.msk [vmem:[#allocation2 + $0x69] sm:$0xff] %vm33_vm0, %v4518_v39  ;;  %v4529_v3 = vmax.f32 %v14411_v30, 0.0  ;;  %v4530_v18 = vmax.f32 %v14415_v1, 0.0  ;;  %v4531_v33 = vmax.f32 %v14419_v45, 0.0  ;;  %v4532_v32 = vmax.f32 %v14423_v26, 0.0 }
 0x753   :  { %4579 = vst.msk [vmem:[#allocation2 + $0x49] sm:$0xff] %vm33_vm0, %v4515_v61  ;;  %4583 = vst.msk [vmem:[#allocation2 + $0x79] sm:$0xff] %vm33_vm0, %v4519_v58  ;;  %v4533_v13 = vmax.f32 %v14427_v31, 0.0  ;;  %v4534_v44 = vmax.f32 %v14431_v56, 0.0  ;;  %v4535_v46 = vmax.f32 %v14435_v5, 0.0  ;;  %v4536_v41 = vmax.f32 %v14439_v7, 0.0 }
 0x754   :  { %4584 = vst.msk [vmem:[#allocation2 + $0x81] sm:$0xff] %vm33_vm0, %v4520_v9  ;;  %4585 = vst.msk [vmem:[#allocation2 + $0x91] sm:$0xff] %vm33_vm0, %v4521_v25  ;;  %v4537_v16 = vmax.f32 %v14443_v0, 0.0  ;;  %v4538_v15 = vmax.f32 %v14447_v49, 0.0  ;;  %v4539_v55 = vmax.f32 %v14451_v24, 0.0  ;;  %v4540_v30 = vmax.f32 %v14455_v17, 0.0 }
 0x755   :  { %4586 = vst.msk [vmem:[#allocation2 + $0x99] sm:$0xff] %vm33_vm0, %v4522_v40  ;;  %4587 = vst.msk [vmem:[#allocation2 + $0xa9] sm:$0xff] %vm33_vm0, %v4523_v47  ;;  %v4541_v1 = vmax.f32 %v14459_v10, 0.0  ;;  %v4542_v45 = vmax.f32 %v14463_v63, 0.0  ;;  %v4543_v26 = vmax.f32 %v14467_v38, 0.0  ;;  %v4544_v31 = vmax.f32 %v14471_v8, 0.0 }
 0x756   :  { %4588 = vst.msk [vmem:[#allocation2 + $0xb1] sm:$0xff] %vm33_vm0, %v4524_v22  ;;  %4589 = vst.msk [vmem:[#allocation2 + $0xc1] sm:$0xff] %vm33_vm0, %v4525_v14  ;;  %v4545_v56 = vmax.f32 %v14475_v2, 0.0  ;;  %v4546_v5 = vmax.f32 %v14479_v27, 0.0  ;;  %v4547_v7 = vmax.f32 %v14483_v19, 0.0  ;;  %v4548_v0 = vmax.f32 %v14487_v12, 0.0 }
 0x757   :  { %4590 = vst.msk [vmem:[#allocation2 + $0xc9] sm:$0xff] %vm33_vm0, %v4526_v59  ;;  %4591 = vst.msk [vmem:[#allocation2 + $0xd9] sm:$0xff] %vm33_vm0, %v4527_v43  ;;  %v4549_v49 = vmax.f32 %v14491_v36, 0.0  ;;  %v4550_v24 = vmax.f32 %v14495_v52, 0.0  ;;  %v4551_v17 = vmax.f32 %v14499_v11, 0.0  ;;  %v14663_v63 = vld [vmem:[#allocation2 + $0x30] sm:$0xff] }
 0x758   :  { %4592 = vst.msk [vmem:[#allocation2 + $0xe1] sm:$0xff] %vm33_vm0, %v4528_v23  ;;  %4593 = vst.msk [vmem:[#allocation2 + $0xf1] sm:$0xff] %vm33_vm0, %v4529_v3  ;;  %v14657_v10 = vld [vmem:[#allocation2 + $0x38] sm:$0xff]  ;;  %v4552_v38 = vmax.f32 %v14503_v42, 0.0  ;;  %v4553_v8 = vmax.f32 %v14507_v62, 0.0  ;;  %v4554_v2 = vmax.f32 %v14511_v54, 0.0  ;;  %4923 = vrot.lane.b32.xlu0 %v14663_v63, %s10407_s15 }
 0x759   :  { %4594 = vst.msk [vmem:[#allocation2 + $0xf9] sm:$0xff] %vm33_vm0, %v4530_v18  ;;  %4595 = vst.msk [vmem:[#allocation2 + $0x109] sm:$0xff] %vm33_vm0, %v4531_v33  ;;  %v4555_v27 = vmax.f32 %v14515_v20, 0.0  ;;  %4925 = vrot.lane.b32.xlu1 %v14657_v10, %s10407_s15  ;;  %v4556_v19 = vmax.f32 %v14519_v51, 0.0  ;;  %v4557_v12 = vmax.f32 %v14524_v53, 0.0  ;;  %v19658_v36 = vld [vmem:[#allocation95_spill] sm:$0xff] }
 0x75a   :  { %4596 = vst.msk [vmem:[#allocation2 + $0x111] sm:$0xff] %vm33_vm0, %v4532_v32  ;;  %4597 = vst.msk [vmem:[#allocation2 + $0x121] sm:$0xff] %vm33_vm0, %v4533_v13  ;;  %v4558_v52 = vmax.f32 %v19658_v36, 0.0  ;;  %v4559_v11 = vmax.f32 %v14532_v29, 0.0  ;;  %v19659_v42 = vld [vmem:[#allocation148_spill] sm:$0xff]  ;;  %v19660_v54 = vld [vmem:[#allocation149_spill] sm:$0xff] }
 0x75b   :  { %4598 = vst.msk [vmem:[#allocation2 + $0x129] sm:$0xff] %vm33_vm0, %v4534_v44  ;;  %4599 = vst.msk [vmem:[#allocation2 + $0x139] sm:$0xff] %vm33_vm0, %v4535_v46  ;;  %v4560_v62 = vmax.f32 %v19659_v42, 0.0  ;;  %v4561_v20 = vmax.f32 %v19660_v54, 0.0  ;;  %v4562_v51 = vmax.f32 %v14544_v57, 0.0  ;;  %v4563_v53 = vmax.f32 %v14548_v50, 0.0 }
 0x75c   :  { %4600 = vst.msk [vmem:[#allocation2 + $0x141] sm:$0xff] %vm33_vm0, %v4536_v41  ;;  %4601 = vst.msk [vmem:[#allocation2 + $0x151] sm:$0xff] %vm33_vm0, %v4537_v16  ;;  %v19661_v29 = vld [vmem:[#allocation39_spill] sm:$0xff]  ;;  %v4565_v21 = vmax.f32 %v14557_v37, 0.0  ;;  %v4566_v58 = vmax.f32 %v14561_v6, 0.0  ;;  %v4567_v25 = vmax.f32 %v14565_v28, 0.0 }
 0x75d   :  { %4602 = vst.msk [vmem:[#allocation2 + $0x159] sm:$0xff] %vm33_vm0, %v4538_v15  ;;  %4603 = vst.msk [vmem:[#allocation2 + $0x169] sm:$0xff] %vm33_vm0, %v4539_v55  ;;  %v4564_v61 = vmax.f32 %v19661_v29, 0.0  ;;  %v14701_v57 = vld [vmem:[#allocation2 + $0x50] sm:$0xff]  ;;  %v14703_v50 = vld [vmem:[#allocation2 + $0x48] sm:$0xff]  ;;  %v4568_v34 = vmax.f32 %v14569_v4, 0.0 }
 0x75e   :  { %4604 = vst.msk [vmem:[#allocation2 + $0x171] sm:$0xff] %vm33_vm0, %v4540_v30  ;;  %4605 = vst.msk [vmem:[#allocation2 + $0x181] sm:$0xff] %vm33_vm0, %v4541_v1  ;;  %v19662_v60 = vld [vmem:[#allocation40_spill] sm:$0xff]  ;;  %v19664_v39 = vld [vmem:[#allocation97_spill] sm:$0xff]  ;;  %4929 = vrot.lane.b32.xlu1 %v14701_v57, %s10407_s15  ;;  %4927 = vrot.lane.b32.xlu0 %v14703_v50, %s10407_s15  ;;  %v4574_v40 = vmax.f32 %v14589_v48, 0.0 }
 0x75f   :  { %4606 = vst.msk [vmem:[#allocation2 + $0x189] sm:$0xff] %vm33_vm0, %v4542_v45  ;;  %4607 = vst.msk [vmem:[#allocation2 + $0x1c9] sm:$0xff] %vm33_vm0, %v4543_v26  ;;  %v4569_v37 = vmax.f32 %v19662_v60, 0.0  ;;  %v19663_v35 = vld [vmem:[#allocation96_spill] sm:$0xff]  ;;  %v4571_v28 = vmax.f32 %v19664_v39, 0.0  ;;  %v19665_v4 = vld [vmem:[#allocation150_spill] sm:$0xff] }
 0x760   :  { %4608 = vst.msk [vmem:[#allocation2 + $0x1d1] sm:$0xff] %vm33_vm0, %v4544_v31  ;;  %4609 = vst.msk [vmem:[#allocation2 + $0x1e1] sm:$0xff] %vm33_vm0, %v4545_v56  ;;  %v4570_v6 = vmax.f32 %v19663_v35, 0.0  ;;  %v4573_v9 = vmax.f32 %v19665_v4, 0.0  ;;  %v14729_v48 = vld [vmem:[#allocation2 + $0x68] sm:$0xff]  ;;  %v14731_v47 = vld [vmem:[#allocation2 + $0x60] sm:$0xff] }
 0x761   :  { %4610 = vst.msk [vmem:[#allocation2 + $0x1e9] sm:$0xff] %vm33_vm0, %v4546_v5  ;;  %4611 = vst.msk [vmem:[#allocation2 + $0x1f9] sm:$0xff] %vm33_vm0, %v4547_v7  ;;  %v14737_v22 = vld [vmem:[#allocation2 + $0x80] sm:$0xff]  ;;  %v14739_v14 = vld [vmem:[#allocation2 + $0x78] sm:$0xff] }
 0x762   :  { %4612 = vst.msk [vmem:[#allocation2 + $0x201] sm:$0xff] %vm33_vm0, %v4548_v0  ;;  %4613 = vst.msk [vmem:[#allocation2 + $0x211] sm:$0xff] %vm33_vm0, %v4549_v49  ;;  %4933 = vrot.lane.b32.xlu1 %v14729_v48, %s10407_s15  ;;  %4931 = vrot.lane.b32.xlu0 %v14731_v47, %s10407_s15  ;;  %v14745_v59 = vld [vmem:[#allocation2 + $0x98] sm:$0xff]  ;;  %v14747_v43 = vld [vmem:[#allocation2 + $0x90] sm:$0xff] }
 0x763   :  { %4614 = vst.msk [vmem:[#allocation2 + $0x219] sm:$0xff] %vm33_vm0, %v4550_v24  ;;  %4615 = vst.msk [vmem:[#allocation2 + $0x229] sm:$0xff] %vm33_vm0, %v4551_v17  ;;  %v14753_v23 = vld [vmem:[#allocation2 + $0xb0] sm:$0xff]  ;;  %v14755_v3 = vld [vmem:[#allocation2 + $0xa8] sm:$0xff] }
 0x764   :  { %4616 = vst.msk [vmem:[#allocation2 + $0x231] sm:$0xff] %vm33_vm0, %v4552_v38  ;;  %4617 = vst.msk [vmem:[#allocation2 + $0x241] sm:$0xff] %vm33_vm0, %v4553_v8  ;;  %v14761_v18 = vld [vmem:[#allocation2 + $0xc8] sm:$0xff]  ;;  %v14763_v33 = vld [vmem:[#allocation2 + $0xc0] sm:$0xff] }
 0x765   :  { %4618 = vst.msk [vmem:[#allocation2 + $0x249] sm:$0xff] %vm33_vm0, %v4554_v2  ;;  %4619 = vst.msk [vmem:[#allocation2 + $0x259] sm:$0xff] %vm33_vm0, %v4555_v27  ;;  %v14769_v32 = vld [vmem:[#allocation2 + $0xe0] sm:$0xff]  ;;  %v14771_v13 = vld [vmem:[#allocation2 + $0xd8] sm:$0xff] }
 0x766   :  { %4620 = vst.msk [vmem:[#allocation2 + $0x261] sm:$0xff] %vm33_vm0, %v4556_v19  ;;  %4621 = vst.msk [vmem:[#allocation2 + $0x271] sm:$0xff] %vm33_vm0, %v4557_v12  ;;  %4937 = vrot.lane.b32.xlu1 %v14737_v22, %s10407_s15  ;;  %4935 = vrot.lane.b32.xlu0 %v14739_v14, %s10407_s15  ;;  %v14777_v44 = vld [vmem:[#allocation2 + $0xf8] sm:$0xff]  ;;  %v14779_v46 = vld [vmem:[#allocation2 + $0xf0] sm:$0xff] }
 0x767   :  { %4622 = vst.msk [vmem:[#allocation2 + $0x279] sm:$0xff] %vm33_vm0, %v4558_v52  ;;  %4623 = vst.msk [vmem:[#allocation2 + $0x289] sm:$0xff] %vm33_vm0, %v4559_v11  ;;  %v14785_v41 = vld [vmem:[#allocation2 + $0x110] sm:$0xff]  ;;  %v14787_v16 = vld [vmem:[#allocation2 + $0x108] sm:$0xff] }
 0x768   :  { %4624 = vst.msk [vmem:[#allocation2 + $0x291] sm:$0xff] %vm33_vm0, %v4560_v62  ;;  %4625 = vst.msk [vmem:[#allocation2 + $0x2a1] sm:$0xff] %vm33_vm0, %v4561_v20  ;;  %v14793_v15 = vld [vmem:[#allocation2 + $0x128] sm:$0xff]  ;;  %v14795_v55 = vld [vmem:[#allocation2 + $0x120] sm:$0xff] }
 0x769   :  { %4626 = vst.msk [vmem:[#allocation2 + $0x2a9] sm:$0xff] %vm33_vm0, %v4562_v51  ;;  %4627 = vst.msk [vmem:[#allocation2 + $0x2b9] sm:$0xff] %vm33_vm0, %v4563_v53  ;;  %v14801_v30 = vld [vmem:[#allocation2 + $0x140] sm:$0xff]  ;;  %v14803_v1 = vld [vmem:[#allocation2 + $0x138] sm:$0xff] }
 0x76a   :  { %4628 = vst.msk [vmem:[#allocation2 + $0x2c1] sm:$0xff] %vm33_vm0, %v4564_v61  ;;  %4629 = vst.msk [vmem:[#allocation2 + $0x2d1] sm:$0xff] %vm33_vm0, %v4565_v21  ;;  %4941 = vrot.lane.b32.xlu1 %v14745_v59, %s10407_s15  ;;  %4939 = vrot.lane.b32.xlu0 %v14747_v43, %s10407_s15  ;;  %v4668_v45 = vld [vmem:[#allocation2 + $0x158] sm:$0xff]  ;;  %v4667_v26 = vld [vmem:[#allocation2 + $0x150] sm:$0xff] }
 0x76b   :  { %4630 = vst.msk [vmem:[#allocation2 + $0x2d9] sm:$0xff] %vm33_vm0, %v4566_v58  ;;  %4631 = vst.msk [vmem:[#allocation2 + $0x2e9] sm:$0xff] %vm33_vm0, %v4567_v25  ;;  %v4670_v31 = vld [vmem:[#allocation2 + $0x170] sm:$0xff]  ;;  %v4669_v56 = vld [vmem:[#allocation2 + $0x168] sm:$0xff] }
 0x76c   :  { %4632 = vst.msk [vmem:[#allocation2 + $0x2f1] sm:$0xff] %vm33_vm0, %v4568_v34  ;;  %4633 = vst.msk [vmem:[#allocation2 + $0x301] sm:$0xff] %vm33_vm0, %v4569_v37  ;;  %v4672_v5 = vld [vmem:[#allocation2 + $0x188] sm:$0xff]  ;;  %v4671_v7 = vld [vmem:[#allocation2 + $0x180] sm:$0xff] }
 0x76d   :  { %4634 = vst.msk [vmem:[#allocation2 + $0x309] sm:$0xff] %vm33_vm0, %v4570_v6  ;;  %4635 = vst.msk [vmem:[#allocation2 + $0x319] sm:$0xff] %vm33_vm0, %v4571_v28  ;;  %v4678_v0 = vld [vmem:[#allocation2 + $0x1d0] sm:$0xff]  ;;  %v4677_v49 = vld [vmem:[#allocation2 + $0x1c8] sm:$0xff] }
 0x76e   :  { %4637 = vst.msk [vmem:[#allocation2 + $0x331] sm:$0xff] %vm33_vm0, %v4573_v9  ;;  %4638 = vst.msk [vmem:[#allocation2 + $0x339] sm:$0xff] %vm33_vm0, %v4574_v40  ;;  %4945 = vrot.lane.b32.xlu1 %v14753_v23, %s10407_s15  ;;  %4943 = vrot.lane.b32.xlu0 %v14755_v3, %s10407_s15  ;;  %v4680_v24 = vld [vmem:[#allocation2 + $0x1e8] sm:$0xff]  ;;  %v4679_v17 = vld [vmem:[#allocation2 + $0x1e0] sm:$0xff] }
 0x76f   :  { %v4682_v38 = vld [vmem:[#allocation2 + $0x200] sm:$0xff]  ;;  %v4681_v8 = vld [vmem:[#allocation2 + $0x1f8] sm:$0xff]  ;;  %v4683_v27 = vld [vmem:[#allocation2 + $0x210] sm:$0xff] }
 0x770   :  { %v4684_v2 = vld [vmem:[#allocation2 + $0x218] sm:$0xff]  ;;  %v4686_v19 = vld [vmem:[#allocation2 + $0x230] sm:$0xff]  ;;  %v4685_v12 = vld [vmem:[#allocation2 + $0x228] sm:$0xff] }
 0x771   :  { %v4688_v36 = vld [vmem:[#allocation2 + $0x248] sm:$0xff]  ;;  %v4687_v52 = vld [vmem:[#allocation2 + $0x240] sm:$0xff]  ;;  %v4689_v42 = vld [vmem:[#allocation2 + $0x258] sm:$0xff] }
 0x772   :  { %4949 = vrot.lane.b32.xlu1 %v14761_v18, %s10407_s15  ;;  %4947 = vrot.lane.b32.xlu0 %v14763_v33, %s10407_s15  ;;  %v4690_v11 = vld [vmem:[#allocation2 + $0x260] sm:$0xff]  ;;  %v4692_v62 = vld [vmem:[#allocation2 + $0x278] sm:$0xff]  ;;  %v4691_v54 = vld [vmem:[#allocation2 + $0x270] sm:$0xff] }
 0x773   :  { %v4694_v20 = vld [vmem:[#allocation2 + $0x290] sm:$0xff]  ;;  %v4693_v51 = vld [vmem:[#allocation2 + $0x288] sm:$0xff]  ;;  %v4695_v29 = vld [vmem:[#allocation2 + $0x2a0] sm:$0xff] }
 0x774   :  { %v4696_v53 = vld [vmem:[#allocation2 + $0x2a8] sm:$0xff]  ;;  %v4698_v61 = vld [vmem:[#allocation2 + $0x2c0] sm:$0xff]  ;;  %v4697_v21 = vld [vmem:[#allocation2 + $0x2b8] sm:$0xff] }
 0x775   :  { %v4700_v58 = vld [vmem:[#allocation2 + $0x2d8] sm:$0xff]  ;;  %v4699_v25 = vld [vmem:[#allocation2 + $0x2d0] sm:$0xff]  ;;  %v4701_v60 = vld [vmem:[#allocation2 + $0x2e8] sm:$0xff] }
 0x776   :  { %4953 = vrot.lane.b32.xlu1 %v14769_v32, %s10407_s15  ;;  %4951 = vrot.lane.b32.xlu0 %v14771_v13, %s10407_s15  ;;  %v4702_v34 = vld [vmem:[#allocation2 + $0x2f0] sm:$0xff]  ;;  %v4704_v6 = vld [vmem:[#allocation2 + $0x308] sm:$0xff]  ;;  %v4703_v39 = vld [vmem:[#allocation2 + $0x300] sm:$0xff] }
 0x777   :  { %v4706_v9 = vld [vmem:[#allocation2 + $0x320] sm:$0xff]  ;;  %v4705_v40 = vld [vmem:[#allocation2 + $0x318] sm:$0xff] }
 0x77a   :  { %4957 = vrot.lane.b32.xlu1 %v14777_v44, %s10407_s15  ;;  %4955 = vrot.lane.b32.xlu0 %v14779_v46, %s10407_s15 }
 0x77e   :  { %4961 = vrot.lane.b32.xlu1 %v14785_v41, %s10407_s15  ;;  %4959 = vrot.lane.b32.xlu0 %v14787_v16, %s10407_s15 }
 0x782   :  { %4965 = vrot.lane.b32.xlu1 %v14793_v15, %s10407_s15  ;;  %4963 = vrot.lane.b32.xlu0 %v14795_v55, %s10407_s15 }
 0x786   :  { %4969 = vrot.lane.b32.xlu1 %v14801_v30, %s10407_s15  ;;  %4967 = vrot.lane.b32.xlu0 %v14803_v1, %s10407_s15 }
 0x78a   :  { %4973 = vrot.lane.b32.xlu1 %v4668_v45, %s10407_s15  ;;  %4971 = vrot.lane.b32.xlu0 %v4667_v26, %s10407_s15 }
 0x78e   :  { %4977 = vrot.lane.b32.xlu1 %v4670_v31, %s10407_s15  ;;  %4975 = vrot.lane.b32.xlu0 %v4669_v56, %s10407_s15  ;;  %v4708_v31 = vld [vmem:[#allocation2 + $0x338] sm:$0xff]  ;;  %v4707_v56 = vld [vmem:[#allocation2 + $0x330] sm:$0xff] }
 0x792   :  { %4981 = vrot.lane.b32.xlu1 %v4672_v5, %s10407_s15  ;;  %4979 = vrot.lane.b32.xlu0 %v4671_v7, %s10407_s15 }
 0x796   :  { %4985 = vrot.lane.b32.xlu1 %v4678_v0, %s10407_s15  ;;  %4983 = vrot.lane.b32.xlu0 %v4677_v49, %s10407_s15 }
 0x79a   :  { %4989 = vrot.lane.b32.xlu1 %v4680_v24, %s10407_s15  ;;  %4987 = vrot.lane.b32.xlu0 %v4679_v17, %s10407_s15 }
 0x79e   :  { %4993 = vrot.lane.b32.xlu1 %v4682_v38, %s10407_s15  ;;  %4991 = vrot.lane.b32.xlu0 %v4681_v8, %s10407_s15 }
 0x7a2   :  { %4997 = vrot.lane.b32.xlu1 %v4684_v2, %s10407_s15  ;;  %4995 = vrot.lane.b32.xlu0 %v4683_v27, %s10407_s15 }
 0x7a6   :  { %5001 = vrot.lane.b32.xlu1 %v4686_v19, %s10407_s15  ;;  %4999 = vrot.lane.b32.xlu0 %v4685_v12, %s10407_s15  ;;  %v4714_v19 = vld [vmem:[#allocation2 + $0x21] sm:$0xff]  ;;  %v4713_v12 = vld [vmem:[#allocation2 + $0x19] sm:$0xff] }
 0x7aa   :  { %5005 = vrot.lane.b32.xlu1 %v4688_v36, %s10407_s15  ;;  %5003 = vrot.lane.b32.xlu0 %v4687_v52, %s10407_s15 }
 0x7ae   :  { %5009 = vrot.lane.b32.xlu1 %v4690_v11, %s10407_s15  ;;  %5007 = vrot.lane.b32.xlu0 %v4689_v42, %s10407_s15  ;;  %v4716_v11 = vld [vmem:[#allocation2 + $0x39] sm:$0xff]  ;;  %v4715_v42 = vld [vmem:[#allocation2 + $0x31] sm:$0xff] }
 0x7b2   :  { %5013 = vrot.lane.b32.xlu1 %v4692_v62, %s10407_s15  ;;  %5011 = vrot.lane.b32.xlu0 %v4691_v54, %s10407_s15 }
 0x7b6   :  { %5017 = vrot.lane.b32.xlu1 %v4694_v20, %s10407_s15  ;;  %5015 = vrot.lane.b32.xlu0 %v4693_v51, %s10407_s15 }
 0x7ba   :  { %5021 = vrot.lane.b32.xlu1 %v4696_v53, %s10407_s15  ;;  %5019 = vrot.lane.b32.xlu0 %v4695_v29, %s10407_s15  ;;  %v4718_v53 = vld [vmem:[#allocation2 + $0x51] sm:$0xff]  ;;  %v4717_v29 = vld [vmem:[#allocation2 + $0x49] sm:$0xff] }
 0x7bb   :  { %v14843_v35 = vpop.permute.xlu0 %4919 }
 0x7bc   :  { %v14841_v37 = vpop.permute.xlu1 %4921 }
 0x7be   :  { %5025 = vrot.lane.b32.xlu1 %v4698_v61, %s10407_s15  ;;  %5023 = vrot.lane.b32.xlu0 %v4697_v21, %s10407_s15  ;;  %v4784_v61 = vld [vmem:[#allocation2 + $0xa] sm:$0xff]  ;;  %v4783_v21 = vld [vmem:[#allocation2 + $0x2] sm:$0xff] }
 0x7c2   :  { %5029 = vrot.lane.b32.xlu1 %v4700_v58, %s10407_s15  ;;  %5027 = vrot.lane.b32.xlu0 %v4699_v25, %s10407_s15  ;;  %v10262_v58 = vld [vmem:[%s18885_s4] sm:$0xff]  }
 0x7c3   :  { %9775 = vmatprep.subr.bf16.mxu1 %v10262_v58 }
 0x7c4   :  { %9776 = vmatpush3.bf16.msra.mxu1 %v10262_v58 }
 0x7c6   :  { %5033 = vrot.lane.b32.xlu1 %v4702_v34, %s10407_s15  ;;  %5031 = vrot.lane.b32.xlu0 %v4701_v60, %s10407_s15  ;;  %v10263_v60 = vld [vmem:[%s18885_s4 + $0x8] sm:$0xff]  }
 0x7c7   :  { %9777 = vmatprep.subr.bf16.mxu1 %v10263_v60 }
 0x7c8   :  { %9778 = vmatpush3.bf16.msra.mxu1 %v10263_v60 }
 0x7ca   :  { %5037 = vrot.lane.b32.xlu1 %v4704_v6, %s10407_s15  ;;  %5035 = vrot.lane.b32.xlu0 %v4703_v39, %s10407_s15  ;;  %v14849_v4 = vpop.permute.xlu0 %4923 }
 0x7cb   :  { %v14847_v28 = vpop.permute.xlu1 %4925 }
 0x7ce   :  { %5041 = vrot.lane.b32.xlu1 %v4706_v9, %s10407_s15  ;;  %5039 = vrot.lane.b32.xlu0 %v4705_v40, %s10407_s15  ;;  %v4786_v9 = vld [vmem:[#allocation2 + $0x22] sm:$0xff]  ;;  %v4785_v40 = vld [vmem:[#allocation2 + $0x1a] sm:$0xff] }
 0x7d0   :  { %v14853_v45 = vpop.permute.xlu1 %4929  ;;  %v14855_v26 = vpop.permute.xlu0 %4927 }
 0x7d2   :  { %5045 = vrot.lane.b32.xlu1 %v4708_v31, %s10407_s15  ;;  %5043 = vrot.lane.b32.xlu0 %v4707_v56, %s10407_s15 }
 0x7d4   :  { %v14859_v5 = vpop.permute.xlu1 %4933  ;;  %v14861_v7 = vpop.permute.xlu0 %4931 }
 0x7d6   :  { %5117 = vrot.lane.b32.xlu1 %v14657_v10, %s10408_s16  ;;  %5115 = vrot.lane.b32.xlu0 %v14663_v63, %s10408_s16 }
 0x7d8   :  { %v14867_v0 = vpop.permute.xlu1 %4937  ;;  %v14869_v49 = vpop.permute.xlu0 %4935 }
 0x7da   :  { %5121 = vrot.lane.b32.xlu1 %v14701_v57, %s10408_s16  ;;  %5119 = vrot.lane.b32.xlu0 %v14703_v50, %s10408_s16 }
 0x7dc   :  { %v14875_v24 = vpop.permute.xlu1 %4941  ;;  %v14877_v17 = vpop.permute.xlu0 %4939 }
 0x7de   :  { %5125 = vrot.lane.b32.xlu1 %v14729_v48, %s10408_s16  ;;  %5123 = vrot.lane.b32.xlu0 %v14731_v47, %s10408_s16 }
 0x7e0   :  { %v14883_v10 = vpop.permute.xlu1 %4945  ;;  %v14885_v63 = vpop.permute.xlu0 %4943 }
 0x7e2   :  { %5129 = vrot.lane.b32.xlu1 %v14737_v22, %s10408_s16  ;;  %5127 = vrot.lane.b32.xlu0 %v14739_v14, %s10408_s16 }
 0x7e4   :  { %v14891_v38 = vpop.permute.xlu1 %4949  ;;  %v14893_v8 = vpop.permute.xlu0 %4947 }
 0x7e5   :  { %19666 = vst [vmem:[#allocation151_spill] sm:$0xff] %v14891_v38  ;;  %19667 = vst [vmem:[#allocation41_spill] sm:$0xff] %v14893_v8 }
 0x7e6   :  { %5133 = vrot.lane.b32.xlu1 %v14745_v59, %s10408_s16  ;;  %5131 = vrot.lane.b32.xlu0 %v14747_v43, %s10408_s16 }
 0x7e8   :  { %v14899_v48 = vpop.permute.xlu1 %4953  ;;  %v14901_v47 = vpop.permute.xlu0 %4951 }
 0x7e9   :  { %19668 = vst [vmem:[#allocation42_spill] sm:$0xff] %v14899_v48  ;;  %19669 = vst [vmem:[#allocation98_spill] sm:$0xff] %v14901_v47 }
 0x7ea   :  { %5137 = vrot.lane.b32.xlu1 %v14753_v23, %s10408_s16  ;;  %5135 = vrot.lane.b32.xlu0 %v14755_v3, %s10408_s16 }
 0x7ec   :  { %v14907_v22 = vpop.permute.xlu1 %4957  ;;  %v14909_v14 = vpop.permute.xlu0 %4955 }
 0x7ed   :  { %19670 = vst [vmem:[#allocation99_spill] sm:$0xff] %v14907_v22  ;;  %19671 = vst [vmem:[#allocation152_spill] sm:$0xff] %v14909_v14  ;;  %v4640_v14 = vld [vmem:[#allocation2 + $0x8] sm:$0xff]  ;;  %v4639_v22 = vld [vmem:[#allocation2] sm:$0xff] }
 0x7ee   :  { %5141 = vrot.lane.b32.xlu1 %v14761_v18, %s10408_s16  ;;  %5139 = vrot.lane.b32.xlu0 %v14763_v33, %s10408_s16  ;;  %v6604_v47 = vsel %vm33_vm0, %v4640_v14, %v14841_v37  ;;  %v6603_v48 = vsel %vm33_vm0, %v4639_v22, %v14843_v35  ;;  %v10344_v37 = vld [vmem:[#allocation2 + $0x20] sm:$0xff] }
 0x7ef   :  { %v6606_v35 = vsel %vm33_vm0, %v10344_v37, %v14847_v28 }
 0x7f0   :  { %v14915_v59 = vpop.permute.xlu1 %4961  ;;  %v14917_v43 = vpop.permute.xlu0 %4959 }
 0x7f1   :  { %19672 = vst [vmem:[#allocation153_spill] sm:$0xff] %v14915_v59  ;;  %19673 = vst [vmem:[#allocation43_spill] sm:$0xff] %v14917_v43  ;;  %v15160_v43 = vld [vmem:[#allocation2 + $0xb2] sm:$0xff]  ;;  %v15162_v59 = vld [vmem:[#allocation2 + $0xaa] sm:$0xff] }
 0x7f2   :  { %5145 = vrot.lane.b32.xlu1 %v14769_v32, %s10408_s16  ;;  %5143 = vrot.lane.b32.xlu0 %v14771_v13, %s10408_s16 }
 0x7f4   :  { %v14923_v23 = vpop.permute.xlu1 %4965  ;;  %v14925_v3 = vpop.permute.xlu0 %4963 }
 0x7f5   :  { %19674 = vst [vmem:[#allocation44_spill] sm:$0xff] %v14923_v23  ;;  %19675 = vst [vmem:[#allocation100_spill] sm:$0xff] %v14925_v3 }
 0x7f6   :  { %5149 = vrot.lane.b32.xlu1 %v14777_v44, %s10408_s16  ;;  %5147 = vrot.lane.b32.xlu0 %v14779_v46, %s10408_s16 }
 0x7f8   :  { %v14931_v18 = vpop.permute.xlu1 %4969  ;;  %v14933_v33 = vpop.permute.xlu0 %4967 }
 0x7f9   :  { %19676 = vst [vmem:[#allocation101_spill] sm:$0xff] %v14931_v18  ;;  %19677 = vst [vmem:[#allocation45_spill] sm:$0xff] %v14933_v33 }
 0x7fa   :  { %5153 = vrot.lane.b32.xlu1 %v14785_v41, %s10408_s16  ;;  %5151 = vrot.lane.b32.xlu0 %v14787_v16, %s10408_s16  ;;  %v4712_v41 = vld [vmem:[#allocation2 + $0x9] sm:$0xff]  ;;  %v4711_v16 = vld [vmem:[#allocation2 + $0x1] sm:$0xff] }
 0x7fc   :  { %v14939_v32 = vpop.permute.xlu1 %4973  ;;  %v14941_v13 = vpop.permute.xlu0 %4971 }
 0x7fd   :  { %19678 = vst [vmem:[#allocation46_spill] sm:$0xff] %v14939_v32  ;;  %19679 = vst [vmem:[#allocation102_spill] sm:$0xff] %v14941_v13 }
 0x7fe   :  { %5157 = vrot.lane.b32.xlu1 %v14793_v15, %s10408_s16  ;;  %5155 = vrot.lane.b32.xlu0 %v14795_v55, %s10408_s16 }
 0x800   :  { %v14947_v44 = vpop.permute.xlu1 %4977  ;;  %v14949_v46 = vpop.permute.xlu0 %4975 }
 0x801   :  { %19680 = vst [vmem:[#allocation103_spill] sm:$0xff] %v14947_v44  ;;  %19681 = vst [vmem:[#allocation47_spill] sm:$0xff] %v14949_v46  ;;  %v4726_v46 = vld [vmem:[#allocation2 + $0xb1] sm:$0xff]  ;;  %v4725_v44 = vld [vmem:[#allocation2 + $0xa9] sm:$0xff] }
 0x802   :  { %5161 = vrot.lane.b32.xlu1 %v14801_v30, %s10408_s16  ;;  %5159 = vrot.lane.b32.xlu0 %v14803_v1, %s10408_s16 }
 0x804   :  { %v14955_v2 = vpop.permute.xlu1 %4981  ;;  %v14957_v27 = vpop.permute.xlu0 %4979 }
 0x805   :  { %19682 = vst [vmem:[#allocation48_spill] sm:$0xff] %v14955_v2  ;;  %19683 = vst [vmem:[#allocation104_spill] sm:$0xff] %v14957_v27 }
 0x806   :  { %5373 = vrot.lane.b32.xlu1 %v4712_v41, %s10409_s17  ;;  %5371 = vrot.lane.b32.xlu0 %v4711_v16, %s10409_s17 }
 0x808   :  { %v14961_v15 = vpop.permute.xlu1 %4985  ;;  %v14963_v55 = vpop.permute.xlu0 %4983 }
 0x809   :  { %19684 = vst [vmem:[#allocation105_spill] sm:$0xff] %v14961_v15  ;;  %19685 = vst [vmem:[#allocation49_spill] sm:$0xff] %v14963_v55  ;;  %v4723_v15 = vld [vmem:[#allocation2 + $0x91] sm:$0xff] }
 0x80a   :  { %5377 = vrot.lane.b32.xlu1 %v4714_v19, %s10409_s17  ;;  %5375 = vrot.lane.b32.xlu0 %v4713_v12, %s10409_s17 }
 0x80c   :  { %v14967_v30 = vpop.permute.xlu1 %4989  ;;  %v14969_v1 = vpop.permute.xlu0 %4987 }
 0x80d   :  { %19686 = vst [vmem:[#allocation50_spill] sm:$0xff] %v14967_v30  ;;  %19687 = vst [vmem:[#allocation106_spill] sm:$0xff] %v14969_v1 }
 0x80e   :  { %5569 = vrot.lane.b32.xlu1 %v4714_v19, %s10410_s18  ;;  %5567 = vrot.lane.b32.xlu0 %v4713_v12, %s10410_s18  ;;  %v10264_v19 = vld [vmem:[%s18885_s4 + $0x10] ss:$0 sps:$4 sm:$0x33]   ;;  %v4788_v12 = vld [vmem:[#allocation2 + $0x3a] sm:$0xff] }
 0x80f   :  { %10244 = vmatprep.subr.msk.bf16.mxu1 %vm3047_vm3, %v10264_v19  ;;  %v7429_v60 = vsel %vm3047_vm3, %v10264_v19, 0 }
 0x810   :  { %v14973_v36 = vpop.permute.xlu1 %4993  ;;  %v14975_v52 = vpop.permute.xlu0 %4991  ;;  %9780 = vmatpush3.bf16.msra.mxu1 %v7429_v60 }
 0x811   :  { %19688 = vst [vmem:[#allocation107_spill] sm:$0xff] %v14973_v36  ;;  %19689 = vst [vmem:[#allocation51_spill] sm:$0xff] %v14975_v52 }
 0x812   :  { %5573 = vrot.lane.b32.xlu1 %v4716_v11, %s10410_s18  ;;  %5571 = vrot.lane.b32.xlu0 %v4715_v42, %s10410_s18 }
 0x814   :  { %v14979_v62 = vpop.permute.xlu1 %4997  ;;  %v14981_v54 = vpop.permute.xlu0 %4995 }
 0x815   :  { %19690 = vst [vmem:[#allocation52_spill] sm:$0xff] %v14979_v62  ;;  %19691 = vst [vmem:[#allocation108_spill] sm:$0xff] %v14981_v54 }
 0x816   :  { %5765 = vrot.lane.b32.xlu1 %v4716_v11, %s10411_s19  ;;  %5763 = vrot.lane.b32.xlu0 %v4715_v42, %s10411_s19 }
 0x818   :  { %v14985_v20 = vpop.permute.xlu1 %5001  ;;  %v14987_v51 = vpop.permute.xlu0 %4999 }
 0x819   :  { %19692 = vst [vmem:[#allocation109_spill] sm:$0xff] %v14985_v20  ;;  %19693 = vst [vmem:[#allocation53_spill] sm:$0xff] %v14987_v51  ;;  %v4794_v51 = vld [vmem:[#allocation2 + $0x82] sm:$0xff]  ;;  %v4793_v20 = vld [vmem:[#allocation2 + $0x7a] sm:$0xff] }
 0x81a   :  { %5769 = vrot.lane.b32.xlu1 %v4718_v53, %s10411_s19  ;;  %5767 = vrot.lane.b32.xlu0 %v4717_v29, %s10411_s19 }
 0x81c   :  { %v14994_v25 = vpop.permute.xlu1 %5005  ;;  %v14996_v34 = vpop.permute.xlu0 %5003 }
 0x81d   :  { %19694 = vst [vmem:[#allocation54_spill] sm:$0xff] %v14994_v25  ;;  %19695 = vst [vmem:[#allocation110_spill] sm:$0xff] %v14996_v34 }
 0x81e   :  { %6021 = vrot.lane.b32.xlu1 %v4784_v61, %s10412_s22  ;;  %6019 = vrot.lane.b32.xlu0 %v4783_v21, %s10412_s22  ;;  %v4787_v61 = vld [vmem:[#allocation2 + $0x32] sm:$0xff] }
 0x820   :  { %v15003_v6 = vpop.permute.xlu1 %5009  ;;  %v15005_v39 = vpop.permute.xlu0 %5007 }
 0x821   :  { %19696 = vst [vmem:[#allocation111_spill] sm:$0xff] %v15003_v6  ;;  %19697 = vst [vmem:[#allocation55_spill] sm:$0xff] %v15005_v39  ;;  %v4791_v6 = vld [vmem:[#allocation2 + $0x62] sm:$0xff] }
 0x822   :  { %6025 = vrot.lane.b32.xlu1 %v4786_v9, %s10412_s22  ;;  %6023 = vrot.lane.b32.xlu0 %v4785_v40, %s10412_s22 }
 0x824   :  { %v15009_v31 = vpop.permute.xlu1 %5013  ;;  %v15011_v56 = vpop.permute.xlu0 %5011 }
 0x825   :  { %19698 = vst [vmem:[#allocation56_spill] sm:$0xff] %v15009_v31  ;;  %19699 = vst [vmem:[#allocation112_spill] sm:$0xff] %v15011_v56 }
 0x826   :  { %6217 = vrot.lane.b32.xlu1 %v4786_v9, %s10413_s27  ;;  %6215 = vrot.lane.b32.xlu0 %v4785_v40, %s10413_s27 }
 0x828   :  { %v15015_v41 = vpop.permute.xlu1 %5017  ;;  %v15017_v16 = vpop.permute.xlu0 %5015 }
 0x829   :  { %19700 = vst [vmem:[#allocation113_spill] sm:$0xff] %v15015_v41  ;;  %19701 = vst [vmem:[#allocation57_spill] sm:$0xff] %v15017_v16  ;;  %v4790_v16 = vld [vmem:[#allocation2 + $0x52] sm:$0xff]  ;;  %v4789_v41 = vld [vmem:[#allocation2 + $0x4a] sm:$0xff] }
 0x82a   :  { %6221 = vrot.lane.b32.xlu1 %v4788_v12, %s10413_s27  ;;  %6219 = vrot.lane.b32.xlu0 %v4787_v61, %s10413_s27 }
 0x82c   :  { %v15025_v21 = vpop.permute.xlu1 %5021  ;;  %v15027_v58 = vpop.permute.xlu0 %5019 }
 0x82d   :  { %19702 = vst [vmem:[#allocation58_spill] sm:$0xff] %v15025_v21  ;;  %19703 = vst [vmem:[#allocation114_spill] sm:$0xff] %v15027_v58 }
 0x82e   :  { %6413 = vrot.lane.b32.xlu1 %v4788_v12, %s10414_s2  ;;  %6411 = vrot.lane.b32.xlu0 %v4787_v61, %s10414_s2 }
 0x830   :  { %v15032_v9 = vpop.permute.xlu1 %5025  ;;  %v15034_v40 = vpop.permute.xlu0 %5023 }
 0x831   :  { %19704 = vst [vmem:[#allocation115_spill] sm:$0xff] %v15032_v9  ;;  %19705 = vst [vmem:[#allocation59_spill] sm:$0xff] %v15034_v40 }
 0x832   :  { %6417 = vrot.lane.b32.xlu1 %v4790_v16, %s10414_s2  ;;  %6415 = vrot.lane.b32.xlu0 %v4789_v41, %s10414_s2 }
 0x834   :  { %v15038_v21 = vpop.permute.xlu1 %5029  ;;  %v15040_v58 = vpop.permute.xlu0 %5027 }
 0x835   :  { %19706 = vst [vmem:[#allocation60_spill] sm:$0xff] %v15038_v21  ;;  %19707 = vst [vmem:[#allocation116_spill] sm:$0xff] %v15040_v58 }
 0x836   :  { %5381 = vrot.lane.b32.xlu1 %v4716_v11, %s10409_s17  ;;  %5379 = vrot.lane.b32.xlu0 %v4715_v42, %s10409_s17  ;;  %v4720_v42 = vld [vmem:[#allocation2 + $0x69] sm:$0xff] }
 0x838   :  { %v15044_v19 = vpop.permute.xlu1 %5033  ;;  %v15046_v60 = vpop.permute.xlu0 %5031 }
 0x839   :  { %19708 = vst [vmem:[#allocation117_spill] sm:$0xff] %v15044_v19  ;;  %19709 = vst [vmem:[#allocation61_spill] sm:$0xff] %v15046_v60  ;;  %v4719_v19 = vld [vmem:[#allocation2 + $0x61] sm:$0xff] }
 0x83a   :  { %5385 = vrot.lane.b32.xlu1 %v4718_v53, %s10409_s17  ;;  %5383 = vrot.lane.b32.xlu0 %v4717_v29, %s10409_s17 }
 0x83c   :  { %v15050_v40 = vpop.permute.xlu1 %5037  ;;  %v15052_v9 = vpop.permute.xlu0 %5035 }
 0x83d   :  { %19710 = vst [vmem:[#allocation62_spill] sm:$0xff] %v15050_v40  ;;  %19711 = vst [vmem:[#allocation118_spill] sm:$0xff] %v15052_v9 }
 0x83e   :  { %5577 = vrot.lane.b32.xlu1 %v4718_v53, %s10410_s18  ;;  %5575 = vrot.lane.b32.xlu0 %v4717_v29, %s10410_s18 }
 0x840   :  { %v15056_v58 = vpop.permute.xlu1 %5041  ;;  %v15058_v11 = vpop.permute.xlu0 %5039 }
 0x841   :  { %19712 = vst [vmem:[#allocation119_spill] sm:$0xff] %v15056_v58  ;;  %19713 = vst [vmem:[#allocation128_spill] sm:$0xff] %v15058_v11  ;;  %v4722_v58 = vld [vmem:[#allocation2 + $0x81] sm:$0xff]  ;;  %v4721_v11 = vld [vmem:[#allocation2 + $0x79] sm:$0xff] }
 0x842   :  { %5581 = vrot.lane.b32.xlu1 %v4720_v42, %s10410_s18  ;;  %5579 = vrot.lane.b32.xlu0 %v4719_v19, %s10410_s18 }
 0x844   :  { %v15062_v60 = vpop.permute.xlu1 %5045  ;;  %v15064_v21 = vpop.permute.xlu0 %5043 }
 0x845   :  { %19714 = vst [vmem:[#allocation20_spill] sm:$0xff] %v15062_v60  ;;  %19715 = vst [vmem:[#allocation130_spill] sm:$0xff] %v15064_v21 }
 0x846   :  { %5773 = vrot.lane.b32.xlu1 %v4720_v42, %s10411_s19  ;;  %5771 = vrot.lane.b32.xlu0 %v4719_v19, %s10411_s19 }
 0x848   :  { %v15068_v53 = vpop.permute.xlu1 %5117  ;;  %v15070_v29 = vpop.permute.xlu0 %5115 }
 0x84a   :  { %5777 = vrot.lane.b32.xlu1 %v4722_v58, %s10411_s19  ;;  %5775 = vrot.lane.b32.xlu0 %v4721_v11, %s10411_s19 }
 0x84c   :  { %v15074_v9 = vpop.permute.xlu1 %5121  ;;  %v15076_v40 = vpop.permute.xlu0 %5119 }
 0x84e   :  { %6029 = vrot.lane.b32.xlu1 %v4788_v12, %s10412_s22  ;;  %6027 = vrot.lane.b32.xlu0 %v4787_v61, %s10412_s22  ;;  %v4792_v61 = vld [vmem:[#allocation2 + $0x6a] sm:$0xff] }
 0x850   :  { %v15080_v21 = vpop.permute.xlu1 %5125  ;;  %v15082_v60 = vpop.permute.xlu0 %5123 }
 0x852   :  { %6033 = vrot.lane.b32.xlu1 %v4790_v16, %s10412_s22  ;;  %6031 = vrot.lane.b32.xlu0 %v4789_v41, %s10412_s22 }
 0x854   :  { %v15086_v56 = vpop.permute.xlu1 %5129  ;;  %v15088_v31 = vpop.permute.xlu0 %5127 }
 0x856   :  { %6225 = vrot.lane.b32.xlu1 %v4790_v16, %s10413_s27  ;;  %6223 = vrot.lane.b32.xlu0 %v4789_v41, %s10413_s27 }
 0x858   :  { %v15092_v39 = vpop.permute.xlu1 %5133  ;;  %v15094_v12 = vpop.permute.xlu0 %5131 }
 0x85a   :  { %6229 = vrot.lane.b32.xlu1 %v4792_v61, %s10413_s27  ;;  %6227 = vrot.lane.b32.xlu0 %v4791_v6, %s10413_s27 }
 0x85c   :  { %v15098_v34 = vpop.permute.xlu1 %5137  ;;  %v15100_v25 = vpop.permute.xlu0 %5135 }
 0x85e   :  { %6421 = vrot.lane.b32.xlu1 %v4792_v61, %s10414_s2  ;;  %6419 = vrot.lane.b32.xlu0 %v4791_v6, %s10414_s2 }
 0x860   :  { %v15104_v16 = vpop.permute.xlu1 %5141  ;;  %v15106_v41 = vpop.permute.xlu0 %5139 }
 0x861   :  { %19716 = vst [vmem:[#allocation22_spill] sm:$0xff] %v15106_v41  ;;  %v10345_v41 = vld [vmem:[#allocation2 + $0x18] sm:$0xff] }
 0x862   :  { %6425 = vrot.lane.b32.xlu1 %v4794_v51, %s10414_s2  ;;  %6423 = vrot.lane.b32.xlu0 %v4793_v20, %s10414_s2 }
 0x864   :  { %v15110_v54 = vpop.permute.xlu1 %5145  ;;  %v15112_v62 = vpop.permute.xlu0 %5143 }
 0x865   :  { %19717 = vst [vmem:[#allocation132_spill] sm:$0xff] %v15110_v54  ;;  %19718 = vst [vmem:[#allocation7_spill] sm:$0xff] %v15112_v62  ;;  %v6668_v62 = vsel %vm2278_vm4, %v6604_v47, %v15068_v53  ;;  %v6605_v47 = vsel %vm33_vm0, %v10345_v41, %v14849_v4  ;;  %v6670_v53 = vsel %vm2278_vm4, %v6606_v35, %v15074_v9 }
 0x866   :  { %5389 = vrot.lane.b32.xlu1 %v4720_v42, %s10409_s17  ;;  %5387 = vrot.lane.b32.xlu0 %v4719_v19, %s10409_s17  ;;  %v4724_v19 = vld [vmem:[#allocation2 + $0x99] sm:$0xff]  ;;  %v6669_v28 = vsel %vm2278_vm4, %v6605_v47, %v15076_v40 }
 0x868   :  { %v15116_v52 = vpop.permute.xlu1 %5149  ;;  %v15118_v36 = vpop.permute.xlu0 %5147 }
 0x869   :  { %19719 = vst [vmem:[#allocation4_spill] sm:$0xff] %v15116_v52  ;;  %19720 = vst [vmem:[#allocation6_spill] sm:$0xff] %v15118_v36 }
 0x86a   :  { %5393 = vrot.lane.b32.xlu1 %v4722_v58, %s10409_s17  ;;  %5391 = vrot.lane.b32.xlu0 %v4721_v11, %s10409_s17 }
 0x86c   :  { %v15122_v1 = vpop.permute.xlu1 %5153  ;;  %v15124_v30 = vpop.permute.xlu0 %5151 }
 0x86d   :  { %19721 = vst [vmem:[#allocation3_spill] sm:$0xff] %v15122_v1  ;;  %19722 = vst [vmem:[#allocation9_spill] sm:$0xff] %v15124_v30 }
 0x86e   :  { %5585 = vrot.lane.b32.xlu1 %v4722_v58, %s10410_s18  ;;  %5583 = vrot.lane.b32.xlu0 %v4721_v11, %s10410_s18 }
 0x870   :  { %v15128_v55 = vpop.permute.xlu1 %5157  ;;  %v15130_v42 = vpop.permute.xlu0 %5155 }
 0x871   :  { %19723 = vst [vmem:[#allocation8_spill] sm:$0xff] %v15128_v55  ;;  %19724 = vst [vmem:[#allocation154_spill] sm:$0xff] %v15130_v42  ;;  %v15148_v42 = vld [vmem:[#allocation2 + $0x9a] sm:$0xff]  ;;  %v15150_v55 = vld [vmem:[#allocation2 + $0x92] sm:$0xff] }
 0x872   :  { %5589 = vrot.lane.b32.xlu1 %v4724_v19, %s10410_s18  ;;  %5587 = vrot.lane.b32.xlu0 %v4723_v15, %s10410_s18 }
 0x874   :  { %v15134_v27 = vpop.permute.xlu1 %5161  ;;  %v15136_v2 = vpop.permute.xlu0 %5159 }
 0x875   :  { %19725 = vst [vmem:[#allocation10_spill] sm:$0xff] %v15134_v27  ;;  %19726 = vst [vmem:[#allocation63_spill] sm:$0xff] %v15136_v2 }
 0x876   :  { %5781 = vrot.lane.b32.xlu1 %v4724_v19, %s10411_s19  ;;  %5779 = vrot.lane.b32.xlu0 %v4723_v15, %s10411_s19 }
 0x878   :  { %v5374_v58 = vpop.permute.xlu1 %5373  ;;  %v5372_v11 = vpop.permute.xlu0 %5371 }
 0x87a   :  { %5785 = vrot.lane.b32.xlu1 %v4726_v46, %s10411_s19  ;;  %5783 = vrot.lane.b32.xlu0 %v4725_v44, %s10411_s19 }
 0x87c   :  { %v5378_v13 = vpop.permute.xlu1 %5377  ;;  %v5376_v32 = vpop.permute.xlu0 %5375 }
 0x87d   :  { %v6734_v4 = vsel %vm2343_vm5, %v6670_v53, %v5378_v13 }
 0x87e   :  { %6037 = vrot.lane.b32.xlu1 %v4792_v61, %s10412_s22  ;;  %6035 = vrot.lane.b32.xlu0 %v4791_v6, %s10412_s22 }
 0x880   :  { %v5570_v33 = vpop.permute.xlu1 %5569  ;;  %v5568_v18 = vpop.permute.xlu0 %5567 }
 0x882   :  { %6041 = vrot.lane.b32.xlu1 %v4794_v51, %s10412_s22  ;;  %6039 = vrot.lane.b32.xlu0 %v4793_v20, %s10412_s22 }
 0x884   :  { %v5574_v2 = vpop.permute.xlu1 %5573  ;;  %v5572_v27 = vpop.permute.xlu0 %5571 }
 0x886   :  { %6233 = vrot.lane.b32.xlu1 %v4794_v51, %s10413_s27  ;;  %6231 = vrot.lane.b32.xlu0 %v4793_v20, %s10413_s27 }
 0x888   :  { %v5766_v3 = vpop.permute.xlu1 %5765  ;;  %v5764_v23 = vpop.permute.xlu0 %5763 }
 0x88a   :  { %6237 = vrot.lane.b32.xlu1 %v15148_v42, %s10413_s27  ;;  %6235 = vrot.lane.b32.xlu0 %v15150_v55, %s10413_s27 }
 0x88c   :  { %v5770_v6 = vpop.permute.xlu1 %5769  ;;  %v5768_v61 = vpop.permute.xlu0 %5767 }
 0x88e   :  { %6429 = vrot.lane.b32.xlu1 %v15148_v42, %s10414_s2  ;;  %6427 = vrot.lane.b32.xlu0 %v15150_v55, %s10414_s2 }
 0x890   :  { %v6022_v20 = vpop.permute.xlu1 %6021  ;;  %v6020_v51 = vpop.permute.xlu0 %6019 }
 0x892   :  { %6433 = vrot.lane.b32.xlu1 %v15160_v43, %s10414_s2  ;;  %6431 = vrot.lane.b32.xlu0 %v15162_v59, %s10414_s2 }
 0x894   :  { %v6026_v30 = vpop.permute.xlu1 %6025  ;;  %v6024_v1 = vpop.permute.xlu0 %6023 }
 0x896   :  { %5397 = vrot.lane.b32.xlu1 %v4724_v19, %s10409_s17  ;;  %5395 = vrot.lane.b32.xlu0 %v4723_v15, %s10409_s17  ;;  %v6667_v15 = vsel %vm2278_vm4, %v6603_v48, %v15070_v29  ;;  %v6732_v19 = vsel %vm2343_vm5, %v6668_v62, %v5374_v58  ;;  %v6798_v29 = vsel %vm2408_vm6, %v6734_v4, %v5574_v2  ;;  %v15206_v58 = vld [vmem:[#allocation2 + $0xc9] sm:$0xff] }
 0x897   :  { %v6731_v54 = vsel %vm2343_vm5, %v6667_v15, %v5372_v11  ;;  %v6796_v22 = vsel %vm2408_vm6, %v6732_v19, %v5570_v33  ;;  %v15208_v11 = vld [vmem:[#allocation2 + $0xc1] sm:$0xff] }
 0x898   :  { %v6218_v36 = vpop.permute.xlu1 %6217  ;;  %v6216_v52 = vpop.permute.xlu0 %6215  ;;  %v6795_v14 = vsel %vm2408_vm6, %v6731_v54, %v5568_v18  ;;  %v6860_v48 = vsel %vm2473_vm7, %v6796_v22, %v5766_v3  ;;  %v6733_v3 = vsel %vm2343_vm5, %v6669_v28, %v5376_v32  ;;  %v6862_v32 = vsel %vm2473_vm7, %v6798_v29, %v5770_v6  ;;  %v15264_v29 = vld [vmem:[#allocation2 + $0xca] sm:$0xff] }
 0x899   :  { %v6859_v62 = vsel %vm2473_vm7, %v6795_v14, %v5764_v23  ;;  %v6924_v18 = vsel %vm2538_vm8, %v6860_v48, %v6022_v20  ;;  %v6797_v9 = vsel %vm2408_vm6, %v6733_v3, %v5572_v27  ;;  %v6926_v2 = vsel %vm2538_vm8, %v6862_v32, %v6026_v30  ;;  %v4730_v48 = vld [vmem:[#allocation2 + $0xe1] sm:$0xff] }
 0x89a   :  { %5401 = vrot.lane.b32.xlu1 %v4726_v46, %s10409_s17  ;;  %5399 = vrot.lane.b32.xlu0 %v4725_v44, %s10409_s17  ;;  %v6923_v33 = vsel %vm2538_vm8, %v6859_v62, %v6020_v51  ;;  %v6988_v23 = vsel %vm2603_vm9, %v6924_v18, %v6218_v36  ;;  %v6861_v13 = vsel %vm2473_vm7, %v6797_v9, %v5768_v61  ;;  %v4729_v62 = vld [vmem:[#allocation2 + $0xd9] sm:$0xff] }
 0x89b   :  { %v6925_v27 = vsel %vm2538_vm8, %v6861_v13, %v6024_v1  ;;  %v15278_v32 = vld [vmem:[#allocation2 + $0xda] sm:$0xff] }
 0x89c   :  { %v6222_v8 = vpop.permute.xlu1 %6221  ;;  %v6220_v38 = vpop.permute.xlu0 %6219 }
 0x89d   :  { %v6989_v20 = vsel %vm2603_vm9, %v6925_v27, %v6220_v38  ;;  %v10359_v38 = vld [vmem:[#allocation2 + $0xa8] sm:$0xff] }
 0x89e   :  { %5593 = vrot.lane.b32.xlu1 %v4726_v46, %s10410_s18  ;;  %5591 = vrot.lane.b32.xlu0 %v4725_v44, %s10410_s18  ;;  %v6987_v46 = vsel %vm2603_vm9, %v6923_v33, %v6216_v52  ;;  %v6990_v52 = vsel %vm2603_vm9, %v6926_v2, %v6222_v8 }
 0x8a0   :  { %v6414_v54 = vpop.permute.xlu1 %6413  ;;  %v6412_v44 = vpop.permute.xlu0 %6411 }
 0x8a1   :  { %v7052_v40 = vsel %vm2668_vm10, %v6988_v23, %v6414_v54  ;;  %v7051_v41 = vsel %vm2668_vm10, %v6987_v46, %v6412_v44 }
 0x8a2   :  { %v15212_v36 = vpack.c.bf16 %v7052_v40, %v7051_v41  ;;  %5597 = vrot.lane.b32.xlu1 %v15206_v58, %s10410_s18  ;;  %5595 = vrot.lane.b32.xlu0 %v15208_v11, %s10410_s18 }
 0x8a4   :  { %v7147_v6 = vunpack.c.l.bf16 %v15212_v36  ;;  %v7148_v61 = vunpack.c.h.bf16 %v15212_v36  ;;  %v6418_v51 = vpop.permute.xlu1 %6417  ;;  %9781 = vmatprep.mubr.msk.bf16.mxu1 %vm2950_vm11, %v15212_v36  ;;  %v6416_v15 = vpop.permute.xlu0 %6415 }
 0x8a5   :  { %v7054_v19 = vsel %vm2668_vm10, %v6990_v52, %v6418_v51  ;;  %v7053_v37 = vsel %vm2668_vm10, %v6989_v20, %v6416_v15  ;;  %v10346_v20 = vld [vmem:[#allocation2 + $0x38] sm:$0xff] }
 0x8a6   :  { %v15228_v30 = vsub.f32 %v7051_v41, %v7147_v6  ;;  %v15230_v1 = vsub.f32 %v7052_v40, %v7148_v61  ;;  %v15232_v8 = vpack.c.bf16 %v7054_v19, %v7053_v37  ;;  %5789 = vrot.lane.b32.xlu1 %v15206_v58, %s10411_s19  ;;  %5787 = vrot.lane.b32.xlu0 %v15208_v11, %s10411_s19  ;;  %v15276_v41 = vld [vmem:[#allocation2 + $0xe2] sm:$0xff]  ;;  %v10347_v61 = vld [vmem:[#allocation2 + $0x30] sm:$0xff] }
 0x8a7   :  { %v6608_v6 = vsel %vm33_vm0, %v10346_v20, %v14853_v45  ;;  %v6607_v51 = vsel %vm33_vm0, %v10347_v61, %v14855_v26  ;;  %v6610_v26 = vsel %vm33_vm0, %v14701_v57, %v14859_v5  ;;  %v15326_v20 = vld [vmem:[#allocation2 + $0xf9] sm:$0xff] }
 0x8a8   :  { %19727 = vst [vmem:[#allocation5_spill] sm:$0xff] %v15228_v30  ;;  %19728 = vst [vmem:[#allocation121_spill] sm:$0xff] %v15230_v1  ;;  %v7149_v35 = vunpack.c.l.bf16 %v15232_v8  ;;  %v7150_v22 = vunpack.c.h.bf16 %v15232_v8  ;;  %v5382_v14 = vpop.permute.xlu1 %5381  ;;  %9782 = vmatmul.mubr.msk.bf16.vlgmr.msra.gmra.mrb[0].mxu1 %vm2950_vm11, %v15232_v8  ;;  %v5380_v47 = vpop.permute.xlu0 %5379  ;;  %v19780_v30 = vld [vmem:[#allocation102_spill] sm:$0xff] }
 0x8aa   :  { %v15244_v53 = vsub.f32 %v7053_v37, %v7149_v35  ;;  %v15246_v28 = vsub.f32 %v7054_v19, %v7150_v22  ;;  %5793 = vrot.lane.b32.xlu1 %v4730_v48, %s10411_s19  ;;  %5791 = vrot.lane.b32.xlu0 %v4729_v62, %s10411_s19 }
 0x8ac   :  { %19729 = vst [vmem:[#allocation120_spill] sm:$0xff] %v15244_v53  ;;  %19730 = vst [vmem:[#allocation87_spill] sm:$0xff] %v15246_v28  ;;  %v5386_v33 = vpop.permute.xlu1 %5385  ;;  %v5384_v4 = vpop.permute.xlu0 %5383  ;;  %v10377_v28 = vld [vmem:[#allocation2 + $0x138] sm:$0xff] }
 0x8ae   :  { %6045 = vrot.lane.b32.xlu1 %v15148_v42, %s10412_s22  ;;  %6043 = vrot.lane.b32.xlu0 %v15150_v55, %s10412_s22  ;;  %v15266_v55 = vld [vmem:[#allocation2 + $0xc2] sm:$0xff] }
 0x8b0   :  { %v5578_v3 = vpop.permute.xlu1 %5577  ;;  %v5576_v23 = vpop.permute.xlu0 %5575 }
 0x8b2   :  { %6049 = vrot.lane.b32.xlu1 %v15160_v43, %s10412_s22  ;;  %6047 = vrot.lane.b32.xlu0 %v15162_v59, %s10412_s22 }
 0x8b4   :  { %v5582_v46 = vpop.permute.xlu1 %5581  ;;  %v5580_v54 = vpop.permute.xlu0 %5579 }
 0x8b6   :  { %6241 = vrot.lane.b32.xlu1 %v15160_v43, %s10413_s27  ;;  %6239 = vrot.lane.b32.xlu0 %v15162_v59, %s10413_s27 }
 0x8b8   :  { %v5774_v42 = vpop.permute.xlu1 %5773  ;;  %v5772_v44 = vpop.permute.xlu0 %5771 }
 0x8ba   :  { %6245 = vrot.lane.b32.xlu1 %v15264_v29, %s10413_s27  ;;  %6243 = vrot.lane.b32.xlu0 %v15266_v55, %s10413_s27 }
 0x8bc   :  { %v5778_v9 = vpop.permute.xlu1 %5777  ;;  %v5776_v40 = vpop.permute.xlu0 %5775 }
 0x8be   :  { %6437 = vrot.lane.b32.xlu1 %v15264_v29, %s10414_s2  ;;  %6435 = vrot.lane.b32.xlu0 %v15266_v55, %s10414_s2 }
 0x8c0   :  { %v6030_v59 = vpop.permute.xlu1 %6029  ;;  %v6028_v43 = vpop.permute.xlu0 %6027 }
 0x8c2   :  { %6441 = vrot.lane.b32.xlu1 %v15276_v41, %s10414_s2  ;;  %6439 = vrot.lane.b32.xlu0 %v15278_v32, %s10414_s2 }
 0x8c4   :  { %v6034_v13 = vpop.permute.xlu1 %6033  ;;  %v6032_v2 = vpop.permute.xlu0 %6031 }
 0x8c6   :  { %5405 = vrot.lane.b32.xlu1 %v15206_v58, %s10409_s17  ;;  %5403 = vrot.lane.b32.xlu0 %v15208_v11, %s10409_s17  ;;  %v6672_v58 = vsel %vm2278_vm4, %v6608_v6, %v15080_v21  ;;  %v6671_v11 = vsel %vm2278_vm4, %v6607_v51, %v15082_v60  ;;  %v6609_v21 = vsel %vm33_vm0, %v14703_v50, %v14861_v7 }
 0x8c7   :  { %v6736_v15 = vsel %vm2343_vm5, %v6672_v58, %v5382_v14  ;;  %v6735_v19 = vsel %vm2343_vm5, %v6671_v11, %v5380_v47  ;;  %v6674_v47 = vsel %vm2278_vm4, %v6610_v26, %v15086_v56  ;;  %v6673_v57 = vsel %vm2278_vm4, %v6609_v21, %v15088_v31  ;;  %v4733_v21 = vld [vmem:[#allocation2 + $0x109] sm:$0xff] }
 0x8c8   :  { %v6226_v27 = vpop.permute.xlu1 %6225  ;;  %v6224_v52 = vpop.permute.xlu0 %6223  ;;  %v6800_v35 = vsel %vm2408_vm6, %v6736_v15, %v5578_v3  ;;  %v6799_v22 = vsel %vm2408_vm6, %v6735_v19, %v5576_v23  ;;  %v6738_v50 = vsel %vm2343_vm5, %v6674_v47, %v5386_v33  ;;  %v6737_v7 = vsel %vm2343_vm5, %v6673_v57, %v5384_v4 }
 0x8c9   :  { %v6864_v60 = vsel %vm2473_vm7, %v6800_v35, %v5774_v42  ;;  %v6863_v14 = vsel %vm2473_vm7, %v6799_v22, %v5772_v44  ;;  %v6802_v44 = vsel %vm2408_vm6, %v6738_v50, %v5582_v46  ;;  %v6801_v56 = vsel %vm2408_vm6, %v6737_v7, %v5580_v54  ;;  %v4734_v22 = vld [vmem:[#allocation2 + $0x111] sm:$0xff] }
 0x8ca   :  { %5409 = vrot.lane.b32.xlu1 %v4730_v48, %s10409_s17  ;;  %5407 = vrot.lane.b32.xlu0 %v4729_v62, %s10409_s17  ;;  %v6928_v5 = vsel %vm2538_vm8, %v6864_v60, %v6030_v59  ;;  %v6927_v3 = vsel %vm2538_vm8, %v6863_v14, %v6028_v43  ;;  %v15328_v43 = vld [vmem:[#allocation2 + $0xf1] sm:$0xff]  ;;  %v6866_v33 = vsel %vm2473_vm7, %v6802_v44, %v5778_v9 }
 0x8cb   :  { %v6992_v23 = vsel %vm2603_vm9, %v6928_v5, %v6226_v27  ;;  %v6865_v4 = vsel %vm2473_vm7, %v6801_v56, %v5776_v40  ;;  %v6930_v46 = vsel %vm2538_vm8, %v6866_v33, %v6034_v13  ;;  %v15396_v56 = vld [vmem:[#allocation2 + $0x112] sm:$0xff] }
 0x8cc   :  { %v6230_v37 = vpop.permute.xlu1 %6229  ;;  %v6228_v45 = vpop.permute.xlu0 %6227  ;;  %v6929_v54 = vsel %vm2538_vm8, %v6865_v4, %v6032_v2 }
 0x8cd   :  { %v6993_v6 = vsel %vm2603_vm9, %v6929_v54, %v6228_v45  ;;  %v10348_v54 = vld [vmem:[#allocation2 + $0x68] sm:$0xff] }
 0x8ce   :  { %5601 = vrot.lane.b32.xlu1 %v4730_v48, %s10410_s18  ;;  %5599 = vrot.lane.b32.xlu0 %v4729_v62, %s10410_s18  ;;  %v6991_v48 = vsel %vm2603_vm9, %v6927_v3, %v6224_v52  ;;  %v6994_v52 = vsel %vm2603_vm9, %v6930_v46, %v6230_v37 }
 0x8d0   :  { %v6422_v42 = vpop.permute.xlu1 %6421  ;;  %v6420_v62 = vpop.permute.xlu0 %6419 }
 0x8d1   :  { %v7056_v31 = vsel %vm2668_vm10, %v6992_v23, %v6422_v42  ;;  %v7055_v59 = vsel %vm2668_vm10, %v6991_v48, %v6420_v62  ;;  %v15384_v42 = vld [vmem:[#allocation2 + $0xfa] sm:$0xff] }
 0x8d2   :  { %v15332_v27 = vpack.c.bf16 %v7056_v31, %v7055_v59  ;;  %5605 = vrot.lane.b32.xlu1 %v15326_v20, %s10410_s18  ;;  %5603 = vrot.lane.b32.xlu0 %v15328_v43, %s10410_s18 }
 0x8d4   :  { %v7151_v9 = vunpack.c.l.bf16 %v15332_v27  ;;  %v7152_v40 = vunpack.c.h.bf16 %v15332_v27  ;;  %v6426_v61 = vpop.permute.xlu1 %6425  ;;  %9785 = vmatprep.mubr.msk.bf16.mxu1 %vm2950_vm11, %v15332_v27  ;;  %v6424_v51 = vpop.permute.xlu0 %6423 }
 0x8d5   :  { %v7058_v58 = vsel %vm2668_vm10, %v6994_v52, %v6426_v61  ;;  %v7057_v11 = vsel %vm2668_vm10, %v6993_v6, %v6424_v51  ;;  %v6612_v52 = vsel %vm33_vm0, %v10348_v54, %v14867_v0  ;;  %v10349_v6 = vld [vmem:[#allocation2 + $0x60] sm:$0xff] }
 0x8d6   :  { %v15348_v13 = vsub.f32 %v7055_v59, %v7151_v9  ;;  %v15350_v2 = vsub.f32 %v7056_v31, %v7152_v40  ;;  %v15352_v15 = vpack.c.bf16 %v7058_v58, %v7057_v11  ;;  %5797 = vrot.lane.b32.xlu1 %v15326_v20, %s10411_s19  ;;  %5795 = vrot.lane.b32.xlu0 %v15328_v43, %s10411_s19  ;;  %v15398_v31 = vld [vmem:[#allocation2 + $0x10a] sm:$0xff] }
 0x8d7   :  { %v6611_v9 = vsel %vm33_vm0, %v10349_v6, %v14869_v49  ;;  %v15444_v6 = vld [vmem:[#allocation2 + $0x129] sm:$0xff] }
 0x8d8   :  { %19731 = vst [vmem:[#allocation86_spill] sm:$0xff] %v15348_v13  ;;  %19732 = vst [vmem:[#allocation91_spill] sm:$0xff] %v15350_v2  ;;  %v7153_v37 = vunpack.c.l.bf16 %v15352_v15  ;;  %v7154_v45 = vunpack.c.h.bf16 %v15352_v15  ;;  %v5390_v26 = vpop.permute.xlu1 %5389  ;;  %9786 = vmatmul.mubr.msk.bf16.gmra.mrb[4].mxu1 %vm2950_vm11, %v15352_v15  ;;  %v5388_v35 = vpop.permute.xlu0 %5387  ;;  %v10376_v13 = vld [vmem:[#allocation2 + $0x140] sm:$0xff] }
 0x8da   :  { %v15364_v60 = vsub.f32 %v7057_v11, %v7153_v37  ;;  %v15366_v14 = vsub.f32 %v7058_v58, %v7154_v45  ;;  %5801 = vrot.lane.b32.xlu1 %v4734_v22, %s10411_s19  ;;  %5799 = vrot.lane.b32.xlu0 %v4733_v21, %s10411_s19  ;;  %v10350_v58 = vld [vmem:[#allocation2 + $0x80] sm:$0xff]  ;;  %v10351_v45 = vld [vmem:[#allocation2 + $0x78] sm:$0xff] }
 0x8db   :  { %v6614_v49 = vsel %vm33_vm0, %v10350_v58, %v14875_v24 }
 0x8dc   :  { %19733 = vst [vmem:[#allocation90_spill] sm:$0xff] %v15364_v60  ;;  %19734 = vst [vmem:[#allocation12_spill] sm:$0xff] %v15366_v14  ;;  %v5394_v57 = vpop.permute.xlu1 %5393  ;;  %v5392_v5 = vpop.permute.xlu0 %5391 }
 0x8de   :  { %6053 = vrot.lane.b32.xlu1 %v15264_v29, %s10412_s22  ;;  %6051 = vrot.lane.b32.xlu0 %v15266_v55, %s10412_s22  ;;  %v15386_v55 = vld [vmem:[#allocation2 + $0xf2] sm:$0xff] }
 0x8e0   :  { %v5586_v3 = vpop.permute.xlu1 %5585  ;;  %v5584_v50 = vpop.permute.xlu0 %5583 }
 0x8e2   :  { %6057 = vrot.lane.b32.xlu1 %v15276_v41, %s10412_s22  ;;  %6055 = vrot.lane.b32.xlu0 %v15278_v32, %s10412_s22 }
 0x8e4   :  { %v5590_v7 = vpop.permute.xlu1 %5589  ;;  %v5588_v23 = vpop.permute.xlu0 %5587 }
 0x8e6   :  { %6249 = vrot.lane.b32.xlu1 %v15276_v41, %s10413_s27  ;;  %6247 = vrot.lane.b32.xlu0 %v15278_v32, %s10413_s27 }
 0x8e8   :  { %v5782_v29 = vpop.permute.xlu1 %5781  ;;  %v5780_v48 = vpop.permute.xlu0 %5779 }
 0x8ea   :  { %6253 = vrot.lane.b32.xlu1 %v15384_v42, %s10413_s27  ;;  %6251 = vrot.lane.b32.xlu0 %v15386_v55, %s10413_s27 }
 0x8ec   :  { %v5786_v62 = vpop.permute.xlu1 %5785  ;;  %v5784_v44 = vpop.permute.xlu0 %5783 }
 0x8ee   :  { %6445 = vrot.lane.b32.xlu1 %v15384_v42, %s10414_s2  ;;  %6443 = vrot.lane.b32.xlu0 %v15386_v55, %s10414_s2 }
 0x8f0   :  { %v6038_v41 = vpop.permute.xlu1 %6037  ;;  %v6036_v32 = vpop.permute.xlu0 %6035 }
 0x8f2   :  { %6449 = vrot.lane.b32.xlu1 %v15396_v56, %s10414_s2  ;;  %6447 = vrot.lane.b32.xlu0 %v15398_v31, %s10414_s2 }
 0x8f4   :  { %v6042_v59 = vpop.permute.xlu1 %6041  ;;  %v6040_v33 = vpop.permute.xlu0 %6039 }
 0x8f6   :  { %5413 = vrot.lane.b32.xlu1 %v15326_v20, %s10409_s17  ;;  %5411 = vrot.lane.b32.xlu0 %v15328_v43, %s10409_s17  ;;  %v6676_v20 = vsel %vm2278_vm4, %v6612_v52, %v15092_v39  ;;  %v6675_v43 = vsel %vm2278_vm4, %v6611_v9, %v15094_v12  ;;  %v6613_v39 = vsel %vm33_vm0, %v10351_v45, %v14877_v17  ;;  %v15482_v45 = vld [vmem:[#allocation2 + $0x141] sm:$0xff] }
 0x8f7   :  { %v6740_v40 = vsel %vm2343_vm5, %v6676_v20, %v5390_v26  ;;  %v6739_v61 = vsel %vm2343_vm5, %v6675_v43, %v5388_v35  ;;  %v6678_v35 = vsel %vm2278_vm4, %v6614_v49, %v15098_v34  ;;  %v6677_v24 = vsel %vm2278_vm4, %v6613_v39, %v15100_v25  ;;  %v15484_v39 = vld [vmem:[#allocation2 + $0x139] sm:$0xff] }
 0x8f8   :  { %v6234_v4 = vpop.permute.xlu1 %6233  ;;  %v6232_v46 = vpop.permute.xlu0 %6231  ;;  %v6804_v11 = vsel %vm2408_vm6, %v6740_v40, %v5586_v3  ;;  %v6803_v37 = vsel %vm2408_vm6, %v6739_v61, %v5584_v50  ;;  %v6742_v17 = vsel %vm2343_vm5, %v6678_v35, %v5394_v57  ;;  %v10358_v35 = vld [vmem:[#allocation2 + $0xb0] sm:$0xff] }
 0x8f9   :  { %v6868_v12 = vsel %vm2473_vm7, %v6804_v11, %v5782_v29  ;;  %v6867_v26 = vsel %vm2473_vm7, %v6803_v37, %v5780_v48  ;;  %v6741_v29 = vsel %vm2343_vm5, %v6677_v24, %v5392_v5  ;;  %v6806_v52 = vsel %vm2408_vm6, %v6742_v17, %v5590_v7 }
 0x8fa   :  { %5417 = vrot.lane.b32.xlu1 %v4734_v22, %s10409_s17  ;;  %5415 = vrot.lane.b32.xlu0 %v4733_v21, %s10409_s17  ;;  %v6932_v3 = vsel %vm2538_vm8, %v6868_v12, %v6038_v41  ;;  %v6931_v50 = vsel %vm2538_vm8, %v6867_v26, %v6036_v32  ;;  %v6805_v34 = vsel %vm2408_vm6, %v6741_v29, %v5588_v23  ;;  %v15446_v32 = vld [vmem:[#allocation2 + $0x121] sm:$0xff] }
 0x8fb   :  { %v6996_v48 = vsel %vm2603_vm9, %v6932_v3, %v6234_v4  ;;  %v6870_v57 = vsel %vm2473_vm7, %v6806_v52, %v5786_v62  ;;  %v6869_v5 = vsel %vm2473_vm7, %v6805_v34, %v5784_v44  ;;  %v15528_v34 = vld [vmem:[#allocation2 + $0x142] sm:$0xff] }
 0x8fc   :  { %v6238_v51 = vpop.permute.xlu1 %6237  ;;  %v6236_v0 = vpop.permute.xlu0 %6235  ;;  %v6934_v7 = vsel %vm2538_vm8, %v6870_v57, %v6042_v59  ;;  %v6933_v23 = vsel %vm2538_vm8, %v6869_v5, %v6040_v33  ;;  %v15536_v5 = vld [vmem:[#allocation2 + $0x158] sm:$0xff] }
 0x8fd   :  { %v6997_v9 = vsel %vm2603_vm9, %v6933_v23, %v6236_v0  ;;  %v19740_v0 = vld [vmem:[#allocation151_spill] sm:$0xff] }
 0x8fe   :  { %5609 = vrot.lane.b32.xlu1 %v4734_v22, %s10410_s18  ;;  %5607 = vrot.lane.b32.xlu0 %v4733_v21, %s10410_s18  ;;  %v6995_v22 = vsel %vm2603_vm9, %v6931_v50, %v6232_v46  ;;  %v6998_v46 = vsel %vm2603_vm9, %v6934_v7, %v6238_v51  ;;  %v15540_v7 = vld [vmem:[#allocation2 + $0x150] sm:$0xff]  ;;  %v6618_v47 = vsel %vm33_vm0, %v10358_v35, %v19740_v0  ;;  %v19743_v35 = vld [vmem:[#allocation7_spill] sm:$0xff] }
 0x900   :  { %v6430_v54 = vpop.permute.xlu1 %6429  ;;  %v6428_v21 = vpop.permute.xlu0 %6427 }
 0x901   :  { %v7060_v25 = vsel %vm2668_vm10, %v6996_v48, %v6430_v54  ;;  %v7059_v41 = vsel %vm2668_vm10, %v6995_v22, %v6428_v21  ;;  %v15516_v22 = vld [vmem:[#allocation2 + $0x12a] sm:$0xff]  ;;  %v15518_v54 = vld [vmem:[#allocation2 + $0x122] sm:$0xff] }
 0x902   :  { %v15450_v4 = vpack.c.bf16 %v7060_v25, %v7059_v41  ;;  %5613 = vrot.lane.b32.xlu1 %v15444_v6, %s10410_s18  ;;  %5611 = vrot.lane.b32.xlu0 %v15446_v32, %s10410_s18 }
 0x904   :  { %v7155_v62 = vunpack.c.l.bf16 %v15450_v4  ;;  %v7156_v44 = vunpack.c.h.bf16 %v15450_v4  ;;  %v6434_v20 = vpop.permute.xlu1 %6433  ;;  %9789 = vmatprep.mubr.msk.bf16.mxu1 %vm2950_vm11, %v15450_v4  ;;  %v6432_v43 = vpop.permute.xlu0 %6431 }
 0x905   :  { %v7062_v40 = vsel %vm2668_vm10, %v6998_v46, %v6434_v20  ;;  %v7061_v61 = vsel %vm2668_vm10, %v6997_v9, %v6432_v43  ;;  %v10354_v9 = vld [vmem:[#allocation2 + $0x98] sm:$0xff]  ;;  %v15548_v43 = vld [vmem:[#allocation2 + $0x170] sm:$0xff] }
 0x906   :  { %v15466_v59 = vsub.f32 %v7059_v41, %v7155_v62  ;;  %v15468_v33 = vsub.f32 %v7060_v25, %v7156_v44  ;;  %v15470_v51 = vpack.c.bf16 %v7062_v40, %v7061_v61  ;;  %5805 = vrot.lane.b32.xlu1 %v15444_v6, %s10411_s19  ;;  %5803 = vrot.lane.b32.xlu0 %v15446_v32, %s10411_s19  ;;  %v15530_v25 = vld [vmem:[#allocation2 + $0x13a] sm:$0xff]  ;;  %v10355_v44 = vld [vmem:[#allocation2 + $0x90] sm:$0xff] }
 0x907   :  { %v6616_v62 = vsel %vm33_vm0, %v10354_v9, %v14883_v10  ;;  %v6615_v20 = vsel %vm33_vm0, %v10355_v44, %v14885_v63 }
 0x908   :  { %19735 = vst [vmem:[#allocation11_spill] sm:$0xff] %v15466_v59  ;;  %19736 = vst [vmem:[#allocation65_spill] sm:$0xff] %v15468_v33  ;;  %v7157_v58 = vunpack.c.l.bf16 %v15470_v51  ;;  %v7158_v49 = vunpack.c.h.bf16 %v15470_v51  ;;  %v5398_v11 = vpop.permute.xlu1 %5397  ;;  %9790 = vmatmul.mubr.msk.bf16.gmra.mrb[8].mxu1 %vm2950_vm11, %v15470_v51  ;;  %v5396_v37 = vpop.permute.xlu0 %5395  ;;  %v19754_v59 = vld [vmem:[#allocation152_spill] sm:$0xff] }
 0x90a   :  { %v15486_v12 = vsub.f32 %v7061_v61, %v7157_v58  ;;  %v15488_v26 = vsub.f32 %v7062_v40, %v7158_v49  ;;  %5809 = vrot.lane.b32.xlu1 %v15482_v45, %s10411_s19  ;;  %5807 = vrot.lane.b32.xlu0 %v15484_v39, %s10411_s19  ;;  %v15552_v40 = vld [vmem:[#allocation2 + $0x168] sm:$0xff]  ;;  %v6680_v61 = vsel %vm2278_vm4, %v6616_v62, %v15104_v16  ;;  %v19739_v58 = vld [vmem:[#allocation22_spill] sm:$0xff] }
 0x90b   :  { %v6679_v10 = vsel %vm2278_vm4, %v6615_v20, %v19739_v58  ;;  %v6744_v49 = vsel %vm2343_vm5, %v6680_v61, %v5398_v11 }
 0x90c   :  { %19737 = vst [vmem:[#allocation64_spill] sm:$0xff] %v15486_v12  ;;  %19738 = vst [vmem:[#allocation123_spill] sm:$0xff] %v15488_v26  ;;  %v15496_v24 = vpop.permute.xlu1 %5401  ;;  %v15498_v3 = vpop.permute.xlu0 %5399  ;;  %v6743_v63 = vsel %vm2343_vm5, %v6679_v10, %v5396_v37  ;;  %v19741_v12 = vld [vmem:[#allocation41_spill] sm:$0xff]  ;;  %v19742_v37 = vld [vmem:[#allocation132_spill] sm:$0xff] }
 0x90d   :  { %v6617_v16 = vsel %vm33_vm0, %v10359_v38, %v19741_v12  ;;  %v6682_v0 = vsel %vm2278_vm4, %v6618_v47, %v19742_v37  ;;  %v15626_v37 = vld [vmem:[#allocation2 + $0x159] sm:$0xff] }
 0x90e   :  { %6061 = vrot.lane.b32.xlu1 %v15384_v42, %s10412_s22  ;;  %6059 = vrot.lane.b32.xlu0 %v15386_v55, %s10412_s22  ;;  %v10363_v26 = vld [vmem:[#allocation2 + $0xd8] sm:$0xff] }
 0x910   :  { %v5594_v50 = vpop.permute.xlu1 %5593  ;;  %v5592_v17 = vpop.permute.xlu0 %5591 }
 0x911   :  { %v6808_v19 = vsel %vm2408_vm6, %v6744_v49, %v5594_v50  ;;  %v6807_v18 = vsel %vm2408_vm6, %v6743_v63, %v5592_v17  ;;  %v6681_v50 = vsel %vm2278_vm4, %v6617_v16, %v19743_v35 }
 0x912   :  { %6065 = vrot.lane.b32.xlu1 %v15396_v56, %s10412_s22  ;;  %6063 = vrot.lane.b32.xlu0 %v15398_v31, %s10412_s22 }
 0x914   :  { %v15508_v29 = vpop.permute.xlu1 %5597  ;;  %v15510_v48 = vpop.permute.xlu0 %5595 }
 0x916   :  { %6257 = vrot.lane.b32.xlu1 %v15396_v56, %s10413_s27  ;;  %6255 = vrot.lane.b32.xlu0 %v15398_v31, %s10413_s27 }
 0x918   :  { %v5790_v42 = vpop.permute.xlu1 %5789  ;;  %v5788_v55 = vpop.permute.xlu0 %5787 }
 0x919   :  { %v6872_v62 = vsel %vm2473_vm7, %v6808_v19, %v5790_v42  ;;  %v6871_v11 = vsel %vm2473_vm7, %v6807_v18, %v5788_v55  ;;  %v6746_v19 = vsel %vm2343_vm5, %v6682_v0, %v15496_v24  ;;  %v6745_v18 = vsel %vm2343_vm5, %v6681_v50, %v15498_v3  ;;  %v15628_v0 = vld [vmem:[#allocation2 + $0x151] sm:$0xff] }
 0x91a   :  { %6261 = vrot.lane.b32.xlu1 %v15516_v22, %s10413_s27  ;;  %6259 = vrot.lane.b32.xlu0 %v15518_v54, %s10413_s27  ;;  %v6810_v47 = vsel %vm2408_vm6, %v6746_v19, %v15508_v29  ;;  %v6809_v55 = vsel %vm2408_vm6, %v6745_v18, %v15510_v48  ;;  %v15648_v18 = vld [vmem:[#allocation2 + $0x171] sm:$0xff] }
 0x91c   :  { %v5794_v21 = vpop.permute.xlu1 %5793  ;;  %v5792_v52 = vpop.permute.xlu0 %5791 }
 0x91d   :  { %v6874_v24 = vsel %vm2473_vm7, %v6810_v47, %v5794_v21  ;;  %v6873_v3 = vsel %vm2473_vm7, %v6809_v55, %v5792_v52 }
 0x91e   :  { %6453 = vrot.lane.b32.xlu1 %v15516_v22, %s10414_s2  ;;  %6451 = vrot.lane.b32.xlu0 %v15518_v54, %s10414_s2 }
 0x920   :  { %v6046_v56 = vpop.permute.xlu1 %6045  ;;  %v6044_v31 = vpop.permute.xlu0 %6043 }
 0x921   :  { %v6936_v17 = vsel %vm2538_vm8, %v6872_v62, %v6046_v56  ;;  %v6935_v38 = vsel %vm2538_vm8, %v6871_v11, %v6044_v31 }
 0x922   :  { %6457 = vrot.lane.b32.xlu1 %v15528_v34, %s10414_s2  ;;  %6455 = vrot.lane.b32.xlu0 %v15530_v25, %s10414_s2 }
 0x924   :  { %v6050_v41 = vpop.permute.xlu1 %6049  ;;  %v6048_v57 = vpop.permute.xlu0 %6047 }
 0x925   :  { %v6938_v29 = vsel %vm2538_vm8, %v6874_v24, %v6050_v41  ;;  %v6937_v48 = vsel %vm2538_vm8, %v6873_v3, %v6048_v57  ;;  %v15672_v24 = vld [vmem:[#allocation2 + $0x15a] sm:$0xff] }
 0x926   :  { %5165 = vrot.lane.b32.xlu1 %v15536_v5, %s10408_s16  ;;  %5163 = vrot.lane.b32.xlu0 %v15540_v7, %s10408_s16 }
 0x928   :  { %v6242_v23 = vpop.permute.xlu1 %6241  ;;  %v6240_v46 = vpop.permute.xlu0 %6239 }
 0x92a   :  { %5169 = vrot.lane.b32.xlu1 %v15548_v43, %s10408_s16  ;;  %5167 = vrot.lane.b32.xlu0 %v15552_v40, %s10408_s16 }
 0x92c   :  { %v6246_v9 = vpop.permute.xlu1 %6245  ;;  %v6244_v44 = vpop.permute.xlu0 %6243 }
 0x92e   :  { %5421 = vrot.lane.b32.xlu1 %v15444_v6, %s10409_s17  ;;  %5419 = vrot.lane.b32.xlu0 %v15446_v32, %s10409_s17  ;;  %v7000_v6 = vsel %vm2603_vm9, %v6936_v17, %v6242_v23  ;;  %v6999_v32 = vsel %vm2603_vm9, %v6935_v38, %v6240_v46  ;;  %v7002_v23 = vsel %vm2603_vm9, %v6938_v29, %v6246_v9 }
 0x92f   :  { %v7001_v46 = vsel %vm2603_vm9, %v6937_v48, %v6244_v44  ;;  %v15684_v48 = vld [vmem:[#allocation2 + $0x172] sm:$0xff] }
 0x930   :  { %v6438_v12 = vpop.permute.xlu1 %6437  ;;  %v6436_v42 = vpop.permute.xlu0 %6435 }
 0x931   :  { %v7064_v56 = vsel %vm2668_vm10, %v7000_v6, %v6438_v12  ;;  %v7063_v31 = vsel %vm2668_vm10, %v6999_v32, %v6436_v42  ;;  %v15650_v6 = vld [vmem:[#allocation2 + $0x169] sm:$0xff] }
 0x932   :  { %v15594_v20 = vpack.c.bf16 %v7064_v56, %v7063_v31  ;;  %5425 = vrot.lane.b32.xlu1 %v15482_v45, %s10409_s17  ;;  %5423 = vrot.lane.b32.xlu0 %v15484_v39, %s10409_s17 }
 0x934   :  { %v7159_v21 = vunpack.c.l.bf16 %v15594_v20  ;;  %v7160_v52 = vunpack.c.h.bf16 %v15594_v20  ;;  %v6442_v61 = vpop.permute.xlu1 %6441  ;;  %9793 = vmatprep.mubr.msk.bf16.mxu1 %vm2950_vm11, %v15594_v20  ;;  %v6440_v58 = vpop.permute.xlu0 %6439 }
 0x935   :  { %v7066_v10 = vsel %vm2668_vm10, %v7002_v23, %v6442_v61  ;;  %v7065_v49 = vsel %vm2668_vm10, %v7001_v46, %v6440_v58  ;;  %v15686_v23 = vld [vmem:[#allocation2 + $0x16a] sm:$0xff]  ;;  %v10361_v61 = vld [vmem:[#allocation2 + $0xc0] sm:$0xff]  ;;  %v19750_v58 = vld [vmem:[#allocation98_spill] sm:$0xff] }
 0x936   :  { %v15610_v41 = vsub.f32 %v7063_v31, %v7159_v21  ;;  %v15612_v57 = vsub.f32 %v7064_v56, %v7160_v52  ;;  %v15614_v63 = vpack.c.bf16 %v7066_v10, %v7065_v49  ;;  %5617 = vrot.lane.b32.xlu1 %v15482_v45, %s10410_s18  ;;  %5615 = vrot.lane.b32.xlu0 %v15484_v39, %s10410_s18  ;;  %v10360_v46 = vld [vmem:[#allocation2 + $0xc8] sm:$0xff]  ;;  %v19749_v21 = vld [vmem:[#allocation42_spill] sm:$0xff] }
 0x937   :  { %v6620_v52 = vsel %vm33_vm0, %v10360_v46, %v19749_v21 }
 0x938   :  { %19744 = vst [vmem:[#allocation122_spill] sm:$0xff] %v15610_v41  ;;  %19745 = vst [vmem:[#allocation14_spill] sm:$0xff] %v15612_v57  ;;  %v7161_v44 = vunpack.c.l.bf16 %v15614_v63  ;;  %v7162_v16 = vunpack.c.h.bf16 %v15614_v63  ;;  %v5406_v62 = vpop.permute.xlu1 %5405  ;;  %9794 = vmatmul.mubr.msk.bf16.gmra.mrb[12].mxu1 %vm2950_vm11, %v15614_v63  ;;  %v5404_v11 = vpop.permute.xlu0 %5403 }
 0x939   :  { %19746 = vst [vmem:[#allocation13_spill] sm:$0xff] %v15614_v63  ;;  %v19840_v63 = vld [vmem:[#allocation114_spill] sm:$0xff] }
 0x93a   :  { %v15630_v45 = vsub.f32 %v7065_v49, %v7161_v44  ;;  %v15632_v35 = vsub.f32 %v7066_v10, %v7162_v16  ;;  %5621 = vrot.lane.b32.xlu1 %v15626_v37, %s10410_s18  ;;  %5619 = vrot.lane.b32.xlu0 %v15628_v0, %s10410_s18  ;;  %v6619_v10 = vsel %vm33_vm0, %v10361_v61, %v19750_v58  ;;  %v19751_v49 = vld [vmem:[#allocation4_spill] sm:$0xff]  ;;  %v19752_v16 = vld [vmem:[#allocation6_spill] sm:$0xff]  ;;  %v19753_v61 = vld [vmem:[#allocation99_spill] sm:$0xff] }
 0x93b   :  { %v6684_v44 = vsel %vm2278_vm4, %v6620_v52, %v19751_v49  ;;  %v6683_v39 = vsel %vm2278_vm4, %v6619_v10, %v19752_v16  ;;  %v6621_v52 = vsel %vm33_vm0, %v10363_v26, %v19754_v59  ;;  %v10364_v49 = vld [vmem:[#allocation2 + $0x188] sm:$0xff]  ;;  %v4674_v26 = vld [vmem:[#allocation2 + $0x1a0] sm:$0xff] }
 0x93c   :  { %19747 = vst [vmem:[#allocation67_spill] sm:$0xff] %v15630_v45  ;;  %19748 = vst [vmem:[#allocation66_spill] sm:$0xff] %v15632_v35  ;;  %v15640_v50 = vpop.permute.xlu1 %5409  ;;  %v15642_v17 = vpop.permute.xlu0 %5407  ;;  %v6748_v9 = vsel %vm2343_vm5, %v6684_v44, %v5406_v62  ;;  %v6747_v46 = vsel %vm2343_vm5, %v6683_v39, %v5404_v11  ;;  %v10362_v35 = vld [vmem:[#allocation2 + $0xe0] sm:$0xff] }
 0x93d   :  { %v6622_v58 = vsel %vm33_vm0, %v10362_v35, %v19753_v61  ;;  %v10365_v11 = vld [vmem:[#allocation2 + $0x180] sm:$0xff] }
 0x93e   :  { %5813 = vrot.lane.b32.xlu1 %v15626_v37, %s10411_s19  ;;  %5811 = vrot.lane.b32.xlu0 %v15628_v0, %s10411_s19  ;;  %v19755_v39 = vld [vmem:[#allocation3_spill] sm:$0xff] }
 0x93f   :  { %v6686_v35 = vsel %vm2278_vm4, %v6622_v58, %v19755_v39 }
 0x940   :  { %v5602_v38 = vpop.permute.xlu1 %5601  ;;  %v5600_v19 = vpop.permute.xlu0 %5599 }
 0x941   :  { %v6812_v41 = vsel %vm2408_vm6, %v6748_v9, %v5602_v38  ;;  %v6811_v57 = vsel %vm2408_vm6, %v6747_v46, %v5600_v19  ;;  %v19756_v9 = vld [vmem:[#allocation9_spill] sm:$0xff] }
 0x942   :  { %5817 = vrot.lane.b32.xlu1 %v15648_v18, %s10411_s19  ;;  %5815 = vrot.lane.b32.xlu0 %v15650_v6, %s10411_s19  ;;  %v6685_v38 = vsel %vm2278_vm4, %v6621_v52, %v19756_v9 }
 0x944   :  { %v15656_v32 = vpop.permute.xlu1 %5605  ;;  %v15658_v12 = vpop.permute.xlu0 %5603 }
 0x946   :  { %6069 = vrot.lane.b32.xlu1 %v15516_v22, %s10412_s22  ;;  %6067 = vrot.lane.b32.xlu0 %v15518_v54, %s10412_s22  ;;  %v15674_v54 = vld [vmem:[#allocation2 + $0x152] sm:$0xff] }
 0x948   :  { %v5798_v42 = vpop.permute.xlu1 %5797  ;;  %v5796_v47 = vpop.permute.xlu0 %5795 }
 0x949   :  { %v6876_v10 = vsel %vm2473_vm7, %v6812_v41, %v5798_v42  ;;  %v6875_v62 = vsel %vm2473_vm7, %v6811_v57, %v5796_v47  ;;  %v4673_v41 = vld [vmem:[#allocation2 + $0x198] sm:$0xff]  ;;  %v6750_v57 = vsel %vm2343_vm5, %v6686_v35, %v15640_v50  ;;  %v6749_v42 = vsel %vm2343_vm5, %v6685_v38, %v15642_v17 }
 0x94a   :  { %6073 = vrot.lane.b32.xlu1 %v15528_v34, %s10412_s22  ;;  %6071 = vrot.lane.b32.xlu0 %v15530_v25, %s10412_s22  ;;  %v6814_v61 = vsel %vm2408_vm6, %v6750_v57, %v15656_v32 }
 0x94c   :  { %v5802_v55 = vpop.permute.xlu1 %5801  ;;  %v5800_v56 = vpop.permute.xlu0 %5799 }
 0x94d   :  { %v6878_v50 = vsel %vm2473_vm7, %v6814_v61, %v5802_v55  ;;  %v4745_v61 = vld [vmem:[#allocation2 + $0x199] sm:$0xff] }
 0x94e   :  { %6265 = vrot.lane.b32.xlu1 %v15528_v34, %s10413_s27  ;;  %6263 = vrot.lane.b32.xlu0 %v15530_v25, %s10413_s27 }
 0x950   :  { %v6054_v22 = vpop.permute.xlu1 %6053  ;;  %v6052_v31 = vpop.permute.xlu0 %6051 }
 0x951   :  { %v6940_v19 = vsel %vm2538_vm8, %v6876_v10, %v6054_v22  ;;  %v6939_v59 = vsel %vm2538_vm8, %v6875_v62, %v6052_v31  ;;  %v6813_v22 = vsel %vm2408_vm6, %v6749_v42, %v15658_v12  ;;  %v4744_v42 = vld [vmem:[#allocation2 + $0x189] sm:$0xff] }
 0x952   :  { %6269 = vrot.lane.b32.xlu1 %v15672_v24, %s10413_s27  ;;  %6267 = vrot.lane.b32.xlu0 %v15674_v54, %s10413_s27  ;;  %v6877_v17 = vsel %vm2473_vm7, %v6813_v22, %v5800_v56 }
 0x954   :  { %v6058_v3 = vpop.permute.xlu1 %6057  ;;  %v6056_v29 = vpop.permute.xlu0 %6055 }
 0x955   :  { %v6941_v32 = vsel %vm2538_vm8, %v6877_v17, %v6056_v29 }
 0x956   :  { %6461 = vrot.lane.b32.xlu1 %v15672_v24, %s10414_s2  ;;  %6459 = vrot.lane.b32.xlu0 %v15674_v54, %s10414_s2 }
 0x958   :  { %v6250_v34 = vpop.permute.xlu1 %6249  ;;  %v6248_v25 = vpop.permute.xlu0 %6247 }
 0x959   :  { %v7004_v47 = vsel %vm2603_vm9, %v6940_v19, %v6250_v34  ;;  %v7003_v44 = vsel %vm2603_vm9, %v6939_v59, %v6248_v25  ;;  %v6942_v34 = vsel %vm2538_vm8, %v6878_v50, %v6058_v3 }
 0x95a   :  { %6465 = vrot.lane.b32.xlu1 %v15684_v48, %s10414_s2  ;;  %6463 = vrot.lane.b32.xlu0 %v15686_v23, %s10414_s2 }
 0x95c   :  { %v6254_v21 = vpop.permute.xlu1 %6253  ;;  %v6252_v45 = vpop.permute.xlu0 %6251 }
 0x95d   :  { %v7006_v12 = vsel %vm2603_vm9, %v6942_v34, %v6254_v21  ;;  %v7005_v25 = vsel %vm2603_vm9, %v6941_v32, %v6252_v45  ;;  %v19768_v45 = vld [vmem:[#allocation100_spill] sm:$0xff] }
 0x95e   :  { %5173 = vrot.lane.b32.xlu1 %v10364_v49, %s10408_s16  ;;  %5171 = vrot.lane.b32.xlu0 %v10365_v11, %s10408_s16 }
 0x960   :  { %v6446_v16 = vpop.permute.xlu1 %6445  ;;  %v6444_v46 = vpop.permute.xlu0 %6443 }
 0x961   :  { %v7068_v31 = vsel %vm2668_vm10, %v7004_v47, %v6446_v16  ;;  %v7067_v58 = vsel %vm2668_vm10, %v7003_v44, %v6444_v46  ;;  %v4743_v47 = vld [vmem:[#allocation2 + $0x181] sm:$0xff] }
 0x962   :  { %v15732_v52 = vpack.c.bf16 %v7068_v31, %v7067_v58  ;;  %5177 = vrot.lane.b32.xlu1 %v4674_v26, %s10408_s16  ;;  %5175 = vrot.lane.b32.xlu0 %v4673_v41, %s10408_s16  ;;  %v4746_v46 = vld [vmem:[#allocation2 + $0x1a1] sm:$0xff] }
 0x964   :  { %19757 = vst [vmem:[#allocation125_spill] sm:$0xff] %v15732_v52  ;;  %v7163_v10 = vunpack.c.l.bf16 %v15732_v52  ;;  %v7164_v55 = vunpack.c.h.bf16 %v15732_v52  ;;  %v6450_v62 = vpop.permute.xlu1 %6449  ;;  %9797 = vmatprep.mubr.msk.bf16.mxu1 %vm2950_vm11, %v15732_v52  ;;  %v6448_v56 = vpop.permute.xlu0 %6447  ;;  %v19830_v52 = vld [vmem:[#allocation112_spill] sm:$0xff] }
 0x965   :  { %v7070_v49 = vsel %vm2668_vm10, %v7006_v12, %v6450_v62  ;;  %v7069_v11 = vsel %vm2668_vm10, %v7005_v25, %v6448_v56  ;;  %v4816_v12 = vld [vmem:[#allocation2 + $0x18a] sm:$0xff]  ;;  %v10366_v25 = vld [vmem:[#allocation2 + $0xf8] sm:$0xff]  ;;  %v19764_v56 = vld [vmem:[#allocation43_spill] sm:$0xff] }
 0x966   :  { %v15746_v3 = vsub.f32 %v7067_v58, %v7163_v10  ;;  %v15748_v29 = vsub.f32 %v7068_v31, %v7164_v55  ;;  %v15750_v21 = vpack.c.bf16 %v7070_v49, %v7069_v11  ;;  %5429 = vrot.lane.b32.xlu1 %v15626_v37, %s10409_s17  ;;  %5427 = vrot.lane.b32.xlu0 %v15628_v0, %s10409_s17  ;;  %v19763_v10 = vld [vmem:[#allocation153_spill] sm:$0xff]  ;;  %v10369_v37 = vld [vmem:[#allocation2 + $0x108] sm:$0xff] }
 0x967   :  { %v6624_v55 = vsel %vm33_vm0, %v10366_v25, %v19763_v10  ;;  %v10367_v62 = vld [vmem:[#allocation2 + $0xf0] sm:$0xff]  ;;  %v19767_v25 = vld [vmem:[#allocation44_spill] sm:$0xff] }
 0x968   :  { %19758 = vst [vmem:[#allocation124_spill] sm:$0xff] %v15746_v3  ;;  %19759 = vst [vmem:[#allocation16_spill] sm:$0xff] %v15748_v29  ;;  %v7165_v39 = vunpack.c.l.bf16 %v15750_v21  ;;  %v7166_v35 = vunpack.c.h.bf16 %v15750_v21  ;;  %v5414_v9 = vpop.permute.xlu1 %5413  ;;  %9798 = vmatmul.mubr.msk.bf16.gmra.mrb[16].mxu1 %vm2950_vm11, %v15750_v21  ;;  %v5412_v38 = vpop.permute.xlu0 %5411  ;;  %v10375_v3 = vld [vmem:[#allocation2 + $0x120] sm:$0xff]  ;;  %v19778_v29 = vld [vmem:[#allocation45_spill] sm:$0xff] }
 0x969   :  { %19760 = vst [vmem:[#allocation15_spill] sm:$0xff] %v15750_v21  ;;  %v6627_v33 = vsel %vm33_vm0, %v10375_v3, %v19778_v29  ;;  %v19779_v3 = vld [vmem:[#allocation46_spill] sm:$0xff] }
 0x96a   :  { %v15762_v19 = vsub.f32 %v7069_v11, %v7165_v39  ;;  %v15764_v59 = vsub.f32 %v7070_v49, %v7166_v35  ;;  %5433 = vrot.lane.b32.xlu1 %v15648_v18, %s10409_s17  ;;  %5431 = vrot.lane.b32.xlu0 %v15650_v6, %s10409_s17  ;;  %v6623_v49 = vsel %vm33_vm0, %v10367_v62, %v19764_v56  ;;  %v19800_v21 = vld [vmem:[#allocation106_spill] sm:$0xff] }
 0x96b   :  { %v6630_v29 = vsel %vm33_vm0, %v10376_v13, %v19779_v3 }
 0x96c   :  { %19761 = vst [vmem:[#allocation69_spill] sm:$0xff] %v15762_v19  ;;  %19762 = vst [vmem:[#allocation68_spill] sm:$0xff] %v15764_v59  ;;  %v15772_v0 = vpop.permute.xlu1 %5417  ;;  %v15774_v26 = vpop.permute.xlu0 %5415  ;;  %v19777_v19 = vld [vmem:[#allocation101_spill] sm:$0xff] }
 0x96e   :  { %5625 = vrot.lane.b32.xlu1 %v15648_v18, %s10410_s18  ;;  %5623 = vrot.lane.b32.xlu0 %v15650_v6, %s10410_s18 }
 0x970   :  { %v5610_v41 = vpop.permute.xlu1 %5609  ;;  %v5608_v57 = vpop.permute.xlu0 %5607 }
 0x972   :  { %5629 = vrot.lane.b32.xlu1 %v4744_v42, %s10410_s18  ;;  %5627 = vrot.lane.b32.xlu0 %v4743_v47, %s10410_s18 }
 0x974   :  { %v5614_v44 = vpop.permute.xlu1 %5613  ;;  %v5612_v16 = vpop.permute.xlu0 %5611 }
 0x976   :  { %5821 = vrot.lane.b32.xlu1 %v4744_v42, %s10411_s19  ;;  %5819 = vrot.lane.b32.xlu0 %v4743_v47, %s10411_s19 }
 0x978   :  { %v5806_v18 = vpop.permute.xlu1 %5805  ;;  %v5804_v22 = vpop.permute.xlu0 %5803 }
 0x97a   :  { %5825 = vrot.lane.b32.xlu1 %v4746_v46, %s10411_s19  ;;  %5823 = vrot.lane.b32.xlu0 %v4745_v61, %s10411_s19  ;;  %v10368_v61 = vld [vmem:[#allocation2 + $0x110] sm:$0xff] }
 0x97b   :  { %v6626_v10 = vsel %vm33_vm0, %v10368_v61, %v19767_v25 }
 0x97c   :  { %v5810_v6 = vpop.permute.xlu1 %5809  ;;  %v5808_v31 = vpop.permute.xlu0 %5807 }
 0x97e   :  { %6077 = vrot.lane.b32.xlu1 %v15672_v24, %s10412_s22  ;;  %6075 = vrot.lane.b32.xlu0 %v15674_v54, %s10412_s22  ;;  %v4815_v54 = vld [vmem:[#allocation2 + $0x182] sm:$0xff] }
 0x980   :  { %v6062_v58 = vpop.permute.xlu1 %6061  ;;  %v6060_v50 = vpop.permute.xlu0 %6059 }
 0x982   :  { %6081 = vrot.lane.b32.xlu1 %v15684_v48, %s10412_s22  ;;  %6079 = vrot.lane.b32.xlu0 %v15686_v23, %s10412_s22 }
 0x984   :  { %v6066_v17 = vpop.permute.xlu1 %6065  ;;  %v6064_v34 = vpop.permute.xlu0 %6063 }
 0x986   :  { %6273 = vrot.lane.b32.xlu1 %v15684_v48, %s10413_s27  ;;  %6271 = vrot.lane.b32.xlu0 %v15686_v23, %s10413_s27  ;;  %v19765_v48 = vld [vmem:[#allocation8_spill] sm:$0xff]  ;;  %v19766_v23 = vld [vmem:[#allocation154_spill] sm:$0xff] }
 0x987   :  { %v6688_v11 = vsel %vm2278_vm4, %v6624_v55, %v19765_v48  ;;  %v6687_v39 = vsel %vm2278_vm4, %v6623_v49, %v19766_v23  ;;  %v6625_v55 = vsel %vm33_vm0, %v10369_v37, %v19768_v45  ;;  %v4817_v45 = vld [vmem:[#allocation2 + $0x19a] sm:$0xff] }
 0x988   :  { %v6258_v24 = vpop.permute.xlu1 %6257  ;;  %v6256_v32 = vpop.permute.xlu0 %6255  ;;  %v6752_v35 = vsel %vm2343_vm5, %v6688_v11, %v5414_v9  ;;  %v6751_v42 = vsel %vm2343_vm5, %v6687_v39, %v5412_v38  ;;  %v19769_v38 = vld [vmem:[#allocation10_spill] sm:$0xff]  ;;  %v19770_v11 = vld [vmem:[#allocation63_spill] sm:$0xff] }
 0x989   :  { %v6816_v62 = vsel %vm2408_vm6, %v6752_v35, %v5610_v41  ;;  %v6815_v56 = vsel %vm2408_vm6, %v6751_v42, %v5608_v57  ;;  %v6690_v48 = vsel %vm2278_vm4, %v6626_v10, %v19769_v38  ;;  %v6689_v41 = vsel %vm2278_vm4, %v6625_v55, %v19770_v11  ;;  %v4818_v39 = vld [vmem:[#allocation2 + $0x1a2] sm:$0xff] }
 0x98a   :  { %6277 = vrot.lane.b32.xlu1 %v4816_v12, %s10413_s27  ;;  %6275 = vrot.lane.b32.xlu0 %v4815_v54, %s10413_s27  ;;  %v6880_v49 = vsel %vm2473_vm7, %v6816_v62, %v5806_v18  ;;  %v6879_v9 = vsel %vm2473_vm7, %v6815_v56, %v5804_v22  ;;  %v6754_v37 = vsel %vm2343_vm5, %v6690_v48, %v15772_v0 }
 0x98b   :  { %v6944_v57 = vsel %vm2538_vm8, %v6880_v49, %v6062_v58  ;;  %v6943_v23 = vsel %vm2538_vm8, %v6879_v9, %v6060_v50  ;;  %v6753_v18 = vsel %vm2343_vm5, %v6689_v41, %v15774_v26  ;;  %v6818_v42 = vsel %vm2408_vm6, %v6754_v37, %v5614_v44  ;;  %v15862_v49 = vld [vmem:[#allocation2 + $0x1e0] sm:$0xff] }
 0x98c   :  { %v6262_v47 = vpop.permute.xlu1 %6261  ;;  %v6260_v46 = vpop.permute.xlu0 %6259  ;;  %v7008_v22 = vsel %vm2603_vm9, %v6944_v57, %v6258_v24  ;;  %v6817_v58 = vsel %vm2408_vm6, %v6753_v18, %v5612_v16  ;;  %v6882_v25 = vsel %vm2473_vm7, %v6818_v42, %v5810_v6  ;;  %v4748_v37 = vld [vmem:[#allocation2 + $0x1b9] sm:$0xff]  ;;  %v4747_v18 = vld [vmem:[#allocation2 + $0x1b1] sm:$0xff] }
 0x98d   :  { %v6881_v0 = vsel %vm2473_vm7, %v6817_v58, %v5808_v31  ;;  %v6946_v26 = vsel %vm2538_vm8, %v6882_v25, %v6066_v17  ;;  %v4750_v58 = vld [vmem:[#allocation2 + $0x1d1] sm:$0xff] }
 0x98e   :  { %6469 = vrot.lane.b32.xlu1 %v4816_v12, %s10414_s2  ;;  %6467 = vrot.lane.b32.xlu0 %v4815_v54, %s10414_s2  ;;  %v7007_v12 = vsel %vm2603_vm9, %v6943_v23, %v6256_v32  ;;  %v6945_v44 = vsel %vm2538_vm8, %v6881_v0, %v6064_v34  ;;  %v7010_v16 = vsel %vm2603_vm9, %v6946_v26, %v6262_v47 }
 0x98f   :  { %v7009_v24 = vsel %vm2603_vm9, %v6945_v44, %v6260_v46  ;;  %v15858_v46 = vld [vmem:[#allocation2 + $0x1e8] sm:$0xff] }
 0x990   :  { %v6454_v54 = vpop.permute.xlu1 %6453  ;;  %v6452_v35 = vpop.permute.xlu0 %6451  ;;  %v15904_v44 = vld [vmem:[#allocation2 + $0x1e9] sm:$0xff] }
 0x991   :  { %v7072_v50 = vsel %vm2668_vm10, %v7008_v22, %v6454_v54  ;;  %v7071_v61 = vsel %vm2668_vm10, %v7007_v12, %v6452_v35  ;;  %v4821_v22 = vld [vmem:[#allocation2 + $0x1ca] sm:$0xff] }
 0x992   :  { %v15838_v10 = vpack.c.bf16 %v7072_v50, %v7071_v61  ;;  %6473 = vrot.lane.b32.xlu1 %v4818_v39, %s10414_s2  ;;  %6471 = vrot.lane.b32.xlu0 %v4817_v45, %s10414_s2  ;;  %v15880_v39 = vld [vmem:[#allocation2 + $0x200] sm:$0xff]  ;;  %v15884_v45 = vld [vmem:[#allocation2 + $0x1f8] sm:$0xff] }
 0x994   :  { %19771 = vst [vmem:[#allocation127_spill] sm:$0xff] %v15838_v10  ;;  %v7167_v32 = vunpack.c.l.bf16 %v15838_v10  ;;  %v7168_v6 = vunpack.c.h.bf16 %v15838_v10  ;;  %v6458_v62 = vpop.permute.xlu1 %6457  ;;  %9801 = vmatprep.mubr.msk.bf16.mxu1 %vm2950_vm11, %v15838_v10  ;;  %v6456_v31 = vpop.permute.xlu0 %6455  ;;  %v10387_v10 = vld [vmem:[#allocation2 + $0x1c8] sm:$0xff] }
 0x995   :  { %v7074_v56 = vsel %vm2668_vm10, %v7010_v16, %v6458_v62  ;;  %v7073_v55 = vsel %vm2668_vm10, %v7009_v24, %v6456_v31  ;;  %v15906_v16 = vld [vmem:[#allocation2 + $0x1e1] sm:$0xff] }
 0x996   :  { %v15852_v17 = vsub.f32 %v7071_v61, %v7167_v32  ;;  %v15854_v34 = vsub.f32 %v7072_v50, %v7168_v6  ;;  %v15856_v47 = vpack.c.bf16 %v7074_v56, %v7073_v55  ;;  %5181 = vrot.lane.b32.xlu1 %v15858_v46, %s10408_s16  ;;  %5179 = vrot.lane.b32.xlu0 %v15862_v49, %s10408_s16  ;;  %v4749_v50 = vld [vmem:[#allocation2 + $0x1c9] sm:$0xff]  ;;  %v15920_v31 = vld [vmem:[#allocation2 + $0x201] sm:$0xff] }
 0x998   :  { %19772 = vst [vmem:[#allocation126_spill] sm:$0xff] %v15852_v17  ;;  %19773 = vst [vmem:[#allocation18_spill] sm:$0xff] %v15854_v34  ;;  %v7169_v38 = vunpack.c.l.bf16 %v15856_v47  ;;  %v7170_v48 = vunpack.c.h.bf16 %v15856_v47  ;;  %v15870_v11 = vpop.permute.xlu1 %5165  ;;  %9802 = vmatmul.mubr.msk.bf16.gmra.mrb[20].mxu1 %vm2950_vm11, %v15856_v47  ;;  %v15874_v41 = vpop.permute.xlu0 %5163  ;;  %v15934_v34 = vld [vmem:[#allocation2 + $0x1ea] sm:$0xff] }
 0x999   :  { %19774 = vst [vmem:[#allocation17_spill] sm:$0xff] %v15856_v47 }
 0x99a   :  { %v15876_v57 = vsub.f32 %v7073_v55, %v7169_v38  ;;  %v15878_v23 = vsub.f32 %v7074_v56, %v7170_v48  ;;  %5185 = vrot.lane.b32.xlu1 %v15880_v39, %s10408_s16  ;;  %5183 = vrot.lane.b32.xlu0 %v15884_v45, %s10408_s16  ;;  %v15922_v56 = vld [vmem:[#allocation2 + $0x1f9] sm:$0xff] }
 0x99b   :  { %v4820_v55 = vld [vmem:[#allocation2 + $0x1ba] sm:$0xff]  ;;  %v4819_v38 = vld [vmem:[#allocation2 + $0x1b2] sm:$0xff] }
 0x99c   :  { %19775 = vst [vmem:[#allocation71_spill] sm:$0xff] %v15876_v57  ;;  %19776 = vst [vmem:[#allocation70_spill] sm:$0xff] %v15878_v23  ;;  %v15890_v12 = vpop.permute.xlu1 %5169  ;;  %v15892_v54 = vpop.permute.xlu0 %5167 }
 0x99d   :  { %v6694_v13 = vsel %vm2278_vm4, %v6630_v29, %v15890_v12  ;;  %v16014_v29 = vld [vmem:[#allocation2 + $0x210] sm:$0xff] }
 0x99e   :  { %5437 = vrot.lane.b32.xlu1 %v4748_v37, %s10409_s17  ;;  %5435 = vrot.lane.b32.xlu0 %v4747_v18, %s10409_s17 }
 0x9a0   :  { %v5422_v35 = vpop.permute.xlu1 %5421  ;;  %v5420_v42 = vpop.permute.xlu0 %5419 }
 0x9a2   :  { %5441 = vrot.lane.b32.xlu1 %v4750_v58, %s10409_s17  ;;  %5439 = vrot.lane.b32.xlu0 %v4749_v50, %s10409_s17 }
 0x9a4   :  { %v15898_v61 = vpop.permute.xlu1 %5425  ;;  %v15900_v25 = vpop.permute.xlu0 %5423 }
 0x9a6   :  { %5633 = vrot.lane.b32.xlu1 %v4750_v58, %s10410_s18  ;;  %5631 = vrot.lane.b32.xlu0 %v4749_v50, %s10410_s18  ;;  %v4822_v50 = vld [vmem:[#allocation2 + $0x1d2] sm:$0xff] }
 0x9a8   :  { %v5618_v0 = vpop.permute.xlu1 %5617  ;;  %v5616_v26 = vpop.permute.xlu0 %5615 }
 0x9aa   :  { %5637 = vrot.lane.b32.xlu1 %v15904_v44, %s10410_s18  ;;  %5635 = vrot.lane.b32.xlu0 %v15906_v16, %s10410_s18 }
 0x9ac   :  { %v15912_v24 = vpop.permute.xlu1 %5621  ;;  %v15914_v32 = vpop.permute.xlu0 %5619 }
 0x9ae   :  { %5829 = vrot.lane.b32.xlu1 %v15904_v44, %s10411_s19  ;;  %5827 = vrot.lane.b32.xlu0 %v15906_v16, %s10411_s19 }
 0x9b0   :  { %v5814_v6 = vpop.permute.xlu1 %5813  ;;  %v5812_v62 = vpop.permute.xlu0 %5811 }
 0x9b2   :  { %5833 = vrot.lane.b32.xlu1 %v15920_v31, %s10411_s19  ;;  %5831 = vrot.lane.b32.xlu0 %v15922_v56, %s10411_s19 }
 0x9b4   :  { %v5818_v48 = vpop.permute.xlu1 %5817  ;;  %v5816_v37 = vpop.permute.xlu0 %5815 }
 0x9b6   :  { %6085 = vrot.lane.b32.xlu1 %v4820_v55, %s10412_s22  ;;  %6083 = vrot.lane.b32.xlu0 %v4819_v38, %s10412_s22  ;;  %v15936_v55 = vld [vmem:[#allocation2 + $0x1e2] sm:$0xff] }
 0x9b7   :  { %v10374_v38 = vld [vmem:[#allocation2 + $0x128] sm:$0xff] }
 0x9b8   :  { %v6070_v18 = vpop.permute.xlu1 %6069  ;;  %v6068_v58 = vpop.permute.xlu0 %6067  ;;  %v6628_v59 = vsel %vm33_vm0, %v10374_v38, %v19777_v19 }
 0x9ba   :  { %6089 = vrot.lane.b32.xlu1 %v4822_v50, %s10412_s22  ;;  %6087 = vrot.lane.b32.xlu0 %v4821_v22, %s10412_s22 }
 0x9bc   :  { %v6074_v9 = vpop.permute.xlu1 %6073  ;;  %v6072_v57 = vpop.permute.xlu0 %6071 }
 0x9be   :  { %6281 = vrot.lane.b32.xlu1 %v4822_v50, %s10413_s27  ;;  %6279 = vrot.lane.b32.xlu0 %v4821_v22, %s10413_s27  ;;  %v6692_v22 = vsel %vm2278_vm4, %v6628_v59, %v15870_v11  ;;  %v6691_v50 = vsel %vm2278_vm4, %v6627_v33, %v15874_v41  ;;  %v6629_v59 = vsel %vm33_vm0, %v10377_v28, %v19780_v30 }
 0x9bf   :  { %v6756_v60 = vsel %vm2343_vm5, %v6692_v22, %v5422_v35  ;;  %v6755_v19 = vsel %vm2343_vm5, %v6691_v50, %v5420_v42  ;;  %v6758_v28 = vsel %vm2343_vm5, %v6694_v13, %v15898_v61  ;;  %v15982_v61 = vld [vmem:[#allocation2 + $0x202] sm:$0xff] }
 0x9c0   :  { %v6266_v23 = vpop.permute.xlu1 %6265  ;;  %v6264_v17 = vpop.permute.xlu0 %6263  ;;  %v6820_v2 = vsel %vm2408_vm6, %v6756_v60, %v5618_v0  ;;  %v6819_v53 = vsel %vm2408_vm6, %v6755_v19, %v5616_v26  ;;  %v6693_v60 = vsel %vm2278_vm4, %v6629_v59, %v15892_v54  ;;  %v6822_v12 = vsel %vm2408_vm6, %v6758_v28, %v15912_v24  ;;  %v16028_v28 = vld [vmem:[#allocation2 + $0x230] sm:$0xff]  ;;  %v19788_v59 = vld [vmem:[#allocation47_spill] sm:$0xff] }
 0x9c1   :  { %v6884_v33 = vsel %vm2473_vm7, %v6820_v2, %v5814_v6  ;;  %v6883_v11 = vsel %vm2473_vm7, %v6819_v53, %v5812_v62  ;;  %v6757_v53 = vsel %vm2343_vm5, %v6693_v60, %v15900_v25  ;;  %v15984_v62 = vld [vmem:[#allocation2 + $0x1fa] sm:$0xff] }
 0x9c2   :  { %6285 = vrot.lane.b32.xlu1 %v15934_v34, %s10413_s27  ;;  %6283 = vrot.lane.b32.xlu0 %v15936_v55, %s10413_s27  ;;  %v6948_v41 = vsel %vm2538_vm8, %v6884_v33, %v6070_v18  ;;  %v6947_v30 = vsel %vm2538_vm8, %v6883_v11, %v6068_v58  ;;  %v6821_v54 = vsel %vm2408_vm6, %v6757_v53, %v15914_v32  ;;  %v16032_v53 = vld [vmem:[#allocation2 + $0x228] sm:$0xff] }
 0x9c3   :  { %v7012_v2 = vsel %vm2603_vm9, %v6948_v41, %v6266_v23  ;;  %v7011_v35 = vsel %vm2603_vm9, %v6947_v30, %v6264_v17  ;;  %v6886_v23 = vsel %vm2473_vm7, %v6822_v12, %v5818_v48  ;;  %v6885_v17 = vsel %vm2473_vm7, %v6821_v54, %v5816_v37 }
 0x9c4   :  { %v6270_v38 = vpop.permute.xlu1 %6269  ;;  %v6268_v14 = vpop.permute.xlu0 %6267  ;;  %v6950_v24 = vsel %vm2538_vm8, %v6886_v23, %v6074_v9  ;;  %v6949_v32 = vsel %vm2538_vm8, %v6885_v17, %v6072_v57  ;;  %v16054_v23 = vld [vmem:[#allocation2 + $0x219] sm:$0xff] }
 0x9c5   :  { %v7014_v18 = vsel %vm2603_vm9, %v6950_v24, %v6270_v38  ;;  %v7013_v58 = vsel %vm2603_vm9, %v6949_v32, %v6268_v14  ;;  %v16010_v14 = vld [vmem:[#allocation2 + $0x218] sm:$0xff] }
 0x9c6   :  { %6477 = vrot.lane.b32.xlu1 %v15934_v34, %s10414_s2  ;;  %6475 = vrot.lane.b32.xlu0 %v15936_v55, %s10414_s2  ;;  %v16066_v32 = vld [vmem:[#allocation2 + $0x231] sm:$0xff] }
 0x9c8   :  { %v6462_v42 = vpop.permute.xlu1 %6461  ;;  %v6460_v0 = vpop.permute.xlu0 %6459 }
 0x9c9   :  { %v7076_v26 = vsel %vm2668_vm10, %v7012_v2, %v6462_v42  ;;  %v7075_v6 = vsel %vm2668_vm10, %v7011_v35, %v6460_v0 }
 0x9ca   :  { %v15988_v25 = vpack.c.bf16 %v7076_v26, %v7075_v6  ;;  %6481 = vrot.lane.b32.xlu1 %v15982_v61, %s10414_s2  ;;  %6479 = vrot.lane.b32.xlu0 %v15984_v62, %s10414_s2 }
 0x9cc   :  { %19781 = vst [vmem:[#allocation19_spill] sm:$0xff] %v15988_v25  ;;  %v7171_v48 = vunpack.c.l.bf16 %v15988_v25  ;;  %v7172_v37 = vunpack.c.h.bf16 %v15988_v25  ;;  %v6466_v22 = vpop.permute.xlu1 %6465  ;;  %9805 = vmatprep.mubr.msk.bf16.mxu1 %vm2950_vm11, %v15988_v25  ;;  %v6464_v50 = vpop.permute.xlu0 %6463 }
 0x9cd   :  { %v7078_v19 = vsel %vm2668_vm10, %v7014_v18, %v6466_v22  ;;  %v7077_v3 = vsel %vm2668_vm10, %v7013_v58, %v6464_v50  ;;  %v16068_v18 = vld [vmem:[#allocation2 + $0x229] sm:$0xff] }
 0x9ce   :  { %v16004_v9 = vsub.f32 %v7075_v6, %v7171_v48  ;;  %v16006_v57 = vsub.f32 %v7076_v26, %v7172_v37  ;;  %v16008_v38 = vpack.c.bf16 %v7078_v19, %v7077_v3  ;;  %5189 = vrot.lane.b32.xlu1 %v16010_v14, %s10408_s16  ;;  %5187 = vrot.lane.b32.xlu0 %v16014_v29, %s10408_s16 }
 0x9d0   :  { %19782 = vst [vmem:[#allocation129_spill] sm:$0xff] %v16004_v9  ;;  %19783 = vst [vmem:[#allocation73_spill] sm:$0xff] %v16006_v57  ;;  %v7173_v33 = vunpack.c.l.bf16 %v16008_v38  ;;  %v7174_v11 = vunpack.c.h.bf16 %v16008_v38  ;;  %v5174_v13 = vpop.permute.xlu1 %5173  ;;  %9806 = vmatmul.mubr.msk.bf16.gmra.mrb[24].mxu1 %vm2950_vm11, %v16008_v38  ;;  %v5172_v60 = vpop.permute.xlu0 %5171 }
 0x9d1   :  { %19784 = vst [vmem:[#allocation72_spill] sm:$0xff] %v16008_v38  ;;  %v19790_v38 = vld [vmem:[#allocation104_spill] sm:$0xff] }
 0x9d2   :  { %v16024_v41 = vsub.f32 %v7077_v3, %v7173_v33  ;;  %v16026_v30 = vsub.f32 %v7078_v19, %v7174_v11  ;;  %5193 = vrot.lane.b32.xlu1 %v16028_v28, %s10408_s16  ;;  %5191 = vrot.lane.b32.xlu0 %v16032_v53, %s10408_s16  ;;  %v16086_v33 = vld [vmem:[#allocation2 + $0x21a] sm:$0xff] }
 0x9d3   :  { %v19787_v11 = vld [vmem:[#allocation103_spill] sm:$0xff] }
 0x9d4   :  { %19785 = vst [vmem:[#allocation21_spill] sm:$0xff] %v16024_v41  ;;  %19786 = vst [vmem:[#allocation131_spill] sm:$0xff] %v16026_v30  ;;  %v16038_v35 = vpop.permute.xlu1 %5177  ;;  %v16040_v42 = vpop.permute.xlu0 %5175  ;;  %v6632_v2 = vsel %vm33_vm0, %v15536_v5, %v19787_v11  ;;  %v6631_v41 = vsel %vm33_vm0, %v15540_v7, %v19788_v59  ;;  %v19789_v11 = vld [vmem:[#allocation48_spill] sm:$0xff] }
 0x9d5   :  { %v6634_v7 = vsel %vm33_vm0, %v15548_v43, %v19789_v11 }
 0x9d6   :  { %5445 = vrot.lane.b32.xlu1 %v15904_v44, %s10409_s17  ;;  %5443 = vrot.lane.b32.xlu0 %v15906_v16, %s10409_s17  ;;  %v16056_v16 = vld [vmem:[#allocation2 + $0x211] sm:$0xff]  ;;  %v6698_v43 = vsel %vm2278_vm4, %v6634_v7, %v16038_v35 }
 0x9d8   :  { %v5430_v0 = vpop.permute.xlu1 %5429  ;;  %v5428_v12 = vpop.permute.xlu0 %5427 }
 0x9da   :  { %5449 = vrot.lane.b32.xlu1 %v15920_v31, %s10409_s17  ;;  %5447 = vrot.lane.b32.xlu0 %v15922_v56, %s10409_s17 }
 0x9dc   :  { %v5434_v54 = vpop.permute.xlu1 %5433  ;;  %v5432_v26 = vpop.permute.xlu0 %5431 }
 0x9de   :  { %5641 = vrot.lane.b32.xlu1 %v15920_v31, %s10410_s18  ;;  %5639 = vrot.lane.b32.xlu0 %v15922_v56, %s10410_s18 }
 0x9e0   :  { %v5626_v44 = vpop.permute.xlu1 %5625  ;;  %v5624_v6 = vpop.permute.xlu0 %5623 }
 0x9e2   :  { %5645 = vrot.lane.b32.xlu1 %v16054_v23, %s10410_s18  ;;  %5643 = vrot.lane.b32.xlu0 %v16056_v16, %s10410_s18 }
 0x9e4   :  { %v5630_v17 = vpop.permute.xlu1 %5629  ;;  %v5628_v24 = vpop.permute.xlu0 %5627 }
 0x9e6   :  { %5837 = vrot.lane.b32.xlu1 %v16054_v23, %s10411_s19  ;;  %5835 = vrot.lane.b32.xlu0 %v16056_v16, %s10411_s19 }
 0x9e8   :  { %v5822_v31 = vpop.permute.xlu1 %5821  ;;  %v5820_v56 = vpop.permute.xlu0 %5819 }
 0x9ea   :  { %5841 = vrot.lane.b32.xlu1 %v16066_v32, %s10411_s19  ;;  %5839 = vrot.lane.b32.xlu0 %v16068_v18, %s10411_s19 }
 0x9ec   :  { %v5826_v58 = vpop.permute.xlu1 %5825  ;;  %v5824_v48 = vpop.permute.xlu0 %5823 }
 0x9ee   :  { %6093 = vrot.lane.b32.xlu1 %v15934_v34, %s10412_s22  ;;  %6091 = vrot.lane.b32.xlu0 %v15936_v55, %s10412_s22  ;;  %v16088_v55 = vld [vmem:[#allocation2 + $0x212] sm:$0xff] }
 0x9f0   :  { %v6078_v37 = vpop.permute.xlu1 %6077  ;;  %v6076_v22 = vpop.permute.xlu0 %6075 }
 0x9f2   :  { %6097 = vrot.lane.b32.xlu1 %v15982_v61, %s10412_s22  ;;  %6095 = vrot.lane.b32.xlu0 %v15984_v62, %s10412_s22 }
 0x9f4   :  { %v6082_v50 = vpop.permute.xlu1 %6081  ;;  %v6080_v19 = vpop.permute.xlu0 %6079 }
 0x9f6   :  { %6289 = vrot.lane.b32.xlu1 %v15982_v61, %s10413_s27  ;;  %6287 = vrot.lane.b32.xlu0 %v15984_v62, %s10413_s27  ;;  %v6696_v61 = vsel %vm2278_vm4, %v6632_v2, %v5174_v13  ;;  %v6695_v62 = vsel %vm2278_vm4, %v6631_v41, %v5172_v60  ;;  %v6633_v13 = vsel %vm33_vm0, %v15552_v40, %v19790_v38 }
 0x9f7   :  { %v6760_v30 = vsel %vm2343_vm5, %v6696_v61, %v5430_v0  ;;  %v6759_v9 = vsel %vm2343_vm5, %v6695_v62, %v5428_v12  ;;  %v6762_v38 = vsel %vm2343_vm5, %v6698_v43, %v5434_v54 }
 0x9f8   :  { %v6274_v34 = vpop.permute.xlu1 %6273  ;;  %v6272_v3 = vpop.permute.xlu0 %6271  ;;  %v6824_v59 = vsel %vm2408_vm6, %v6760_v30, %v5626_v44  ;;  %v6823_v1 = vsel %vm2408_vm6, %v6759_v9, %v5624_v6  ;;  %v6697_v9 = vsel %vm2278_vm4, %v6633_v13, %v16040_v42  ;;  %v6826_v6 = vsel %vm2408_vm6, %v6762_v38, %v5630_v17  ;;  %v16178_v38 = vld [vmem:[#allocation2 + $0x260] sm:$0xff]  ;;  %v19797_v13 = vld [vmem:[#allocation105_spill] sm:$0xff] }
 0x9f9   :  { %v6888_v60 = vsel %vm2473_vm7, %v6824_v59, %v5822_v31  ;;  %v6887_v41 = vsel %vm2473_vm7, %v6823_v1, %v5820_v56  ;;  %v6761_v1 = vsel %vm2343_vm5, %v6697_v9, %v5432_v26  ;;  %v16132_v56 = vld [vmem:[#allocation2 + $0x232] sm:$0xff]  ;;  %v6890_v54 = vsel %vm2473_vm7, %v6826_v6, %v5826_v58  ;;  %v16164_v59 = vld [vmem:[#allocation2 + $0x240] sm:$0xff] }
 0x9fa   :  { %6293 = vrot.lane.b32.xlu1 %v16086_v33, %s10413_s27  ;;  %6291 = vrot.lane.b32.xlu0 %v16088_v55, %s10413_s27  ;;  %v6952_v30 = vsel %vm2538_vm8, %v6888_v60, %v6078_v37  ;;  %v6951_v40 = vsel %vm2538_vm8, %v6887_v41, %v6076_v22  ;;  %v6825_v35 = vsel %vm2408_vm6, %v6761_v1, %v5628_v24  ;;  %v16134_v37 = vld [vmem:[#allocation2 + $0x22a] sm:$0xff]  ;;  %v16182_v1 = vld [vmem:[#allocation2 + $0x258] sm:$0xff] }
 0x9fb   :  { %v7016_v2 = vsel %vm2603_vm9, %v6952_v30, %v6274_v34  ;;  %v7015_v0 = vsel %vm2603_vm9, %v6951_v40, %v6272_v3  ;;  %v6889_v26 = vsel %vm2473_vm7, %v6825_v35, %v5824_v48  ;;  %v6954_v17 = vsel %vm2538_vm8, %v6890_v54, %v6082_v50  ;;  %v16210_v54 = vld [vmem:[#allocation2 + $0x241] sm:$0xff] }
 0x9fc   :  { %v6278_v57 = vpop.permute.xlu1 %6277  ;;  %v6276_v5 = vpop.permute.xlu0 %6275  ;;  %v6953_v24 = vsel %vm2538_vm8, %v6889_v26, %v6080_v19 }
 0x9fd   :  { %v7018_v34 = vsel %vm2603_vm9, %v6954_v17, %v6278_v57  ;;  %v7017_v3 = vsel %vm2603_vm9, %v6953_v24, %v6276_v5  ;;  %v16160_v5 = vld [vmem:[#allocation2 + $0x248] sm:$0xff] }
 0x9fe   :  { %6485 = vrot.lane.b32.xlu1 %v16086_v33, %s10414_s2  ;;  %6483 = vrot.lane.b32.xlu0 %v16088_v55, %s10414_s2  ;;  %v16220_v24 = vld [vmem:[#allocation2 + $0x261] sm:$0xff] }
 0xa00   :  { %v6470_v12 = vpop.permute.xlu1 %6469  ;;  %v6468_v44 = vpop.permute.xlu0 %6467 }
 0xa01   :  { %v7080_v42 = vsel %vm2668_vm10, %v7016_v2, %v6470_v12  ;;  %v7079_v31 = vsel %vm2668_vm10, %v7015_v0, %v6468_v44  ;;  %v16242_v2 = vld [vmem:[#allocation2 + $0x242] sm:$0xff] }
 0xa02   :  { %v16138_v22 = vpack.c.bf16 %v7080_v42, %v7079_v31  ;;  %6489 = vrot.lane.b32.xlu1 %v16132_v56, %s10414_s2  ;;  %6487 = vrot.lane.b32.xlu0 %v16134_v37, %s10414_s2 }
 0xa04   :  { %19791 = vst [vmem:[#allocation75_spill] sm:$0xff] %v16138_v22  ;;  %v7175_v58 = vunpack.c.l.bf16 %v16138_v22  ;;  %v7176_v48 = vunpack.c.h.bf16 %v16138_v22  ;;  %v6474_v61 = vpop.permute.xlu1 %6473  ;;  %9809 = vmatprep.mubr.msk.bf16.mxu1 %vm2950_vm11, %v16138_v22  ;;  %v6472_v62 = vpop.permute.xlu0 %6471 }
 0xa05   :  { %v7082_v11 = vsel %vm2668_vm10, %v7018_v34, %v6474_v61  ;;  %v7081_v7 = vsel %vm2668_vm10, %v7017_v3, %v6472_v62  ;;  %v16222_v34 = vld [vmem:[#allocation2 + $0x259] sm:$0xff] }
 0xa06   :  { %v16154_v50 = vsub.f32 %v7079_v31, %v7175_v58  ;;  %v16156_v19 = vsub.f32 %v7080_v42, %v7176_v48  ;;  %v16158_v57 = vpack.c.bf16 %v7082_v11, %v7081_v7  ;;  %5197 = vrot.lane.b32.xlu1 %v16160_v5, %s10408_s16  ;;  %5195 = vrot.lane.b32.xlu0 %v16164_v59, %s10408_s16  ;;  %v16208_v31 = vld [vmem:[#allocation2 + $0x249] sm:$0xff] }
 0xa08   :  { %19792 = vst [vmem:[#allocation74_spill] sm:$0xff] %v16154_v50  ;;  %19793 = vst [vmem:[#allocation23_spill] sm:$0xff] %v16156_v19  ;;  %v7177_v60 = vunpack.c.l.bf16 %v16158_v57  ;;  %v7178_v41 = vunpack.c.h.bf16 %v16158_v57  ;;  %v5182_v43 = vpop.permute.xlu1 %5181  ;;  %9810 = vmatmul.mubr.msk.bf16.gmra.mrb[28].mxu1 %vm2950_vm11, %v16158_v57  ;;  %v5180_v9 = vpop.permute.xlu0 %5179 }
 0xa09   :  { %19794 = vst [vmem:[#allocation133_spill] sm:$0xff] %v16158_v57 }
 0xa0a   :  { %v16174_v30 = vsub.f32 %v7081_v7, %v7177_v60  ;;  %v16176_v40 = vsub.f32 %v7082_v11, %v7178_v41  ;;  %5201 = vrot.lane.b32.xlu1 %v16178_v38, %s10408_s16  ;;  %5199 = vrot.lane.b32.xlu0 %v16182_v1, %s10408_s16  ;;  %v4675_v7 = vld [vmem:[#allocation2 + $0x1b0] sm:$0xff] }
 0xa0b   :  { %v16240_v41 = vld [vmem:[#allocation2 + $0x24a] sm:$0xff] }
 0xa0c   :  { %19795 = vst [vmem:[#allocation76_spill] sm:$0xff] %v16174_v30  ;;  %19796 = vst [vmem:[#allocation24_spill] sm:$0xff] %v16176_v40  ;;  %v16188_v0 = vpop.permute.xlu1 %5185  ;;  %v16190_v12 = vpop.permute.xlu0 %5183  ;;  %v19798_v40 = vld [vmem:[#allocation49_spill] sm:$0xff] }
 0xa0d   :  { %v6635_v50 = vsel %vm33_vm0, %v4675_v7, %v19798_v40 }
 0xa0e   :  { %5453 = vrot.lane.b32.xlu1 %v16054_v23, %s10409_s17  ;;  %5451 = vrot.lane.b32.xlu0 %v16056_v16, %s10409_s17 }
 0xa10   :  { %v5438_v44 = vpop.permute.xlu1 %5437  ;;  %v5436_v6 = vpop.permute.xlu0 %5435 }
 0xa12   :  { %5457 = vrot.lane.b32.xlu1 %v16066_v32, %s10409_s17  ;;  %5455 = vrot.lane.b32.xlu0 %v16068_v18, %s10409_s17 }
 0xa14   :  { %v16200_v35 = vpop.permute.xlu1 %5441  ;;  %v16202_v42 = vpop.permute.xlu0 %5439 }
 0xa16   :  { %5649 = vrot.lane.b32.xlu1 %v16066_v32, %s10410_s18  ;;  %5647 = vrot.lane.b32.xlu0 %v16068_v18, %s10410_s18 }
 0xa18   :  { %v5634_v23 = vpop.permute.xlu1 %5633  ;;  %v5632_v16 = vpop.permute.xlu0 %5631 }
 0xa1a   :  { %5653 = vrot.lane.b32.xlu1 %v16208_v31, %s10410_s18  ;;  %5651 = vrot.lane.b32.xlu0 %v16210_v54, %s10410_s18 }
 0xa1c   :  { %v5638_v26 = vpop.permute.xlu1 %5637  ;;  %v5636_v17 = vpop.permute.xlu0 %5635 }
 0xa1e   :  { %5845 = vrot.lane.b32.xlu1 %v16208_v31, %s10411_s19  ;;  %5843 = vrot.lane.b32.xlu0 %v16210_v54, %s10411_s19 }
 0xa20   :  { %v5830_v32 = vpop.permute.xlu1 %5829  ;;  %v5828_v18 = vpop.permute.xlu0 %5827 }
 0xa22   :  { %5849 = vrot.lane.b32.xlu1 %v16220_v24, %s10411_s19  ;;  %5847 = vrot.lane.b32.xlu0 %v16222_v34, %s10411_s19 }
 0xa24   :  { %v5834_v3 = vpop.permute.xlu1 %5833  ;;  %v5832_v58 = vpop.permute.xlu0 %5831 }
 0xa26   :  { %6101 = vrot.lane.b32.xlu1 %v16086_v33, %s10412_s22  ;;  %6099 = vrot.lane.b32.xlu0 %v16088_v55, %s10412_s22  ;;  %v4676_v33 = vld [vmem:[#allocation2 + $0x1b8] sm:$0xff] }
 0xa27   :  { %v6636_v30 = vsel %vm33_vm0, %v4676_v33, %v19797_v13  ;;  %v10386_v13 = vld [vmem:[#allocation2 + $0x1d0] sm:$0xff]  ;;  %v19799_v33 = vld [vmem:[#allocation50_spill] sm:$0xff] }
 0xa28   :  { %v6086_v48 = vpop.permute.xlu1 %6085  ;;  %v6084_v61 = vpop.permute.xlu0 %6083  ;;  %v6638_v40 = vsel %vm33_vm0, %v10386_v13, %v19799_v33 }
 0xa2a   :  { %6105 = vrot.lane.b32.xlu1 %v16132_v56, %s10412_s22  ;;  %6103 = vrot.lane.b32.xlu0 %v16134_v37, %s10412_s22 }
 0xa2c   :  { %v6090_v62 = vpop.permute.xlu1 %6089  ;;  %v6088_v11 = vpop.permute.xlu0 %6087 }
 0xa2e   :  { %6297 = vrot.lane.b32.xlu1 %v16132_v56, %s10413_s27  ;;  %6295 = vrot.lane.b32.xlu0 %v16134_v37, %s10413_s27  ;;  %v6700_v56 = vsel %vm2278_vm4, %v6636_v30, %v5182_v43  ;;  %v6699_v37 = vsel %vm2278_vm4, %v6635_v50, %v5180_v9  ;;  %v6637_v43 = vsel %vm33_vm0, %v10387_v10, %v19800_v21 }
 0xa2f   :  { %v6764_v19 = vsel %vm2343_vm5, %v6700_v56, %v5438_v44  ;;  %v6763_v57 = vsel %vm2343_vm5, %v6699_v37, %v5436_v6  ;;  %v6702_v30 = vsel %vm2278_vm4, %v6638_v40, %v16188_v0 }
 0xa30   :  { %v6282_v60 = vpop.permute.xlu1 %6281  ;;  %v6280_v55 = vpop.permute.xlu0 %6279  ;;  %v6828_v7 = vsel %vm2408_vm6, %v6764_v19, %v5634_v23  ;;  %v6827_v47 = vsel %vm2408_vm6, %v6763_v57, %v5632_v16  ;;  %v6701_v19 = vsel %vm2278_vm4, %v6637_v43, %v16190_v12  ;;  %v6766_v10 = vsel %vm2343_vm5, %v6702_v30, %v16200_v35  ;;  %v16286_v35 = vld [vmem:[#allocation2 + $0x25a] sm:$0xff] }
 0xa31   :  { %v6892_v50 = vsel %vm2473_vm7, %v6828_v7, %v5830_v32  ;;  %v6891_v9 = vsel %vm2473_vm7, %v6827_v47, %v5828_v18  ;;  %v6765_v47 = vsel %vm2343_vm5, %v6701_v19, %v16202_v42  ;;  %v6830_v0 = vsel %vm2408_vm6, %v6766_v10, %v5638_v26  ;;  %v16316_v7 = vld [vmem:[#allocation2 + $0x270] sm:$0xff]  ;;  %v19808_v43 = vld [vmem:[#allocation51_spill] sm:$0xff] }
 0xa32   :  { %6301 = vrot.lane.b32.xlu1 %v16240_v41, %s10413_s27  ;;  %6299 = vrot.lane.b32.xlu0 %v16242_v2, %s10413_s27  ;;  %v6956_v57 = vsel %vm2538_vm8, %v6892_v50, %v6086_v48  ;;  %v6955_v21 = vsel %vm2538_vm8, %v6891_v9, %v6084_v61  ;;  %v6829_v12 = vsel %vm2408_vm6, %v6765_v47, %v5636_v17  ;;  %v16284_v48 = vld [vmem:[#allocation2 + $0x262] sm:$0xff]  ;;  %v16330_v10 = vld [vmem:[#allocation2 + $0x290] sm:$0xff] }
 0xa33   :  { %v7020_v44 = vsel %vm2603_vm9, %v6956_v57, %v6282_v60  ;;  %v7019_v6 = vsel %vm2603_vm9, %v6955_v21, %v6280_v55  ;;  %v6894_v42 = vsel %vm2473_vm7, %v6830_v0, %v5834_v3  ;;  %v6893_v61 = vsel %vm2473_vm7, %v6829_v12, %v5832_v58  ;;  %v16334_v47 = vld [vmem:[#allocation2 + $0x288] sm:$0xff] }
 0xa34   :  { %v6286_v22 = vpop.permute.xlu1 %6285  ;;  %v6284_v25 = vpop.permute.xlu0 %6283  ;;  %v6958_v26 = vsel %vm2538_vm8, %v6894_v42, %v6090_v62  ;;  %v6957_v17 = vsel %vm2538_vm8, %v6893_v61, %v6088_v11  ;;  %v16356_v42 = vld [vmem:[#allocation2 + $0x279] sm:$0xff] }
 0xa35   :  { %v7022_v55 = vsel %vm2603_vm9, %v6958_v26, %v6286_v22  ;;  %v7021_v56 = vsel %vm2603_vm9, %v6957_v17, %v6284_v25  ;;  %v16312_v25 = vld [vmem:[#allocation2 + $0x278] sm:$0xff] }
 0xa36   :  { %6493 = vrot.lane.b32.xlu1 %v16240_v41, %s10414_s2  ;;  %6491 = vrot.lane.b32.xlu0 %v16242_v2, %s10414_s2  ;;  %v16368_v17 = vld [vmem:[#allocation2 + $0x291] sm:$0xff] }
 0xa38   :  { %v6478_v23 = vpop.permute.xlu1 %6477  ;;  %v6476_v16 = vpop.permute.xlu0 %6475 }
 0xa39   :  { %v7084_v32 = vsel %vm2668_vm10, %v7020_v44, %v6478_v23  ;;  %v7083_v18 = vsel %vm2668_vm10, %v7019_v6, %v6476_v16 }
 0xa3a   :  { %v16290_v60 = vpack.c.bf16 %v7084_v32, %v7083_v18  ;;  %6497 = vrot.lane.b32.xlu1 %v16284_v48, %s10414_s2  ;;  %6495 = vrot.lane.b32.xlu0 %v16286_v35, %s10414_s2 }
 0xa3c   :  { %19801 = vst [vmem:[#allocation134_spill] sm:$0xff] %v16290_v60  ;;  %v7179_v3 = vunpack.c.l.bf16 %v16290_v60  ;;  %v7180_v58 = vunpack.c.h.bf16 %v16290_v60  ;;  %v6482_v37 = vpop.permute.xlu1 %6481  ;;  %9813 = vmatprep.mubr.msk.bf16.mxu1 %vm2950_vm11, %v16290_v60  ;;  %v6480_v13 = vpop.permute.xlu0 %6479  ;;  %v19810_v60 = vld [vmem:[#allocation108_spill] sm:$0xff] }
 0xa3d   :  { %v7086_v33 = vsel %vm2668_vm10, %v7022_v55, %v6482_v37  ;;  %v7085_v40 = vsel %vm2668_vm10, %v7021_v56, %v6480_v13  ;;  %v16370_v55 = vld [vmem:[#allocation2 + $0x289] sm:$0xff] }
 0xa3e   :  { %v16306_v62 = vsub.f32 %v7083_v18, %v7179_v3  ;;  %v16308_v11 = vsub.f32 %v7084_v32, %v7180_v58  ;;  %v16310_v22 = vpack.c.bf16 %v7086_v33, %v7085_v40  ;;  %5205 = vrot.lane.b32.xlu1 %v16312_v25, %s10408_s16  ;;  %5203 = vrot.lane.b32.xlu0 %v16316_v7, %s10408_s16 }
 0xa40   :  { %19802 = vst [vmem:[#allocation77_spill] sm:$0xff] %v16306_v62  ;;  %19803 = vst [vmem:[#allocation25_spill] sm:$0xff] %v16308_v11  ;;  %v7181_v50 = vunpack.c.l.bf16 %v16310_v22  ;;  %v7182_v9 = vunpack.c.h.bf16 %v16310_v22  ;;  %v5190_v30 = vpop.permute.xlu1 %5189  ;;  %9814 = vmatmul.mubr.msk.bf16.gmra.mrb[32].mxu1 %vm2950_vm11, %v16310_v22  ;;  %v5188_v19 = vpop.permute.xlu0 %5187 }
 0xa41   :  { %19804 = vst [vmem:[#allocation135_spill] sm:$0xff] %v16310_v22 }
 0xa42   :  { %v16326_v57 = vsub.f32 %v7085_v40, %v7181_v50  ;;  %v16328_v21 = vsub.f32 %v7086_v33, %v7182_v9  ;;  %5209 = vrot.lane.b32.xlu1 %v16330_v10, %s10408_s16  ;;  %5207 = vrot.lane.b32.xlu0 %v16334_v47, %s10408_s16  ;;  %v16388_v50 = vld [vmem:[#allocation2 + $0x27a] sm:$0xff] }
 0xa43   :  { %v19807_v9 = vld [vmem:[#allocation107_spill] sm:$0xff] }
 0xa44   :  { %19805 = vst [vmem:[#allocation78_spill] sm:$0xff] %v16326_v57  ;;  %19806 = vst [vmem:[#allocation26_spill] sm:$0xff] %v16328_v21  ;;  %v16340_v6 = vpop.permute.xlu1 %5193  ;;  %v16342_v23 = vpop.permute.xlu0 %5191  ;;  %v6640_v44 = vsel %vm33_vm0, %v15858_v46, %v19807_v9  ;;  %v6639_v57 = vsel %vm33_vm0, %v15862_v49, %v19808_v43  ;;  %v19809_v9 = vld [vmem:[#allocation52_spill] sm:$0xff] }
 0xa45   :  { %v6642_v49 = vsel %vm33_vm0, %v15880_v39, %v19809_v9 }
 0xa46   :  { %5461 = vrot.lane.b32.xlu1 %v16208_v31, %s10409_s17  ;;  %5459 = vrot.lane.b32.xlu0 %v16210_v54, %s10409_s17  ;;  %v16358_v54 = vld [vmem:[#allocation2 + $0x271] sm:$0xff]  ;;  %v6706_v39 = vsel %vm2278_vm4, %v6642_v49, %v16340_v6 }
 0xa48   :  { %v5446_v16 = vpop.permute.xlu1 %5445  ;;  %v5444_v0 = vpop.permute.xlu0 %5443 }
 0xa4a   :  { %5465 = vrot.lane.b32.xlu1 %v16220_v24, %s10409_s17  ;;  %5463 = vrot.lane.b32.xlu0 %v16222_v34, %s10409_s17 }
 0xa4c   :  { %v5450_v12 = vpop.permute.xlu1 %5449  ;;  %v5448_v32 = vpop.permute.xlu0 %5447 }
 0xa4e   :  { %5657 = vrot.lane.b32.xlu1 %v16220_v24, %s10410_s18  ;;  %5655 = vrot.lane.b32.xlu0 %v16222_v34, %s10410_s18 }
 0xa50   :  { %v5642_v31 = vpop.permute.xlu1 %5641  ;;  %v5640_v18 = vpop.permute.xlu0 %5639 }
 0xa52   :  { %5661 = vrot.lane.b32.xlu1 %v16356_v42, %s10410_s18  ;;  %5659 = vrot.lane.b32.xlu0 %v16358_v54, %s10410_s18 }
 0xa54   :  { %v5646_v61 = vpop.permute.xlu1 %5645  ;;  %v5644_v26 = vpop.permute.xlu0 %5643 }
 0xa56   :  { %5853 = vrot.lane.b32.xlu1 %v16356_v42, %s10411_s19  ;;  %5851 = vrot.lane.b32.xlu0 %v16358_v54, %s10411_s19 }
 0xa58   :  { %v5838_v24 = vpop.permute.xlu1 %5837  ;;  %v5836_v34 = vpop.permute.xlu0 %5835 }
 0xa5a   :  { %5857 = vrot.lane.b32.xlu1 %v16368_v17, %s10411_s19  ;;  %5855 = vrot.lane.b32.xlu0 %v16370_v55, %s10411_s19 }
 0xa5c   :  { %v5842_v56 = vpop.permute.xlu1 %5841  ;;  %v5840_v3 = vpop.permute.xlu0 %5839 }
 0xa5e   :  { %6109 = vrot.lane.b32.xlu1 %v16240_v41, %s10412_s22  ;;  %6107 = vrot.lane.b32.xlu0 %v16242_v2, %s10412_s22  ;;  %v16390_v2 = vld [vmem:[#allocation2 + $0x272] sm:$0xff] }
 0xa60   :  { %v6094_v58 = vpop.permute.xlu1 %6093  ;;  %v6092_v37 = vpop.permute.xlu0 %6091 }
 0xa62   :  { %6113 = vrot.lane.b32.xlu1 %v16284_v48, %s10412_s22  ;;  %6111 = vrot.lane.b32.xlu0 %v16286_v35, %s10412_s22 }
 0xa64   :  { %v6098_v13 = vpop.permute.xlu1 %6097  ;;  %v6096_v33 = vpop.permute.xlu0 %6095 }
 0xa66   :  { %6305 = vrot.lane.b32.xlu1 %v16284_v48, %s10413_s27  ;;  %6303 = vrot.lane.b32.xlu0 %v16286_v35, %s10413_s27  ;;  %v6704_v48 = vsel %vm2278_vm4, %v6640_v44, %v5190_v30  ;;  %v6703_v35 = vsel %vm2278_vm4, %v6639_v57, %v5188_v19  ;;  %v6641_v30 = vsel %vm33_vm0, %v15884_v45, %v19810_v60 }
 0xa67   :  { %v6768_v21 = vsel %vm2343_vm5, %v6704_v48, %v5446_v16  ;;  %v6767_v62 = vsel %vm2343_vm5, %v6703_v35, %v5444_v0  ;;  %v6770_v60 = vsel %vm2343_vm5, %v6706_v39, %v5450_v12 }
 0xa68   :  { %v6290_v41 = vpop.permute.xlu1 %6289  ;;  %v6288_v40 = vpop.permute.xlu0 %6287  ;;  %v6832_v43 = vsel %vm2408_vm6, %v6768_v21, %v5642_v31  ;;  %v6831_v22 = vsel %vm2408_vm6, %v6767_v62, %v5640_v18  ;;  %v6705_v62 = vsel %vm2278_vm4, %v6641_v30, %v16342_v23  ;;  %v6834_v18 = vsel %vm2408_vm6, %v6770_v60, %v5646_v61  ;;  %v16480_v60 = vld [vmem:[#allocation2 + $0x2c0] sm:$0xff]  ;;  %v19818_v30 = vld [vmem:[#allocation53_spill] sm:$0xff] }
 0xa69   :  { %v6896_v19 = vsel %vm2473_vm7, %v6832_v43, %v5838_v24  ;;  %v6895_v57 = vsel %vm2473_vm7, %v6831_v22, %v5836_v34  ;;  %v6769_v22 = vsel %vm2343_vm5, %v6705_v62, %v5448_v32  ;;  %v16434_v34 = vld [vmem:[#allocation2 + $0x292] sm:$0xff]  ;;  %v6898_v12 = vsel %vm2473_vm7, %v6834_v18, %v5842_v56  ;;  %v16466_v43 = vld [vmem:[#allocation2 + $0x2a0] sm:$0xff] }
 0xa6a   :  { %6309 = vrot.lane.b32.xlu1 %v16388_v50, %s10413_s27  ;;  %6307 = vrot.lane.b32.xlu0 %v16390_v2, %s10413_s27  ;;  %v6960_v21 = vsel %vm2538_vm8, %v6896_v19, %v6094_v58  ;;  %v6959_v45 = vsel %vm2538_vm8, %v6895_v57, %v6092_v37  ;;  %v6833_v6 = vsel %vm2408_vm6, %v6769_v22, %v5644_v26  ;;  %v16436_v58 = vld [vmem:[#allocation2 + $0x28a] sm:$0xff]  ;;  %v16484_v22 = vld [vmem:[#allocation2 + $0x2b8] sm:$0xff] }
 0xa6b   :  { %v7024_v44 = vsel %vm2603_vm9, %v6960_v21, %v6290_v41  ;;  %v7023_v16 = vsel %vm2603_vm9, %v6959_v45, %v6288_v40  ;;  %v6897_v32 = vsel %vm2473_vm7, %v6833_v6, %v5840_v3  ;;  %v6962_v61 = vsel %vm2538_vm8, %v6898_v12, %v6098_v13  ;;  %v16506_v12 = vld [vmem:[#allocation2 + $0x2a9] sm:$0xff] }
 0xa6c   :  { %v6294_v11 = vpop.permute.xlu1 %6293  ;;  %v6292_v46 = vpop.permute.xlu0 %6291  ;;  %v6961_v26 = vsel %vm2538_vm8, %v6897_v32, %v6096_v33 }
 0xa6d   :  { %v7026_v41 = vsel %vm2603_vm9, %v6962_v61, %v6294_v11  ;;  %v7025_v40 = vsel %vm2603_vm9, %v6961_v26, %v6292_v46  ;;  %v16462_v46 = vld [vmem:[#allocation2 + $0x2a8] sm:$0xff] }
 0xa6e   :  { %6501 = vrot.lane.b32.xlu1 %v16388_v50, %s10414_s2  ;;  %6499 = vrot.lane.b32.xlu0 %v16390_v2, %s10414_s2  ;;  %v16518_v26 = vld [vmem:[#allocation2 + $0x2c1] sm:$0xff] }
 0xa70   :  { %v6486_v0 = vpop.permute.xlu1 %6485  ;;  %v6484_v31 = vpop.permute.xlu0 %6483 }
 0xa71   :  { %v7088_v23 = vsel %vm2668_vm10, %v7024_v44, %v6486_v0  ;;  %v7087_v24 = vsel %vm2668_vm10, %v7023_v16, %v6484_v31 }
 0xa72   :  { %v16440_v37 = vpack.c.bf16 %v7088_v23, %v7087_v24  ;;  %6505 = vrot.lane.b32.xlu1 %v16434_v34, %s10414_s2  ;;  %6503 = vrot.lane.b32.xlu0 %v16436_v58, %s10414_s2 }
 0xa74   :  { %19811 = vst [vmem:[#allocation136_spill] sm:$0xff] %v16440_v37  ;;  %v7183_v56 = vunpack.c.l.bf16 %v16440_v37  ;;  %v7184_v3 = vunpack.c.h.bf16 %v16440_v37  ;;  %v6490_v48 = vpop.permute.xlu1 %6489  ;;  %9817 = vmatprep.mubr.msk.bf16.mxu1 %vm2950_vm11, %v16440_v37  ;;  %v6488_v35 = vpop.permute.xlu0 %6487  ;;  %v19820_v37 = vld [vmem:[#allocation110_spill] sm:$0xff] }
 0xa75   :  { %v7090_v9 = vsel %vm2668_vm10, %v7026_v41, %v6490_v48  ;;  %v7089_v49 = vsel %vm2668_vm10, %v7025_v40, %v6488_v35  ;;  %v16520_v41 = vld [vmem:[#allocation2 + $0x2b9] sm:$0xff] }
 0xa76   :  { %v16456_v13 = vsub.f32 %v7087_v24, %v7183_v56  ;;  %v16458_v33 = vsub.f32 %v7088_v23, %v7184_v3  ;;  %v16460_v11 = vpack.c.bf16 %v7090_v9, %v7089_v49  ;;  %5213 = vrot.lane.b32.xlu1 %v16462_v46, %s10408_s16  ;;  %5211 = vrot.lane.b32.xlu0 %v16466_v43, %s10408_s16 }
 0xa78   :  { %19812 = vst [vmem:[#allocation79_spill] sm:$0xff] %v16456_v13  ;;  %19813 = vst [vmem:[#allocation27_spill] sm:$0xff] %v16458_v33  ;;  %v7185_v19 = vunpack.c.l.bf16 %v16460_v11  ;;  %v7186_v57 = vunpack.c.h.bf16 %v16460_v11  ;;  %v5198_v39 = vpop.permute.xlu1 %5197  ;;  %9818 = vmatmul.mubr.msk.bf16.gmra.mrb[36].mxu1 %vm2950_vm11, %v16460_v11  ;;  %v5196_v62 = vpop.permute.xlu0 %5195 }
 0xa79   :  { %19814 = vst [vmem:[#allocation137_spill] sm:$0xff] %v16460_v11 }
 0xa7a   :  { %v16476_v21 = vsub.f32 %v7089_v49, %v7185_v19  ;;  %v16478_v45 = vsub.f32 %v7090_v9, %v7186_v57  ;;  %5217 = vrot.lane.b32.xlu1 %v16480_v60, %s10408_s16  ;;  %5215 = vrot.lane.b32.xlu0 %v16484_v22, %s10408_s16  ;;  %v16538_v19 = vld [vmem:[#allocation2 + $0x2aa] sm:$0xff] }
 0xa7b   :  { %v19817_v57 = vld [vmem:[#allocation109_spill] sm:$0xff] }
 0xa7c   :  { %19815 = vst [vmem:[#allocation81_spill] sm:$0xff] %v16476_v21  ;;  %19816 = vst [vmem:[#allocation28_spill] sm:$0xff] %v16478_v45  ;;  %v16490_v16 = vpop.permute.xlu1 %5201  ;;  %v16492_v0 = vpop.permute.xlu0 %5199  ;;  %v6644_v44 = vsel %vm33_vm0, %v16010_v14, %v19817_v57  ;;  %v6643_v21 = vsel %vm33_vm0, %v16014_v29, %v19818_v30  ;;  %v19819_v57 = vld [vmem:[#allocation54_spill] sm:$0xff] }
 0xa7d   :  { %v6646_v29 = vsel %vm33_vm0, %v16028_v28, %v19819_v57 }
 0xa7e   :  { %5469 = vrot.lane.b32.xlu1 %v16356_v42, %s10409_s17  ;;  %5467 = vrot.lane.b32.xlu0 %v16358_v54, %s10409_s17  ;;  %v16508_v54 = vld [vmem:[#allocation2 + $0x2a1] sm:$0xff]  ;;  %v6710_v28 = vsel %vm2278_vm4, %v6646_v29, %v16490_v16 }
 0xa80   :  { %v5454_v31 = vpop.permute.xlu1 %5453  ;;  %v5452_v18 = vpop.permute.xlu0 %5451 }
 0xa82   :  { %5473 = vrot.lane.b32.xlu1 %v16368_v17, %s10409_s17  ;;  %5471 = vrot.lane.b32.xlu0 %v16370_v55, %s10409_s17 }
 0xa84   :  { %v5458_v6 = vpop.permute.xlu1 %5457  ;;  %v5456_v23 = vpop.permute.xlu0 %5455 }
 0xa86   :  { %5665 = vrot.lane.b32.xlu1 %v16368_v17, %s10410_s18  ;;  %5663 = vrot.lane.b32.xlu0 %v16370_v55, %s10410_s18 }
 0xa88   :  { %v5650_v42 = vpop.permute.xlu1 %5649  ;;  %v5648_v24 = vpop.permute.xlu0 %5647 }
 0xa8a   :  { %5669 = vrot.lane.b32.xlu1 %v16506_v12, %s10410_s18  ;;  %5667 = vrot.lane.b32.xlu0 %v16508_v54, %s10410_s18 }
 0xa8c   :  { %v5654_v32 = vpop.permute.xlu1 %5653  ;;  %v5652_v61 = vpop.permute.xlu0 %5651 }
 0xa8e   :  { %5861 = vrot.lane.b32.xlu1 %v16506_v12, %s10411_s19  ;;  %5859 = vrot.lane.b32.xlu0 %v16508_v54, %s10411_s19 }
 0xa90   :  { %v5846_v17 = vpop.permute.xlu1 %5845  ;;  %v5844_v55 = vpop.permute.xlu0 %5843 }
 0xa92   :  { %5865 = vrot.lane.b32.xlu1 %v16518_v26, %s10411_s19  ;;  %5863 = vrot.lane.b32.xlu0 %v16520_v41, %s10411_s19 }
 0xa94   :  { %v5850_v40 = vpop.permute.xlu1 %5849  ;;  %v5848_v56 = vpop.permute.xlu0 %5847 }
 0xa96   :  { %6117 = vrot.lane.b32.xlu1 %v16388_v50, %s10412_s22  ;;  %6115 = vrot.lane.b32.xlu0 %v16390_v2, %s10412_s22  ;;  %v16540_v2 = vld [vmem:[#allocation2 + $0x2a2] sm:$0xff] }
 0xa98   :  { %v6102_v3 = vpop.permute.xlu1 %6101  ;;  %v6100_v48 = vpop.permute.xlu0 %6099 }
 0xa9a   :  { %6121 = vrot.lane.b32.xlu1 %v16434_v34, %s10412_s22  ;;  %6119 = vrot.lane.b32.xlu0 %v16436_v58, %s10412_s22 }
 0xa9c   :  { %v6106_v35 = vpop.permute.xlu1 %6105  ;;  %v6104_v9 = vpop.permute.xlu0 %6103 }
 0xa9e   :  { %6313 = vrot.lane.b32.xlu1 %v16434_v34, %s10413_s27  ;;  %6311 = vrot.lane.b32.xlu0 %v16436_v58, %s10413_s27  ;;  %v6708_v34 = vsel %vm2278_vm4, %v6644_v44, %v5198_v39  ;;  %v6707_v58 = vsel %vm2278_vm4, %v6643_v21, %v5196_v62  ;;  %v6645_v39 = vsel %vm33_vm0, %v16032_v53, %v19820_v37 }
 0xa9f   :  { %v6772_v45 = vsel %vm2343_vm5, %v6708_v34, %v5454_v31  ;;  %v6771_v13 = vsel %vm2343_vm5, %v6707_v58, %v5452_v18  ;;  %v6774_v37 = vsel %vm2343_vm5, %v6710_v28, %v5458_v6 }
 0xaa0   :  { %v6298_v50 = vpop.permute.xlu1 %6297  ;;  %v6296_v49 = vpop.permute.xlu0 %6295  ;;  %v6836_v30 = vsel %vm2408_vm6, %v6772_v45, %v5650_v42  ;;  %v6835_v11 = vsel %vm2408_vm6, %v6771_v13, %v5648_v24  ;;  %v6709_v13 = vsel %vm2278_vm4, %v6645_v39, %v16492_v0  ;;  %v6838_v24 = vsel %vm2408_vm6, %v6774_v37, %v5654_v32  ;;  %v16632_v37 = vld [vmem:[#allocation2 + $0x2f0] sm:$0xff] }
 0xaa1   :  { %v6900_v62 = vsel %vm2473_vm7, %v6836_v30, %v5846_v17  ;;  %v6899_v21 = vsel %vm2473_vm7, %v6835_v11, %v5844_v55  ;;  %v6773_v11 = vsel %vm2343_vm5, %v6709_v13, %v5456_v23  ;;  %v16584_v55 = vld [vmem:[#allocation2 + $0x2c2] sm:$0xff]  ;;  %v6902_v6 = vsel %vm2473_vm7, %v6838_v24, %v5850_v40  ;;  %v16616_v30 = vld [vmem:[#allocation2 + $0x2d0] sm:$0xff] }
 0xaa2   :  { %6317 = vrot.lane.b32.xlu1 %v16538_v19, %s10413_s27  ;;  %6315 = vrot.lane.b32.xlu0 %v16540_v2, %s10413_s27  ;;  %v6964_v45 = vsel %vm2538_vm8, %v6900_v62, %v6102_v3  ;;  %v6963_v53 = vsel %vm2538_vm8, %v6899_v21, %v6100_v48  ;;  %v6837_v16 = vsel %vm2408_vm6, %v6773_v11, %v5652_v61  ;;  %v16586_v3 = vld [vmem:[#allocation2 + $0x2ba] sm:$0xff]  ;;  %v16636_v11 = vld [vmem:[#allocation2 + $0x2e8] sm:$0xff] }
 0xaa3   :  { %v7028_v44 = vsel %vm2603_vm9, %v6964_v45, %v6298_v50  ;;  %v7027_v31 = vsel %vm2603_vm9, %v6963_v53, %v6296_v49  ;;  %v6901_v23 = vsel %vm2473_vm7, %v6837_v16, %v5848_v56  ;;  %v6966_v32 = vsel %vm2538_vm8, %v6902_v6, %v6106_v35  ;;  %v16664_v6 = vld [vmem:[#allocation2 + $0x2d1] sm:$0xff] }
 0xaa4   :  { %v6302_v33 = vpop.permute.xlu1 %6301  ;;  %v6300_v14 = vpop.permute.xlu0 %6299  ;;  %v6965_v61 = vsel %vm2538_vm8, %v6901_v23, %v6104_v9 }
 0xaa5   :  { %v7030_v50 = vsel %vm2603_vm9, %v6966_v32, %v6302_v33  ;;  %v7029_v49 = vsel %vm2603_vm9, %v6965_v61, %v6300_v14  ;;  %v16612_v14 = vld [vmem:[#allocation2 + $0x2d8] sm:$0xff] }
 0xaa6   :  { %6509 = vrot.lane.b32.xlu1 %v16538_v19, %s10414_s2  ;;  %6507 = vrot.lane.b32.xlu0 %v16540_v2, %s10414_s2  ;;  %v16674_v61 = vld [vmem:[#allocation2 + $0x2f1] sm:$0xff] }
 0xaa8   :  { %v6494_v18 = vpop.permute.xlu1 %6493  ;;  %v6492_v42 = vpop.permute.xlu0 %6491 }
 0xaa9   :  { %v7092_v0 = vsel %vm2668_vm10, %v7028_v44, %v6494_v18  ;;  %v7091_v17 = vsel %vm2668_vm10, %v7027_v31, %v6492_v42  ;;  %v19827_v44 = vld [vmem:[#allocation111_spill] sm:$0xff] }
 0xaaa   :  { %v16590_v48 = vpack.c.bf16 %v7092_v0, %v7091_v17  ;;  %6513 = vrot.lane.b32.xlu1 %v16584_v55, %s10414_s2  ;;  %6511 = vrot.lane.b32.xlu0 %v16586_v3, %s10414_s2  ;;  %v6648_v39 = vsel %vm33_vm0, %v16160_v5, %v19827_v44 }
 0xaac   :  { %19821 = vst [vmem:[#allocation80_spill] sm:$0xff] %v16590_v48  ;;  %v7187_v40 = vunpack.c.l.bf16 %v16590_v48  ;;  %v7188_v56 = vunpack.c.h.bf16 %v16590_v48  ;;  %v6498_v34 = vpop.permute.xlu1 %6497  ;;  %9821 = vmatprep.mubr.msk.bf16.mxu1 %vm2950_vm11, %v16590_v48  ;;  %v6496_v58 = vpop.permute.xlu0 %6495 }
 0xaad   :  { %v7094_v57 = vsel %vm2668_vm10, %v7030_v50, %v6498_v34  ;;  %v7093_v29 = vsel %vm2668_vm10, %v7029_v49, %v6496_v58  ;;  %v16676_v50 = vld [vmem:[#allocation2 + $0x2e9] sm:$0xff] }
 0xaae   :  { %v16606_v35 = vsub.f32 %v7091_v17, %v7187_v40  ;;  %v16608_v9 = vsub.f32 %v7092_v0, %v7188_v56  ;;  %v16610_v33 = vpack.c.bf16 %v7094_v57, %v7093_v29  ;;  %5221 = vrot.lane.b32.xlu1 %v16612_v14, %s10408_s16  ;;  %5219 = vrot.lane.b32.xlu0 %v16616_v30, %s10408_s16  ;;  %v16662_v17 = vld [vmem:[#allocation2 + $0x2d9] sm:$0xff] }
 0xaaf   :  { %v16689_v56 = vld [vmem:[%s18886_s3] sm:$0xff]  }
 0xab0   :  { %19822 = vst [vmem:[#allocation138_spill] sm:$0xff] %v16606_v35  ;;  %19823 = vst [vmem:[#allocation139_spill] sm:$0xff] %v16608_v9  ;;  %v7189_v62 = vunpack.c.l.bf16 %v16610_v33  ;;  %v7190_v21 = vunpack.c.h.bf16 %v16610_v33  ;;  %v16624_v28 = vpop.permute.xlu1 %5205  ;;  %9822 = vmatmul.mubr.msk.bf16.gmra.mrb[40].mxu1 %vm2950_vm11, %v16610_v33  ;;  %v5204_v13 = vpop.permute.xlu0 %5203  ;;  %9845 = vmatprep.subr.bf16.mxu1 %v16689_v56 }
 0xab1   :  { %19824 = vst [vmem:[#allocation29_spill] sm:$0xff] %v16610_v33  ;;  %9846 = vmatpush3.bf16.msra.mxu1 %v16689_v56  ;;  %v19829_v33 = vld [vmem:[#allocation56_spill] sm:$0xff] }
 0xab2   :  { %v16628_v45 = vsub.f32 %v7093_v29, %v7189_v62  ;;  %v16630_v53 = vsub.f32 %v7094_v57, %v7190_v21  ;;  %5225 = vrot.lane.b32.xlu1 %v16632_v37, %s10408_s16  ;;  %5223 = vrot.lane.b32.xlu0 %v16636_v11, %s10408_s16  ;;  %v16701_v62 = vld [vmem:[#allocation2 + $0x2da] sm:$0xff]  ;;  %v16703_v21 = vld [vmem:[#allocation2 + $0x2d2] sm:$0xff] }
 0xab4   :  { %19825 = vst [vmem:[#allocation82_spill] sm:$0xff] %v16628_v45  ;;  %19826 = vst [vmem:[#allocation140_spill] sm:$0xff] %v16630_v53  ;;  %v16642_v31 = vpop.permute.xlu1 %5209  ;;  %v16644_v18 = vpop.permute.xlu0 %5207  ;;  %v19828_v45 = vld [vmem:[#allocation55_spill] sm:$0xff] }
 0xab5   :  { %v6647_v53 = vsel %vm33_vm0, %v16164_v59, %v19828_v45  ;;  %v6650_v59 = vsel %vm33_vm0, %v16178_v38, %v19829_v33 }
 0xab6   :  { %5477 = vrot.lane.b32.xlu1 %v16506_v12, %s10409_s17  ;;  %5475 = vrot.lane.b32.xlu0 %v16508_v54, %s10409_s17  ;;  %v6714_v38 = vsel %vm2278_vm4, %v6650_v59, %v16642_v31 }
 0xab8   :  { %v5462_v42 = vpop.permute.xlu1 %5461  ;;  %v5460_v24 = vpop.permute.xlu0 %5459 }
 0xaba   :  { %5481 = vrot.lane.b32.xlu1 %v16518_v26, %s10409_s17  ;;  %5479 = vrot.lane.b32.xlu0 %v16520_v41, %s10409_s17 }
 0xabc   :  { %v16654_v16 = vpop.permute.xlu1 %5465  ;;  %v16656_v0 = vpop.permute.xlu0 %5463 }
 0xabe   :  { %5673 = vrot.lane.b32.xlu1 %v16518_v26, %s10410_s18  ;;  %5671 = vrot.lane.b32.xlu0 %v16520_v41, %s10410_s18 }
 0xac0   :  { %v5658_v12 = vpop.permute.xlu1 %5657  ;;  %v5656_v54 = vpop.permute.xlu0 %5655 }
 0xac2   :  { %5677 = vrot.lane.b32.xlu1 %v16662_v17, %s10410_s18  ;;  %5675 = vrot.lane.b32.xlu0 %v16664_v6, %s10410_s18 }
 0xac4   :  { %v5662_v23 = vpop.permute.xlu1 %5661  ;;  %v5660_v32 = vpop.permute.xlu0 %5659 }
 0xac6   :  { %5869 = vrot.lane.b32.xlu1 %v16662_v17, %s10411_s19  ;;  %5867 = vrot.lane.b32.xlu0 %v16664_v6, %s10411_s19 }
 0xac8   :  { %v5854_v26 = vpop.permute.xlu1 %5853  ;;  %v5852_v41 = vpop.permute.xlu0 %5851 }
 0xaca   :  { %5873 = vrot.lane.b32.xlu1 %v16674_v61, %s10411_s19  ;;  %5871 = vrot.lane.b32.xlu0 %v16676_v50, %s10411_s19 }
 0xacc   :  { %v5858_v49 = vpop.permute.xlu1 %5857  ;;  %v5856_v40 = vpop.permute.xlu0 %5855 }
 0xace   :  { %6125 = vrot.lane.b32.xlu1 %v16538_v19, %s10412_s22  ;;  %6123 = vrot.lane.b32.xlu0 %v16540_v2, %s10412_s22 }
 0xad0   :  { %v6110_v34 = vpop.permute.xlu1 %6109  ;;  %v6108_v58 = vpop.permute.xlu0 %6107 }
 0xad2   :  { %6129 = vrot.lane.b32.xlu1 %v16584_v55, %s10412_s22  ;;  %6127 = vrot.lane.b32.xlu0 %v16586_v3, %s10412_s22 }
 0xad4   :  { %v6114_v19 = vpop.permute.xlu1 %6113  ;;  %v6112_v57 = vpop.permute.xlu0 %6111 }
 0xad6   :  { %6321 = vrot.lane.b32.xlu1 %v16584_v55, %s10413_s27  ;;  %6319 = vrot.lane.b32.xlu0 %v16586_v3, %s10413_s27  ;;  %v6712_v55 = vsel %vm2278_vm4, %v6648_v39, %v16624_v28  ;;  %v6711_v3 = vsel %vm2278_vm4, %v6647_v53, %v5204_v13  ;;  %v6649_v39 = vsel %vm33_vm0, %v16182_v1, %v19830_v52 }
 0xad7   :  { %v6776_v35 = vsel %vm2343_vm5, %v6712_v55, %v5462_v42  ;;  %v6775_v9 = vsel %vm2343_vm5, %v6711_v3, %v5460_v24  ;;  %v6778_v1 = vsel %vm2343_vm5, %v6714_v38, %v16654_v16  ;;  %v16752_v16 = vld [vmem:[#allocation2 + $0x2ea] sm:$0xff] }
 0xad8   :  { %v6306_v2 = vpop.permute.xlu1 %6305  ;;  %v6304_v29 = vpop.permute.xlu0 %6303  ;;  %v6840_v45 = vsel %vm2408_vm6, %v6776_v35, %v5658_v12  ;;  %v6839_v48 = vsel %vm2408_vm6, %v6775_v9, %v5656_v54  ;;  %v6713_v35 = vsel %vm2278_vm4, %v6649_v39, %v16644_v18  ;;  %v6842_v31 = vsel %vm2408_vm6, %v6778_v1, %v5662_v23  ;;  %v16796_v1 = vld [vmem:[#allocation2 + $0x320] sm:$0xff] }
 0xad9   :  { %v6904_v28 = vsel %vm2473_vm7, %v6840_v45, %v5854_v26  ;;  %v6903_v13 = vsel %vm2473_vm7, %v6839_v48, %v5852_v41  ;;  %v6777_v48 = vsel %vm2343_vm5, %v6713_v35, %v16656_v0  ;;  %v16750_v26 = vld [vmem:[#allocation2 + $0x2f2] sm:$0xff]  ;;  %v6906_v0 = vsel %vm2473_vm7, %v6842_v31, %v5858_v49  ;;  %v16782_v45 = vld [vmem:[#allocation2 + $0x300] sm:$0xff] }
 0xada   :  { %6325 = vrot.lane.b32.xlu1 %v16701_v62, %s10413_s27  ;;  %6323 = vrot.lane.b32.xlu0 %v16703_v21, %s10413_s27  ;;  %v6968_v9 = vsel %vm2538_vm8, %v6904_v28, %v6110_v34  ;;  %v6967_v52 = vsel %vm2538_vm8, %v6903_v13, %v6108_v58  ;;  %v6841_v18 = vsel %vm2408_vm6, %v6777_v48, %v5660_v32  ;;  %v16800_v48 = vld [vmem:[#allocation2 + $0x318] sm:$0xff] }
 0xadb   :  { %v7032_v33 = vsel %vm2603_vm9, %v6968_v9, %v6306_v2  ;;  %v7031_v53 = vsel %vm2603_vm9, %v6967_v52, %v6304_v29  ;;  %v6905_v41 = vsel %vm2473_vm7, %v6841_v18, %v5856_v40  ;;  %v6970_v23 = vsel %vm2538_vm8, %v6906_v0, %v6114_v19  ;;  %v16822_v0 = vld [vmem:[#allocation2 + $0x309] sm:$0xff] }
 0xadc   :  { %v6310_v5 = vpop.permute.xlu1 %6309  ;;  %v6308_v44 = vpop.permute.xlu0 %6307  ;;  %v6969_v32 = vsel %vm2538_vm8, %v6905_v41, %v6112_v57  ;;  %v16829_v41 = vld [vmem:[%s18886_s3 + $0x8] sm:$0xff]  }
 0xadd   :  { %v7034_v58 = vsel %vm2603_vm9, %v6970_v23, %v6310_v5  ;;  %v7033_v2 = vsel %vm2603_vm9, %v6969_v32, %v6308_v44  ;;  %v16778_v44 = vld [vmem:[#allocation2 + $0x308] sm:$0xff]  ;;  %9847 = vmatprep.subr.bf16.mxu1 %v16829_v41 }
 0xade   :  { %6517 = vrot.lane.b32.xlu1 %v16701_v62, %s10414_s2  ;;  %6515 = vrot.lane.b32.xlu0 %v16703_v21, %s10414_s2 }
 0xadf   :  { %9848 = vmatpush3.bf16.msra.mxu1 %v16829_v41 }
 0xae0   :  { %v6502_v42 = vpop.permute.xlu1 %6501  ;;  %v6500_v24 = vpop.permute.xlu0 %6499 }
 0xae1   :  { %v7096_v12 = vsel %vm2668_vm10, %v7032_v33, %v6502_v42  ;;  %v7095_v54 = vsel %vm2668_vm10, %v7031_v53, %v6500_v24  ;;  %v19837_v33 = vld [vmem:[#allocation113_spill] sm:$0xff] }
 0xae2   :  { %v16756_v34 = vpack.c.bf16 %v7096_v12, %v7095_v54  ;;  %6521 = vrot.lane.b32.xlu1 %v16750_v26, %s10414_s2  ;;  %6519 = vrot.lane.b32.xlu0 %v16752_v16, %s10414_s2  ;;  %v6652_v39 = vsel %vm33_vm0, %v16312_v25, %v19837_v33  ;;  %v19839_v33 = vld [vmem:[#allocation58_spill] sm:$0xff] }
 0xae4   :  { %19831 = vst [vmem:[#allocation30_spill] sm:$0xff] %v16756_v34  ;;  %v7191_v49 = vunpack.c.l.bf16 %v16756_v34  ;;  %v7192_v40 = vunpack.c.h.bf16 %v16756_v34  ;;  %v6506_v29 = vpop.permute.xlu1 %6505  ;;  %9825 = vmatprep.mubr.msk.bf16.mxu1 %vm2950_vm11, %v16756_v34  ;;  %v6504_v55 = vpop.permute.xlu0 %6503 }
 0xae5   :  { %v7098_v3 = vsel %vm2668_vm10, %v7034_v58, %v6506_v29  ;;  %v7097_v59 = vsel %vm2668_vm10, %v7033_v2, %v6504_v55  ;;  %v16841_v58 = vld [vmem:[#allocation2 + $0x321] sm:$0xff]  ;;  %v16843_v2 = vld [vmem:[#allocation2 + $0x319] sm:$0xff] }
 0xae6   :  { %v16772_v19 = vsub.f32 %v7095_v54, %v7191_v49  ;;  %v16774_v57 = vsub.f32 %v7096_v12, %v7192_v40  ;;  %v16776_v5 = vpack.c.bf16 %v7098_v3, %v7097_v59  ;;  %5229 = vrot.lane.b32.xlu1 %v16778_v44, %s10408_s16  ;;  %5227 = vrot.lane.b32.xlu0 %v16782_v45, %s10408_s16 }
 0xae8   :  { %19832 = vst [vmem:[#allocation83_spill] sm:$0xff] %v16772_v19  ;;  %19833 = vst [vmem:[#allocation31_spill] sm:$0xff] %v16774_v57  ;;  %v7193_v28 = vunpack.c.l.bf16 %v16776_v5  ;;  %v7194_v13 = vunpack.c.h.bf16 %v16776_v5  ;;  %v5214_v38 = vpop.permute.xlu1 %5213  ;;  %9826 = vmatmul.mubr.msk.bf16.gmra.mrb[44].mxu1 %vm2950_vm11, %v16776_v5  ;;  %v5212_v35 = vpop.permute.xlu0 %5211 }
 0xae9   :  { %19834 = vst [vmem:[#allocation84_spill] sm:$0xff] %v16776_v5 }
 0xaea   :  { %v16792_v9 = vsub.f32 %v7097_v59, %v7193_v28  ;;  %v16794_v52 = vsub.f32 %v7098_v3, %v7194_v13  ;;  %5233 = vrot.lane.b32.xlu1 %v16796_v1, %s10408_s16  ;;  %5231 = vrot.lane.b32.xlu0 %v16800_v48, %s10408_s16  ;;  %v16861_v13 = vld [vmem:[#allocation2 + $0x30a] sm:$0xff] }
 0xaec   :  { %19835 = vst [vmem:[#allocation141_spill] sm:$0xff] %v16792_v9  ;;  %19836 = vst [vmem:[#allocation32_spill] sm:$0xff] %v16794_v52  ;;  %v16806_v53 = vpop.permute.xlu1 %5217  ;;  %v16808_v42 = vpop.permute.xlu0 %5215  ;;  %v19838_v9 = vld [vmem:[#allocation57_spill] sm:$0xff] }
 0xaed   :  { %v6651_v52 = vsel %vm33_vm0, %v16316_v7, %v19838_v9  ;;  %v6654_v7 = vsel %vm33_vm0, %v16330_v10, %v19839_v33 }
 0xaee   :  { %5485 = vrot.lane.b32.xlu1 %v16662_v17, %s10409_s17  ;;  %5483 = vrot.lane.b32.xlu0 %v16664_v6, %s10409_s17  ;;  %v16824_v6 = vld [vmem:[#allocation2 + $0x301] sm:$0xff]  ;;  %v6718_v10 = vsel %vm2278_vm4, %v6654_v7, %v16806_v53 }
 0xaf0   :  { %v5470_v24 = vpop.permute.xlu1 %5469  ;;  %v5468_v31 = vpop.permute.xlu0 %5467 }
 0xaf2   :  { %5489 = vrot.lane.b32.xlu1 %v16674_v61, %s10409_s17  ;;  %5487 = vrot.lane.b32.xlu0 %v16676_v50, %s10409_s17 }
 0xaf4   :  { %v5474_v18 = vpop.permute.xlu1 %5473  ;;  %v5472_v12 = vpop.permute.xlu0 %5471 }
 0xaf6   :  { %5681 = vrot.lane.b32.xlu1 %v16674_v61, %s10410_s18  ;;  %5679 = vrot.lane.b32.xlu0 %v16676_v50, %s10410_s18 }
 0xaf8   :  { %v5666_v17 = vpop.permute.xlu1 %5665  ;;  %v5664_v54 = vpop.permute.xlu0 %5663 }
 0xafa   :  { %5685 = vrot.lane.b32.xlu1 %v16822_v0, %s10410_s18  ;;  %5683 = vrot.lane.b32.xlu0 %v16824_v6, %s10410_s18 }
 0xafc   :  { %v5670_v61 = vpop.permute.xlu1 %5669  ;;  %v5668_v50 = vpop.permute.xlu0 %5667 }
 0xafe   :  { %5877 = vrot.lane.b32.xlu1 %v16822_v0, %s10411_s19  ;;  %5875 = vrot.lane.b32.xlu0 %v16824_v6, %s10411_s19 }
 0xb00   :  { %v5862_v23 = vpop.permute.xlu1 %5861  ;;  %v5860_v32 = vpop.permute.xlu0 %5859 }
 0xb02   :  { %5881 = vrot.lane.b32.xlu1 %v16841_v58, %s10411_s19  ;;  %5879 = vrot.lane.b32.xlu0 %v16843_v2, %s10411_s19 }
 0xb04   :  { %v5866_v49 = vpop.permute.xlu1 %5865  ;;  %v5864_v40 = vpop.permute.xlu0 %5863 }
 0xb06   :  { %6133 = vrot.lane.b32.xlu1 %v16701_v62, %s10412_s22  ;;  %6131 = vrot.lane.b32.xlu0 %v16703_v21, %s10412_s22  ;;  %v16863_v21 = vld [vmem:[#allocation2 + $0x302] sm:$0xff] }
 0xb08   :  { %v6118_v29 = vpop.permute.xlu1 %6117  ;;  %v6116_v55 = vpop.permute.xlu0 %6115 }
 0xb0a   :  { %6137 = vrot.lane.b32.xlu1 %v16750_v26, %s10412_s22  ;;  %6135 = vrot.lane.b32.xlu0 %v16752_v16, %s10412_s22 }
 0xb0c   :  { %v6122_v3 = vpop.permute.xlu1 %6121  ;;  %v6120_v59 = vpop.permute.xlu0 %6119 }
 0xb0e   :  { %6329 = vrot.lane.b32.xlu1 %v16750_v26, %s10413_s27  ;;  %6327 = vrot.lane.b32.xlu0 %v16752_v16, %s10413_s27  ;;  %v6716_v26 = vsel %vm2278_vm4, %v6652_v39, %v5214_v38  ;;  %v6715_v16 = vsel %vm2278_vm4, %v6651_v52, %v5212_v35  ;;  %v6653_v39 = vsel %vm33_vm0, %v16334_v47, %v19840_v63 }
 0xb0f   :  { %v6780_v19 = vsel %vm2343_vm5, %v6716_v26, %v5470_v24  ;;  %v6779_v57 = vsel %vm2343_vm5, %v6715_v16, %v5468_v31  ;;  %v6782_v47 = vsel %vm2343_vm5, %v6718_v10, %v5474_v18 }
 0xb10   :  { %v6314_v62 = vpop.permute.xlu1 %6313  ;;  %v6312_v28 = vpop.permute.xlu0 %6311  ;;  %v6844_v9 = vsel %vm2408_vm6, %v6780_v19, %v5666_v17  ;;  %v6843_v34 = vsel %vm2408_vm6, %v6779_v57, %v5664_v54  ;;  %v6717_v19 = vsel %vm2278_vm4, %v6653_v39, %v16808_v42  ;;  %v6846_v54 = vsel %vm2408_vm6, %v6782_v47, %v5670_v61  ;;  %v4710_v39 = vld [vmem:[#allocation2 + $0x350] sm:$0xff] }
 0xb11   :  { %v6908_v38 = vsel %vm2473_vm7, %v6844_v9, %v5862_v23  ;;  %v6907_v35 = vsel %vm2473_vm7, %v6843_v34, %v5860_v32  ;;  %v6781_v34 = vsel %vm2343_vm5, %v6717_v19, %v5472_v12  ;;  %v16907_v32 = vld [vmem:[#allocation2 + $0x322] sm:$0xff]  ;;  %v6910_v18 = vsel %vm2473_vm7, %v6846_v54, %v5866_v49  ;;  %v10405_v9 = vld [vmem:[#allocation2 + $0x330] sm:$0xff] }
 0xb12   :  { %6333 = vrot.lane.b32.xlu1 %v16861_v13, %s10413_s27  ;;  %6331 = vrot.lane.b32.xlu0 %v16863_v21, %s10413_s27  ;;  %v6972_v57 = vsel %vm2538_vm8, %v6908_v38, %v6118_v29  ;;  %v6971_v63 = vsel %vm2538_vm8, %v6907_v35, %v6116_v55  ;;  %v6845_v53 = vsel %vm2408_vm6, %v6781_v34, %v5668_v50  ;;  %v16909_v29 = vld [vmem:[#allocation2 + $0x31a] sm:$0xff]  ;;  %v4709_v38 = vld [vmem:[#allocation2 + $0x348] sm:$0xff] }
 0xb13   :  { %v7036_v52 = vsel %vm2603_vm9, %v6972_v57, %v6314_v62  ;;  %v7035_v24 = vsel %vm2603_vm9, %v6971_v63, %v6312_v28  ;;  %v6909_v12 = vsel %vm2473_vm7, %v6845_v53, %v5864_v40  ;;  %v6974_v61 = vsel %vm2538_vm8, %v6910_v18, %v6122_v3  ;;  %v19843_v35 = vld [vmem:[#allocation60_spill] sm:$0xff] }
 0xb14   :  { %v6318_v5 = vpop.permute.xlu1 %6317  ;;  %v6316_v25 = vpop.permute.xlu0 %6315  ;;  %v6973_v50 = vsel %vm2538_vm8, %v6909_v12, %v6120_v59  ;;  %v4780_v12 = vld [vmem:[#allocation2 + $0x339] sm:$0xff] }
 0xb15   :  { %v7038_v62 = vsel %vm2603_vm9, %v6974_v61, %v6318_v5  ;;  %v7037_v28 = vsel %vm2603_vm9, %v6973_v50, %v6316_v25  ;;  %v10404_v25 = vld [vmem:[#allocation2 + $0x338] sm:$0xff] }
 0xb16   :  { %6525 = vrot.lane.b32.xlu1 %v16861_v13, %s10414_s2  ;;  %6523 = vrot.lane.b32.xlu0 %v16863_v21, %s10414_s2  ;;  %v4779_v61 = vld [vmem:[#allocation2 + $0x331] sm:$0xff] }
 0xb18   :  { %v6510_v31 = vpop.permute.xlu1 %6509  ;;  %v6508_v17 = vpop.permute.xlu0 %6507 }
 0xb19   :  { %v7100_v42 = vsel %vm2668_vm10, %v7036_v52, %v6510_v31  ;;  %v7099_v23 = vsel %vm2668_vm10, %v7035_v24, %v6508_v17  ;;  %v16958_v17 = vld [vmem:[%s18886_s3 + $0x10] ss:$0 sps:$4 sm:$0x33]  }
 0xb1a   :  { %v16913_v55 = vpack.c.bf16 %v7100_v42, %v7099_v23  ;;  %6529 = vrot.lane.b32.xlu1 %v16907_v32, %s10414_s2  ;;  %6527 = vrot.lane.b32.xlu0 %v16909_v29, %s10414_s2  ;;  %v16968_v54 = vsel %vm3047_vm3, %v16958_v17, 0 }
 0xb1b   :  { %10245 = vmatprep.subr.msk.bf16.mxu1 %vm3047_vm3, %v16958_v17 }
 0xb1c   :  { %v7195_v49 = vunpack.c.l.bf16 %v16913_v55  ;;  %v7196_v40 = vunpack.c.h.bf16 %v16913_v55  ;;  %v6514_v26 = vpop.permute.xlu1 %6513  ;;  %9829 = vmatprep.mubr.msk.bf16.mxu1 %vm2950_vm11, %v16913_v55  ;;  %v6512_v16 = vpop.permute.xlu0 %6511  ;;  %9850 = vmatpush3.bf16.msra.mxu1 %v16968_v54 }
 0xb1d   :  { %v7102_v33 = vsel %vm2668_vm10, %v7038_v62, %v6514_v26  ;;  %v7101_v7 = vsel %vm2668_vm10, %v7037_v28, %v6512_v16  ;;  %9915 = vmatprep.subr.bf16.mxu1 %v16689_v56  ;;  %v4782_v28 = vld [vmem:[#allocation2 + $0x351] sm:$0xff] }
 0xb1e   :  { %v16929_v3 = vsub.f32 %v7099_v23, %v7195_v49  ;;  %v16931_v59 = vsub.f32 %v7100_v42, %v7196_v40  ;;  %v16933_v5 = vpack.c.bf16 %v7102_v33, %v7101_v7  ;;  %5237 = vrot.lane.b32.xlu1 %v10404_v25, %s10408_s16  ;;  %5235 = vrot.lane.b32.xlu0 %v10405_v9, %s10408_s16  ;;  %v4781_v49 = vld [vmem:[#allocation2 + $0x349] sm:$0xff] }
 0xb20   :  { %v7197_v10 = vunpack.c.l.bf16 %v16933_v5  ;;  %v7198_v19 = vunpack.c.h.bf16 %v16933_v5  ;;  %v5222_v57 = vpop.permute.xlu1 %5221  ;;  %9830 = vmatmul.mubr.msk.bf16.gmra.mrb[48].mxu1 %vm2950_vm11, %v16933_v5  ;;  %v5220_v63 = vpop.permute.xlu0 %5219 }
 0xb22   :  { %v16943_v47 = vsub.f32 %v7101_v7, %v7197_v10  ;;  %v16945_v34 = vsub.f32 %v7102_v33, %v7198_v19  ;;  %5241 = vrot.lane.b32.xlu1 %v4710_v39, %s10408_s16  ;;  %5239 = vrot.lane.b32.xlu0 %v4709_v38, %s10408_s16  ;;  %v4852_v39 = vld [vmem:[#allocation2 + $0x33a] sm:$0xff] }
 0xb23   :  { %v19841_v38 = vld [vmem:[#allocation115_spill] sm:$0xff] }
 0xb24   :  { %v16951_v24 = vpop.permute.xlu1 %5225  ;;  %v16953_v31 = vpop.permute.xlu0 %5223  ;;  %v6656_v10 = vsel %vm33_vm0, %v16462_v46, %v19841_v38  ;;  %v19842_v19 = vld [vmem:[#allocation59_spill] sm:$0xff]  ;;  %v6658_v46 = vsel %vm33_vm0, %v16480_v60, %v19843_v35 }
 0xb26   :  { %5493 = vrot.lane.b32.xlu1 %v16822_v0, %s10409_s17  ;;  %5491 = vrot.lane.b32.xlu0 %v16824_v6, %s10409_s17 }
 0xb28   :  { %v5478_v53 = vpop.permute.xlu1 %5477  ;;  %v5476_v42 = vpop.permute.xlu0 %5475 }
 0xb2a   :  { %5497 = vrot.lane.b32.xlu1 %v16841_v58, %s10409_s17  ;;  %5495 = vrot.lane.b32.xlu0 %v16843_v2, %s10409_s17 }
 0xb2c   :  { %v5482_v0 = vpop.permute.xlu1 %5481  ;;  %v5480_v6 = vpop.permute.xlu0 %5479 }
 0xb2e   :  { %5689 = vrot.lane.b32.xlu1 %v16841_v58, %s10410_s18  ;;  %5687 = vrot.lane.b32.xlu0 %v16843_v2, %s10410_s18 }
 0xb30   :  { %v5674_v23 = vpop.permute.xlu1 %5673  ;;  %v5672_v18 = vpop.permute.xlu0 %5671 }
 0xb32   :  { %5693 = vrot.lane.b32.xlu1 %v4780_v12, %s10410_s18  ;;  %5691 = vrot.lane.b32.xlu0 %v4779_v61, %s10410_s18 }
 0xb34   :  { %v5678_v50 = vpop.permute.xlu1 %5677  ;;  %v5676_v62 = vpop.permute.xlu0 %5675 }
 0xb36   :  { %5885 = vrot.lane.b32.xlu1 %v4780_v12, %s10411_s19  ;;  %5883 = vrot.lane.b32.xlu0 %v4779_v61, %s10411_s19  ;;  %v6655_v12 = vsel %vm33_vm0, %v16466_v43, %v19842_v19  ;;  %v19844_v19 = vld [vmem:[#allocation116_spill] sm:$0xff] }
 0xb38   :  { %v5870_v58 = vpop.permute.xlu1 %5869  ;;  %v5868_v40 = vpop.permute.xlu0 %5867 }
 0xb3a   :  { %5889 = vrot.lane.b32.xlu1 %v4782_v28, %s10411_s19  ;;  %5887 = vrot.lane.b32.xlu0 %v4781_v49, %s10411_s19 }
 0xb3c   :  { %v5874_v2 = vpop.permute.xlu1 %5873  ;;  %v5872_v26 = vpop.permute.xlu0 %5871 }
 0xb3e   :  { %6141 = vrot.lane.b32.xlu1 %v16861_v13, %s10412_s22  ;;  %6139 = vrot.lane.b32.xlu0 %v16863_v21, %s10412_s22  ;;  %v4851_v21 = vld [vmem:[#allocation2 + $0x332] sm:$0xff] }
 0xb40   :  { %v6126_v16 = vpop.permute.xlu1 %6125  ;;  %v6124_v33 = vpop.permute.xlu0 %6123 }
 0xb42   :  { %6145 = vrot.lane.b32.xlu1 %v16907_v32, %s10412_s22  ;;  %6143 = vrot.lane.b32.xlu0 %v16909_v29, %s10412_s22 }
 0xb44   :  { %v6130_v7 = vpop.permute.xlu1 %6129  ;;  %v6128_v25 = vpop.permute.xlu0 %6127 }
 0xb46   :  { %6337 = vrot.lane.b32.xlu1 %v16907_v32, %s10413_s27  ;;  %6335 = vrot.lane.b32.xlu0 %v16909_v29, %s10413_s27  ;;  %v6720_v32 = vsel %vm2278_vm4, %v6656_v10, %v5222_v57  ;;  %v6719_v29 = vsel %vm2278_vm4, %v6655_v12, %v5220_v63  ;;  %v6657_v57 = vsel %vm33_vm0, %v16484_v22, %v19844_v19  ;;  %v4853_v22 = vld [vmem:[#allocation2 + $0x34a] sm:$0xff] }
 0xb47   :  { %v6784_v61 = vsel %vm2343_vm5, %v6720_v32, %v5478_v53  ;;  %v6783_v28 = vsel %vm2343_vm5, %v6719_v29, %v5476_v42  ;;  %v6722_v42 = vsel %vm2278_vm4, %v6658_v46, %v16951_v24  ;;  %v6721_v60 = vsel %vm2278_vm4, %v6657_v57, %v16953_v31 }
 0xb48   :  { %v6322_v13 = vpop.permute.xlu1 %6321  ;;  %v6320_v9 = vpop.permute.xlu0 %6319  ;;  %v6848_v43 = vsel %vm2408_vm6, %v6784_v61, %v5674_v23  ;;  %v6847_v38 = vsel %vm2408_vm6, %v6783_v28, %v5672_v18  ;;  %v4854_v18 = vld [vmem:[#allocation2 + $0x352] sm:$0xff] }
 0xb49   :  { %v6912_v63 = vsel %vm2473_vm7, %v6848_v43, %v5870_v58  ;;  %v6911_v53 = vsel %vm2473_vm7, %v6847_v38, %v5868_v40  ;;  %v6786_v58 = vsel %vm2343_vm5, %v6722_v42, %v5482_v0  ;;  %v6785_v40 = vsel %vm2343_vm5, %v6721_v60, %v5480_v6 }
 0xb4a   :  { %6341 = vrot.lane.b32.xlu1 %v4852_v39, %s10413_s27  ;;  %6339 = vrot.lane.b32.xlu0 %v4851_v21, %s10413_s27  ;;  %v6976_v35 = vsel %vm2538_vm8, %v6912_v63, %v6126_v16  ;;  %v6975_v23 = vsel %vm2538_vm8, %v6911_v53, %v6124_v33  ;;  %v6850_v24 = vsel %vm2408_vm6, %v6786_v58, %v5678_v50 }
 0xb4b   :  { %v6849_v31 = vsel %vm2408_vm6, %v6785_v40, %v5676_v62  ;;  %v6914_v32 = vsel %vm2473_vm7, %v6850_v24, %v5874_v2 }
 0xb4c   :  { %v6326_v49 = vpop.permute.xlu1 %6325  ;;  %v6324_v52 = vpop.permute.xlu0 %6323  ;;  %v6913_v0 = vsel %vm2473_vm7, %v6849_v31, %v5872_v26  ;;  %v6978_v6 = vsel %vm2538_vm8, %v6914_v32, %v6130_v7 }
 0xb4d   :  { %v6977_v50 = vsel %vm2538_vm8, %v6913_v0, %v6128_v25  ;;  %v7042_v62 = vsel %vm2603_vm9, %v6978_v6, %v6326_v49 }
 0xb4e   :  { %6533 = vrot.lane.b32.xlu1 %v4852_v39, %s10414_s2  ;;  %6531 = vrot.lane.b32.xlu0 %v4851_v21, %s10414_s2  ;;  %v7040_v39 = vsel %vm2603_vm9, %v6976_v35, %v6322_v13  ;;  %v7039_v21 = vsel %vm2603_vm9, %v6975_v23, %v6320_v9  ;;  %v7041_v13 = vsel %vm2603_vm9, %v6977_v50, %v6324_v52 }
 0xb50   :  { %v6518_v10 = vpop.permute.xlu1 %6517  ;;  %v6516_v12 = vpop.permute.xlu0 %6515 }
 0xb51   :  { %v7104_v16 = vsel %vm2668_vm10, %v7040_v39, %v6518_v10  ;;  %v7103_v33 = vsel %vm2668_vm10, %v7039_v21, %v6516_v12 }
 0xb52   :  { %v17038_v29 = vpack.c.bf16 %v7104_v16, %v7103_v33  ;;  %6537 = vrot.lane.b32.xlu1 %v4854_v18, %s10414_s2  ;;  %6535 = vrot.lane.b32.xlu0 %v4853_v22, %s10414_s2 }
 0xb54   :  { %v7199_v9 = vunpack.c.l.bf16 %v17038_v29  ;;  %v7200_v2 = vunpack.c.h.bf16 %v17038_v29  ;;  %v6522_v61 = vpop.permute.xlu1 %6521  ;;  %9833 = vmatprep.mubr.msk.bf16.mxu1 %vm2950_vm11, %v17038_v29  ;;  %v6520_v26 = vpop.permute.xlu0 %6519 }
 0xb55   :  { %v7106_v28 = vsel %vm2668_vm10, %v7042_v62, %v6522_v61  ;;  %v7105_v46 = vsel %vm2668_vm10, %v7041_v13, %v6520_v26  ;;  %v19847_v13 = vld [vmem:[#allocation117_spill] sm:$0xff] }
 0xb56   :  { %v17052_v7 = vsub.f32 %v7103_v33, %v7199_v9  ;;  %v17054_v25 = vsub.f32 %v7104_v16, %v7200_v2  ;;  %v17056_v49 = vpack.c.bf16 %v7106_v28, %v7105_v46  ;;  %v6660_v9 = vsel %vm33_vm0, %v16612_v14, %v19847_v13  ;;  %v19848_v2 = vld [vmem:[#allocation61_spill] sm:$0xff]  ;;  %v19850_v13 = vld [vmem:[#allocation118_spill] sm:$0xff] }
 0xb57   :  { %v6659_v61 = vsel %vm33_vm0, %v16616_v30, %v19848_v2  ;;  %v6661_v30 = vsel %vm33_vm0, %v16636_v11, %v19850_v13 }
 0xb58   :  { %v7201_v43 = vunpack.c.l.bf16 %v17056_v49  ;;  %v7202_v38 = vunpack.c.h.bf16 %v17056_v49  ;;  %v5230_v19 = vpop.permute.xlu1 %5229  ;;  %9834 = vmatmul.mubr.msk.bf16.gmra.mrb[52].mxu1 %vm2950_vm11, %v17056_v49  ;;  %v5228_v57 = vpop.permute.xlu0 %5227 }
 0xb59   :  { %v6724_v26 = vsel %vm2278_vm4, %v6660_v9, %v5230_v19 }
 0xb5a   :  { %v17064_v63 = vsub.f32 %v7105_v46, %v7201_v43  ;;  %v17066_v53 = vsub.f32 %v7106_v28, %v7202_v38  ;;  %v6723_v28 = vsel %vm2278_vm4, %v6659_v61, %v5228_v57 }
 0xb5c   :  { %19845 = vst [vmem:[#allocation142_spill] sm:$0xff] %v17064_v63  ;;  %19846 = vst [vmem:[#allocation33_spill] sm:$0xff] %v17066_v53  ;;  %v5234_v60 = vpop.permute.xlu1 %5233  ;;  %v5232_v35 = vpop.permute.xlu0 %5231  ;;  %v19849_v53 = vld [vmem:[#allocation62_spill] sm:$0xff] }
 0xb5d   :  { %v6662_v14 = vsel %vm33_vm0, %v16632_v37, %v19849_v53 }
 0xb60   :  { %v5486_v23 = vpop.permute.xlu1 %5485  ;;  %v5484_v18 = vpop.permute.xlu0 %5483 }
 0xb61   :  { %v6788_v46 = vsel %vm2343_vm5, %v6724_v26, %v5486_v23  ;;  %v6787_v43 = vsel %vm2343_vm5, %v6723_v28, %v5484_v18  ;;  %v6726_v23 = vsel %vm2278_vm4, %v6662_v14, %v5234_v60  ;;  %v6725_v18 = vsel %vm2278_vm4, %v6661_v30, %v5232_v35 }
 0xb64   :  { %v5490_v22 = vpop.permute.xlu1 %5489  ;;  %v5488_v58 = vpop.permute.xlu0 %5487 }
 0xb65   :  { %v6790_v9 = vsel %vm2343_vm5, %v6726_v23, %v5490_v22  ;;  %v6789_v37 = vsel %vm2343_vm5, %v6725_v18, %v5488_v58 }
 0xb68   :  { %v5682_v40 = vpop.permute.xlu1 %5681  ;;  %v5680_v39 = vpop.permute.xlu0 %5679 }
 0xb69   :  { %v6852_v52 = vsel %vm2408_vm6, %v6788_v46, %v5682_v40  ;;  %v6851_v63 = vsel %vm2408_vm6, %v6787_v43, %v5680_v39 }
 0xb6c   :  { %v5686_v21 = vpop.permute.xlu1 %5685  ;;  %v5684_v10 = vpop.permute.xlu0 %5683 }
 0xb6d   :  { %v6853_v60 = vsel %vm2408_vm6, %v6789_v37, %v5684_v10 }
 0xb70   :  { %v5878_v12 = vpop.permute.xlu1 %5877  ;;  %v5876_v24 = vpop.permute.xlu0 %5875 }
 0xb71   :  { %v6916_v19 = vsel %vm2473_vm7, %v6852_v52, %v5878_v12  ;;  %v6915_v57 = vsel %vm2473_vm7, %v6851_v63, %v5876_v24  ;;  %v6854_v63 = vsel %vm2408_vm6, %v6790_v9, %v5686_v21 }
 0xb74   :  { %v5882_v31 = vpop.permute.xlu1 %5881  ;;  %v5880_v16 = vpop.permute.xlu0 %5879 }
 0xb75   :  { %v6918_v24 = vsel %vm2473_vm7, %v6854_v63, %v5882_v31  ;;  %v6917_v22 = vsel %vm2473_vm7, %v6853_v60, %v5880_v16 }
 0xb78   :  { %v6134_v33 = vpop.permute.xlu1 %6133  ;;  %v6132_v32 = vpop.permute.xlu0 %6131 }
 0xb79   :  { %v6980_v40 = vsel %vm2538_vm8, %v6916_v19, %v6134_v33  ;;  %v6979_v39 = vsel %vm2538_vm8, %v6915_v57, %v6132_v32 }
 0xb7c   :  { %v6138_v0 = vpop.permute.xlu1 %6137  ;;  %v6136_v6 = vpop.permute.xlu0 %6135 }
 0xb7d   :  { %v6982_v58 = vsel %vm2538_vm8, %v6918_v24, %v6138_v0  ;;  %v6981_v32 = vsel %vm2538_vm8, %v6917_v22, %v6136_v6 }
 0xb80   :  { %v6330_v50 = vpop.permute.xlu1 %6329  ;;  %v6328_v62 = vpop.permute.xlu0 %6327 }
 0xb81   :  { %v7044_v53 = vsel %vm2603_vm9, %v6980_v40, %v6330_v50  ;;  %v7043_v11 = vsel %vm2603_vm9, %v6979_v39, %v6328_v62 }
 0xb84   :  { %v6334_v38 = vpop.permute.xlu1 %6333  ;;  %v6332_v42 = vpop.permute.xlu0 %6331 }
 0xb85   :  { %v7046_v50 = vsel %vm2603_vm9, %v6982_v58, %v6334_v38  ;;  %v7045_v21 = vsel %vm2603_vm9, %v6981_v32, %v6332_v42 }
 0xb88   :  { %v6526_v2 = vpop.permute.xlu1 %6525  ;;  %v6524_v52 = vpop.permute.xlu0 %6523 }
 0xb89   :  { %v7108_v35 = vsel %vm2668_vm10, %v7044_v53, %v6526_v2  ;;  %v7107_v12 = vsel %vm2668_vm10, %v7043_v11, %v6524_v52 }
 0xb8a   :  { %v17104_v33 = vpack.c.bf16 %v7108_v35, %v7107_v12 }
 0xb8c   :  { %v7203_v10 = vunpack.c.l.bf16 %v17104_v33  ;;  %v7204_v62 = vunpack.c.h.bf16 %v17104_v33  ;;  %v6530_v61 = vpop.permute.xlu1 %6529  ;;  %9837 = vmatprep.mubr.msk.bf16.mxu1 %vm2950_vm11, %v17104_v33  ;;  %v6528_v31 = vpop.permute.xlu0 %6527 }
 0xb8d   :  { %v7110_v16 = vsel %vm2668_vm10, %v7046_v50, %v6530_v61  ;;  %v7109_v26 = vsel %vm2668_vm10, %v7045_v21, %v6528_v31  ;;  %v19853_v21 = vld [vmem:[#allocation119_spill] sm:$0xff] }
 0xb8e   :  { %v17116_v0 = vsub.f32 %v7107_v12, %v7203_v10  ;;  %v17118_v6 = vsub.f32 %v7108_v35, %v7204_v62  ;;  %v17120_v28 = vpack.c.bf16 %v7110_v16, %v7109_v26  ;;  %v6664_v10 = vsel %vm33_vm0, %v16778_v44, %v19853_v21  ;;  %v19854_v62 = vld [vmem:[#allocation128_spill] sm:$0xff]  ;;  %v19856_v21 = vld [vmem:[#allocation130_spill] sm:$0xff] }
 0xb8f   :  { %v6663_v61 = vsel %vm33_vm0, %v16782_v45, %v19854_v62  ;;  %v6665_v45 = vsel %vm33_vm0, %v16800_v48, %v19856_v21 }
 0xb90   :  { %v7205_v46 = vunpack.c.l.bf16 %v17120_v28  ;;  %v7206_v43 = vunpack.c.h.bf16 %v17120_v28  ;;  %v5238_v38 = vpop.permute.xlu1 %5237  ;;  %9838 = vmatmul.mubr.msk.bf16.gmra.mrb[56].mxu1 %vm2950_vm11, %v17120_v28  ;;  %v5236_v14 = vpop.permute.xlu0 %5235 }
 0xb91   :  { %v6728_v31 = vsel %vm2278_vm4, %v6664_v10, %v5238_v38 }
 0xb92   :  { %v17128_v13 = vsub.f32 %v7109_v26, %v7205_v46  ;;  %v17130_v30 = vsub.f32 %v7110_v16, %v7206_v43  ;;  %v6727_v16 = vsel %vm2278_vm4, %v6663_v61, %v5236_v14 }
 0xb94   :  { %19851 = vst [vmem:[#allocation85_spill] sm:$0xff] %v17128_v13  ;;  %19852 = vst [vmem:[#allocation143_spill] sm:$0xff] %v17130_v30  ;;  %v5242_v57 = vpop.permute.xlu1 %5241  ;;  %v5240_v23 = vpop.permute.xlu0 %5239  ;;  %v19855_v30 = vld [vmem:[#allocation20_spill] sm:$0xff] }
 0xb95   :  { %v6666_v44 = vsel %vm33_vm0, %v16796_v1, %v19855_v30 }
 0xb98   :  { %v5494_v18 = vpop.permute.xlu1 %5493  ;;  %v5492_v40 = vpop.permute.xlu0 %5491 }
 0xb99   :  { %v6792_v26 = vsel %vm2343_vm5, %v6728_v31, %v5494_v18  ;;  %v6791_v46 = vsel %vm2343_vm5, %v6727_v16, %v5492_v40  ;;  %v6730_v18 = vsel %vm2278_vm4, %v6666_v44, %v5242_v57  ;;  %v6729_v40 = vsel %vm2278_vm4, %v6665_v45, %v5240_v23  ;;  %v19868_v45 = vld [vmem:[#allocation136_spill] sm:$0xff] }
 0xb9c   :  { %v5498_v39 = vpop.permute.xlu1 %5497  ;;  %v5496_v9 = vpop.permute.xlu0 %5495 }
 0xb9d   :  { %v6794_v10 = vsel %vm2343_vm5, %v6730_v18, %v5498_v39  ;;  %v6793_v1 = vsel %vm2343_vm5, %v6729_v40, %v5496_v9  ;;  %v19871_v18 = vld [vmem:[#allocation29_spill] sm:$0xff]  ;;  %v19872_v40 = vld [vmem:[#allocation30_spill] sm:$0xff] }
 0xba0   :  { %v5690_v37 = vpop.permute.xlu1 %5689  ;;  %v5688_v53 = vpop.permute.xlu0 %5687 }
 0xba1   :  { %v6856_v42 = vsel %vm2408_vm6, %v6792_v26, %v5690_v37  ;;  %v6855_v13 = vsel %vm2408_vm6, %v6791_v46, %v5688_v53 }
 0xba4   :  { %v5694_v11 = vpop.permute.xlu1 %5693  ;;  %v5692_v2 = vpop.permute.xlu0 %5691 }
 0xba5   :  { %v6857_v57 = vsel %vm2408_vm6, %v6793_v1, %v5692_v2 }
 0xba8   :  { %v5886_v52 = vpop.permute.xlu1 %5885  ;;  %v5884_v63 = vpop.permute.xlu0 %5883 }
 0xba9   :  { %v6920_v38 = vsel %vm2473_vm7, %v6856_v42, %v5886_v52  ;;  %v6919_v14 = vsel %vm2473_vm7, %v6855_v13, %v5884_v63  ;;  %v6858_v13 = vsel %vm2408_vm6, %v6794_v10, %v5694_v11 }
 0xbac   :  { %v5890_v60 = vpop.permute.xlu1 %5889  ;;  %v5888_v35 = vpop.permute.xlu0 %5887 }
 0xbad   :  { %v6922_v63 = vsel %vm2473_vm7, %v6858_v13, %v5890_v60  ;;  %v6921_v39 = vsel %vm2473_vm7, %v6857_v57, %v5888_v35  ;;  %v19887_v13 = vld [vmem:[#allocation11_spill] sm:$0xff] }
 0xbb0   :  { %v6142_v12 = vpop.permute.xlu1 %6141  ;;  %v6140_v24 = vpop.permute.xlu0 %6139 }
 0xbb1   :  { %v6984_v37 = vsel %vm2538_vm8, %v6920_v38, %v6142_v12  ;;  %v6983_v53 = vsel %vm2538_vm8, %v6919_v14, %v6140_v24  ;;  %v19869_v38 = vld [vmem:[#allocation137_spill] sm:$0xff]  ;;  %v19870_v14 = vld [vmem:[#allocation80_spill] sm:$0xff] }
 0xbb4   :  { %v6146_v22 = vpop.permute.xlu1 %6145  ;;  %v6144_v58 = vpop.permute.xlu0 %6143 }
 0xbb5   :  { %v6986_v9 = vsel %vm2538_vm8, %v6922_v63, %v6146_v22  ;;  %v6985_v24 = vsel %vm2538_vm8, %v6921_v39, %v6144_v58  ;;  %v19892_v39 = vld [vmem:[#allocation14_spill] sm:$0xff] }
 0xbb8   :  { %v6338_v32 = vpop.permute.xlu1 %6337  ;;  %v6336_v50 = vpop.permute.xlu0 %6335 }
 0xbb9   :  { %v7048_v30 = vsel %vm2603_vm9, %v6984_v37, %v6338_v32  ;;  %v7047_v48 = vsel %vm2603_vm9, %v6983_v53, %v6336_v50  ;;  %v19873_v37 = vld [vmem:[#allocation84_spill] sm:$0xff]  ;;  %v19875_v53 = vld [vmem:[#allocation5_spill] sm:$0xff] }
 0xbbc   :  { %v6342_v43 = vpop.permute.xlu1 %6341  ;;  %v6340_v19 = vpop.permute.xlu0 %6339 }
 0xbbd   :  { %v7050_v32 = vsel %vm2603_vm9, %v6986_v9, %v6342_v43  ;;  %v7049_v50 = vsel %vm2603_vm9, %v6985_v24, %v6340_v19  ;;  %v19895_v24 = vld [vmem:[#allocation66_spill] sm:$0xff] }
 0xbc0   :  { %v6534_v62 = vpop.permute.xlu1 %6533  ;;  %v6532_v42 = vpop.permute.xlu0 %6531 }
 0xbc1   :  { %v7112_v23 = vsel %vm2668_vm10, %v7048_v30, %v6534_v62  ;;  %v7111_v52 = vsel %vm2668_vm10, %v7047_v48, %v6532_v42  ;;  %v19881_v30 = vld [vmem:[#allocation86_spill] sm:$0xff]  ;;  %v19886_v42 = vld [vmem:[#allocation65_spill] sm:$0xff] }
 0xbc2   :  { %v7145_v12 = vpack.c.bf16 %v7112_v23, %v7111_v52  ;;  %v19884_v48 = vld [vmem:[#allocation90_spill] sm:$0xff]  ;;  %v19888_v57 = vpack.c.bf16 %v19886_v42, %v19887_v13  ;;  %v19937_v13 = vld [vmem:[#allocation140_spill] sm:$0xff] }
 0xbc4   :  { %v7207_v11 = vunpack.c.l.bf16 %v7145_v12  ;;  %v7208_v61 = vunpack.c.h.bf16 %v7145_v12  ;;  %v6538_v2 = vpop.permute.xlu1 %6537  ;;  %9841 = vmatprep.mubr.msk.bf16.mxu1 %vm2950_vm11, %v7145_v12  ;;  %v6536_v31 = vpop.permute.xlu0 %6535 }
 0xbc5   :  { %v7114_v16 = vsel %vm2668_vm10, %v7050_v32, %v6538_v2  ;;  %v7113_v60 = vsel %vm2668_vm10, %v7049_v50, %v6536_v31  ;;  %v19896_v32 = vld [vmem:[#allocation67_spill] sm:$0xff]  ;;  %v19901_v31 = vld [vmem:[#allocation68_spill] sm:$0xff] }
 0xbc6   :  { %v17175_v35 = vsub.f32 %v7111_v52, %v7207_v11  ;;  %v17177_v26 = vsub.f32 %v7112_v23, %v7208_v61  ;;  %v7146_v22 = vpack.c.bf16 %v7114_v16, %v7113_v60  ;;  %v19889_v23 = vld [vmem:[#allocation123_spill] sm:$0xff]  ;;  %v19890_v52 = vld [vmem:[#allocation64_spill] sm:$0xff]  ;;  %v19897_v50 = vpack.c.bf16 %v19895_v24, %v19896_v32 }
 0xbc7   :  { %v19891_v63 = vpack.c.bf16 %v19889_v23, %v19890_v52  ;;  %v19898_v11 = vld [vmem:[#allocation16_spill] sm:$0xff]  ;;  %v19940_v52 = vld [vmem:[#allocation31_spill] sm:$0xff]  ;;  %v19946_v32 = vpack.c.bf16 %v16931_v59, %v16929_v3  ;;  %v19952_v3 = vpack.c.bf16 %v17118_v6, %v17116_v0 }
 0xbc8   :  { %v7305_v58 = vpack.c.bf16 %v17177_v26, %v17175_v35  ;;  %v7209_v46 = vunpack.c.l.bf16 %v7146_v22  ;;  %v7210_v19 = vunpack.c.h.bf16 %v7146_v22  ;;  %9842 = vmatmul.mubr.msk.bf16.gmra.mrb[60].mxu1 %vm2950_vm11, %v7146_v22  ;;  %v19899_v61 = vld [vmem:[#allocation124_spill] sm:$0xff]  ;;  %v19953_v59 = vld [vmem:[#allocation143_spill] sm:$0xff] }
 0xbc9   :  { %9851 = vmatprep.mubr.msk.bf16.mxu1 %vm2950_vm11, %v15212_v36  ;;  %v19857_v36 = vld [vmem:[#allocation13_spill] sm:$0xff]  ;;  %v19900_v2 = vpack.c.bf16 %v19898_v11, %v19899_v61  ;;  %v19948_v11 = vpack.c.bf16 %v17054_v25, %v17052_v7 }
 0xbca   :  { %v17184_v43 = vsub.f32 %v7113_v60, %v7209_v46  ;;  %v17186_v44 = vsub.f32 %v7114_v16, %v7210_v19  ;;  %v19902_v16 = vld [vmem:[#allocation69_spill] sm:$0xff]  ;;  %v19905_v46 = vld [vmem:[#allocation126_spill] sm:$0xff] }
 0xbcb   :  { %v19903_v60 = vpack.c.bf16 %v19901_v31, %v19902_v16  ;;  %v19949_v61 = vld [vmem:[#allocation33_spill] sm:$0xff] }
 0xbcc   :  { %v7306_v21 = vpack.c.bf16 %v17186_v44, %v17184_v43  ;;  %v19954_v16 = vld [vmem:[#allocation85_spill] sm:$0xff] }
 0xbd0   :  { %9852 = vmatmul.mubr.msk.bf16.vlgmr.msra.gmra.mrb[0].mxu1 %vm2950_vm11, %v15232_v8  ;;  %v19858_v8 = vld [vmem:[#allocation125_spill] sm:$0xff] }
 0xbd1   :  { %9916 = vmatpush3.bf16.msra.mxu1 %v16689_v56  ;;  %9855 = vmatprep.mubr.msk.bf16.mxu1 %vm2950_vm11, %v15332_v27  ;;  %v19859_v27 = vld [vmem:[#allocation15_spill] sm:$0xff] }
 0xbd2   :  { %9917 = vmatprep.subr.bf16.mxu1 %v16829_v41  ;;  %v19862_v56 = vld [vmem:[#allocation19_spill] sm:$0xff] }
 0xbd5   :  { %9918 = vmatpush3.bf16.msra.mxu1 %v16829_v41  ;;  %v19865_v41 = vld [vmem:[#allocation133_spill] sm:$0xff] }
 0xbd6   :  { %10246 = vmatprep.subr.msk.bf16.mxu1 %vm3047_vm3, %v16958_v17  ;;  %v19866_v17 = vld [vmem:[#allocation134_spill] sm:$0xff] }
 0xbd8   :  { %9856 = vmatmul.mubr.msk.bf16.gmra.mrb[4].mxu1 %vm2950_vm11, %v15352_v15  ;;  %v19860_v15 = vld [vmem:[#allocation127_spill] sm:$0xff] }
 0xbd9   :  { %9859 = vmatprep.mubr.msk.bf16.mxu1 %vm2950_vm11, %v15450_v4  ;;  %9920 = vmatpush3.bf16.msra.mxu1 %v16968_v54  ;;  %v19861_v4 = vld [vmem:[#allocation17_spill] sm:$0xff]  ;;  %v19867_v54 = vld [vmem:[#allocation135_spill] sm:$0xff] }
 0xbe0   :  { %9860 = vmatmul.mubr.msk.bf16.gmra.mrb[8].mxu1 %vm2950_vm11, %v15470_v51  ;;  %v19863_v51 = vld [vmem:[#allocation72_spill] sm:$0xff] }
 0xbe1   :  { %9863 = vmatprep.mubr.msk.bf16.mxu1 %vm2950_vm11, %v15594_v20  ;;  %v19864_v20 = vld [vmem:[#allocation75_spill] sm:$0xff] }
 0xbe8   :  { %9864 = vmatmul.mubr.msk.bf16.gmra.mrb[12].mxu1 %vm2950_vm11, %v19857_v36  ;;  %v19907_v36 = vld [vmem:[#allocation70_spill] sm:$0xff] }
 0xbe9   :  { %9867 = vmatprep.mubr.msk.bf16.mxu1 %vm2950_vm11, %v19858_v8  ;;  %v19908_v8 = vld [vmem:[#allocation71_spill] sm:$0xff] }
 0xbf0   :  { %9868 = vmatmul.mubr.msk.bf16.gmra.mrb[16].mxu1 %vm2950_vm11, %v19859_v27  ;;  %v19909_v27 = vpack.c.bf16 %v19907_v36, %v19908_v8 }
 0xbf1   :  { %9871 = vmatprep.mubr.msk.bf16.mxu1 %vm2950_vm11, %v19860_v15  ;;  %v19910_v15 = vld [vmem:[#allocation73_spill] sm:$0xff] }
 0xbf8   :  { %9872 = vmatmul.mubr.msk.bf16.gmra.mrb[20].mxu1 %vm2950_vm11, %v19861_v4  ;;  %v19911_v4 = vld [vmem:[#allocation129_spill] sm:$0xff] }
 0xbf9   :  { %9875 = vmatprep.mubr.msk.bf16.mxu1 %vm2950_vm11, %v19862_v56  ;;  %v19912_v56 = vpack.c.bf16 %v19910_v15, %v19911_v4 }
 0xc00   :  { %9876 = vmatmul.mubr.msk.bf16.gmra.mrb[24].mxu1 %vm2950_vm11, %v19863_v51  ;;  %v19913_v51 = vld [vmem:[#allocation131_spill] sm:$0xff] }
 0xc01   :  { %9879 = vmatprep.mubr.msk.bf16.mxu1 %vm2950_vm11, %v19864_v20  ;;  %v19914_v20 = vld [vmem:[#allocation21_spill] sm:$0xff] }
 0xc08   :  { %9880 = vmatmul.mubr.msk.bf16.gmra.mrb[28].mxu1 %vm2950_vm11, %v19865_v41  ;;  %v19915_v41 = vpack.c.bf16 %v19913_v51, %v19914_v20 }
 0xc09   :  { %9883 = vmatprep.mubr.msk.bf16.mxu1 %vm2950_vm11, %v19866_v17  ;;  %v19916_v17 = vld [vmem:[#allocation23_spill] sm:$0xff] }
 0xc10   :  { %9884 = vmatmul.mubr.msk.bf16.gmra.mrb[32].mxu1 %vm2950_vm11, %v19867_v54  ;;  %v19917_v54 = vld [vmem:[#allocation74_spill] sm:$0xff] }
 0xc11   :  { %9887 = vmatprep.mubr.msk.bf16.mxu1 %vm2950_vm11, %v19868_v45  ;;  %v19918_v45 = vpack.c.bf16 %v19916_v17, %v19917_v54 }
 0xc18   :  { %9888 = vmatmul.mubr.msk.bf16.gmra.mrb[36].mxu1 %vm2950_vm11, %v19869_v38  ;;  %v19919_v38 = vld [vmem:[#allocation24_spill] sm:$0xff] }
 0xc19   :  { %9891 = vmatprep.mubr.msk.bf16.mxu1 %vm2950_vm11, %v19870_v14  ;;  %v19920_v14 = vld [vmem:[#allocation76_spill] sm:$0xff] }
 0xc20   :  { %9892 = vmatmul.mubr.msk.bf16.gmra.mrb[40].mxu1 %vm2950_vm11, %v19871_v18  ;;  %v19921_v18 = vpack.c.bf16 %v19919_v38, %v19920_v14 }
 0xc21   :  { %9895 = vmatprep.mubr.msk.bf16.mxu1 %vm2950_vm11, %v19872_v40  ;;  %v19922_v40 = vld [vmem:[#allocation25_spill] sm:$0xff] }
 0xc28   :  { %9896 = vmatmul.mubr.msk.bf16.gmra.mrb[44].mxu1 %vm2950_vm11, %v19873_v37  ;;  %v19923_v37 = vld [vmem:[#allocation77_spill] sm:$0xff] }
 0xc29   :  { %9899 = vmatprep.mubr.msk.bf16.mxu1 %vm2950_vm11, %v16913_v55  ;;  %v19874_v55 = vld [vmem:[#allocation121_spill] sm:$0xff] }
 0xc2a   :  { %v19876_v10 = vpack.c.bf16 %v19874_v55, %v19875_v53  ;;  %v19924_v55 = vpack.c.bf16 %v19922_v40, %v19923_v37  ;;  %v19925_v53 = vld [vmem:[#allocation26_spill] sm:$0xff] }
 0xc30   :  { %9900 = vmatmul.mubr.msk.bf16.gmra.mrb[48].mxu1 %vm2950_vm11, %v16933_v5  ;;  %v19877_v5 = vld [vmem:[#allocation87_spill] sm:$0xff] }
 0xc31   :  { %9903 = vmatprep.mubr.msk.bf16.mxu1 %vm2950_vm11, %v17038_v29  ;;  %v19878_v29 = vld [vmem:[#allocation120_spill] sm:$0xff] }
 0xc32   :  { %v19879_v1 = vpack.c.bf16 %v19877_v5, %v19878_v29  ;;  %v19928_v29 = vld [vmem:[#allocation27_spill] sm:$0xff] }
 0xc38   :  { %9904 = vmatmul.mubr.msk.bf16.gmra.mrb[52].mxu1 %vm2950_vm11, %v17056_v49  ;;  %v19880_v49 = vld [vmem:[#allocation91_spill] sm:$0xff] }
 0xc39   :  { %9907 = vmatprep.mubr.msk.bf16.mxu1 %vm2950_vm11, %v17104_v33  ;;  %v19882_v33 = vpack.c.bf16 %v19880_v49, %v19881_v30  ;;  %v19931_v30 = vld [vmem:[#allocation28_spill] sm:$0xff] }
 0xc40   :  { %9908 = vmatmul.mubr.msk.bf16.gmra.mrb[56].mxu1 %vm2950_vm11, %v17120_v28  ;;  %v19883_v28 = vld [vmem:[#allocation12_spill] sm:$0xff] }
 0xc41   :  { %9911 = vmatprep.mubr.msk.bf16.mxu1 %vm2950_vm11, %v7145_v12  ;;  %v19885_v62 = vpack.c.bf16 %v19883_v28, %v19884_v48  ;;  %v19893_v12 = vld [vmem:[#allocation122_spill] sm:$0xff]  ;;  %v19934_v48 = vld [vmem:[#allocation139_spill] sm:$0xff] }
 0xc42   :  { %v19894_v9 = vpack.c.bf16 %v19892_v39, %v19893_v12  ;;  %v19943_v12 = vld [vmem:[#allocation32_spill] sm:$0xff] }
 0xc48   :  { %9912 = vmatmul.mubr.msk.bf16.gmra.mrb[60].mxu1 %vm2950_vm11, %v7146_v22  ;;  %v19904_v22 = vld [vmem:[#allocation18_spill] sm:$0xff] }
 0xc49   :  { %9921 = vmatprep.mubr.msk.bf16.mxu1 %vm2950_vm11, %v19876_v10  ;;  %v19906_v19 = vpack.c.bf16 %v19904_v22, %v19905_v46  ;;  %v19926_v10 = vld [vmem:[#allocation78_spill] sm:$0xff] }
 0xc4a   :  { %v19927_v5 = vpack.c.bf16 %v19925_v53, %v19926_v10 }
 0xc50   :  { %9922 = vmatmul.mubr.msk.bf16.vlgmr.msra.gmra.mrb[0].mxu1 %vm2950_vm11, %v19879_v1  ;;  %v19929_v1 = vld [vmem:[#allocation79_spill] sm:$0xff] }
 0xc51   :  { %9925 = vmatprep.mubr.msk.bf16.mxu1 %vm2950_vm11, %v19882_v33  ;;  %v19930_v49 = vpack.c.bf16 %v19928_v29, %v19929_v1  ;;  %v19932_v33 = vld [vmem:[#allocation81_spill] sm:$0xff] }
 0xc52   :  { %v19933_v28 = vpack.c.bf16 %v19931_v30, %v19932_v33 }
 0xc58   :  { %9926 = vmatmul.mubr.msk.bf16.gmra.mrb[4].mxu1 %vm2950_vm11, %v19885_v62  ;;  %v19935_v62 = vld [vmem:[#allocation138_spill] sm:$0xff] }
 0xc59   :  { %9929 = vmatprep.mubr.msk.bf16.mxu1 %vm2950_vm11, %v19888_v57  ;;  %v19936_v42 = vpack.c.bf16 %v19934_v48, %v19935_v62  ;;  %v19938_v57 = vld [vmem:[#allocation82_spill] sm:$0xff] }
 0xc5a   :  { %v19939_v23 = vpack.c.bf16 %v19937_v13, %v19938_v57 }
 0xc60   :  { %9930 = vmatmul.mubr.msk.bf16.gmra.mrb[8].mxu1 %vm2950_vm11, %v19891_v63  ;;  %v19941_v63 = vld [vmem:[#allocation83_spill] sm:$0xff] }
 0xc61   :  { %9933 = vmatprep.mubr.msk.bf16.mxu1 %vm2950_vm11, %v19894_v9  ;;  %v19942_v39 = vpack.c.bf16 %v19940_v52, %v19941_v63  ;;  %v19944_v9 = vld [vmem:[#allocation141_spill] sm:$0xff] }
 0xc62   :  { %v19945_v24 = vpack.c.bf16 %v19943_v12, %v19944_v9 }
 0xc68   :  { %9934 = vmatmul.mubr.msk.bf16.gmra.mrb[12].mxu1 %vm2950_vm11, %v19897_v50  ;;  %v19947_v50 = vpack.c.bf16 %v16945_v34, %v16943_v47  ;;  %v19955_v47 = vpack.c.bf16 %v19953_v59, %v19954_v16 }
 0xc69   :  { %9937 = vmatprep.mubr.msk.bf16.mxu1 %vm2950_vm11, %v19900_v2  ;;  %v19950_v2 = vld [vmem:[#allocation142_spill] sm:$0xff] }
 0xc6a   :  { %v19951_v31 = vpack.c.bf16 %v19949_v61, %v19950_v2 }
 0xc70   :  { %9938 = vmatmul.mubr.msk.bf16.gmra.mrb[16].mxu1 %vm2950_vm11, %v19903_v60 }
 0xc71   :  { %9941 = vmatprep.mubr.msk.bf16.mxu1 %vm2950_vm11, %v19906_v19 }
 0xc78   :  { %9942 = vmatmul.mubr.msk.bf16.gmra.mrb[20].mxu1 %vm2950_vm11, %v19909_v27 }
 0xc79   :  { %9945 = vmatprep.mubr.msk.bf16.mxu1 %vm2950_vm11, %v19912_v56 }
 0xc80   :  { %9946 = vmatmul.mubr.msk.bf16.gmra.mrb[24].mxu1 %vm2950_vm11, %v19915_v41 }
 0xc81   :  { %9949 = vmatprep.mubr.msk.bf16.mxu1 %vm2950_vm11, %v19918_v45 }
 0xc88   :  { %9950 = vmatmul.mubr.msk.bf16.gmra.mrb[28].mxu1 %vm2950_vm11, %v19921_v18 }
 0xc89   :  { %9953 = vmatprep.mubr.msk.bf16.mxu1 %vm2950_vm11, %v19924_v55 }
 0xc90   :  { %9954 = vmatmul.mubr.msk.bf16.gmra.mrb[32].mxu1 %vm2950_vm11, %v19927_v5 }
 0xc91   :  { %9957 = vmatprep.mubr.msk.bf16.mxu1 %vm2950_vm11, %v19930_v49 }
 0xc98   :  { %9958 = vmatmul.mubr.msk.bf16.gmra.mrb[36].mxu1 %vm2950_vm11, %v19933_v28 }
 0xc99   :  { %9961 = vmatprep.mubr.msk.bf16.mxu1 %vm2950_vm11, %v19936_v42 }
 0xca0   :  { %9962 = vmatmul.mubr.msk.bf16.gmra.mrb[40].mxu1 %vm2950_vm11, %v19939_v23 }
 0xca1   :  { %9965 = vmatprep.mubr.msk.bf16.mxu1 %vm2950_vm11, %v19942_v39 }
 0xca8   :  { %9966 = vmatmul.mubr.msk.bf16.gmra.mrb[44].mxu1 %vm2950_vm11, %v19945_v24 }
 0xca9   :  { %9969 = vmatprep.mubr.msk.bf16.mxu1 %vm2950_vm11, %v19946_v32 }
 0xcb0   :  { %9970 = vmatmul.mubr.msk.bf16.gmra.mrb[48].mxu1 %vm2950_vm11, %v19947_v50 }
 0xcb1   :  { %9973 = vmatprep.mubr.msk.bf16.mxu1 %vm2950_vm11, %v19948_v11 }
 0xcb8   :  { %9974 = vmatmul.mubr.msk.bf16.gmra.mrb[52].mxu1 %vm2950_vm11, %v19951_v31 }
 0xcb9   :  { %9977 = vmatprep.mubr.msk.bf16.mxu1 %vm2950_vm11, %v19952_v3 }
 0xcc0   :  { %9978 = vmatmul.mubr.msk.bf16.gmra.mrb[56].mxu1 %vm2950_vm11, %v19955_v47 }
 0xcc1   :  { %9981 = vmatprep.mubr.msk.bf16.mxu1 %vm2950_vm11, %v7305_v58 }
 0xcc8   :  { %9982 = vmatmul.mubr.msk.bf16.gmra.mrb[60].mxu1 %vm2950_vm11, %v7306_v21 }
 0xd23   :  { %v17384_v34 = vpop.f32.mrb[0].mxu1 }
 0xd24   :  { %19956 = vst [vmem:[#allocation88_spill] sm:$0xff] %v17384_v34  ;;  %v17386_v7 = vpop.f32.mrb[1].mxu1 }
 0xd25   :  { %v17388_v25 = vpop.f32.mrb[2].mxu1 }
 0xd26   :  { %19957 = vst [vmem:[#allocation144_spill] sm:$0xff] %v17388_v25  ;;  %v17390_v0 = vpop.f32.mrb[3].mxu1 }
 0xd27   :  { %19958 = vst [vmem:[#allocation34_spill] sm:$0xff] %v17390_v0  ;;  %v8478_v6 = vadd.f32 %v17390_v0, %v17386_v7 }
 0xd29   :  { %v8479_v35 = vadd.f32 %v17384_v34, %v8478_v6 }
 0xd2b   :  { %v17395_v26 = vpop.f32.mrb[4].mxu1  ;;  %v8480_v58 = vadd.f32 %v17388_v25, %v8479_v35 }
 0xd2c   :  { %v17398_v43 = vpop.f32.mrb[5].mxu1 }
 0xd2d   :  { %19959 = vst [vmem:[#allocation89_spill] sm:$0xff] %v17398_v43  ;;  %v8481_v44 = vadd.f32 %v8480_v58, %v17398_v43  ;;  %v17401_v21 = vpop.f32.mrb[6].mxu1 }
 0xd2e   :  { %v17403_v60 = vpop.f32.mrb[7].mxu1 }
 0xd2f   :  { %v8482_v22 = vadd.f32 %v8481_v44, %v17403_v60 }
 0xd31   :  { %v8483_v46 = vadd.f32 %v17395_v26, %v8482_v22 }
 0xd33   :  { %v17407_v19 = vpop.f32.mrb[8].mxu1  ;;  %v8484_v36 = vadd.f32 %v17401_v21, %v8483_v46 }
 0xd34   :  { %v17410_v8 = vpop.f32.mrb[9].mxu1 }
 0xd35   :  { %v8485_v27 = vadd.f32 %v8484_v36, %v17410_v8  ;;  %v17413_v15 = vpop.f32.mrb[10].mxu1 }
 0xd36   :  { %v17415_v4 = vpop.f32.mrb[11].mxu1 }
 0xd37   :  { %v8486_v56 = vadd.f32 %v8485_v27, %v17415_v4 }
 0xd39   :  { %v8487_v51 = vadd.f32 %v17407_v19, %v8486_v56 }
 0xd3b   :  { %v17419_v20 = vpop.f32.mrb[12].mxu1  ;;  %v8488_v41 = vadd.f32 %v17413_v15, %v8487_v51 }
 0xd3c   :  { %v17422_v17 = vpop.f32.mrb[13].mxu1 }
 0xd3d   :  { %v8489_v54 = vadd.f32 %v8488_v41, %v17422_v17  ;;  %v17425_v45 = vpop.f32.mrb[14].mxu1 }
 0xd3e   :  { %v17427_v38 = vpop.f32.mrb[15].mxu1 }
 0xd3f   :  { %v8490_v14 = vadd.f32 %v8489_v54, %v17427_v38 }
 0xd41   :  { %v8491_v18 = vadd.f32 %v17419_v20, %v8490_v14 }
 0xd43   :  { %v17431_v40 = vpop.f32.mrb[16].mxu1  ;;  %v8492_v37 = vadd.f32 %v17425_v45, %v8491_v18 }
 0xd44   :  { %v17434_v55 = vpop.f32.mrb[17].mxu1 }
 0xd45   :  { %v8493_v53 = vadd.f32 %v8492_v37, %v17434_v55  ;;  %v17437_v10 = vpop.f32.mrb[18].mxu1 }
 0xd46   :  { %v17439_v5 = vpop.f32.mrb[19].mxu1 }
 0xd47   :  { %v8494_v29 = vadd.f32 %v8493_v53, %v17439_v5 }
 0xd49   :  { %v8495_v1 = vadd.f32 %v17431_v40, %v8494_v29 }
 0xd4b   :  { %v17443_v49 = vpop.f32.mrb[20].mxu1  ;;  %v8496_v30 = vadd.f32 %v17437_v10, %v8495_v1 }
 0xd4c   :  { %v17446_v33 = vpop.f32.mrb[21].mxu1 }
 0xd4d   :  { %v8497_v28 = vadd.f32 %v8496_v30, %v17446_v33  ;;  %v17449_v48 = vpop.f32.mrb[22].mxu1 }
 0xd4e   :  { %v17451_v62 = vpop.f32.mrb[23].mxu1 }
 0xd4f   :  { %v8498_v42 = vadd.f32 %v8497_v28, %v17451_v62 }
 0xd51   :  { %v8499_v13 = vadd.f32 %v17443_v49, %v8498_v42 }
 0xd53   :  { %v17455_v57 = vpop.f32.mrb[24].mxu1  ;;  %v8500_v23 = vadd.f32 %v17449_v48, %v8499_v13 }
 0xd54   :  { %v17458_v52 = vpop.f32.mrb[25].mxu1 }
 0xd55   :  { %v8501_v63 = vadd.f32 %v8500_v23, %v17458_v52  ;;  %v17461_v39 = vpop.f32.mrb[26].mxu1 }
 0xd56   :  { %v17463_v12 = vpop.f32.mrb[27].mxu1 }
 0xd57   :  { %v8502_v9 = vadd.f32 %v8501_v63, %v17463_v12 }
 0xd59   :  { %v8503_v24 = vadd.f32 %v17455_v57, %v8502_v9 }
 0xd5b   :  { %v17467_v32 = vpop.f32.mrb[28].mxu1  ;;  %v8504_v50 = vadd.f32 %v17461_v39, %v8503_v24 }
 0xd5c   :  { %v17470_v11 = vpop.f32.mrb[29].mxu1 }
 0xd5d   :  { %v8505_v61 = vadd.f32 %v8504_v50, %v17470_v11  ;;  %v17473_v2 = vpop.f32.mrb[30].mxu1 }
 0xd5e   :  { %v17475_v31 = vpop.f32.mrb[31].mxu1 }
 0xd5f   :  { %v8506_v3 = vadd.f32 %v8505_v61, %v17475_v31 }
 0xd61   :  { %v8507_v59 = vadd.f32 %v17467_v32, %v8506_v3 }
 0xd63   :  { %v17479_v16 = vpop.f32.mrb[32].mxu1  ;;  %v8508_v47 = vadd.f32 %v17473_v2, %v8507_v59 }
 0xd64   :  { %v17482_v6 = vpop.f32.mrb[33].mxu1 }
 0xd65   :  { %v8509_v35 = vadd.f32 %v8508_v47, %v17482_v6  ;;  %v17485_v58 = vpop.f32.mrb[34].mxu1 }
 0xd66   :  { %v17487_v44 = vpop.f32.mrb[35].mxu1 }
 0xd67   :  { %v8510_v22 = vadd.f32 %v8509_v35, %v17487_v44 }
 0xd69   :  { %v8511_v46 = vadd.f32 %v17479_v16, %v8510_v22 }
 0xd6b   :  { %v17491_v36 = vpop.f32.mrb[36].mxu1  ;;  %v8512_v27 = vadd.f32 %v17485_v58, %v8511_v46 }
 0xd6c   :  { %v17494_v56 = vpop.f32.mrb[37].mxu1 }
 0xd6d   :  { %v8513_v51 = vadd.f32 %v8512_v27, %v17494_v56  ;;  %v17497_v41 = vpop.f32.mrb[38].mxu1 }
 0xd6e   :  { %v17499_v54 = vpop.f32.mrb[39].mxu1 }
 0xd6f   :  { %v8514_v14 = vadd.f32 %v8513_v51, %v17499_v54 }
 0xd71   :  { %v8515_v18 = vadd.f32 %v17491_v36, %v8514_v14 }
 0xd73   :  { %v17503_v37 = vpop.f32.mrb[40].mxu1  ;;  %v8516_v53 = vadd.f32 %v17497_v41, %v8515_v18 }
 0xd74   :  { %v17506_v29 = vpop.f32.mrb[41].mxu1 }
 0xd75   :  { %v8517_v1 = vadd.f32 %v8516_v53, %v17506_v29  ;;  %v17509_v30 = vpop.f32.mrb[42].mxu1 }
 0xd76   :  { %19960 = vst [vmem:[#allocation35_spill] sm:$0xff] %v17509_v30  ;;  %v17511_v28 = vpop.f32.mrb[43].mxu1 }
 0xd77   :  { %v8518_v42 = vadd.f32 %v8517_v1, %v17511_v28 }
 0xd79   :  { %v8519_v13 = vadd.f32 %v17503_v37, %v8518_v42 }
 0xd7b   :  { %v17515_v23 = vpop.f32.mrb[44].mxu1  ;;  %v8520_v63 = vadd.f32 %v17509_v30, %v8519_v13 }
 0xd7c   :  { %19961 = vst [vmem:[#allocation145_spill] sm:$0xff] %v17515_v23  ;;  %v17518_v9 = vpop.f32.mrb[45].mxu1 }
 0xd7d   :  { %19962 = vst [vmem:[#allocation92_spill] sm:$0xff] %v17518_v9  ;;  %v8521_v24 = vadd.f32 %v8520_v63, %v17518_v9  ;;  %v17521_v50 = vpop.f32.mrb[46].mxu1 }
 0xd7e   :  { %19963 = vst [vmem:[#allocation93_spill] sm:$0xff] %v17521_v50  ;;  %v17523_v61 = vpop.f32.mrb[47].mxu1 }
 0xd7f   :  { %19964 = vst [vmem:[#allocation146_spill] sm:$0xff] %v17523_v61  ;;  %v8522_v3 = vadd.f32 %v8521_v24, %v17523_v61 }
 0xd81   :  { %v8523_v59 = vadd.f32 %v17515_v23, %v8522_v3 }
 0xd83   :  { %v17527_v47 = vpop.f32.mrb[48].mxu1  ;;  %v8524_v35 = vadd.f32 %v17521_v50, %v8523_v59 }
 0xd84   :  { %19965 = vst [vmem:[#allocation147_spill] sm:$0xff] %v17527_v47  ;;  %v17530_v22 = vpop.f32.mrb[49].mxu1 }
 0xd85   :  { %19966 = vst [vmem:[#allocation37_spill] sm:$0xff] %v17530_v22  ;;  %v8525_v46 = vadd.f32 %v8524_v35, %v17530_v22  ;;  %v17533_v27 = vpop.f32.mrb[50].mxu1 }
 0xd86   :  { %19967 = vst [vmem:[#allocation38_spill] sm:$0xff] %v17533_v27  ;;  %v17535_v51 = vpop.f32.mrb[51].mxu1 }
 0xd87   :  { %19968 = vst [vmem:[#allocation94_spill] sm:$0xff] %v17535_v51  ;;  %v8526_v14 = vadd.f32 %v8525_v46, %v17535_v51 }
 0xd89   :  { %v8527_v18 = vadd.f32 %v17527_v47, %v8526_v14 }
 0xd8b   :  { %v17539_v53 = vpop.f32.mrb[52].mxu1  ;;  %v8528_v1 = vadd.f32 %v17533_v27, %v8527_v18 }
 0xd8c   :  { %19969 = vst [vmem:[#allocation95_spill] sm:$0xff] %v17539_v53  ;;  %v17542_v42 = vpop.f32.mrb[53].mxu1 }
 0xd8d   :  { %19970 = vst [vmem:[#allocation148_spill] sm:$0xff] %v17542_v42  ;;  %v8529_v13 = vadd.f32 %v8528_v1, %v17542_v42  ;;  %v17545_v63 = vpop.f32.mrb[54].mxu1 }
 0xd8e   :  { %19971 = vst [vmem:[#allocation149_spill] sm:$0xff] %v17545_v63  ;;  %v17547_v24 = vpop.f32.mrb[55].mxu1 }
 0xd8f   :  { %19972 = vst [vmem:[#allocation39_spill] sm:$0xff] %v17547_v24  ;;  %v8530_v3 = vadd.f32 %v8529_v13, %v17547_v24 }
 0xd91   :  { %v8531_v59 = vadd.f32 %v17539_v53, %v8530_v3 }
 0xd93   :  { %v17551_v35 = vpop.f32.mrb[56].mxu1  ;;  %v8532_v46 = vadd.f32 %v17545_v63, %v8531_v59 }
 0xd94   :  { %19973 = vst [vmem:[#allocation40_spill] sm:$0xff] %v17551_v35  ;;  %v17554_v14 = vpop.f32.mrb[57].mxu1 }
 0xd95   :  { %19974 = vst [vmem:[#allocation96_spill] sm:$0xff] %v17554_v14  ;;  %v8533_v18 = vadd.f32 %v8532_v46, %v17554_v14  ;;  %v17557_v27 = vpop.f32.mrb[58].mxu1 }
 0xd96   :  { %19975 = vst [vmem:[#allocation97_spill] sm:$0xff] %v17557_v27  ;;  %v17559_v47 = vpop.f32.mrb[59].mxu1 }
 0xd97   :  { %19976 = vst [vmem:[#allocation150_spill] sm:$0xff] %v17559_v47  ;;  %v8534_v1 = vadd.f32 %v8533_v18, %v17559_v47 }
 0xd99   :  { %v8535_v42 = vadd.f32 %v17551_v35, %v8534_v1 }
 0xd9b   :  { %v17563_v51 = vpop.f32.mrb[60].mxu1  ;;  %v8536_v13 = vadd.f32 %v17557_v27, %v8535_v42 }
 0xd9c   :  { %19977 = vst [vmem:[#allocation22_spill] sm:$0xff] %v17563_v51  ;;  %v17566_v3 = vpop.f32.mrb[61].mxu1 }
 0xd9d   :  { %19978 = vst [vmem:[#allocation151_spill] sm:$0xff] %v17566_v3  ;;  %v8537_v59 = vadd.f32 %v8536_v13, %v17566_v3  ;;  %v17569_v63 = vpop.f32.mrb[62].mxu1 }
 0xd9e   :  { %v17571_v53 = vpop.f32.mrb[63].mxu1 }
 0xd9f   :  { %19979 = vst [vmem:[#allocation41_spill] sm:$0xff] %v17571_v53  ;;  %v8538_v46 = vadd.f32 %v8537_v59, %v17571_v53 }
 0xda1   :  { %v8539_v14 = vadd.f32 %v17563_v51, %v8538_v46 }
 0xda3   :  { %v8540_v18 = vadd.f32 %v17569_v63, %v8539_v14 }
 0xda5   :  { %v8541_v47 = vrot.slane %v8540_v18, 4 }
 0xda7   :  { %v8542_v1 = vadd.f32 %v8541_v47, %v8540_v18 }
 0xda9   :  { %v8543_v35 = vrot.slane %v8542_v1, 2 }
 0xdab   :  { %v8544_v24 = vadd.f32 %v8543_v35, %v8542_v1 }
 0xdad   :  { %v8545_v22 = vrot.slane %v8544_v24, 1 }
 0xdaf   :  { %v8546_v42 = vadd.f32 %v8545_v22, %v8544_v24 }
 0xdb1   :  { %v17576_v27 = vmul.f32 0.001953125, %v8546_v42 }
 0xdb3   :  { %v8548_v13 = vsub.f32 %v17386_v7, %v17576_v27  ;;  %v8549_v3 = vsub.f32 %v17390_v0, %v17576_v27  ;;  %v8550_v59 = vsub.f32 %v17384_v34, %v17576_v27  ;;  %v8551_v47 = vsub.f32 %v17388_v25, %v17576_v27 }
 0xdb4   :  { %v8552_v35 = vsub.f32 %v17398_v43, %v17576_v27  ;;  %v8553_v14 = vsub.f32 %v17403_v60, %v17576_v27  ;;  %v8554_v42 = vsub.f32 %v17395_v26, %v17576_v27  ;;  %v8556_v43 = vsub.f32 %v17410_v8, %v17576_v27 }
 0xdb5   :  { %v8612_v46 = vmul.f32 %v8548_v13, %v8548_v13  ;;  %v8613_v51 = vmul.f32 %v8549_v3, %v8549_v3  ;;  %v8614_v22 = vmul.f32 %v8550_v59, %v8550_v59  ;;  %v8615_v18 = vmul.f32 %v8551_v47, %v8551_v47 }
 0xdb6   :  { %v8616_v0 = vmul.f32 %v8552_v35, %v8552_v35  ;;  %v8555_v3 = vsub.f32 %v17401_v21, %v17576_v27  ;;  %v8617_v13 = vmul.f32 %v8553_v14, %v8553_v14  ;;  %v8618_v59 = vmul.f32 %v8554_v42, %v8554_v42 }
 0xdb7   :  { %v8676_v24 = vadd.f32 %v8613_v51, %v8612_v46  ;;  %v8557_v46 = vsub.f32 %v17415_v4, %v17576_v27  ;;  %v8620_v35 = vmul.f32 %v8556_v43, %v8556_v43 }
 0xdb8   :  { %v8619_v47 = vmul.f32 %v8555_v3, %v8555_v3 }
 0xdb9   :  { %v8677_v1 = vadd.f32 %v8676_v24, %v8614_v22  ;;  %v8558_v24 = vsub.f32 %v17407_v19, %v17576_v27  ;;  %v8621_v14 = vmul.f32 %v8557_v46, %v8557_v46 }
 0xdbb   :  { %v8678_v34 = vadd.f32 %v8677_v1, %v8615_v18  ;;  %v8559_v1 = vsub.f32 %v17413_v15, %v17576_v27  ;;  %v8622_v42 = vmul.f32 %v8558_v24, %v8558_v24 }
 0xdbd   :  { %v8679_v25 = vadd.f32 %v8678_v34, %v8616_v0  ;;  %v8560_v0 = vsub.f32 %v17422_v17, %v17576_v27  ;;  %v8623_v3 = vmul.f32 %v8559_v1, %v8559_v1 }
 0xdbf   :  { %v8680_v51 = vadd.f32 %v8679_v25, %v8617_v13  ;;  %v8561_v13 = vsub.f32 %v17427_v38, %v17576_v27  ;;  %v8624_v43 = vmul.f32 %v8560_v0, %v8560_v0 }
 0xdc1   :  { %v8681_v22 = vadd.f32 %v8680_v51, %v8618_v59  ;;  %v8562_v51 = vsub.f32 %v17419_v20, %v17576_v27  ;;  %v8625_v46 = vmul.f32 %v8561_v13, %v8561_v13 }
 0xdc3   :  { %v8682_v18 = vadd.f32 %v8681_v22, %v8619_v47  ;;  %v8563_v22 = vsub.f32 %v17425_v45, %v17576_v27  ;;  %v8626_v24 = vmul.f32 %v8562_v51, %v8562_v51 }
 0xdc5   :  { %v8683_v34 = vadd.f32 %v8682_v18, %v8620_v35  ;;  %v8564_v18 = vsub.f32 %v17434_v55, %v17576_v27  ;;  %v8627_v1 = vmul.f32 %v8563_v22, %v8563_v22 }
 0xdc7   :  { %v8684_v25 = vadd.f32 %v8683_v34, %v8621_v14  ;;  %v8565_v34 = vsub.f32 %v17439_v5, %v17576_v27  ;;  %v8628_v0 = vmul.f32 %v8564_v18, %v8564_v18 }
 0xdc9   :  { %v8685_v59 = vadd.f32 %v8684_v25, %v8622_v42  ;;  %v8566_v25 = vsub.f32 %v17431_v40, %v17576_v27  ;;  %v8629_v13 = vmul.f32 %v8565_v34, %v8565_v34 }
 0xdcb   :  { %v8686_v47 = vadd.f32 %v8685_v59, %v8623_v3  ;;  %v8567_v59 = vsub.f32 %v17437_v10, %v17576_v27  ;;  %v8630_v51 = vmul.f32 %v8566_v25, %v8566_v25 }
 0xdcd   :  { %v8687_v35 = vadd.f32 %v8686_v47, %v8624_v43  ;;  %v8568_v47 = vsub.f32 %v17446_v33, %v17576_v27  ;;  %v8631_v22 = vmul.f32 %v8567_v59, %v8567_v59 }
 0xdcf   :  { %v8688_v14 = vadd.f32 %v8687_v35, %v8625_v46  ;;  %v8569_v35 = vsub.f32 %v17451_v62, %v17576_v27  ;;  %v8632_v18 = vmul.f32 %v8568_v47, %v8568_v47 }
 0xdd1   :  { %v8689_v42 = vadd.f32 %v8688_v14, %v8626_v24  ;;  %v8570_v14 = vsub.f32 %v17443_v49, %v17576_v27  ;;  %v8633_v34 = vmul.f32 %v8569_v35, %v8569_v35 }
 0xdd3   :  { %v8690_v3 = vadd.f32 %v8689_v42, %v8627_v1  ;;  %v8571_v42 = vsub.f32 %v17449_v48, %v17576_v27  ;;  %v8634_v25 = vmul.f32 %v8570_v14, %v8570_v14 }
 0xdd5   :  { %v8691_v43 = vadd.f32 %v8690_v3, %v8628_v0  ;;  %v8572_v3 = vsub.f32 %v17458_v52, %v17576_v27  ;;  %v8635_v59 = vmul.f32 %v8571_v42, %v8571_v42 }
 0xdd7   :  { %v8692_v46 = vadd.f32 %v8691_v43, %v8629_v13  ;;  %v8573_v43 = vsub.f32 %v17463_v12, %v17576_v27  ;;  %v8636_v47 = vmul.f32 %v8572_v3, %v8572_v3 }
 0xdd9   :  { %v8693_v24 = vadd.f32 %v8692_v46, %v8630_v51  ;;  %v8574_v46 = vsub.f32 %v17455_v57, %v17576_v27  ;;  %v8637_v35 = vmul.f32 %v8573_v43, %v8573_v43 }
 0xddb   :  { %v8694_v1 = vadd.f32 %v8693_v24, %v8631_v22  ;;  %v8575_v24 = vsub.f32 %v17461_v39, %v17576_v27  ;;  %v8638_v14 = vmul.f32 %v8574_v46, %v8574_v46 }
 0xddd   :  { %v8695_v0 = vadd.f32 %v8694_v1, %v8632_v18  ;;  %v8576_v1 = vsub.f32 %v17470_v11, %v17576_v27  ;;  %v8639_v42 = vmul.f32 %v8575_v24, %v8575_v24 }
 0xddf   :  { %v8696_v13 = vadd.f32 %v8695_v0, %v8633_v34  ;;  %v8577_v0 = vsub.f32 %v17475_v31, %v17576_v27  ;;  %v8640_v3 = vmul.f32 %v8576_v1, %v8576_v1 }
 0xde1   :  { %v8697_v51 = vadd.f32 %v8696_v13, %v8634_v25  ;;  %v8578_v13 = vsub.f32 %v17467_v32, %v17576_v27  ;;  %v8641_v43 = vmul.f32 %v8577_v0, %v8577_v0 }
 0xde3   :  { %v8698_v22 = vadd.f32 %v8697_v51, %v8635_v59  ;;  %v8579_v51 = vsub.f32 %v17473_v2, %v17576_v27  ;;  %v8642_v46 = vmul.f32 %v8578_v13, %v8578_v13 }
 0xde5   :  { %v8699_v18 = vadd.f32 %v8698_v22, %v8636_v47  ;;  %v8580_v22 = vsub.f32 %v17482_v6, %v17576_v27  ;;  %v8643_v24 = vmul.f32 %v8579_v51, %v8579_v51 }
 0xde7   :  { %v8700_v34 = vadd.f32 %v8699_v18, %v8637_v35  ;;  %v8581_v18 = vsub.f32 %v17487_v44, %v17576_v27  ;;  %v8644_v1 = vmul.f32 %v8580_v22, %v8580_v22 }
 0xde9   :  { %v8701_v25 = vadd.f32 %v8700_v34, %v8638_v14  ;;  %v8582_v34 = vsub.f32 %v17479_v16, %v17576_v27  ;;  %v8645_v0 = vmul.f32 %v8581_v18, %v8581_v18 }
 0xdeb   :  { %v8702_v59 = vadd.f32 %v8701_v25, %v8639_v42  ;;  %v8583_v25 = vsub.f32 %v17485_v58, %v17576_v27  ;;  %v8646_v13 = vmul.f32 %v8582_v34, %v8582_v34 }
 0xded   :  { %v8703_v47 = vadd.f32 %v8702_v59, %v8640_v3  ;;  %v8584_v59 = vsub.f32 %v17494_v56, %v17576_v27  ;;  %v8647_v51 = vmul.f32 %v8583_v25, %v8583_v25 }
 0xdef   :  { %v8704_v35 = vadd.f32 %v8703_v47, %v8641_v43  ;;  %v8585_v47 = vsub.f32 %v17499_v54, %v17576_v27  ;;  %v8648_v22 = vmul.f32 %v8584_v59, %v8584_v59 }
 0xdf1   :  { %v8705_v14 = vadd.f32 %v8704_v35, %v8642_v46  ;;  %v8586_v35 = vsub.f32 %v17491_v36, %v17576_v27  ;;  %v8649_v18 = vmul.f32 %v8585_v47, %v8585_v47 }
 0xdf3   :  { %v8706_v42 = vadd.f32 %v8705_v14, %v8643_v24  ;;  %v8587_v14 = vsub.f32 %v17497_v41, %v17576_v27  ;;  %v8650_v34 = vmul.f32 %v8586_v35, %v8586_v35 }
 0xdf5   :  { %v8707_v3 = vadd.f32 %v8706_v42, %v8644_v1  ;;  %v8588_v42 = vsub.f32 %v17506_v29, %v17576_v27  ;;  %v8651_v25 = vmul.f32 %v8587_v14, %v8587_v14 }
 0xdf7   :  { %v8708_v43 = vadd.f32 %v8707_v3, %v8645_v0  ;;  %v8589_v3 = vsub.f32 %v17511_v28, %v17576_v27  ;;  %v8652_v59 = vmul.f32 %v8588_v42, %v8588_v42 }
 0xdf9   :  { %v8709_v46 = vadd.f32 %v8708_v43, %v8646_v13  ;;  %v8590_v43 = vsub.f32 %v17503_v37, %v17576_v27  ;;  %v8653_v47 = vmul.f32 %v8589_v3, %v8589_v3 }
 0xdfb   :  { %v8710_v24 = vadd.f32 %v8709_v46, %v8647_v51  ;;  %v8591_v46 = vsub.f32 %v17509_v30, %v17576_v27  ;;  %v8654_v35 = vmul.f32 %v8590_v43, %v8590_v43 }
 0xdfd   :  { %v8711_v1 = vadd.f32 %v8710_v24, %v8648_v22  ;;  %v8592_v24 = vsub.f32 %v17518_v9, %v17576_v27  ;;  %v8655_v14 = vmul.f32 %v8591_v46, %v8591_v46 }
 0xdff   :  { %v8712_v0 = vadd.f32 %v8711_v1, %v8649_v18  ;;  %v8593_v1 = vsub.f32 %v17523_v61, %v17576_v27  ;;  %v8656_v42 = vmul.f32 %v8592_v24, %v8592_v24 }
 0xe01   :  { %v8713_v13 = vadd.f32 %v8712_v0, %v8650_v34  ;;  %v8594_v0 = vsub.f32 %v17515_v23, %v17576_v27  ;;  %v8657_v3 = vmul.f32 %v8593_v1, %v8593_v1 }
 0xe03   :  { %v8714_v51 = vadd.f32 %v8713_v13, %v8651_v25  ;;  %v8595_v13 = vsub.f32 %v17521_v50, %v17576_v27  ;;  %v8658_v43 = vmul.f32 %v8594_v0, %v8594_v0 }
 0xe05   :  { %v8715_v22 = vadd.f32 %v8714_v51, %v8652_v59  ;;  %v19980_v51 = vld [vmem:[#allocation37_spill] sm:$0xff]  ;;  %v8659_v46 = vmul.f32 %v8595_v13, %v8595_v13 }
 0xe06   :  { %v8596_v9 = vsub.f32 %v19980_v51, %v17576_v27 }
 0xe07   :  { %v8716_v18 = vadd.f32 %v8715_v22, %v8653_v47  ;;  %v19981_v22 = vld [vmem:[#allocation94_spill] sm:$0xff] }
 0xe08   :  { %v8597_v61 = vsub.f32 %v19981_v22, %v17576_v27  ;;  %v8660_v24 = vmul.f32 %v8596_v9, %v8596_v9 }
 0xe09   :  { %v8717_v34 = vadd.f32 %v8716_v18, %v8654_v35  ;;  %v19982_v18 = vld [vmem:[#allocation147_spill] sm:$0xff] }
 0xe0a   :  { %v8598_v23 = vsub.f32 %v19982_v18, %v17576_v27  ;;  %v8661_v1 = vmul.f32 %v8597_v61, %v8597_v61 }
 0xe0b   :  { %v8718_v25 = vadd.f32 %v8717_v34, %v8655_v14  ;;  %v19983_v34 = vld [vmem:[#allocation38_spill] sm:$0xff] }
 0xe0c   :  { %v8599_v50 = vsub.f32 %v19983_v34, %v17576_v27  ;;  %v8662_v0 = vmul.f32 %v8598_v23, %v8598_v23 }
 0xe0d   :  { %v8719_v59 = vadd.f32 %v8718_v25, %v8656_v42  ;;  %v19984_v25 = vld [vmem:[#allocation148_spill] sm:$0xff] }
 0xe0e   :  { %v8600_v51 = vsub.f32 %v19984_v25, %v17576_v27  ;;  %v8663_v13 = vmul.f32 %v8599_v50, %v8599_v50 }
 0xe0f   :  { %v8720_v47 = vadd.f32 %v8719_v59, %v8657_v3  ;;  %v19985_v59 = vld [vmem:[#allocation39_spill] sm:$0xff] }
 0xe10   :  { %v8601_v22 = vsub.f32 %v19985_v59, %v17576_v27  ;;  %v8664_v9 = vmul.f32 %v8600_v51, %v8600_v51 }
 0xe11   :  { %v8721_v35 = vadd.f32 %v8720_v47, %v8658_v43  ;;  %v19986_v47 = vld [vmem:[#allocation95_spill] sm:$0xff] }
 0xe12   :  { %v8602_v18 = vsub.f32 %v19986_v47, %v17576_v27  ;;  %v8665_v61 = vmul.f32 %v8601_v22, %v8601_v22 }
 0xe13   :  { %v8722_v14 = vadd.f32 %v8721_v35, %v8659_v46  ;;  %v19987_v35 = vld [vmem:[#allocation149_spill] sm:$0xff] }
 0xe14   :  { %v8603_v34 = vsub.f32 %v19987_v35, %v17576_v27  ;;  %v8666_v23 = vmul.f32 %v8602_v18, %v8602_v18 }
 0xe15   :  { %v8723_v42 = vadd.f32 %v8722_v14, %v8660_v24  ;;  %v19988_v14 = vld [vmem:[#allocation96_spill] sm:$0xff] }
 0xe16   :  { %v8604_v25 = vsub.f32 %v19988_v14, %v17576_v27  ;;  %v8667_v50 = vmul.f32 %v8603_v34, %v8603_v34 }
 0xe17   :  { %v8724_v3 = vadd.f32 %v8723_v42, %v8661_v1  ;;  %v19989_v42 = vld [vmem:[#allocation150_spill] sm:$0xff] }
 0xe18   :  { %v8605_v59 = vsub.f32 %v19989_v42, %v17576_v27  ;;  %v8668_v51 = vmul.f32 %v8604_v25, %v8604_v25 }
 0xe19   :  { %v8725_v43 = vadd.f32 %v8724_v3, %v8662_v0  ;;  %v19990_v3 = vld [vmem:[#allocation40_spill] sm:$0xff] }
 0xe1a   :  { %v8606_v47 = vsub.f32 %v19990_v3, %v17576_v27  ;;  %v8669_v22 = vmul.f32 %v8605_v59, %v8605_v59 }
 0xe1b   :  { %v8726_v46 = vadd.f32 %v8725_v43, %v8663_v13  ;;  %v19991_v43 = vld [vmem:[#allocation97_spill] sm:$0xff] }
 0xe1c   :  { %v8607_v35 = vsub.f32 %v19991_v43, %v17576_v27  ;;  %v8670_v18 = vmul.f32 %v8606_v47, %v8606_v47 }
 0xe1d   :  { %v8727_v24 = vadd.f32 %v8726_v46, %v8664_v9  ;;  %v19992_v46 = vld [vmem:[#allocation151_spill] sm:$0xff] }
 0xe1e   :  { %v8608_v14 = vsub.f32 %v19992_v46, %v17576_v27  ;;  %v8671_v34 = vmul.f32 %v8607_v35, %v8607_v35 }
 0xe1f   :  { %v8728_v1 = vadd.f32 %v8727_v24, %v8665_v61  ;;  %v8609_v24 = vsub.f32 %v17571_v53, %v17576_v27 }
 0xe20   :  { %v8672_v25 = vmul.f32 %v8608_v14, %v8608_v14  ;;  %v8476_v14 = vld [vmem:[%s18887_s7] sm:$0x1] }
 0xe21   :  { %v8729_v0 = vadd.f32 %v8728_v1, %v8666_v23  ;;  %v19993_v1 = vld [vmem:[#allocation22_spill] sm:$0xff]  ;;  %v8673_v59 = vmul.f32 %v8609_v24, %v8609_v24 }
 0xe22   :  { %v8610_v3 = vsub.f32 %v19993_v1, %v17576_v27 }
 0xe23   :  { %v8730_v13 = vadd.f32 %v8729_v0, %v8667_v50  ;;  %v8611_v0 = vsub.f32 %v17569_v63, %v17576_v27 }
 0xe25   :  { %v8731_v9 = vadd.f32 %v8730_v13, %v8668_v51  ;;  %v8674_v13 = vmul.f32 %v8610_v3, %v8610_v3  ;;  %v8675_v46 = vmul.f32 %v8611_v0, %v8611_v0  ;;  %v17712_v3 = vld [vmem:[%s18888_s8] sm:$0x1] }
 0xe27   :  { %v8732_v61 = vadd.f32 %v8731_v9, %v8669_v22 }
 0xe29   :  { %v8733_v23 = vadd.f32 %v8732_v61, %v8670_v18 }
 0xe2b   :  { %v8734_v50 = vadd.f32 %v8733_v23, %v8671_v34  ;;  %v19995_v23 = vld [vmem:[#allocation34_spill] sm:$0xff] }
 0xe2d   :  { %v8735_v51 = vadd.f32 %v8734_v50, %v8672_v25  ;;  %v19996_v25 = vld [vmem:[#allocation88_spill] sm:$0xff] }
 0xe2f   :  { %v8736_v43 = vadd.f32 %v8735_v51, %v8673_v59  ;;  %v19998_v59 = vld [vmem:[#allocation89_spill] sm:$0xff] }
 0xe31   :  { %v8737_v47 = vadd.f32 %v8736_v43, %v8674_v13 }
 0xe33   :  { %v8738_v22 = vadd.f32 %v8737_v47, %v8675_v46 }
 0xe35   :  { %v8739_v9 = vrot.slane %v8738_v22, 4 }
 0xe37   :  { %v8740_v42 = vadd.f32 %v8739_v9, %v8738_v22 }
 0xe39   :  { %v8741_v53 = vrot.slane %v8740_v42, 2 }
 0xe3b   :  { %v8742_v35 = vadd.f32 %v8741_v53, %v8740_v42  ;;  %v19994_v53 = vld [vmem:[#allocation36_spill] sm:$0xff] }
 0xe3d   :  { %v8743_v18 = vrot.slane %v8742_v35, 1 }
 0xe3f   :  { %v8744_v61 = vadd.f32 %v8743_v18, %v8742_v35  ;;  %v19999_v35 = vld [vmem:[#allocation35_spill] sm:$0xff]  ;;  %v20000_v18 = vld [vmem:[#allocation92_spill] sm:$0xff] }
 0xe41   :  { %v8745_v30 = vmul.f32 0.001953125, %v8744_v61  ;;  %v20001_v61 = vld [vmem:[#allocation146_spill] sm:$0xff] }
 0xe43   :  { %v8746_v1 = vadd.f32 1e-05, %v8745_v30  ;;  %v20014_v30 = vld [vmem:[#allocation39_spill] sm:$0xff] }
 0xe45   :  { %10270 = vrsqrt.f32 %v8746_v1 }
 0xe4f   :  { %v10271_v24 = vpop.eup %10270 }
 0xe50   :  { %v8748_v34 = vmul.f32 %v10271_v24, %v8476_v14  ;;  %v20002_v14 = vld [vmem:[#allocation145_spill] sm:$0xff] }
 0xe51   :  { %v20003_v24 = vld [vmem:[#allocation93_spill] sm:$0xff] }
 0xe52   :  { %v17715_v43 = vmul.f32 %v8748_v34, %v17576_v27  ;;  %v17718_v42 = vrot.slane %v8748_v34, %v19994_v53  ;;  %v19997_v27 = vld [vmem:[#allocation144_spill] sm:$0xff]  ;;  %v20004_v34 = vld [vmem:[#allocation37_spill] sm:$0xff] }
 0xe54   :  { %v17724_v46 = vmul.f32 %v17718_v42, %v17386_v7  ;;  %v17728_v1 = vmul.f32 %v17718_v42, %v19995_v23  ;;  %v17732_v50 = vmul.f32 %v19996_v25, %v17718_v42  ;;  %v17736_v0 = vmul.f32 %v19997_v27, %v17718_v42  ;;  %v20006_v25 = vld [vmem:[#allocation94_spill] sm:$0xff] }
 0xe55   :  { %v17740_v51 = vmul.f32 %v17718_v42, %v19998_v59  ;;  %v17744_v7 = vmul.f32 %v17718_v42, %v17403_v60  ;;  %v17748_v13 = vmul.f32 %v17395_v26, %v17718_v42  ;;  %v17752_v47 = vmul.f32 %v17401_v21, %v17718_v42  ;;  %v20008_v59 = vld [vmem:[#allocation147_spill] sm:$0xff] }
 0xe56   :  { %v17756_v22 = vmul.f32 %v17718_v42, %v17410_v8  ;;  %v17760_v9 = vmul.f32 %v17718_v42, %v17415_v4  ;;  %v17764_v60 = vmul.f32 %v17407_v19, %v17718_v42  ;;  %v17768_v26 = vmul.f32 %v17413_v15, %v17718_v42 }
 0xe57   :  { %v17772_v21 = vmul.f32 %v17718_v42, %v17422_v17  ;;  %v17776_v8 = vmul.f32 %v17718_v42, %v17427_v38  ;;  %v17780_v4 = vmul.f32 %v17419_v20, %v17718_v42  ;;  %v17784_v19 = vmul.f32 %v17425_v45, %v17718_v42 }
 0xe58   :  { %v17788_v15 = vmul.f32 %v17718_v42, %v17434_v55  ;;  %v17792_v17 = vmul.f32 %v17718_v42, %v17439_v5  ;;  %v17796_v38 = vmul.f32 %v17431_v40, %v17718_v42  ;;  %v17800_v20 = vmul.f32 %v17437_v10, %v17718_v42 }
 0xe59   :  { %v17804_v45 = vmul.f32 %v17718_v42, %v17446_v33  ;;  %v17808_v55 = vmul.f32 %v17718_v42, %v17451_v62  ;;  %v17812_v5 = vmul.f32 %v17443_v49, %v17718_v42  ;;  %v17816_v40 = vmul.f32 %v17449_v48, %v17718_v42 }
 0xe5a   :  { %v17820_v10 = vmul.f32 %v17718_v42, %v17458_v52  ;;  %v17824_v33 = vmul.f32 %v17718_v42, %v17463_v12  ;;  %v17828_v62 = vmul.f32 %v17455_v57, %v17718_v42  ;;  %v17832_v49 = vmul.f32 %v17461_v39, %v17718_v42 }
 0xe5b   :  { %v17836_v48 = vmul.f32 %v17718_v42, %v17470_v11  ;;  %v17840_v52 = vmul.f32 %v17718_v42, %v17475_v31  ;;  %v17844_v12 = vmul.f32 %v17467_v32, %v17718_v42  ;;  %v17848_v57 = vmul.f32 %v17473_v2, %v17718_v42 }
 0xe5c   :  { %v17852_v39 = vmul.f32 %v17718_v42, %v17482_v6  ;;  %v17856_v11 = vmul.f32 %v17718_v42, %v17487_v44  ;;  %v17860_v31 = vmul.f32 %v17479_v16, %v17718_v42  ;;  %v17864_v32 = vmul.f32 %v17485_v58, %v17718_v42 }
 0xe5d   :  { %v17868_v2 = vmul.f32 %v17718_v42, %v17494_v56  ;;  %v17872_v6 = vmul.f32 %v17718_v42, %v17499_v54  ;;  %v17876_v44 = vmul.f32 %v17491_v36, %v17718_v42  ;;  %v17880_v16 = vmul.f32 %v17497_v41, %v17718_v42 }
 0xe5e   :  { %v17884_v58 = vmul.f32 %v17718_v42, %v17506_v29  ;;  %v17888_v56 = vmul.f32 %v17718_v42, %v17511_v28  ;;  %v17892_v54 = vmul.f32 %v17503_v37, %v17718_v42  ;;  %v17896_v36 = vmul.f32 %v19999_v35, %v17718_v42 }
 0xe5f   :  { %v17900_v41 = vmul.f32 %v17718_v42, %v20000_v18  ;;  %v17904_v29 = vmul.f32 %v17718_v42, %v20001_v61  ;;  %v17908_v28 = vmul.f32 %v20002_v14, %v17718_v42  ;;  %v17912_v37 = vmul.f32 %v20003_v24, %v17718_v42  ;;  %v20010_v18 = vld [vmem:[#allocation38_spill] sm:$0xff]  ;;  %v20012_v14 = vld [vmem:[#allocation148_spill] sm:$0xff] }
 0xe60   :  { %v17916_v23 = vmul.f32 %v17718_v42, %v20004_v34  ;;  %v17920_v27 = vmul.f32 %v17718_v42, %v20006_v25  ;;  %v17924_v35 = vmul.f32 %v20008_v59, %v17718_v42  ;;  %v17928_v61 = vmul.f32 %v20010_v18, %v17718_v42 }
 0xe61   :  { %v17932_v24 = vmul.f32 %v17718_v42, %v20012_v14  ;;  %v17936_v34 = vmul.f32 %v17718_v42, %v20014_v30 }
 0xe62   :  { %20005 = vst [vmem:[#allocation132_spill] sm:$0xff] %v17916_v23  ;;  %20007 = vst [vmem:[#allocation7_spill] sm:$0xff] %v17920_v27  ;;  %v20016_v23 = vld [vmem:[#allocation95_spill] sm:$0xff]  ;;  %v20018_v27 = vld [vmem:[#allocation149_spill] sm:$0xff] }
 0xe63   :  { %20009 = vst [vmem:[#allocation42_spill] sm:$0xff] %v17924_v35  ;;  %20011 = vst [vmem:[#allocation98_spill] sm:$0xff] %v17928_v61  ;;  %v17940_v25 = vmul.f32 %v20016_v23, %v17718_v42  ;;  %v17944_v59 = vmul.f32 %v20018_v27, %v17718_v42  ;;  %v20020_v35 = vld [vmem:[#allocation96_spill] sm:$0xff]  ;;  %v20022_v61 = vld [vmem:[#allocation150_spill] sm:$0xff] }
 0xe64   :  { %20013 = vst [vmem:[#allocation4_spill] sm:$0xff] %v17932_v24  ;;  %20015 = vst [vmem:[#allocation6_spill] sm:$0xff] %v17936_v34  ;;  %v17948_v18 = vmul.f32 %v17718_v42, %v20020_v35  ;;  %v17952_v14 = vmul.f32 %v17718_v42, %v20022_v61  ;;  %v20023_v24 = vld [vmem:[#allocation40_spill] sm:$0xff]  ;;  %v20024_v34 = vld [vmem:[#allocation97_spill] sm:$0xff] }
 0xe65   :  { %20017 = vst [vmem:[#allocation99_spill] sm:$0xff] %v17940_v25  ;;  %20019 = vst [vmem:[#allocation152_spill] sm:$0xff] %v17944_v59  ;;  %v17956_v30 = vmul.f32 %v20023_v24, %v17718_v42  ;;  %v17960_v23 = vmul.f32 %v20024_v34, %v17718_v42  ;;  %v20026_v25 = vld [vmem:[#allocation151_spill] sm:$0xff]  ;;  %v20027_v59 = vld [vmem:[#allocation41_spill] sm:$0xff]  ;;  %v17976_v24 = vmul.f32 %v17569_v63, %v17718_v42 }
 0xe66   :  { %20021 = vst [vmem:[#allocation3_spill] sm:$0xff] %v17948_v18  ;;  %v17964_v27 = vmul.f32 %v17718_v42, %v20026_v25  ;;  %v17968_v35 = vmul.f32 %v17718_v42, %v20027_v59  ;;  %v20028_v18 = vld [vmem:[#allocation22_spill] sm:$0xff]  ;;  %v20029_v34 = vsub.f32 %v17712_v3, %v17715_v43 }
 0xe67   :  { %20025 = vst [vmem:[#allocation9_spill] sm:$0xff] %v17960_v23  ;;  %v17972_v61 = vmul.f32 %v20028_v18, %v17718_v42 }
 0xe68   :  { %v17982_v23 = vrot.slane %v20029_v34, %v19994_v53  ;;  %v8755_v34 = vld [vmem:[%s18880_s0 + $0x20] sm:$0xff] }
 0xe6a   :  { %v17986_v25 = vadd.f32 %v17982_v23, %v17724_v46  ;;  %v17990_v59 = vadd.f32 %v17982_v23, %v17728_v1  ;;  %v17994_v18 = vadd.f32 %v17982_v23, %v17732_v50  ;;  %v17998_v63 = vadd.f32 %v17982_v23, %v17736_v0 }
 0xe6b   :  { %v18002_v3 = vadd.f32 %v17982_v23, %v17740_v51  ;;  %v18006_v43 = vadd.f32 %v17982_v23, %v17744_v7  ;;  %v18010_v53 = vadd.f32 %v17982_v23, %v17748_v13  ;;  %v18014_v42 = vadd.f32 %v17982_v23, %v17752_v47 }
 0xe6c   :  { %v18018_v46 = vadd.f32 %v17982_v23, %v17756_v22  ;;  %v18022_v1 = vadd.f32 %v17982_v23, %v17760_v9  ;;  %v18026_v50 = vadd.f32 %v17982_v23, %v17764_v60  ;;  %v18030_v0 = vadd.f32 %v17982_v23, %v17768_v26 }
 0xe6d   :  { %v18034_v51 = vadd.f32 %v17982_v23, %v17772_v21  ;;  %v18038_v7 = vadd.f32 %v17982_v23, %v17776_v8  ;;  %v18042_v13 = vadd.f32 %v17982_v23, %v17780_v4  ;;  %v18046_v47 = vadd.f32 %v17982_v23, %v17784_v19 }
 0xe6e   :  { %v18050_v22 = vadd.f32 %v17982_v23, %v17788_v15  ;;  %v18054_v9 = vadd.f32 %v17982_v23, %v17792_v17  ;;  %v18058_v60 = vadd.f32 %v17982_v23, %v17796_v38  ;;  %v18062_v26 = vadd.f32 %v17982_v23, %v17800_v20 }
 0xe6f   :  { %v18066_v21 = vadd.f32 %v17982_v23, %v17804_v45  ;;  %v18070_v8 = vadd.f32 %v17982_v23, %v17808_v55  ;;  %v18074_v4 = vadd.f32 %v17982_v23, %v17812_v5  ;;  %v18078_v19 = vadd.f32 %v17982_v23, %v17816_v40 }
 0xe70   :  { %v18082_v15 = vadd.f32 %v17982_v23, %v17820_v10  ;;  %v18086_v17 = vadd.f32 %v17982_v23, %v17824_v33  ;;  %v18090_v38 = vadd.f32 %v17982_v23, %v17828_v62  ;;  %v18094_v20 = vadd.f32 %v17982_v23, %v17832_v49 }
 0xe71   :  { %v18098_v45 = vadd.f32 %v17982_v23, %v17836_v48  ;;  %v18102_v55 = vadd.f32 %v17982_v23, %v17840_v52  ;;  %v18106_v5 = vadd.f32 %v17982_v23, %v17844_v12  ;;  %v18110_v40 = vadd.f32 %v17982_v23, %v17848_v57 }
 0xe72   :  { %v18114_v10 = vadd.f32 %v17982_v23, %v17852_v39  ;;  %v18118_v33 = vadd.f32 %v17982_v23, %v17856_v11  ;;  %v18122_v62 = vadd.f32 %v17982_v23, %v17860_v31  ;;  %v18126_v49 = vadd.f32 %v17982_v23, %v17864_v32 }
 0xe73   :  { %v18130_v48 = vadd.f32 %v17982_v23, %v17868_v2  ;;  %v18134_v52 = vadd.f32 %v17982_v23, %v17872_v6  ;;  %v18138_v12 = vadd.f32 %v17982_v23, %v17876_v44  ;;  %v18142_v57 = vadd.f32 %v17982_v23, %v17880_v16  ;;  %v8751_v2 = vld [vmem:[%s18880_s0] sm:$0xff]  ;;  %v8752_v6 = vld [vmem:[%s18880_s0 + $0x8] sm:$0xff]  ;;  %v8753_v44 = vld [vmem:[%s18880_s0 + $0x10] sm:$0xff] }
 0xe74   :  { %20030 = vst [vmem:[#allocation153_spill] sm:$0xff] %v18122_v62  ;;  %20031 = vst [vmem:[#allocation43_spill] sm:$0xff] %v18126_v49  ;;  %v18146_v39 = vadd.f32 %v17982_v23, %v17884_v58  ;;  %v18150_v11 = vadd.f32 %v17982_v23, %v17888_v56  ;;  %v18154_v31 = vadd.f32 %v17982_v23, %v17892_v54  ;;  %v8754_v16 = vld [vmem:[%s18880_s0 + $0x18] sm:$0xff]  ;;  %v8767_v62 = vld [vmem:[%s18880_s0 + $0x80] sm:$0xff] }
 0xe75   :  { %20032 = vst [vmem:[#allocation8_spill] sm:$0xff] %v18130_v48  ;;  %20033 = vst [vmem:[#allocation154_spill] sm:$0xff] %v18134_v52  ;;  %v18158_v32 = vadd.f32 %v17982_v23, %v17896_v36  ;;  %v18174_v58 = vadd.f32 %v17982_v23, %v17900_v41  ;;  %v18178_v56 = vadd.f32 %v17982_v23, %v17904_v29  ;;  %v8756_v41 = vld [vmem:[%s18880_s0 + $0x28] sm:$0xff]  ;;  %v8757_v29 = vld [vmem:[%s18880_s0 + $0x30] sm:$0xff] }
 0xe76   :  { %20034 = vst [vmem:[#allocation44_spill] sm:$0xff] %v18138_v12  ;;  %20035 = vst [vmem:[#allocation100_spill] sm:$0xff] %v18142_v57  ;;  %v18182_v54 = vadd.f32 %v17982_v23, %v17908_v28  ;;  %v18186_v36 = vadd.f32 %v17982_v23, %v17912_v37  ;;  %v8758_v28 = vld [vmem:[%s18880_s0 + $0x38] sm:$0xff]  ;;  %v20058_v12 = vld [vmem:[#allocation152_spill] sm:$0xff] }
 0xe77   :  { %20036 = vst [vmem:[#allocation10_spill] sm:$0xff] %v18146_v39  ;;  %20037 = vst [vmem:[#allocation63_spill] sm:$0xff] %v18150_v11  ;;  %v8759_v39 = vld [vmem:[%s18880_s0 + $0x40] sm:$0xff]  ;;  %v18242_v52 = vadd.f32 %v17982_v23, %v20058_v12 }
 0xe78   :  { %20038 = vst [vmem:[#allocation101_spill] sm:$0xff] %v18154_v31  ;;  %20039 = vst [vmem:[#allocation45_spill] sm:$0xff] %v18158_v32  ;;  %v20050_v31 = vld [vmem:[#allocation98_spill] sm:$0xff]  ;;  %v8763_v48 = vld [vmem:[%s18880_s0 + $0x60] sm:$0xff] }
 0xe79   :  { %20040 = vst [vmem:[#allocation46_spill] sm:$0xff] %v18174_v58  ;;  %20041 = vst [vmem:[#allocation102_spill] sm:$0xff] %v18178_v56  ;;  %v20048_v58 = vld [vmem:[#allocation42_spill] sm:$0xff]  ;;  %v18214_v11 = vadd.f32 %v17982_v23, %v20050_v31 }
 0xe7a   :  { %20042 = vst [vmem:[#allocation103_spill] sm:$0xff] %v18182_v54  ;;  %20043 = vst [vmem:[#allocation47_spill] sm:$0xff] %v18186_v36  ;;  %v20044_v54 = vld [vmem:[#allocation132_spill] sm:$0xff]  ;;  %v20046_v36 = vld [vmem:[#allocation7_spill] sm:$0xff]  ;;  %v18210_v32 = vadd.f32 %v17982_v23, %v20048_v58 }
 0xe7b   :  { %v18202_v37 = vadd.f32 %v17982_v23, %v20044_v54  ;;  %v18206_v56 = vadd.f32 %v17982_v23, %v20046_v36  ;;  %20051 = vst [vmem:[#allocation49_spill] sm:$0xff] %v18214_v11  ;;  %v8760_v54 = vld [vmem:[%s18880_s0 + $0x48] sm:$0xff]  ;;  %v8761_v36 = vld [vmem:[%s18880_s0 + $0x50] sm:$0xff]  ;;  %v8762_v58 = vld [vmem:[%s18880_s0 + $0x58] sm:$0xff] }
 0xe7c   :  { %20049 = vst [vmem:[#allocation105_spill] sm:$0xff] %v18210_v32  ;;  %v20052_v32 = vld [vmem:[#allocation4_spill] sm:$0xff]  ;;  %v20054_v11 = vld [vmem:[#allocation6_spill] sm:$0xff]  ;;  %20059 = vst [vmem:[#allocation51_spill] sm:$0xff] %v18242_v52  ;;  %v18262_v52 = vadd.f32 %v17982_v23, %v17952_v14 }
 0xe7d   :  { %20045 = vst [vmem:[#allocation48_spill] sm:$0xff] %v18202_v37  ;;  %20047 = vst [vmem:[#allocation104_spill] sm:$0xff] %v18206_v56  ;;  %v18230_v31 = vadd.f32 %v17982_v23, %v20052_v32  ;;  %v18234_v56 = vadd.f32 %v17982_v23, %v20054_v11  ;;  %v20056_v37 = vld [vmem:[#allocation99_spill] sm:$0xff]  ;;  %v8764_v32 = vld [vmem:[%s18880_s0 + $0x68] sm:$0xff] }
 0xe7e   :  { %v18238_v57 = vadd.f32 %v17982_v23, %v20056_v37  ;;  %v8765_v11 = vld [vmem:[%s18880_s0 + $0x70] sm:$0xff]  ;;  %v8766_v37 = vld [vmem:[%s18880_s0 + $0x78] sm:$0xff]  ;;  %20062 = vst [vmem:[#allocation108_spill] sm:$0xff] %v18262_v52  ;;  %v18298_v52 = vadd.f32 %v17982_v23, %v17976_v24  ;;  %v18319_v24 = vadd.f32 %v17994_v18, %v8753_v44  ;;  %v18337_v18 = vadd.f32 %v18002_v3, %v8755_v34  ;;  %v8779_v44 = vld [vmem:[%s18880_s0 + $0xe0] sm:$0xff] }
 0xe7f   :  { %20053 = vst [vmem:[#allocation50_spill] sm:$0xff] %v18230_v31  ;;  %20055 = vst [vmem:[#allocation106_spill] sm:$0xff] %v18234_v56  ;;  %v18266_v56 = vadd.f32 %v17982_v23, %v17956_v30  ;;  %v20064_v31 = vld [vmem:[#allocation9_spill] sm:$0xff]  ;;  %v8770_v30 = vld [vmem:[%s18880_s0 + $0x98] sm:$0xff]  ;;  %v18367_v34 = vadd.f32 %v18026_v50, %v8761_v36  ;;  %v18385_v50 = vadd.f32 %v18034_v51, %v8763_v48 }
 0xe80   :  { %20057 = vst [vmem:[#allocation107_spill] sm:$0xff] %v18238_v57  ;;  %v20060_v57 = vld [vmem:[#allocation3_spill] sm:$0xff]  ;;  %v18270_v49 = vadd.f32 %v17982_v23, %v20064_v31  ;;  %v8769_v14 = vld [vmem:[%s18880_s0 + $0x90] sm:$0xff]  ;;  %v18286_v31 = vadd.f32 %v17982_v23, %v17964_v27  ;;  %20069 = vst [vmem:[#allocation55_spill] sm:$0xff] %v18298_v52  ;;  %v18322_v52 = vadd.f32 %v17998_v63, %v8754_v16 }
 0xe81   :  { %v18258_v12 = vadd.f32 %v17982_v23, %v20060_v57  ;;  %20063 = vst [vmem:[#allocation109_spill] sm:$0xff] %v18266_v56  ;;  %v8768_v57 = vld [vmem:[%s18880_s0 + $0x88] sm:$0xff]  ;;  %v18294_v56 = vadd.f32 %v17982_v23, %v17972_v61  ;;  %v8774_v61 = vld [vmem:[%s18880_s0 + $0xb8] sm:$0xff]  ;;  %v18340_v63 = vadd.f32 %v18006_v43, %v8756_v41  ;;  %v8781_v3 = vld [vmem:[%s18880_s0 + $0xf0] sm:$0xff]  ;;  %v18370_v41 = vadd.f32 %v18030_v0, %v8762_v58 }
 0xe82   :  { %20065 = vst [vmem:[#allocation53_spill] sm:$0xff] %v18270_v49  ;;  %20066 = vst [vmem:[#allocation54_spill] sm:$0xff] %v18286_v31  ;;  %v18290_v49 = vadd.f32 %v17982_v23, %v17968_v35  ;;  %v8772_v27 = vld [vmem:[%s18880_s0 + $0xa8] sm:$0xff]  ;;  %v8773_v35 = vld [vmem:[%s18880_s0 + $0xb0] sm:$0xff]  ;;  %v18316_v23 = vadd.f32 %v17990_v59, %v8752_v6  ;;  %v18346_v6 = vadd.f32 %v18014_v42, %v8758_v28 }
 0xe83   :  { %20061 = vst [vmem:[#allocation52_spill] sm:$0xff] %v18258_v12  ;;  %20068 = vst [vmem:[#allocation111_spill] sm:$0xff] %v18294_v56  ;;  %v8771_v12 = vld [vmem:[%s18880_s0 + $0xa0] sm:$0xff]  ;;  %v18313_v56 = vadd.f32 %v17986_v25, %v8751_v2  ;;  %v8776_v31 = vld [vmem:[%s18880_s0 + $0xc8] sm:$0xff]  ;;  %v18343_v2 = vadd.f32 %v18010_v53, %v8757_v29  ;;  %v18361_v53 = vadd.f32 %v18018_v46, %v8759_v39 }
 0xe84   :  { %20067 = vst [vmem:[#allocation110_spill] sm:$0xff] %v18290_v49  ;;  %v8775_v49 = vld [vmem:[%s18880_s0 + $0xc0] sm:$0xff]  ;;  %v8777_v25 = vld [vmem:[%s18880_s0 + $0xd0] sm:$0xff]  ;;  %v8778_v59 = vld [vmem:[%s18880_s0 + $0xd8] sm:$0xff]  ;;  %v18364_v42 = vadd.f32 %v18022_v1, %v8760_v54  ;;  %v18388_v0 = vadd.f32 %v18038_v7, %v8764_v32  ;;  %v18391_v39 = vadd.f32 %v18042_v13, %v8765_v11  ;;  %v18394_v54 = vadd.f32 %v18046_v47, %v8766_v37 }
 0xe85   :  { %v8780_v16 = vld [vmem:[%s18880_s0 + $0xe8] sm:$0xff]  ;;  %v8782_v43 = vld [vmem:[%s18880_s0 + $0xf8] sm:$0xff]  ;;  %v8783_v29 = vld [vmem:[%s18880_s0 + $0x100] sm:$0xff]  ;;  %v18409_v13 = vadd.f32 %v18050_v22, %v8767_v62  ;;  %v18412_v47 = vadd.f32 %v18054_v9, %v8768_v57  ;;  %v18415_v48 = vadd.f32 %v18058_v60, %v8769_v14  ;;  %v18418_v32 = vadd.f32 %v18062_v26, %v8770_v30 }
 0xe86   :  { %v8784_v28 = vld [vmem:[%s18880_s0 + $0x108] sm:$0xff]  ;;  %v8785_v46 = vld [vmem:[%s18880_s0 + $0x110] sm:$0xff]  ;;  %v8786_v1 = vld [vmem:[%s18880_s0 + $0x118] sm:$0xff]  ;;  %v18430_v9 = vadd.f32 %v18066_v21, %v8771_v12  ;;  %v18433_v60 = vadd.f32 %v18070_v8, %v8772_v27  ;;  %v18436_v26 = vadd.f32 %v18074_v4, %v8773_v35  ;;  %v18439_v62 = vadd.f32 %v18078_v19, %v8774_v61 }
 0xe87   :  { %v8787_v36 = vld [vmem:[%s18880_s0 + $0x120] sm:$0xff]  ;;  %v8788_v58 = vld [vmem:[%s18880_s0 + $0x128] sm:$0xff]  ;;  %v8789_v51 = vld [vmem:[%s18880_s0 + $0x130] sm:$0xff]  ;;  %v18451_v8 = vadd.f32 %v18082_v15, %v8775_v49  ;;  %v18454_v4 = vadd.f32 %v18086_v17, %v8776_v31  ;;  %v18457_v19 = vadd.f32 %v18090_v38, %v8777_v25  ;;  %v18460_v12 = vadd.f32 %v18094_v20, %v8778_v59 }
 0xe88   :  { %v8790_v7 = vld [vmem:[%s18880_s0 + $0x138] sm:$0xff]  ;;  %v8791_v11 = vld [vmem:[%s18880_s0 + $0x140] sm:$0xff]  ;;  %v8792_v37 = vld [vmem:[%s18880_s0 + $0x148] sm:$0xff]  ;;  %v18472_v17 = vadd.f32 %v18098_v45, %v8779_v44  ;;  %v18475_v38 = vadd.f32 %v18102_v55, %v8780_v16  ;;  %v18478_v20 = vadd.f32 %v18106_v5, %v8781_v3  ;;  %v18481_v49 = vadd.f32 %v18110_v40, %v8782_v43 }
 0xe89   :  { %v8793_v22 = vld [vmem:[%s18880_s0 + $0x150] sm:$0xff]  ;;  %v8794_v57 = vld [vmem:[%s18880_s0 + $0x158] sm:$0xff]  ;;  %v8795_v14 = vld [vmem:[%s18880_s0 + $0x160] sm:$0xff]  ;;  %v18493_v55 = vadd.f32 %v18114_v10, %v8783_v29  ;;  %v18496_v5 = vadd.f32 %v18118_v33, %v8784_v28 }
 0xe8a   :  { %v8796_v21 = vld [vmem:[%s18880_s0 + $0x168] sm:$0xff]  ;;  %v8797_v30 = vld [vmem:[%s18880_s0 + $0x170] sm:$0xff]  ;;  %v8798_v27 = vld [vmem:[%s18880_s0 + $0x178] sm:$0xff] }
 0xe8b   :  { %v8799_v15 = vld [vmem:[%s18880_s0 + $0x180] sm:$0xff]  ;;  %v8800_v31 = vld [vmem:[%s18880_s0 + $0x188] sm:$0xff]  ;;  %v8801_v35 = vld [vmem:[%s18880_s0 + $0x190] sm:$0xff] }
 0xe8c   :  { %v8802_v45 = vld [vmem:[%s18880_s0 + $0x198] sm:$0xff]  ;;  %v20070_v40 = vld [vmem:[#allocation153_spill] sm:$0xff]  ;;  %v20072_v25 = vld [vmem:[#allocation43_spill] sm:$0xff] }
 0xe8d   :  { %v18499_v61 = vadd.f32 %v20070_v40, %v8785_v46  ;;  %v18502_v59 = vadd.f32 %v20072_v25, %v8786_v1  ;;  %v8803_v44 = vld [vmem:[%s18880_s0 + $0x1a0] sm:$0xff]  ;;  %v8804_v16 = vld [vmem:[%s18880_s0 + $0x1a8] sm:$0xff]  ;;  %v8805_v10 = vld [vmem:[%s18880_s0 + $0x1b0] sm:$0xff] }
 0xe8e   :  { %v20074_v33 = vld [vmem:[#allocation8_spill] sm:$0xff]  ;;  %v20076_v43 = vld [vmem:[#allocation154_spill] sm:$0xff] }
 0xe8f   :  { %20071 = vst [vmem:[#allocation56_spill] sm:$0xff] %v18499_v61  ;;  %20073 = vst [vmem:[#allocation112_spill] sm:$0xff] %v18502_v59  ;;  %v18514_v3 = vadd.f32 %v20074_v33, %v8787_v36  ;;  %v18517_v29 = vadd.f32 %v20076_v43, %v8788_v58  ;;  %v20078_v28 = vld [vmem:[#allocation44_spill] sm:$0xff]  ;;  %v8806_v25 = vld [vmem:[%s18880_s0 + $0x1b8] sm:$0xff] }
 0xe90   :  { %v18520_v46 = vadd.f32 %v20078_v28, %v8789_v51  ;;  %v20080_v1 = vld [vmem:[#allocation100_spill] sm:$0xff]  ;;  %v8807_v59 = vld [vmem:[%s18880_s0 + $0x1c0] sm:$0xff]  ;;  %v20082_v58 = vld [vmem:[#allocation10_spill] sm:$0xff] }
 0xe91   :  { %20075 = vst [vmem:[#allocation113_spill] sm:$0xff] %v18514_v3  ;;  %20077 = vst [vmem:[#allocation57_spill] sm:$0xff] %v18517_v29  ;;  %v18523_v40 = vadd.f32 %v20080_v1, %v8790_v7  ;;  %v8808_v36 = vld [vmem:[%s18880_s0 + $0x1c8] sm:$0xff]  ;;  %v18535_v33 = vadd.f32 %v20082_v58, %v8791_v11  ;;  %v20084_v51 = vld [vmem:[#allocation63_spill] sm:$0xff] }
 0xe92   :  { %20079 = vst [vmem:[#allocation58_spill] sm:$0xff] %v18520_v46  ;;  %v18538_v43 = vadd.f32 %v20084_v51, %v8792_v37  ;;  %v20086_v7 = vld [vmem:[#allocation101_spill] sm:$0xff]  ;;  %v8810_v29 = vld [vmem:[%s18880_s0 + $0x1d8] sm:$0xff]  ;;  %v8811_v11 = vld [vmem:[%s18880_s0 + $0x1e0] sm:$0xff] }
 0xe93   :  { %20081 = vst [vmem:[#allocation114_spill] sm:$0xff] %v18523_v40  ;;  %20083 = vst [vmem:[#allocation115_spill] sm:$0xff] %v18535_v33  ;;  %v18541_v28 = vadd.f32 %v20086_v7, %v8793_v22  ;;  %v20088_v1 = vld [vmem:[#allocation45_spill] sm:$0xff]  ;;  %v20090_v37 = vld [vmem:[#allocation46_spill] sm:$0xff] }
 0xe94   :  { %20085 = vst [vmem:[#allocation59_spill] sm:$0xff] %v18538_v43  ;;  %v18544_v40 = vadd.f32 %v20088_v1, %v8794_v57  ;;  %v8809_v46 = vld [vmem:[%s18880_s0 + $0x1d0] sm:$0xff]  ;;  %v18556_v58 = vadd.f32 %v20090_v37, %v8795_v14  ;;  %v20092_v22 = vld [vmem:[#allocation102_spill] sm:$0xff]  ;;  %v20094_v57 = vld [vmem:[#allocation103_spill] sm:$0xff] }
 0xe95   :  { %20087 = vst [vmem:[#allocation60_spill] sm:$0xff] %v18541_v28  ;;  %v18559_v51 = vadd.f32 %v20092_v22, %v8796_v21  ;;  %v18562_v7 = vadd.f32 %v20094_v57, %v8797_v30  ;;  %v20096_v1 = vld [vmem:[#allocation47_spill] sm:$0xff]  ;;  %v8812_v28 = vld [vmem:[%s18880_s0 + $0x1e8] sm:$0xff]  ;;  %v8813_v43 = vld [vmem:[%s18880_s0 + $0x1f0] sm:$0xff] }
 0xe96   :  { %20089 = vst [vmem:[#allocation116_spill] sm:$0xff] %v18544_v40  ;;  %20091 = vst [vmem:[#allocation117_spill] sm:$0xff] %v18556_v58  ;;  %v18565_v40 = vadd.f32 %v20096_v1, %v8798_v27  ;;  %v8814_v14 = vld [vmem:[%s18880_s0 + $0x1f8] sm:$0xff]  ;;  %v20098_v21 = vld [vmem:[#allocation48_spill] sm:$0xff] }
 0xe97   :  { %20093 = vst [vmem:[#allocation61_spill] sm:$0xff] %v18559_v51  ;;  %20095 = vst [vmem:[#allocation62_spill] sm:$0xff] %v18562_v7  ;;  %v18577_v37 = vadd.f32 %v20098_v21, %v8799_v15  ;;  %v20099_v30 = vld [vmem:[#allocation104_spill] sm:$0xff]  ;;  %v20100_v27 = vld [vmem:[#allocation105_spill] sm:$0xff] }
 0xe98   :  { %20097 = vst [vmem:[#allocation118_spill] sm:$0xff] %v18565_v40  ;;  %v18580_v22 = vadd.f32 %v20099_v30, %v8800_v31  ;;  %v18583_v57 = vadd.f32 %v20100_v27, %v8801_v35  ;;  %v20101_v1 = vld [vmem:[#allocation49_spill] sm:$0xff]  ;;  %v20102_v7 = vld [vmem:[#allocation50_spill] sm:$0xff]  ;;  %v20104_v3 = vld [vmem:[#allocation107_spill] sm:$0xff] }
 0xe99   :  { %v18586_v40 = vadd.f32 %v20101_v1, %v8802_v45  ;;  %v18589_v51 = vadd.f32 %v20102_v7, %v8803_v44  ;;  %v20103_v58 = vld [vmem:[#allocation106_spill] sm:$0xff]  ;;  %v18595_v61 = vadd.f32 %v20104_v3, %v8805_v10  ;;  %v20105_v15 = vld [vmem:[#allocation51_spill] sm:$0xff]  ;;  %v20106_v31 = vld [vmem:[#allocation52_spill] sm:$0xff] }
 0xe9a   :  { %v18592_v33 = vadd.f32 %v20103_v58, %v8804_v16  ;;  %v18598_v21 = vadd.f32 %v20105_v15, %v8806_v25  ;;  %v18601_v30 = vadd.f32 %v20106_v31, %v8807_v59  ;;  %v20107_v35 = vld [vmem:[#allocation108_spill] sm:$0xff]  ;;  %v20108_v45 = vld [vmem:[#allocation109_spill] sm:$0xff]  ;;  %v20110_v16 = vld [vmem:[#allocation54_spill] sm:$0xff] }
 0xe9b   :  { %v18604_v27 = vadd.f32 %v20107_v35, %v8808_v36  ;;  %v18607_v1 = vadd.f32 %v20108_v45, %v8809_v46  ;;  %v20109_v44 = vld [vmem:[#allocation53_spill] sm:$0xff]  ;;  %v18613_v58 = vadd.f32 %v20110_v16, %v8811_v11  ;;  %v20111_v10 = vld [vmem:[#allocation110_spill] sm:$0xff]  ;;  %v20112_v25 = vld [vmem:[#allocation111_spill] sm:$0xff]  ;;  %v9019_v36 = vmax.f32 %v18313_v56, 0.0 }
 0xe9c   :  { %v18610_v7 = vadd.f32 %v20109_v44, %v8810_v29  ;;  %v18616_v3 = vadd.f32 %v20111_v10, %v8812_v28  ;;  %v18619_v15 = vadd.f32 %v20112_v25, %v8813_v43  ;;  %v20113_v59 = vld [vmem:[#allocation55_spill] sm:$0xff]  ;;  %v9020_v46 = vmax.f32 %v18316_v23, 0.0  ;;  %v20119_v16 = vld [vmem:[#allocation114_spill] sm:$0xff] }
 0xe9d   :  { %v18622_v31 = vadd.f32 %v20113_v59, %v8814_v14  ;;  %v9021_v35 = vmax.f32 %v18319_v24, 0.0  ;;  %v9022_v29 = vmax.f32 %v18322_v52, 0.0  ;;  %v9023_v11 = vmax.f32 %v18337_v18, 0.0  ;;  %9083 = vst [vmem:[%s18889_s9] sm:$0xff] %v9019_v36  ;;  %v20120_v25 = vld [vmem:[#allocation115_spill] sm:$0xff] }
 0xe9e   :  { %v9024_v45 = vmax.f32 %v18340_v63, 0.0  ;;  %v9025_v28 = vmax.f32 %v18343_v2, 0.0  ;;  %v9026_v43 = vmax.f32 %v18346_v6, 0.0  ;;  %v9027_v44 = vmax.f32 %v18361_v53, 0.0  ;;  %9084 = vst [vmem:[%s18889_s9 + $0x8] sm:$0xff] %v9020_v46  ;;  %v20121_v36 = vld [vmem:[#allocation59_spill] sm:$0xff] }
 0xe9f   :  { %v9028_v14 = vmax.f32 %v18364_v42, 0.0  ;;  %v9029_v56 = vmax.f32 %v18367_v34, 0.0  ;;  %v9030_v23 = vmax.f32 %v18370_v41, 0.0  ;;  %9085 = vst [vmem:[%s18889_s9 + $0x10] sm:$0xff] %v9021_v35  ;;  %9086 = vst [vmem:[%s18889_s9 + $0x18] sm:$0xff] %v9022_v29  ;;  %v9031_v52 = vmax.f32 %v18385_v50, 0.0 }
 0xea0   :  { %v9032_v24 = vmax.f32 %v18388_v0, 0.0  ;;  %v9033_v18 = vmax.f32 %v18391_v39, 0.0  ;;  %v9034_v63 = vmax.f32 %v18394_v54, 0.0  ;;  %9087 = vst [vmem:[%s18889_s9 + $0x20] sm:$0xff] %v9023_v11  ;;  %9088 = vst [vmem:[%s18889_s9 + $0x28] sm:$0xff] %v9024_v45  ;;  %v9035_v2 = vmax.f32 %v18409_v13, 0.0 }
 0xea1   :  { %9089 = vst [vmem:[%s18889_s9 + $0x30] sm:$0xff] %v9025_v28  ;;  %9090 = vst [vmem:[%s18889_s9 + $0x38] sm:$0xff] %v9026_v43  ;;  %v9036_v6 = vmax.f32 %v18412_v47, 0.0  ;;  %v9037_v53 = vmax.f32 %v18415_v48, 0.0  ;;  %v9038_v42 = vmax.f32 %v18418_v32, 0.0  ;;  %v9039_v34 = vmax.f32 %v18430_v9, 0.0 }
 0xea2   :  { %9091 = vst [vmem:[%s18889_s9 + $0x40] sm:$0xff] %v9027_v44  ;;  %9092 = vst [vmem:[%s18889_s9 + $0x48] sm:$0xff] %v9028_v14  ;;  %v9040_v41 = vmax.f32 %v18433_v60, 0.0  ;;  %v9041_v50 = vmax.f32 %v18436_v26, 0.0  ;;  %v9042_v0 = vmax.f32 %v18439_v62, 0.0  ;;  %v9043_v39 = vmax.f32 %v18451_v8, 0.0 }
 0xea3   :  { %9093 = vst [vmem:[%s18889_s9 + $0x50] sm:$0xff] %v9029_v56  ;;  %9094 = vst [vmem:[%s18889_s9 + $0x58] sm:$0xff] %v9030_v23  ;;  %v9044_v54 = vmax.f32 %v18454_v4, 0.0  ;;  %v9045_v13 = vmax.f32 %v18457_v19, 0.0  ;;  %v9046_v47 = vmax.f32 %v18460_v12, 0.0  ;;  %v9047_v48 = vmax.f32 %v18472_v17, 0.0 }
 0xea4   :  { %9095 = vst [vmem:[%s18889_s9 + $0x60] sm:$0xff] %v9031_v52  ;;  %9096 = vst [vmem:[%s18889_s9 + $0x68] sm:$0xff] %v9032_v24  ;;  %v9048_v32 = vmax.f32 %v18475_v38, 0.0  ;;  %v9049_v9 = vmax.f32 %v18478_v20, 0.0  ;;  %v9050_v60 = vmax.f32 %v18481_v49, 0.0  ;;  %v9051_v26 = vmax.f32 %v18493_v55, 0.0 }
 0xea5   :  { %9097 = vst [vmem:[%s18889_s9 + $0x70] sm:$0xff] %v9033_v18  ;;  %9098 = vst [vmem:[%s18889_s9 + $0x78] sm:$0xff] %v9034_v63  ;;  %v9052_v62 = vmax.f32 %v18496_v5, 0.0  ;;  %v20114_v8 = vld [vmem:[#allocation56_spill] sm:$0xff]  ;;  %v20116_v17 = vld [vmem:[#allocation113_spill] sm:$0xff]  ;;  %v9058_v10 = vmax.f32 %v20119_v16, 0.0 }
 0xea6   :  { %9099 = vst [vmem:[%s18889_s9 + $0x80] sm:$0xff] %v9035_v2  ;;  %9100 = vst [vmem:[%s18889_s9 + $0x88] sm:$0xff] %v9036_v6  ;;  %v9053_v4 = vmax.f32 %v20114_v8, 0.0  ;;  %v20115_v19 = vld [vmem:[#allocation112_spill] sm:$0xff]  ;;  %v9055_v38 = vmax.f32 %v20116_v17, 0.0  ;;  %v20117_v20 = vld [vmem:[#allocation57_spill] sm:$0xff] }
 0xea7   :  { %9101 = vst [vmem:[%s18889_s9 + $0x90] sm:$0xff] %v9037_v53  ;;  %9102 = vst [vmem:[%s18889_s9 + $0x98] sm:$0xff] %v9038_v42  ;;  %v9054_v12 = vmax.f32 %v20115_v19, 0.0  ;;  %v9056_v49 = vmax.f32 %v20117_v20, 0.0  ;;  %v20118_v55 = vld [vmem:[#allocation58_spill] sm:$0xff]  ;;  %v9059_v59 = vmax.f32 %v20120_v25, 0.0 }
 0xea8   :  { %9103 = vst [vmem:[%s18889_s9 + $0xa0] sm:$0xff] %v9039_v34  ;;  %9104 = vst [vmem:[%s18889_s9 + $0xa8] sm:$0xff] %v9040_v41  ;;  %v9057_v5 = vmax.f32 %v20118_v55, 0.0  ;;  %v9060_v46 = vmax.f32 %v20121_v36, 0.0  ;;  %v20122_v35 = vld [vmem:[#allocation60_spill] sm:$0xff]  ;;  %v20124_v28 = vld [vmem:[#allocation117_spill] sm:$0xff] }
 0xea9   :  { %9105 = vst [vmem:[%s18889_s9 + $0xb0] sm:$0xff] %v9041_v50  ;;  %9106 = vst [vmem:[%s18889_s9 + $0xb8] sm:$0xff] %v9042_v0  ;;  %v9061_v29 = vmax.f32 %v20122_v35, 0.0  ;;  %v20123_v11 = vld [vmem:[#allocation116_spill] sm:$0xff]  ;;  %v9063_v43 = vmax.f32 %v20124_v28, 0.0  ;;  %v20125_v44 = vld [vmem:[#allocation61_spill] sm:$0xff] }
 0xeaa   :  { %9107 = vst [vmem:[%s18889_s9 + $0xc0] sm:$0xff] %v9043_v39  ;;  %9108 = vst [vmem:[%s18889_s9 + $0xc8] sm:$0xff] %v9044_v54  ;;  %v9062_v45 = vmax.f32 %v20123_v11, 0.0  ;;  %v9064_v14 = vmax.f32 %v20125_v44, 0.0  ;;  %v20126_v56 = vld [vmem:[#allocation62_spill] sm:$0xff]  ;;  %v9067_v18 = vmax.f32 %v18577_v37, 0.0 }
 0xeab   :  { %9109 = vst [vmem:[%s18889_s9 + $0xd0] sm:$0xff] %v9045_v13  ;;  %9110 = vst [vmem:[%s18889_s9 + $0xd8] sm:$0xff] %v9046_v47  ;;  %v9065_v23 = vmax.f32 %v20126_v56, 0.0  ;;  %v20127_v52 = vld [vmem:[#allocation118_spill] sm:$0xff]  ;;  %v9068_v63 = vmax.f32 %v18580_v22, 0.0  ;;  %v9069_v2 = vmax.f32 %v18583_v57, 0.0 }
 0xeac   :  { %9111 = vst [vmem:[%s18889_s9 + $0xe0] sm:$0xff] %v9047_v48  ;;  %9112 = vst [vmem:[%s18889_s9 + $0xe8] sm:$0xff] %v9048_v32  ;;  %v9066_v24 = vmax.f32 %v20127_v52, 0.0  ;;  %v9070_v6 = vmax.f32 %v18586_v40, 0.0  ;;  %v9071_v37 = vmax.f32 %v18589_v51, 0.0  ;;  %v9072_v40 = vmax.f32 %v18592_v33, 0.0 }
 0xead   :  { %9113 = vst [vmem:[%s18889_s9 + $0xf0] sm:$0xff] %v9049_v9  ;;  %9114 = vst [vmem:[%s18889_s9 + $0xf8] sm:$0xff] %v9050_v60  ;;  %v9073_v22 = vmax.f32 %v18595_v61, 0.0  ;;  %v9074_v57 = vmax.f32 %v18598_v21, 0.0  ;;  %v9075_v61 = vmax.f32 %v18601_v30, 0.0  ;;  %v9076_v33 = vmax.f32 %v18604_v27, 0.0 }
 0xeae   :  { %9115 = vst [vmem:[%s18889_s9 + $0x100] sm:$0xff] %v9051_v26  ;;  %9116 = vst [vmem:[%s18889_s9 + $0x108] sm:$0xff] %v9052_v62  ;;  %v9077_v51 = vmax.f32 %v18607_v1, 0.0  ;;  %v9078_v21 = vmax.f32 %v18610_v7, 0.0  ;;  %v9079_v30 = vmax.f32 %v18613_v58, 0.0  ;;  %v9080_v27 = vmax.f32 %v18616_v3, 0.0 }
 0xeaf   :  { %9117 = vst [vmem:[%s18889_s9 + $0x110] sm:$0xff] %v9053_v4  ;;  %9118 = vst [vmem:[%s18889_s9 + $0x118] sm:$0xff] %v9054_v12  ;;  %v9081_v1 = vmax.f32 %v18619_v15, 0.0  ;;  %v9082_v7 = vmax.f32 %v18622_v31, 0.0 }
 0xeb0   :  { %9119 = vst [vmem:[%s18889_s9 + $0x120] sm:$0xff] %v9055_v38  ;;  %9120 = vst [vmem:[%s18889_s9 + $0x128] sm:$0xff] %v9056_v49 }
 0xeb1   :  { %9121 = vst [vmem:[%s18889_s9 + $0x130] sm:$0xff] %v9057_v5  ;;  %9122 = vst [vmem:[%s18889_s9 + $0x138] sm:$0xff] %v9058_v10 }
 0xeb2   :  { %9123 = vst [vmem:[%s18889_s9 + $0x140] sm:$0xff] %v9059_v59  ;;  %9124 = vst [vmem:[%s18889_s9 + $0x148] sm:$0xff] %v9060_v46 }
 0xeb3   :  { %9125 = vst [vmem:[%s18889_s9 + $0x150] sm:$0xff] %v9061_v29  ;;  %9126 = vst [vmem:[%s18889_s9 + $0x158] sm:$0xff] %v9062_v45 }
 0xeb4   :  { %9127 = vst [vmem:[%s18889_s9 + $0x160] sm:$0xff] %v9063_v43  ;;  %9128 = vst [vmem:[%s18889_s9 + $0x168] sm:$0xff] %v9064_v14 }
 0xeb5   :  { %9129 = vst [vmem:[%s18889_s9 + $0x170] sm:$0xff] %v9065_v23  ;;  %9130 = vst [vmem:[%s18889_s9 + $0x178] sm:$0xff] %v9066_v24 }
 0xeb6   :  { %9131 = vst [vmem:[%s18889_s9 + $0x180] sm:$0xff] %v9067_v18  ;;  %9132 = vst [vmem:[%s18889_s9 + $0x188] sm:$0xff] %v9068_v63 }
 0xeb7   :  { %9133 = vst [vmem:[%s18889_s9 + $0x190] sm:$0xff] %v9069_v2  ;;  %9134 = vst [vmem:[%s18889_s9 + $0x198] sm:$0xff] %v9070_v6 }
 0xeb8   :  { %9135 = vst [vmem:[%s18889_s9 + $0x1a0] sm:$0xff] %v9071_v37  ;;  %9136 = vst [vmem:[%s18889_s9 + $0x1a8] sm:$0xff] %v9072_v40 }
 0xeb9   :  { %9137 = vst [vmem:[%s18889_s9 + $0x1b0] sm:$0xff] %v9073_v22  ;;  %9138 = vst [vmem:[%s18889_s9 + $0x1b8] sm:$0xff] %v9074_v57 }
 0xeba   :  { %9139 = vst [vmem:[%s18889_s9 + $0x1c0] sm:$0xff] %v9075_v61  ;;  %9140 = vst [vmem:[%s18889_s9 + $0x1c8] sm:$0xff] %v9076_v33 }
 0xebb   :  { %9141 = vst [vmem:[%s18889_s9 + $0x1d0] sm:$0xff] %v9077_v51  ;;  %9142 = vst [vmem:[%s18889_s9 + $0x1d8] sm:$0xff] %v9078_v21 }
 0xebc   :  { %9143 = vst [vmem:[%s18889_s9 + $0x1e0] sm:$0xff] %v9079_v30  ;;  %9144 = vst [vmem:[%s18889_s9 + $0x1e8] sm:$0xff] %v9080_v27 }
 0xebd   :  { %9145 = vst [vmem:[%s18889_s9 + $0x1f0] sm:$0xff] %v9081_v1  ;;  %9146 = vst [vmem:[%s18889_s9 + $0x1f8] sm:$0xff] %v9082_v7 }

</bundles_post_ra>
